<compile_context>
chip_gen: v6e
topology: v6e:2x2x1
jax: 0.10.0
libtpu: 0.0.40
codegen_flags: <defaults>
</compile_context>

<pallas_src>
import math

import jax
import jax.numpy as jnp
from jax.experimental import pallas as pl
from jax.experimental.pallas import tpu as pltpu


_VMEM = pl.BlockSpec(memory_space=pltpu.MemorySpace.VMEM)


def _leaky(z):
    return jnp.where(z >= 0, z, 0.01 * z)


# ----------------------- fused encoder kernel (1 call) -----------------------

def _make_encoder_kernel(num_layers, T, B, H):
    """Stacked LSTM encoder with zero initial state.  All layers and timesteps
    run inside one kernel; recurrent state stays in registers (static unroll).
    Only mean-over-layers of the final (h, c) is written out."""

    def kernel(*refs):
        x_ref = refs[0]                                   # (B, T, F) f32
        layer_refs = refs[1:1 + 3 * num_layers]
        hmean_ref, cmean_ref = refs[1 + 3 * num_layers:]

        # layer-0 inputs read straight from the (B, T, F) block (static slices)
        seq = [x_ref[:, t, :] for t in range(T)]          # T x (B, Din) f32
        h_sum = jnp.zeros((B, H), jnp.float32)
        c_sum = jnp.zeros((B, H), jnp.float32)

        for l in range(num_layers):
            w_ih = layer_refs[3 * l + 0][...]             # (Din, 4H) bf16, gates i|f|o|g
            w_hh = layer_refs[3 * l + 1][...]             # (H,   4H) bf16
            b    = layer_refs[3 * l + 2][...]             # (1,   4H) f32 (b_ih + b_hh)

            # Hoisted input projection: ONE matmul for all T timesteps.
            xcat = jnp.concatenate(seq, axis=0).astype(jnp.bfloat16)        # (T*B, Din)
            xproj = jnp.dot(xcat, w_ih,
                            preferred_element_type=jnp.float32) + b         # (T*B, 4H)

            h = jnp.zeros((B, H), jnp.float32)
            c = jnp.zeros((B, H), jnp.float32)
            new_seq = []
            for t in range(T):                            # T static: unroll
                pre = xproj[t * B:(t + 1) * B, :] + jnp.dot(
                    h.astype(jnp.bfloat16), w_hh,
                    preferred_element_type=jnp.float32)   # (B, 4H), gates i|f|o|g
                sig = jax.nn.sigmoid(pre[:, :3 * H])      # i, f, o in one EUP pass
                g_g = jnp.tanh(pre[:, 3 * H:])            # g
                i_g = sig[:, :H]
                f_g = sig[:, H:2 * H]
                o_g = sig[:, 2 * H:3 * H]
                c = f_g * c + i_g * g_g
                h = o_g * jnp.tanh(c)
                new_seq.append(h)
            seq = new_seq
            h_sum = h_sum + h
            c_sum = c_sum + c

        inv = 1.0 / float(num_layers)
        hmean_ref[...] = h_sum * inv                      # torch.mean(h_n, 0)
        cmean_ref[...] = c_sum * inv                      # torch.mean(c_n, 0)

    return kernel


def encoder_forward(x_btf, enc_prep, H):
    B, T, _ = x_btf.shape
    num_layers = len(enc_prep)
    args = [x_btf]
    for lp in enc_prep:
        args += [lp["w_ih"], lp["w_hh"], lp["b"]]
    return pl.pallas_call(
        _make_encoder_kernel(num_layers, T, B, H),
        out_shape=(jax.ShapeDtypeStruct((B, H), jnp.float32),
                   jax.ShapeDtypeStruct((B, H), jnp.float32)),
        in_specs=[_VMEM] * len(args),
        out_specs=(_VMEM, _VMEM),
    )(*args)


# ----------------------- fused decoder kernel (1 call) -----------------------

def _make_decoder_kernel(T_out, B, H, F, T_in):
    """All F LSTMAttention_Decoders lane-packed (F*H lanes) into one kernel;
    all output_seq_len autoregressive steps run inside with state in registers.

    Per-decoder attention replicates PyTorch nn.MultiheadAttention defaults
    (batch_first=False) on a (B, 1, H) tensor: it mixes across the batch axis,
    q == k == v == LeakyReLU(fc1(lstm_out))."""
    FH = F * H
    scale = 1.0 / math.sqrt(H)

    def kernel(x_ref, h0_ref, c0_ref,
               whh_ref, wih_ref, bl_ref,
               fc1w_ref, fc1b_ref,
               winp_ref, binp_ref, wout_ref, bout_ref,
               fc2w_ref, fc2b_ref,
               out_ref):
        whh = whh_ref[...]                                # (FH, 4FH) bf16, block-diag
        wih = wih_ref[...]                                # (F,  4FH) bf16
        bl = bl_ref[...]                                  # (1,  4FH) f32
        fc1w = fc1w_ref[...]                              # (FH, FH)  bf16, block-diag
        fc1b = fc1b_ref[...]                              # (1,  FH)  f32
        winp = winp_ref[...]                              # (FH, 3FH) bf16, block-diag
        binp = binp_ref[...]                              # (1,  3FH) f32
        wout = wout_ref[...]                              # (FH, FH)  bf16, block-diag
        bout = bout_ref[...]                              # (1,  FH)  f32
        fc2w = fc2w_ref[...]                              # (F,  H)   f32
        fc2b = fc2b_ref[...]                              # (1,  F)   f32

        x = x_ref[:, T_in - 1, :]                         # (B, F): last input step
        h0 = h0_ref[...]                                  # (B, H) shared encoder mean
        c0 = c0_ref[...]
        h = jnp.concatenate([h0] * F, axis=-1)            # (B, FH) packed per-decoder state
        c = jnp.concatenate([c0] * F, axis=-1)

        outs = []
        for t in range(T_out):                            # T_out static: unroll
            # --- packed LSTM cell: one 128-wide h-matmul + tiny x-matmul ---
            pre = (jnp.dot(h.astype(jnp.bfloat16), whh,
                           preferred_element_type=jnp.float32)
                   + jnp.dot(x.astype(jnp.bfloat16), wih,
                             preferred_element_type=jnp.float32)
                   + bl)                                  # (B, 4FH), gate blocks i|f|o|g
            sig = jax.nn.sigmoid(pre[:, :3 * FH])
            g_all = jnp.tanh(pre[:, 3 * FH:])
            i_all = sig[:, :FH]
            f_all = sig[:, FH:2 * FH]
            o_all = sig[:, 2 * FH:3 * FH]
            c = f_all * c + i_all * g_all
            h = o_all * jnp.tanh(c)

            # --- q = k = v = LeakyReLU(fc1(lstm_out)), all decoders at once ---
            q = _leaky(jnp.dot(h.astype(jnp.bfloat16), fc1w,
                               preferred_element_type=jnp.float32) + fc1b)   # (B, FH)

            # --- fused QKV projection: one (B, FH) x (FH, 3FH) matmul ---
            qkv = jnp.dot(q.astype(jnp.bfloat16), winp,
                          preferred_element_type=jnp.float32) + binp         # (B, 3FH)
            Q = qkv[:, :FH]
            K = qkv[:, FH:2 * FH]
            V = qkv[:, 2 * FH:]

            # --- per-decoder attention over the batch axis (VPU/XLU path) ---
            attn_parts = []
            for f in range(F):
                Qf = Q[:, f * H:(f + 1) * H]
                Kf = K[:, f * H:(f + 1) * H]
                Vf = V[:, f * H:(f + 1) * H]
                cols = [jnp.sum(Qf * Kf[b:b + 1, :], axis=-1, keepdims=True)
                        for b in range(B)]                 # B x (B, 1)
                scores = jnp.concatenate(cols, axis=-1) * scale              # (B, B)
                m = jnp.max(scores, axis=-1, keepdims=True)
                p = jnp.exp(scores - m)
                w = p * pl.reciprocal(jnp.sum(p, axis=-1, keepdims=True),
                                      approx=True)
                attn_f = w[:, 0:1] * Vf[0:1, :]
                for b in range(1, B):
                    attn_f = attn_f + w[:, b:b + 1] * Vf[b:b + 1, :]          # (B, H)
                attn_parts.append(attn_f)
            attn_cat = jnp.concatenate(attn_parts, axis=-1)                   # (B, FH)

            # --- attention out_proj (block-diagonal, one matmul) ---
            attn_out = jnp.dot(attn_cat.astype(jnp.bfloat16), wout,
                               preferred_element_type=jnp.float32) + bout     # (B, FH)

            # --- fc2: H -> 1 per decoder as lane reductions (off the MXU) ---
            red = [jnp.sum(attn_out[:, f * H:(f + 1) * H] * fc2w[f:f + 1, :],
                           axis=-1, keepdims=True) for f in range(F)]         # F x (B, 1)
            out_t = _leaky(jnp.concatenate(red, axis=-1) + fc2b)              # (B, F)
            outs.append(out_t)
            x = out_t                                     # autoregressive feedback

        # single store of all steps (no per-step masked partial stores)
        out_ref[...] = jnp.concatenate(outs, axis=-1)     # (B, T_out*F)

    return kernel


def decoder_forward(x_btf, h0, c0, dp, T_out, H, F):
    B, T, _ = x_btf.shape
    args = [x_btf, h0, c0,
            dp["whh"], dp["wih"], dp["bl"],
            dp["fc1w"], dp["fc1b"],
            dp["winp"], dp["binp"], dp["wout"], dp["bout"],
            dp["fc2w"], dp["fc2b"]]
    return pl.pallas_call(
        _make_decoder_kernel(T_out, B, H, F, T),
        out_shape=jax.ShapeDtypeStruct((B, T_out * F), jnp.float32),
        in_specs=[_VMEM] * len(args),
        out_specs=_VMEM,
    )(*args)


# ---------------------------- model forward ---------------------------------

def multi_task_lstm_forward(x, enc_prep, dec_prep, output_seq_len, output_size):
    """x: (B, T, F) -> outputs: (B, output_seq_len, output_size)."""
    B, _, F = x.shape
    H = enc_prep[0]["w_hh"].shape[0]

    hidden, cell = encoder_forward(x, enc_prep, H)          # (B, H) mean over layers
    flat = decoder_forward(x, hidden, cell, dec_prep,
                           output_seq_len, H, F)            # (B, T_out*F)
    out = flat.reshape(B, output_seq_len, F)                # bitcast reshape
    if output_size > F:                                     # PyTorch zeros-filled buffer
        out = jnp.pad(out, ((0, 0), (0, 0), (0, output_size - F)))
    return out


# ------------------------------ init helpers --------------------------------

def _uniform(key, shape, scale):
    return jax.random.uniform(key, shape, jnp.float32, -scale, scale)


def init_params(key, input_size, hidden_size, num_layers):
    F, H = input_size, hidden_size
    k_lstm = 1.0 / math.sqrt(H)
    keys = iter(jax.random.split(key, 8 * num_layers + 20 * F))

    enc_params = []
    for layer in range(num_layers):
        d_in = F if layer == 0 else H
        enc_params.append({
            # stored (in, out); gate order (i, f, g, o) like PyTorch
            "w_ih": _uniform(next(keys), (d_in, 4 * H), k_lstm),
            "w_hh": _uniform(next(keys), (H, 4 * H), k_lstm),
            "b": _uniform(next(keys), (1, 4 * H), k_lstm),     # b_ih + b_hh combined
        })

    dec_params = []
    xavier = math.sqrt(6.0 / (H + 3 * H))
    for _ in range(F):
        dec_params.append({
            # LSTM(1 -> H), 1 layer
            "w_ih": _uniform(next(keys), (1, 4 * H), k_lstm),
            "w_hh": _uniform(next(keys), (H, 4 * H), k_lstm),
            "b_lstm": _uniform(next(keys), (1, 4 * H), k_lstm),
            # fc1: H -> H
            "fc1_w": _uniform(next(keys), (H, H), k_lstm),
            "fc1_b": _uniform(next(keys), (1, H), k_lstm),
            # MultiheadAttention in_proj (packed q|k|v) and out_proj
            "w_inp": _uniform(next(keys), (H, 3 * H), xavier),
            "b_inp": jnp.zeros((1, 3 * H), jnp.float32),
            "w_out": _uniform(next(keys), (H, H), k_lstm),
            "b_out": jnp.zeros((1, H), jnp.float32),
            # fc2: H -> 1 (stored as a (1, H) row)
            "fc2_w": _uniform(next(keys), (1, H), k_lstm),
            "fc2_b": _uniform(next(keys), (1, 1), k_lstm),
        })
    return enc_params, dec_params


# ------------------ re-layout params into kernel format ----------------------

def _reorder_gates_ifog(w, H):
    """Reorder last-axis gate blocks from PyTorch (i, f, g, o) to (i, f, o, g)
    so sigmoid / tanh each cover one contiguous lane slice."""
    i = w[..., 0 * H:1 * H]
    f = w[..., 1 * H:2 * H]
    g = w[..., 2 * H:3 * H]
    o = w[..., 3 * H:4 * H]
    return jnp.concatenate([i, f, o, g], axis=-1)


def prepare_encoder_params(enc_params, H):
    prep = []
    for lp in enc_params:
        prep.append({
            "w_ih": _reorder_gates_ifog(lp["w_ih"], H).astype(jnp.bfloat16),
            "w_hh": _reorder_gates_ifog(lp["w_hh"], H).astype(jnp.bfloat16),
            "b": _reorder_gates_ifog(lp["b"], H),
        })
    return prep


def prepare_decoder_params(dec_params, H):
    """Lane-pack the F decoders: block-diagonal weights so every projection is a
    single (F*H)-wide matmul.  Packed column layout keeps decoder f at lanes
    [f*H, (f+1)*H) inside every H-sized block; LSTM gate blocks are laid out
    i|f|o|g at F*H granularity so gate slices align with the packed h/c state."""
    F = len(dec_params)
    FH = F * H

    whh_bd = jnp.zeros((FH, 4 * FH), jnp.float32)
    wih_pk = jnp.zeros((F, 4 * FH), jnp.float32)
    bl_pk = jnp.zeros((1, 4 * FH), jnp.float32)
    fc1w_bd = jnp.zeros((FH, FH), jnp.float32)
    fc1b_pk = jnp.zeros((1, FH), jnp.float32)
    winp_bd = jnp.zeros((FH, 3 * FH), jnp.float32)
    binp_pk = jnp.zeros((1, 3 * FH), jnp.float32)
    wout_bd = jnp.zeros((FH, FH), jnp.float32)
    bout_pk = jnp.zeros((1, FH), jnp.float32)
    fc2w_pk = jnp.zeros((F, H), jnp.float32)
    fc2b_pk = jnp.zeros((1, F), jnp.float32)

    for f, p in enumerate(dec_params):
        rs = slice(f * H, (f + 1) * H)
        whh_r = _reorder_gates_ifog(p["w_hh"], H)      # (H, 4H)
        wih_r = _reorder_gates_ifog(p["w_ih"], H)      # (1, 4H)
        bl_r = _reorder_gates_ifog(p["b_lstm"], H)     # (1, 4H)
        for g in range(4):
            cs = slice(g * FH + f * H, g * FH + (f + 1) * H)
            whh_bd = whh_bd.at[rs, cs].set(whh_r[:, g * H:(g + 1) * H])
            wih_pk = wih_pk.at[f, cs].set(wih_r[0, g * H:(g + 1) * H])
            bl_pk = bl_pk.at[0, cs].set(bl_r[0, g * H:(g + 1) * H])
        fc1w_bd = fc1w_bd.at[rs, rs].set(p["fc1_w"])
        fc1b_pk = fc1b_pk.at[0, rs].set(p["fc1_b"][0])
        for k in range(3):                              # q | k | v blocks
            cs = slice(k * FH + f * H, k * FH + (f + 1) * H)
            winp_bd = winp_bd.at[rs, cs].set(p["w_inp"][:, k * H:(k + 1) * H])
            binp_pk = binp_pk.at[0, cs].set(p["b_inp"][0, k * H:(k + 1) * H])
        wout_bd = wout_bd.at[rs, rs].set(p["w_out"])
        bout_pk = bout_pk.at[0, rs].set(p["b_out"][0])
        fc2w_pk = fc2w_pk.at[f, :].set(p["fc2_w"][0])
        fc2b_pk = fc2b_pk.at[0, f].set(p["fc2_b"][0, 0])

    return {
        "whh": whh_bd.astype(jnp.bfloat16),
        "wih": wih_pk.astype(jnp.bfloat16),
        "bl": bl_pk,
        "fc1w": fc1w_bd.astype(jnp.bfloat16),
        "fc1b": fc1b_pk,
        "winp": winp_bd.astype(jnp.bfloat16),
        "binp": binp_pk,
        "wout": wout_bd.astype(jnp.bfloat16),
        "bout": bout_pk,
        "fc2w": fc2w_pk,
        "fc2b": fc2b_pk,
    }


# --------------------------------- main --------------------------------------

if __name__ == "__main__":
    B = 2              # batch
    INPUT_SEQ_LEN = 8
    OUTPUT_SEQ_LEN = 4
    NUM_LAYERS = 2
    INPUT_SIZE = 4     # number of features == number of decoders
    OUTPUT_SIZE = 4    # == INPUT_SIZE (decoders fill every output column)
    HIDDEN = 32        # INPUT_SIZE * HIDDEN = 128 -> one full lane group

    root = jax.random.PRNGKey(0)
    k_param, k_x = jax.random.split(root)
    enc_params, dec_params = init_params(k_param, INPUT_SIZE, HIDDEN, NUM_LAYERS)
    enc_prep = prepare_encoder_params(enc_params, HIDDEN)
    dec_prep = prepare_decoder_params(dec_params, HIDDEN)
    x = jax.random.normal(k_x, (B, INPUT_SEQ_LEN, INPUT_SIZE), jnp.float32)

    fwd = jax.jit(lambda xx: multi_task_lstm_forward(xx, enc_prep, dec_prep,
                                                     OUTPUT_SEQ_LEN, OUTPUT_SIZE))
    out = fwd(x)
    jax.block_until_ready(out)
    assert out.shape == (B, OUTPUT_SEQ_LEN, OUTPUT_SIZE)
    assert bool(jnp.all(jnp.isfinite(out)))
    print("KERNEL_OK")
</pallas_src>

<mosaic_0001>
module attributes {stable_mosaic.version = 11 : i64} {
  func.func @kernel(%arg0: memref<2x8x4xf32, #tpu.memory_space<vmem>>, %arg1: memref<4x128xbf16, #tpu.memory_space<vmem>>, %arg2: memref<32x128xbf16, #tpu.memory_space<vmem>>, %arg3: memref<1x128xf32, #tpu.memory_space<vmem>>, %arg4: memref<32x128xbf16, #tpu.memory_space<vmem>>, %arg5: memref<32x128xbf16, #tpu.memory_space<vmem>>, %arg6: memref<1x128xf32, #tpu.memory_space<vmem>>, %arg7: memref<2x32xf32, #tpu.memory_space<vmem>>, %arg8: memref<2x32xf32, #tpu.memory_space<vmem>>) attributes {dimension_semantics = [], scalar_prefetch = 0 : i64, scratch_operands = 0 : i64, tpu.core_type = #tpu.core_type<tc>} {
    %c0 = arith.constant 0 : index
    %c0_0 = arith.constant 0 : index
    %c0_1 = arith.constant 0 : index
    %0 = vector.load %arg0[%c0, %c0_0, %c0_1] : memref<2x8x4xf32, #tpu.memory_space<vmem>>, vector<2x1x4xf32>
    %1 = vector.shape_cast %0 : vector<2x1x4xf32> to vector<2x4xf32>
    %c0_2 = arith.constant 0 : index
    %c1 = arith.constant 1 : index
    %c0_3 = arith.constant 0 : index
    %2 = vector.load %arg0[%c0_2, %c1, %c0_3] : memref<2x8x4xf32, #tpu.memory_space<vmem>>, vector<2x1x4xf32>
    %3 = vector.shape_cast %2 : vector<2x1x4xf32> to vector<2x4xf32>
    %c0_4 = arith.constant 0 : index
    %c2 = arith.constant 2 : index
    %c0_5 = arith.constant 0 : index
    %4 = vector.load %arg0[%c0_4, %c2, %c0_5] : memref<2x8x4xf32, #tpu.memory_space<vmem>>, vector<2x1x4xf32>
    %5 = vector.shape_cast %4 : vector<2x1x4xf32> to vector<2x4xf32>
    %c0_6 = arith.constant 0 : index
    %c3 = arith.constant 3 : index
    %c0_7 = arith.constant 0 : index
    %6 = vector.load %arg0[%c0_6, %c3, %c0_7] : memref<2x8x4xf32, #tpu.memory_space<vmem>>, vector<2x1x4xf32>
    %7 = vector.shape_cast %6 : vector<2x1x4xf32> to vector<2x4xf32>
    %c0_8 = arith.constant 0 : index
    %c4 = arith.constant 4 : index
    %c0_9 = arith.constant 0 : index
    %8 = vector.load %arg0[%c0_8, %c4, %c0_9] : memref<2x8x4xf32, #tpu.memory_space<vmem>>, vector<2x1x4xf32>
    %9 = vector.shape_cast %8 : vector<2x1x4xf32> to vector<2x4xf32>
    %c0_10 = arith.constant 0 : index
    %c5 = arith.constant 5 : index
    %c0_11 = arith.constant 0 : index
    %10 = vector.load %arg0[%c0_10, %c5, %c0_11] : memref<2x8x4xf32, #tpu.memory_space<vmem>>, vector<2x1x4xf32>
    %11 = vector.shape_cast %10 : vector<2x1x4xf32> to vector<2x4xf32>
    %c0_12 = arith.constant 0 : index
    %c6 = arith.constant 6 : index
    %c0_13 = arith.constant 0 : index
    %12 = vector.load %arg0[%c0_12, %c6, %c0_13] : memref<2x8x4xf32, #tpu.memory_space<vmem>>, vector<2x1x4xf32>
    %13 = vector.shape_cast %12 : vector<2x1x4xf32> to vector<2x4xf32>
    %c0_14 = arith.constant 0 : index
    %c7 = arith.constant 7 : index
    %c0_15 = arith.constant 0 : index
    %14 = vector.load %arg0[%c0_14, %c7, %c0_15] : memref<2x8x4xf32, #tpu.memory_space<vmem>>, vector<2x1x4xf32>
    %15 = vector.shape_cast %14 : vector<2x1x4xf32> to vector<2x4xf32>
    %cst = arith.constant 0.000000e+00 : f32
    %16 = vector.broadcast %cst : f32 to vector<2x32xf32>
    %cst_16 = arith.constant 0.000000e+00 : f32
    %17 = vector.broadcast %cst_16 : f32 to vector<2x32xf32>
    %c0_17 = arith.constant 0 : index
    %c0_18 = arith.constant 0 : index
    %18 = vector.load %arg1[%c0_17, %c0_18] : memref<4x128xbf16, #tpu.memory_space<vmem>>, vector<4x128xbf16>
    %c0_19 = arith.constant 0 : index
    %c0_20 = arith.constant 0 : index
    %19 = vector.load %arg2[%c0_19, %c0_20] : memref<32x128xbf16, #tpu.memory_space<vmem>>, vector<32x128xbf16>
    %c0_21 = arith.constant 0 : index
    %c0_22 = arith.constant 0 : index
    %20 = vector.load %arg3[%c0_21, %c0_22] : memref<1x128xf32, #tpu.memory_space<vmem>>, vector<1x128xf32>
    %21 = tpu.concatenate %1, %3, %5, %7, %9, %11, %13, %15 in 0 : vector<2x4xf32>, vector<2x4xf32>, vector<2x4xf32>, vector<2x4xf32>, vector<2x4xf32>, vector<2x4xf32>, vector<2x4xf32>, vector<2x4xf32> -> vector<16x4xf32>
    %22 = arith.truncf %21 : vector<16x4xf32> to vector<16x4xbf16>
    %cst_23 = arith.constant dense<0.000000e+00> : vector<16x128xf32>
    %23 = tpu.matmul %22, %18, %cst_23 {dimension_numbers = #tpu.dot_dimension_numbers<[1], [0], [0], [1], [0, 0, 1, 1], [], []>} : vector<16x4xbf16>, vector<4x128xbf16>, vector<16x128xf32> -> vector<16x128xf32>
    %24 = vector.broadcast %20 : vector<1x128xf32> to vector<16x128xf32>
    %25 = arith.addf %23, %24 : vector<16x128xf32>
    %cst_24 = arith.constant 0.000000e+00 : f32
    %26 = vector.broadcast %cst_24 : f32 to vector<2x32xf32>
    %cst_25 = arith.constant 0.000000e+00 : f32
    %27 = vector.broadcast %cst_25 : f32 to vector<2x32xf32>
    %28 = vector.extract_strided_slice %25 {offsets = [0, 0], sizes = [2, 128], strides = [1, 1]} : vector<16x128xf32> to vector<2x128xf32>
    %29 = arith.truncf %26 : vector<2x32xf32> to vector<2x32xbf16>
    %cst_26 = arith.constant dense<0.000000e+00> : vector<2x128xf32>
    %30 = tpu.matmul %29, %19, %cst_26 {dimension_numbers = #tpu.dot_dimension_numbers<[1], [0], [0], [1], [0, 0, 1, 1], [], []>} : vector<2x32xbf16>, vector<32x128xbf16>, vector<2x128xf32> -> vector<2x128xf32>
    %31 = arith.addf %28, %30 : vector<2x128xf32>
    %32 = vector.extract_strided_slice %31 {offsets = [0, 0], sizes = [2, 96], strides = [1, 1]} : vector<2x128xf32> to vector<2x96xf32>
    %33 = arith.negf %32 : vector<2x96xf32>
    %34 = math.exp %33 : vector<2x96xf32>
    %cst_27 = arith.constant 1.000000e+00 : f32
    %35 = vector.broadcast %cst_27 : f32 to vector<2x96xf32>
    %36 = arith.addf %35, %34 : vector<2x96xf32>
    %37 = arith.divf %35, %36 : vector<2x96xf32>
    %38 = vector.extract_strided_slice %31 {offsets = [0, 96], sizes = [2, 32], strides = [1, 1]} : vector<2x128xf32> to vector<2x32xf32>
    %39 = math.tanh %38 : vector<2x32xf32>
    %40 = vector.extract_strided_slice %37 {offsets = [0, 0], sizes = [2, 32], strides = [1, 1]} : vector<2x96xf32> to vector<2x32xf32>
    %41 = vector.extract_strided_slice %37 {offsets = [0, 32], sizes = [2, 32], strides = [1, 1]} : vector<2x96xf32> to vector<2x32xf32>
    %42 = vector.extract_strided_slice %37 {offsets = [0, 64], sizes = [2, 32], strides = [1, 1]} : vector<2x96xf32> to vector<2x32xf32>
    %43 = arith.mulf %41, %27 : vector<2x32xf32>
    %44 = arith.mulf %40, %39 : vector<2x32xf32>
    %45 = arith.addf %43, %44 : vector<2x32xf32>
    %46 = math.tanh %45 : vector<2x32xf32>
    %47 = arith.mulf %42, %46 : vector<2x32xf32>
    %48 = vector.extract_strided_slice %25 {offsets = [2, 0], sizes = [2, 128], strides = [1, 1]} : vector<16x128xf32> to vector<2x128xf32>
    %49 = arith.truncf %47 : vector<2x32xf32> to vector<2x32xbf16>
    %cst_28 = arith.constant dense<0.000000e+00> : vector<2x128xf32>
    %50 = tpu.matmul %49, %19, %cst_28 {dimension_numbers = #tpu.dot_dimension_numbers<[1], [0], [0], [1], [0, 0, 1, 1], [], []>} : vector<2x32xbf16>, vector<32x128xbf16>, vector<2x128xf32> -> vector<2x128xf32>
    %51 = arith.addf %48, %50 : vector<2x128xf32>
    %52 = vector.extract_strided_slice %51 {offsets = [0, 0], sizes = [2, 96], strides = [1, 1]} : vector<2x128xf32> to vector<2x96xf32>
    %53 = arith.negf %52 : vector<2x96xf32>
    %54 = math.exp %53 : vector<2x96xf32>
    %cst_29 = arith.constant 1.000000e+00 : f32
    %55 = vector.broadcast %cst_29 : f32 to vector<2x96xf32>
    %56 = arith.addf %55, %54 : vector<2x96xf32>
    %57 = arith.divf %55, %56 : vector<2x96xf32>
    %58 = vector.extract_strided_slice %51 {offsets = [0, 96], sizes = [2, 32], strides = [1, 1]} : vector<2x128xf32> to vector<2x32xf32>
    %59 = math.tanh %58 : vector<2x32xf32>
    %60 = vector.extract_strided_slice %57 {offsets = [0, 0], sizes = [2, 32], strides = [1, 1]} : vector<2x96xf32> to vector<2x32xf32>
    %61 = vector.extract_strided_slice %57 {offsets = [0, 32], sizes = [2, 32], strides = [1, 1]} : vector<2x96xf32> to vector<2x32xf32>
    %62 = vector.extract_strided_slice %57 {offsets = [0, 64], sizes = [2, 32], strides = [1, 1]} : vector<2x96xf32> to vector<2x32xf32>
    %63 = arith.mulf %61, %45 : vector<2x32xf32>
    %64 = arith.mulf %60, %59 : vector<2x32xf32>
    %65 = arith.addf %63, %64 : vector<2x32xf32>
    %66 = math.tanh %65 : vector<2x32xf32>
    %67 = arith.mulf %62, %66 : vector<2x32xf32>
    %68 = vector.extract_strided_slice %25 {offsets = [4, 0], sizes = [2, 128], strides = [1, 1]} : vector<16x128xf32> to vector<2x128xf32>
    %69 = arith.truncf %67 : vector<2x32xf32> to vector<2x32xbf16>
    %cst_30 = arith.constant dense<0.000000e+00> : vector<2x128xf32>
    %70 = tpu.matmul %69, %19, %cst_30 {dimension_numbers = #tpu.dot_dimension_numbers<[1], [0], [0], [1], [0, 0, 1, 1], [], []>} : vector<2x32xbf16>, vector<32x128xbf16>, vector<2x128xf32> -> vector<2x128xf32>
    %71 = arith.addf %68, %70 : vector<2x128xf32>
    %72 = vector.extract_strided_slice %71 {offsets = [0, 0], sizes = [2, 96], strides = [1, 1]} : vector<2x128xf32> to vector<2x96xf32>
    %73 = arith.negf %72 : vector<2x96xf32>
    %74 = math.exp %73 : vector<2x96xf32>
    %cst_31 = arith.constant 1.000000e+00 : f32
    %75 = vector.broadcast %cst_31 : f32 to vector<2x96xf32>
    %76 = arith.addf %75, %74 : vector<2x96xf32>
    %77 = arith.divf %75, %76 : vector<2x96xf32>
    %78 = vector.extract_strided_slice %71 {offsets = [0, 96], sizes = [2, 32], strides = [1, 1]} : vector<2x128xf32> to vector<2x32xf32>
    %79 = math.tanh %78 : vector<2x32xf32>
    %80 = vector.extract_strided_slice %77 {offsets = [0, 0], sizes = [2, 32], strides = [1, 1]} : vector<2x96xf32> to vector<2x32xf32>
    %81 = vector.extract_strided_slice %77 {offsets = [0, 32], sizes = [2, 32], strides = [1, 1]} : vector<2x96xf32> to vector<2x32xf32>
    %82 = vector.extract_strided_slice %77 {offsets = [0, 64], sizes = [2, 32], strides = [1, 1]} : vector<2x96xf32> to vector<2x32xf32>
    %83 = arith.mulf %81, %65 : vector<2x32xf32>
    %84 = arith.mulf %80, %79 : vector<2x32xf32>
    %85 = arith.addf %83, %84 : vector<2x32xf32>
    %86 = math.tanh %85 : vector<2x32xf32>
    %87 = arith.mulf %82, %86 : vector<2x32xf32>
    %88 = vector.extract_strided_slice %25 {offsets = [6, 0], sizes = [2, 128], strides = [1, 1]} : vector<16x128xf32> to vector<2x128xf32>
    %89 = arith.truncf %87 : vector<2x32xf32> to vector<2x32xbf16>
    %cst_32 = arith.constant dense<0.000000e+00> : vector<2x128xf32>
    %90 = tpu.matmul %89, %19, %cst_32 {dimension_numbers = #tpu.dot_dimension_numbers<[1], [0], [0], [1], [0, 0, 1, 1], [], []>} : vector<2x32xbf16>, vector<32x128xbf16>, vector<2x128xf32> -> vector<2x128xf32>
    %91 = arith.addf %88, %90 : vector<2x128xf32>
    %92 = vector.extract_strided_slice %91 {offsets = [0, 0], sizes = [2, 96], strides = [1, 1]} : vector<2x128xf32> to vector<2x96xf32>
    %93 = arith.negf %92 : vector<2x96xf32>
    %94 = math.exp %93 : vector<2x96xf32>
    %cst_33 = arith.constant 1.000000e+00 : f32
    %95 = vector.broadcast %cst_33 : f32 to vector<2x96xf32>
    %96 = arith.addf %95, %94 : vector<2x96xf32>
    %97 = arith.divf %95, %96 : vector<2x96xf32>
    %98 = vector.extract_strided_slice %91 {offsets = [0, 96], sizes = [2, 32], strides = [1, 1]} : vector<2x128xf32> to vector<2x32xf32>
    %99 = math.tanh %98 : vector<2x32xf32>
    %100 = vector.extract_strided_slice %97 {offsets = [0, 0], sizes = [2, 32], strides = [1, 1]} : vector<2x96xf32> to vector<2x32xf32>
    %101 = vector.extract_strided_slice %97 {offsets = [0, 32], sizes = [2, 32], strides = [1, 1]} : vector<2x96xf32> to vector<2x32xf32>
    %102 = vector.extract_strided_slice %97 {offsets = [0, 64], sizes = [2, 32], strides = [1, 1]} : vector<2x96xf32> to vector<2x32xf32>
    %103 = arith.mulf %101, %85 : vector<2x32xf32>
    %104 = arith.mulf %100, %99 : vector<2x32xf32>
    %105 = arith.addf %103, %104 : vector<2x32xf32>
    %106 = math.tanh %105 : vector<2x32xf32>
    %107 = arith.mulf %102, %106 : vector<2x32xf32>
    %108 = vector.extract_strided_slice %25 {offsets = [8, 0], sizes = [2, 128], strides = [1, 1]} : vector<16x128xf32> to vector<2x128xf32>
    %109 = arith.truncf %107 : vector<2x32xf32> to vector<2x32xbf16>
    %cst_34 = arith.constant dense<0.000000e+00> : vector<2x128xf32>
    %110 = tpu.matmul %109, %19, %cst_34 {dimension_numbers = #tpu.dot_dimension_numbers<[1], [0], [0], [1], [0, 0, 1, 1], [], []>} : vector<2x32xbf16>, vector<32x128xbf16>, vector<2x128xf32> -> vector<2x128xf32>
    %111 = arith.addf %108, %110 : vector<2x128xf32>
    %112 = vector.extract_strided_slice %111 {offsets = [0, 0], sizes = [2, 96], strides = [1, 1]} : vector<2x128xf32> to vector<2x96xf32>
    %113 = arith.negf %112 : vector<2x96xf32>
    %114 = math.exp %113 : vector<2x96xf32>
    %cst_35 = arith.constant 1.000000e+00 : f32
    %115 = vector.broadcast %cst_35 : f32 to vector<2x96xf32>
    %116 = arith.addf %115, %114 : vector<2x96xf32>
    %117 = arith.divf %115, %116 : vector<2x96xf32>
    %118 = vector.extract_strided_slice %111 {offsets = [0, 96], sizes = [2, 32], strides = [1, 1]} : vector<2x128xf32> to vector<2x32xf32>
    %119 = math.tanh %118 : vector<2x32xf32>
    %120 = vector.extract_strided_slice %117 {offsets = [0, 0], sizes = [2, 32], strides = [1, 1]} : vector<2x96xf32> to vector<2x32xf32>
    %121 = vector.extract_strided_slice %117 {offsets = [0, 32], sizes = [2, 32], strides = [1, 1]} : vector<2x96xf32> to vector<2x32xf32>
    %122 = vector.extract_strided_slice %117 {offsets = [0, 64], sizes = [2, 32], strides = [1, 1]} : vector<2x96xf32> to vector<2x32xf32>
    %123 = arith.mulf %121, %105 : vector<2x32xf32>
    %124 = arith.mulf %120, %119 : vector<2x32xf32>
    %125 = arith.addf %123, %124 : vector<2x32xf32>
    %126 = math.tanh %125 : vector<2x32xf32>
    %127 = arith.mulf %122, %126 : vector<2x32xf32>
    %128 = vector.extract_strided_slice %25 {offsets = [10, 0], sizes = [2, 128], strides = [1, 1]} : vector<16x128xf32> to vector<2x128xf32>
    %129 = arith.truncf %127 : vector<2x32xf32> to vector<2x32xbf16>
    %cst_36 = arith.constant dense<0.000000e+00> : vector<2x128xf32>
    %130 = tpu.matmul %129, %19, %cst_36 {dimension_numbers = #tpu.dot_dimension_numbers<[1], [0], [0], [1], [0, 0, 1, 1], [], []>} : vector<2x32xbf16>, vector<32x128xbf16>, vector<2x128xf32> -> vector<2x128xf32>
    %131 = arith.addf %128, %130 : vector<2x128xf32>
    %132 = vector.extract_strided_slice %131 {offsets = [0, 0], sizes = [2, 96], strides = [1, 1]} : vector<2x128xf32> to vector<2x96xf32>
    %133 = arith.negf %132 : vector<2x96xf32>
    %134 = math.exp %133 : vector<2x96xf32>
    %cst_37 = arith.constant 1.000000e+00 : f32
    %135 = vector.broadcast %cst_37 : f32 to vector<2x96xf32>
    %136 = arith.addf %135, %134 : vector<2x96xf32>
    %137 = arith.divf %135, %136 : vector<2x96xf32>
    %138 = vector.extract_strided_slice %131 {offsets = [0, 96], sizes = [2, 32], strides = [1, 1]} : vector<2x128xf32> to vector<2x32xf32>
    %139 = math.tanh %138 : vector<2x32xf32>
    %140 = vector.extract_strided_slice %137 {offsets = [0, 0], sizes = [2, 32], strides = [1, 1]} : vector<2x96xf32> to vector<2x32xf32>
    %141 = vector.extract_strided_slice %137 {offsets = [0, 32], sizes = [2, 32], strides = [1, 1]} : vector<2x96xf32> to vector<2x32xf32>
    %142 = vector.extract_strided_slice %137 {offsets = [0, 64], sizes = [2, 32], strides = [1, 1]} : vector<2x96xf32> to vector<2x32xf32>
    %143 = arith.mulf %141, %125 : vector<2x32xf32>
    %144 = arith.mulf %140, %139 : vector<2x32xf32>
    %145 = arith.addf %143, %144 : vector<2x32xf32>
    %146 = math.tanh %145 : vector<2x32xf32>
    %147 = arith.mulf %142, %146 : vector<2x32xf32>
    %148 = vector.extract_strided_slice %25 {offsets = [12, 0], sizes = [2, 128], strides = [1, 1]} : vector<16x128xf32> to vector<2x128xf32>
    %149 = arith.truncf %147 : vector<2x32xf32> to vector<2x32xbf16>
    %cst_38 = arith.constant dense<0.000000e+00> : vector<2x128xf32>
    %150 = tpu.matmul %149, %19, %cst_38 {dimension_numbers = #tpu.dot_dimension_numbers<[1], [0], [0], [1], [0, 0, 1, 1], [], []>} : vector<2x32xbf16>, vector<32x128xbf16>, vector<2x128xf32> -> vector<2x128xf32>
    %151 = arith.addf %148, %150 : vector<2x128xf32>
    %152 = vector.extract_strided_slice %151 {offsets = [0, 0], sizes = [2, 96], strides = [1, 1]} : vector<2x128xf32> to vector<2x96xf32>
    %153 = arith.negf %152 : vector<2x96xf32>
    %154 = math.exp %153 : vector<2x96xf32>
    %cst_39 = arith.constant 1.000000e+00 : f32
    %155 = vector.broadcast %cst_39 : f32 to vector<2x96xf32>
    %156 = arith.addf %155, %154 : vector<2x96xf32>
    %157 = arith.divf %155, %156 : vector<2x96xf32>
    %158 = vector.extract_strided_slice %151 {offsets = [0, 96], sizes = [2, 32], strides = [1, 1]} : vector<2x128xf32> to vector<2x32xf32>
    %159 = math.tanh %158 : vector<2x32xf32>
    %160 = vector.extract_strided_slice %157 {offsets = [0, 0], sizes = [2, 32], strides = [1, 1]} : vector<2x96xf32> to vector<2x32xf32>
    %161 = vector.extract_strided_slice %157 {offsets = [0, 32], sizes = [2, 32], strides = [1, 1]} : vector<2x96xf32> to vector<2x32xf32>
    %162 = vector.extract_strided_slice %157 {offsets = [0, 64], sizes = [2, 32], strides = [1, 1]} : vector<2x96xf32> to vector<2x32xf32>
    %163 = arith.mulf %161, %145 : vector<2x32xf32>
    %164 = arith.mulf %160, %159 : vector<2x32xf32>
    %165 = arith.addf %163, %164 : vector<2x32xf32>
    %166 = math.tanh %165 : vector<2x32xf32>
    %167 = arith.mulf %162, %166 : vector<2x32xf32>
    %168 = vector.extract_strided_slice %25 {offsets = [14, 0], sizes = [2, 128], strides = [1, 1]} : vector<16x128xf32> to vector<2x128xf32>
    %169 = arith.truncf %167 : vector<2x32xf32> to vector<2x32xbf16>
    %cst_40 = arith.constant dense<0.000000e+00> : vector<2x128xf32>
    %170 = tpu.matmul %169, %19, %cst_40 {dimension_numbers = #tpu.dot_dimension_numbers<[1], [0], [0], [1], [0, 0, 1, 1], [], []>} : vector<2x32xbf16>, vector<32x128xbf16>, vector<2x128xf32> -> vector<2x128xf32>
    %171 = arith.addf %168, %170 : vector<2x128xf32>
    %172 = vector.extract_strided_slice %171 {offsets = [0, 0], sizes = [2, 96], strides = [1, 1]} : vector<2x128xf32> to vector<2x96xf32>
    %173 = arith.negf %172 : vector<2x96xf32>
    %174 = math.exp %173 : vector<2x96xf32>
    %cst_41 = arith.constant 1.000000e+00 : f32
    %175 = vector.broadcast %cst_41 : f32 to vector<2x96xf32>
    %176 = arith.addf %175, %174 : vector<2x96xf32>
    %177 = arith.divf %175, %176 : vector<2x96xf32>
    %178 = vector.extract_strided_slice %171 {offsets = [0, 96], sizes = [2, 32], strides = [1, 1]} : vector<2x128xf32> to vector<2x32xf32>
    %179 = math.tanh %178 : vector<2x32xf32>
    %180 = vector.extract_strided_slice %177 {offsets = [0, 0], sizes = [2, 32], strides = [1, 1]} : vector<2x96xf32> to vector<2x32xf32>
    %181 = vector.extract_strided_slice %177 {offsets = [0, 32], sizes = [2, 32], strides = [1, 1]} : vector<2x96xf32> to vector<2x32xf32>
    %182 = vector.extract_strided_slice %177 {offsets = [0, 64], sizes = [2, 32], strides = [1, 1]} : vector<2x96xf32> to vector<2x32xf32>
    %183 = arith.mulf %181, %165 : vector<2x32xf32>
    %184 = arith.mulf %180, %179 : vector<2x32xf32>
    %185 = arith.addf %183, %184 : vector<2x32xf32>
    %186 = math.tanh %185 : vector<2x32xf32>
    %187 = arith.mulf %182, %186 : vector<2x32xf32>
    %188 = arith.addf %16, %187 : vector<2x32xf32>
    %189 = arith.addf %17, %185 : vector<2x32xf32>
    %c0_42 = arith.constant 0 : index
    %c0_43 = arith.constant 0 : index
    %190 = vector.load %arg4[%c0_42, %c0_43] : memref<32x128xbf16, #tpu.memory_space<vmem>>, vector<32x128xbf16>
    %c0_44 = arith.constant 0 : index
    %c0_45 = arith.constant 0 : index
    %191 = vector.load %arg5[%c0_44, %c0_45] : memref<32x128xbf16, #tpu.memory_space<vmem>>, vector<32x128xbf16>
    %c0_46 = arith.constant 0 : index
    %c0_47 = arith.constant 0 : index
    %192 = vector.load %arg6[%c0_46, %c0_47] : memref<1x128xf32, #tpu.memory_space<vmem>>, vector<1x128xf32>
    %193 = tpu.concatenate %47, %67, %87, %107, %127, %147, %167, %187 in 0 : vector<2x32xf32>, vector<2x32xf32>, vector<2x32xf32>, vector<2x32xf32>, vector<2x32xf32>, vector<2x32xf32>, vector<2x32xf32>, vector<2x32xf32> -> vector<16x32xf32>
    %194 = arith.truncf %193 : vector<16x32xf32> to vector<16x32xbf16>
    %cst_48 = arith.constant dense<0.000000e+00> : vector<16x128xf32>
    %195 = tpu.matmul %194, %190, %cst_48 {dimension_numbers = #tpu.dot_dimension_numbers<[1], [0], [0], [1], [0, 0, 1, 1], [], []>} : vector<16x32xbf16>, vector<32x128xbf16>, vector<16x128xf32> -> vector<16x128xf32>
    %196 = vector.broadcast %192 : vector<1x128xf32> to vector<16x128xf32>
    %197 = arith.addf %195, %196 : vector<16x128xf32>
    %cst_49 = arith.constant 0.000000e+00 : f32
    %198 = vector.broadcast %cst_49 : f32 to vector<2x32xf32>
    %cst_50 = arith.constant 0.000000e+00 : f32
    %199 = vector.broadcast %cst_50 : f32 to vector<2x32xf32>
    %200 = vector.extract_strided_slice %197 {offsets = [0, 0], sizes = [2, 128], strides = [1, 1]} : vector<16x128xf32> to vector<2x128xf32>
    %201 = arith.truncf %198 : vector<2x32xf32> to vector<2x32xbf16>
    %cst_51 = arith.constant dense<0.000000e+00> : vector<2x128xf32>
    %202 = tpu.matmul %201, %191, %cst_51 {dimension_numbers = #tpu.dot_dimension_numbers<[1], [0], [0], [1], [0, 0, 1, 1], [], []>} : vector<2x32xbf16>, vector<32x128xbf16>, vector<2x128xf32> -> vector<2x128xf32>
    %203 = arith.addf %200, %202 : vector<2x128xf32>
    %204 = vector.extract_strided_slice %203 {offsets = [0, 0], sizes = [2, 96], strides = [1, 1]} : vector<2x128xf32> to vector<2x96xf32>
    %205 = arith.negf %204 : vector<2x96xf32>
    %206 = math.exp %205 : vector<2x96xf32>
    %cst_52 = arith.constant 1.000000e+00 : f32
    %207 = vector.broadcast %cst_52 : f32 to vector<2x96xf32>
    %208 = arith.addf %207, %206 : vector<2x96xf32>
    %209 = arith.divf %207, %208 : vector<2x96xf32>
    %210 = vector.extract_strided_slice %203 {offsets = [0, 96], sizes = [2, 32], strides = [1, 1]} : vector<2x128xf32> to vector<2x32xf32>
    %211 = math.tanh %210 : vector<2x32xf32>
    %212 = vector.extract_strided_slice %209 {offsets = [0, 0], sizes = [2, 32], strides = [1, 1]} : vector<2x96xf32> to vector<2x32xf32>
    %213 = vector.extract_strided_slice %209 {offsets = [0, 32], sizes = [2, 32], strides = [1, 1]} : vector<2x96xf32> to vector<2x32xf32>
    %214 = vector.extract_strided_slice %209 {offsets = [0, 64], sizes = [2, 32], strides = [1, 1]} : vector<2x96xf32> to vector<2x32xf32>
    %215 = arith.mulf %213, %199 : vector<2x32xf32>
    %216 = arith.mulf %212, %211 : vector<2x32xf32>
    %217 = arith.addf %215, %216 : vector<2x32xf32>
    %218 = math.tanh %217 : vector<2x32xf32>
    %219 = arith.mulf %214, %218 : vector<2x32xf32>
    %220 = vector.extract_strided_slice %197 {offsets = [2, 0], sizes = [2, 128], strides = [1, 1]} : vector<16x128xf32> to vector<2x128xf32>
    %221 = arith.truncf %219 : vector<2x32xf32> to vector<2x32xbf16>
    %cst_53 = arith.constant dense<0.000000e+00> : vector<2x128xf32>
    %222 = tpu.matmul %221, %191, %cst_53 {dimension_numbers = #tpu.dot_dimension_numbers<[1], [0], [0], [1], [0, 0, 1, 1], [], []>} : vector<2x32xbf16>, vector<32x128xbf16>, vector<2x128xf32> -> vector<2x128xf32>
    %223 = arith.addf %220, %222 : vector<2x128xf32>
    %224 = vector.extract_strided_slice %223 {offsets = [0, 0], sizes = [2, 96], strides = [1, 1]} : vector<2x128xf32> to vector<2x96xf32>
    %225 = arith.negf %224 : vector<2x96xf32>
    %226 = math.exp %225 : vector<2x96xf32>
    %cst_54 = arith.constant 1.000000e+00 : f32
    %227 = vector.broadcast %cst_54 : f32 to vector<2x96xf32>
    %228 = arith.addf %227, %226 : vector<2x96xf32>
    %229 = arith.divf %227, %228 : vector<2x96xf32>
    %230 = vector.extract_strided_slice %223 {offsets = [0, 96], sizes = [2, 32], strides = [1, 1]} : vector<2x128xf32> to vector<2x32xf32>
    %231 = math.tanh %230 : vector<2x32xf32>
    %232 = vector.extract_strided_slice %229 {offsets = [0, 0], sizes = [2, 32], strides = [1, 1]} : vector<2x96xf32> to vector<2x32xf32>
    %233 = vector.extract_strided_slice %229 {offsets = [0, 32], sizes = [2, 32], strides = [1, 1]} : vector<2x96xf32> to vector<2x32xf32>
    %234 = vector.extract_strided_slice %229 {offsets = [0, 64], sizes = [2, 32], strides = [1, 1]} : vector<2x96xf32> to vector<2x32xf32>
    %235 = arith.mulf %233, %217 : vector<2x32xf32>
    %236 = arith.mulf %232, %231 : vector<2x32xf32>
    %237 = arith.addf %235, %236 : vector<2x32xf32>
    %238 = math.tanh %237 : vector<2x32xf32>
    %239 = arith.mulf %234, %238 : vector<2x32xf32>
    %240 = vector.extract_strided_slice %197 {offsets = [4, 0], sizes = [2, 128], strides = [1, 1]} : vector<16x128xf32> to vector<2x128xf32>
    %241 = arith.truncf %239 : vector<2x32xf32> to vector<2x32xbf16>
    %cst_55 = arith.constant dense<0.000000e+00> : vector<2x128xf32>
    %242 = tpu.matmul %241, %191, %cst_55 {dimension_numbers = #tpu.dot_dimension_numbers<[1], [0], [0], [1], [0, 0, 1, 1], [], []>} : vector<2x32xbf16>, vector<32x128xbf16>, vector<2x128xf32> -> vector<2x128xf32>
    %243 = arith.addf %240, %242 : vector<2x128xf32>
    %244 = vector.extract_strided_slice %243 {offsets = [0, 0], sizes = [2, 96], strides = [1, 1]} : vector<2x128xf32> to vector<2x96xf32>
    %245 = arith.negf %244 : vector<2x96xf32>
    %246 = math.exp %245 : vector<2x96xf32>
    %cst_56 = arith.constant 1.000000e+00 : f32
    %247 = vector.broadcast %cst_56 : f32 to vector<2x96xf32>
    %248 = arith.addf %247, %246 : vector<2x96xf32>
    %249 = arith.divf %247, %248 : vector<2x96xf32>
    %250 = vector.extract_strided_slice %243 {offsets = [0, 96], sizes = [2, 32], strides = [1, 1]} : vector<2x128xf32> to vector<2x32xf32>
    %251 = math.tanh %250 : vector<2x32xf32>
    %252 = vector.extract_strided_slice %249 {offsets = [0, 0], sizes = [2, 32], strides = [1, 1]} : vector<2x96xf32> to vector<2x32xf32>
    %253 = vector.extract_strided_slice %249 {offsets = [0, 32], sizes = [2, 32], strides = [1, 1]} : vector<2x96xf32> to vector<2x32xf32>
    %254 = vector.extract_strided_slice %249 {offsets = [0, 64], sizes = [2, 32], strides = [1, 1]} : vector<2x96xf32> to vector<2x32xf32>
    %255 = arith.mulf %253, %237 : vector<2x32xf32>
    %256 = arith.mulf %252, %251 : vector<2x32xf32>
    %257 = arith.addf %255, %256 : vector<2x32xf32>
    %258 = math.tanh %257 : vector<2x32xf32>
    %259 = arith.mulf %254, %258 : vector<2x32xf32>
    %260 = vector.extract_strided_slice %197 {offsets = [6, 0], sizes = [2, 128], strides = [1, 1]} : vector<16x128xf32> to vector<2x128xf32>
    %261 = arith.truncf %259 : vector<2x32xf32> to vector<2x32xbf16>
    %cst_57 = arith.constant dense<0.000000e+00> : vector<2x128xf32>
    %262 = tpu.matmul %261, %191, %cst_57 {dimension_numbers = #tpu.dot_dimension_numbers<[1], [0], [0], [1], [0, 0, 1, 1], [], []>} : vector<2x32xbf16>, vector<32x128xbf16>, vector<2x128xf32> -> vector<2x128xf32>
    %263 = arith.addf %260, %262 : vector<2x128xf32>
    %264 = vector.extract_strided_slice %263 {offsets = [0, 0], sizes = [2, 96], strides = [1, 1]} : vector<2x128xf32> to vector<2x96xf32>
    %265 = arith.negf %264 : vector<2x96xf32>
    %266 = math.exp %265 : vector<2x96xf32>
    %cst_58 = arith.constant 1.000000e+00 : f32
    %267 = vector.broadcast %cst_58 : f32 to vector<2x96xf32>
    %268 = arith.addf %267, %266 : vector<2x96xf32>
    %269 = arith.divf %267, %268 : vector<2x96xf32>
    %270 = vector.extract_strided_slice %263 {offsets = [0, 96], sizes = [2, 32], strides = [1, 1]} : vector<2x128xf32> to vector<2x32xf32>
    %271 = math.tanh %270 : vector<2x32xf32>
    %272 = vector.extract_strided_slice %269 {offsets = [0, 0], sizes = [2, 32], strides = [1, 1]} : vector<2x96xf32> to vector<2x32xf32>
    %273 = vector.extract_strided_slice %269 {offsets = [0, 32], sizes = [2, 32], strides = [1, 1]} : vector<2x96xf32> to vector<2x32xf32>
    %274 = vector.extract_strided_slice %269 {offsets = [0, 64], sizes = [2, 32], strides = [1, 1]} : vector<2x96xf32> to vector<2x32xf32>
    %275 = arith.mulf %273, %257 : vector<2x32xf32>
    %276 = arith.mulf %272, %271 : vector<2x32xf32>
    %277 = arith.addf %275, %276 : vector<2x32xf32>
    %278 = math.tanh %277 : vector<2x32xf32>
    %279 = arith.mulf %274, %278 : vector<2x32xf32>
    %280 = vector.extract_strided_slice %197 {offsets = [8, 0], sizes = [2, 128], strides = [1, 1]} : vector<16x128xf32> to vector<2x128xf32>
    %281 = arith.truncf %279 : vector<2x32xf32> to vector<2x32xbf16>
    %cst_59 = arith.constant dense<0.000000e+00> : vector<2x128xf32>
    %282 = tpu.matmul %281, %191, %cst_59 {dimension_numbers = #tpu.dot_dimension_numbers<[1], [0], [0], [1], [0, 0, 1, 1], [], []>} : vector<2x32xbf16>, vector<32x128xbf16>, vector<2x128xf32> -> vector<2x128xf32>
    %283 = arith.addf %280, %282 : vector<2x128xf32>
    %284 = vector.extract_strided_slice %283 {offsets = [0, 0], sizes = [2, 96], strides = [1, 1]} : vector<2x128xf32> to vector<2x96xf32>
    %285 = arith.negf %284 : vector<2x96xf32>
    %286 = math.exp %285 : vector<2x96xf32>
    %cst_60 = arith.constant 1.000000e+00 : f32
    %287 = vector.broadcast %cst_60 : f32 to vector<2x96xf32>
    %288 = arith.addf %287, %286 : vector<2x96xf32>
    %289 = arith.divf %287, %288 : vector<2x96xf32>
    %290 = vector.extract_strided_slice %283 {offsets = [0, 96], sizes = [2, 32], strides = [1, 1]} : vector<2x128xf32> to vector<2x32xf32>
    %291 = math.tanh %290 : vector<2x32xf32>
    %292 = vector.extract_strided_slice %289 {offsets = [0, 0], sizes = [2, 32], strides = [1, 1]} : vector<2x96xf32> to vector<2x32xf32>
    %293 = vector.extract_strided_slice %289 {offsets = [0, 32], sizes = [2, 32], strides = [1, 1]} : vector<2x96xf32> to vector<2x32xf32>
    %294 = vector.extract_strided_slice %289 {offsets = [0, 64], sizes = [2, 32], strides = [1, 1]} : vector<2x96xf32> to vector<2x32xf32>
    %295 = arith.mulf %293, %277 : vector<2x32xf32>
    %296 = arith.mulf %292, %291 : vector<2x32xf32>
    %297 = arith.addf %295, %296 : vector<2x32xf32>
    %298 = math.tanh %297 : vector<2x32xf32>
    %299 = arith.mulf %294, %298 : vector<2x32xf32>
    %300 = vector.extract_strided_slice %197 {offsets = [10, 0], sizes = [2, 128], strides = [1, 1]} : vector<16x128xf32> to vector<2x128xf32>
    %301 = arith.truncf %299 : vector<2x32xf32> to vector<2x32xbf16>
    %cst_61 = arith.constant dense<0.000000e+00> : vector<2x128xf32>
    %302 = tpu.matmul %301, %191, %cst_61 {dimension_numbers = #tpu.dot_dimension_numbers<[1], [0], [0], [1], [0, 0, 1, 1], [], []>} : vector<2x32xbf16>, vector<32x128xbf16>, vector<2x128xf32> -> vector<2x128xf32>
    %303 = arith.addf %300, %302 : vector<2x128xf32>
    %304 = vector.extract_strided_slice %303 {offsets = [0, 0], sizes = [2, 96], strides = [1, 1]} : vector<2x128xf32> to vector<2x96xf32>
    %305 = arith.negf %304 : vector<2x96xf32>
    %306 = math.exp %305 : vector<2x96xf32>
    %cst_62 = arith.constant 1.000000e+00 : f32
    %307 = vector.broadcast %cst_62 : f32 to vector<2x96xf32>
    %308 = arith.addf %307, %306 : vector<2x96xf32>
    %309 = arith.divf %307, %308 : vector<2x96xf32>
    %310 = vector.extract_strided_slice %303 {offsets = [0, 96], sizes = [2, 32], strides = [1, 1]} : vector<2x128xf32> to vector<2x32xf32>
    %311 = math.tanh %310 : vector<2x32xf32>
    %312 = vector.extract_strided_slice %309 {offsets = [0, 0], sizes = [2, 32], strides = [1, 1]} : vector<2x96xf32> to vector<2x32xf32>
    %313 = vector.extract_strided_slice %309 {offsets = [0, 32], sizes = [2, 32], strides = [1, 1]} : vector<2x96xf32> to vector<2x32xf32>
    %314 = vector.extract_strided_slice %309 {offsets = [0, 64], sizes = [2, 32], strides = [1, 1]} : vector<2x96xf32> to vector<2x32xf32>
    %315 = arith.mulf %313, %297 : vector<2x32xf32>
    %316 = arith.mulf %312, %311 : vector<2x32xf32>
    %317 = arith.addf %315, %316 : vector<2x32xf32>
    %318 = math.tanh %317 : vector<2x32xf32>
    %319 = arith.mulf %314, %318 : vector<2x32xf32>
    %320 = vector.extract_strided_slice %197 {offsets = [12, 0], sizes = [2, 128], strides = [1, 1]} : vector<16x128xf32> to vector<2x128xf32>
    %321 = arith.truncf %319 : vector<2x32xf32> to vector<2x32xbf16>
    %cst_63 = arith.constant dense<0.000000e+00> : vector<2x128xf32>
    %322 = tpu.matmul %321, %191, %cst_63 {dimension_numbers = #tpu.dot_dimension_numbers<[1], [0], [0], [1], [0, 0, 1, 1], [], []>} : vector<2x32xbf16>, vector<32x128xbf16>, vector<2x128xf32> -> vector<2x128xf32>
    %323 = arith.addf %320, %322 : vector<2x128xf32>
    %324 = vector.extract_strided_slice %323 {offsets = [0, 0], sizes = [2, 96], strides = [1, 1]} : vector<2x128xf32> to vector<2x96xf32>
    %325 = arith.negf %324 : vector<2x96xf32>
    %326 = math.exp %325 : vector<2x96xf32>
    %cst_64 = arith.constant 1.000000e+00 : f32
    %327 = vector.broadcast %cst_64 : f32 to vector<2x96xf32>
    %328 = arith.addf %327, %326 : vector<2x96xf32>
    %329 = arith.divf %327, %328 : vector<2x96xf32>
    %330 = vector.extract_strided_slice %323 {offsets = [0, 96], sizes = [2, 32], strides = [1, 1]} : vector<2x128xf32> to vector<2x32xf32>
    %331 = math.tanh %330 : vector<2x32xf32>
    %332 = vector.extract_strided_slice %329 {offsets = [0, 0], sizes = [2, 32], strides = [1, 1]} : vector<2x96xf32> to vector<2x32xf32>
    %333 = vector.extract_strided_slice %329 {offsets = [0, 32], sizes = [2, 32], strides = [1, 1]} : vector<2x96xf32> to vector<2x32xf32>
    %334 = vector.extract_strided_slice %329 {offsets = [0, 64], sizes = [2, 32], strides = [1, 1]} : vector<2x96xf32> to vector<2x32xf32>
    %335 = arith.mulf %333, %317 : vector<2x32xf32>
    %336 = arith.mulf %332, %331 : vector<2x32xf32>
    %337 = arith.addf %335, %336 : vector<2x32xf32>
    %338 = math.tanh %337 : vector<2x32xf32>
    %339 = arith.mulf %334, %338 : vector<2x32xf32>
    %340 = vector.extract_strided_slice %197 {offsets = [14, 0], sizes = [2, 128], strides = [1, 1]} : vector<16x128xf32> to vector<2x128xf32>
    %341 = arith.truncf %339 : vector<2x32xf32> to vector<2x32xbf16>
    %cst_65 = arith.constant dense<0.000000e+00> : vector<2x128xf32>
    %342 = tpu.matmul %341, %191, %cst_65 {dimension_numbers = #tpu.dot_dimension_numbers<[1], [0], [0], [1], [0, 0, 1, 1], [], []>} : vector<2x32xbf16>, vector<32x128xbf16>, vector<2x128xf32> -> vector<2x128xf32>
    %343 = arith.addf %340, %342 : vector<2x128xf32>
    %344 = vector.extract_strided_slice %343 {offsets = [0, 0], sizes = [2, 96], strides = [1, 1]} : vector<2x128xf32> to vector<2x96xf32>
    %345 = arith.negf %344 : vector<2x96xf32>
    %346 = math.exp %345 : vector<2x96xf32>
    %cst_66 = arith.constant 1.000000e+00 : f32
    %347 = vector.broadcast %cst_66 : f32 to vector<2x96xf32>
    %348 = arith.addf %347, %346 : vector<2x96xf32>
    %349 = arith.divf %347, %348 : vector<2x96xf32>
    %350 = vector.extract_strided_slice %343 {offsets = [0, 96], sizes = [2, 32], strides = [1, 1]} : vector<2x128xf32> to vector<2x32xf32>
    %351 = math.tanh %350 : vector<2x32xf32>
    %352 = vector.extract_strided_slice %349 {offsets = [0, 0], sizes = [2, 32], strides = [1, 1]} : vector<2x96xf32> to vector<2x32xf32>
    %353 = vector.extract_strided_slice %349 {offsets = [0, 32], sizes = [2, 32], strides = [1, 1]} : vector<2x96xf32> to vector<2x32xf32>
    %354 = vector.extract_strided_slice %349 {offsets = [0, 64], sizes = [2, 32], strides = [1, 1]} : vector<2x96xf32> to vector<2x32xf32>
    %355 = arith.mulf %353, %337 : vector<2x32xf32>
    %356 = arith.mulf %352, %351 : vector<2x32xf32>
    %357 = arith.addf %355, %356 : vector<2x32xf32>
    %358 = math.tanh %357 : vector<2x32xf32>
    %359 = arith.mulf %354, %358 : vector<2x32xf32>
    %360 = arith.addf %188, %359 : vector<2x32xf32>
    %361 = arith.addf %189, %357 : vector<2x32xf32>
    %cst_67 = arith.constant 5.000000e-01 : f32
    %362 = vector.broadcast %cst_67 : f32 to vector<2x32xf32>
    %363 = arith.mulf %360, %362 : vector<2x32xf32>
    %c0_68 = arith.constant 0 : index
    %c0_69 = arith.constant 0 : index
    %364 = vector.load %arg7[%c0_68, %c0_69] : memref<2x32xf32, #tpu.memory_space<vmem>>, vector<2x32xf32>
    tpu.vector_store %arg7[%c0_68, %c0_69], %363 {strides = array<i32>} : memref<2x32xf32, #tpu.memory_space<vmem>>, vector<2x32xf32>,
    %cst_70 = arith.constant 5.000000e-01 : f32
    %365 = vector.broadcast %cst_70 : f32 to vector<2x32xf32>
    %366 = arith.mulf %361, %365 : vector<2x32xf32>
    %c0_71 = arith.constant 0 : index
    %c0_72 = arith.constant 0 : index
    %367 = vector.load %arg8[%c0_71, %c0_72] : memref<2x32xf32, #tpu.memory_space<vmem>>, vector<2x32xf32>
    tpu.vector_store %arg8[%c0_71, %c0_72], %366 {strides = array<i32>} : memref<2x32xf32, #tpu.memory_space<vmem>>, vector<2x32xf32>,
    return
  }
}

module attributes {stable_mosaic.version = 11 : i64} {
  func.func @kernel(%arg0: memref<2x8x4xf32, #tpu.memory_space<vmem>>, %arg1: memref<2x32xf32, #tpu.memory_space<vmem>>, %arg2: memref<2x32xf32, #tpu.memory_space<vmem>>, %arg3: memref<128x512xbf16, #tpu.memory_space<vmem>>, %arg4: memref<4x512xbf16, #tpu.memory_space<vmem>>, %arg5: memref<1x512xf32, #tpu.memory_space<vmem>>, %arg6: memref<128x128xbf16, #tpu.memory_space<vmem>>, %arg7: memref<1x128xf32, #tpu.memory_space<vmem>>, %arg8: memref<128x384xbf16, #tpu.memory_space<vmem>>, %arg9: memref<1x384xf32, #tpu.memory_space<vmem>>, %arg10: memref<128x128xbf16, #tpu.memory_space<vmem>>, %arg11: memref<1x128xf32, #tpu.memory_space<vmem>>, %arg12: memref<4x32xf32, #tpu.memory_space<vmem>>, %arg13: memref<1x4xf32, #tpu.memory_space<vmem>>, %arg14: memref<2x16xf32, #tpu.memory_space<vmem>>) attributes {dimension_semantics = [], scalar_prefetch = 0 : i64, scratch_operands = 0 : i64, tpu.core_type = #tpu.core_type<tc>} {
    %c0 = arith.constant 0 : index
    %c0_0 = arith.constant 0 : index
    %0 = vector.load %arg3[%c0, %c0_0] : memref<128x512xbf16, #tpu.memory_space<vmem>>, vector<128x512xbf16>
    %c0_1 = arith.constant 0 : index
    %c0_2 = arith.constant 0 : index
    %1 = vector.load %arg4[%c0_1, %c0_2] : memref<4x512xbf16, #tpu.memory_space<vmem>>, vector<4x512xbf16>
    %c0_3 = arith.constant 0 : index
    %c0_4 = arith.constant 0 : index
    %2 = vector.load %arg5[%c0_3, %c0_4] : memref<1x512xf32, #tpu.memory_space<vmem>>, vector<1x512xf32>
    %c0_5 = arith.constant 0 : index
    %c0_6 = arith.constant 0 : index
    %3 = vector.load %arg6[%c0_5, %c0_6] : memref<128x128xbf16, #tpu.memory_space<vmem>>, vector<128x128xbf16>
    %c0_7 = arith.constant 0 : index
    %c0_8 = arith.constant 0 : index
    %4 = vector.load %arg7[%c0_7, %c0_8] : memref<1x128xf32, #tpu.memory_space<vmem>>, vector<1x128xf32>
    %c0_9 = arith.constant 0 : index
    %c0_10 = arith.constant 0 : index
    %5 = vector.load %arg8[%c0_9, %c0_10] : memref<128x384xbf16, #tpu.memory_space<vmem>>, vector<128x384xbf16>
    %c0_11 = arith.constant 0 : index
    %c0_12 = arith.constant 0 : index
    %6 = vector.load %arg9[%c0_11, %c0_12] : memref<1x384xf32, #tpu.memory_space<vmem>>, vector<1x384xf32>
    %c0_13 = arith.constant 0 : index
    %c0_14 = arith.constant 0 : index
    %7 = vector.load %arg10[%c0_13, %c0_14] : memref<128x128xbf16, #tpu.memory_space<vmem>>, vector<128x128xbf16>
    %c0_15 = arith.constant 0 : index
    %c0_16 = arith.constant 0 : index
    %8 = vector.load %arg11[%c0_15, %c0_16] : memref<1x128xf32, #tpu.memory_space<vmem>>, vector<1x128xf32>
    %c0_17 = arith.constant 0 : index
    %c0_18 = arith.constant 0 : index
    %9 = vector.load %arg12[%c0_17, %c0_18] : memref<4x32xf32, #tpu.memory_space<vmem>>, vector<4x32xf32>
    %c0_19 = arith.constant 0 : index
    %c0_20 = arith.constant 0 : index
    %10 = vector.load %arg13[%c0_19, %c0_20] : memref<1x4xf32, #tpu.memory_space<vmem>>, vector<1x4xf32>
    %c0_21 = arith.constant 0 : index
    %c7 = arith.constant 7 : index
    %c0_22 = arith.constant 0 : index
    %11 = vector.load %arg0[%c0_21, %c7, %c0_22] : memref<2x8x4xf32, #tpu.memory_space<vmem>>, vector<2x1x4xf32>
    %12 = vector.shape_cast %11 : vector<2x1x4xf32> to vector<2x4xf32>
    %c0_23 = arith.constant 0 : index
    %c0_24 = arith.constant 0 : index
    %13 = vector.load %arg1[%c0_23, %c0_24] : memref<2x32xf32, #tpu.memory_space<vmem>>, vector<2x32xf32>
    %c0_25 = arith.constant 0 : index
    %c0_26 = arith.constant 0 : index
    %14 = vector.load %arg2[%c0_25, %c0_26] : memref<2x32xf32, #tpu.memory_space<vmem>>, vector<2x32xf32>
    %15 = tpu.concatenate %13, %13, %13, %13 in 1 : vector<2x32xf32>, vector<2x32xf32>, vector<2x32xf32>, vector<2x32xf32> -> vector<2x128xf32>
    %16 = tpu.concatenate %14, %14, %14, %14 in 1 : vector<2x32xf32>, vector<2x32xf32>, vector<2x32xf32>, vector<2x32xf32> -> vector<2x128xf32>
    %17 = arith.truncf %15 : vector<2x128xf32> to vector<2x128xbf16>
    %cst = arith.constant dense<0.000000e+00> : vector<2x512xf32>
    %18 = tpu.matmul %17, %0, %cst {dimension_numbers = #tpu.dot_dimension_numbers<[1], [0], [0], [1], [0, 0, 1, 1], [], []>} : vector<2x128xbf16>, vector<128x512xbf16>, vector<2x512xf32> -> vector<2x512xf32>
    %19 = arith.truncf %12 : vector<2x4xf32> to vector<2x4xbf16>
    %cst_27 = arith.constant dense<0.000000e+00> : vector<2x512xf32>
    %20 = tpu.matmul %19, %1, %cst_27 {dimension_numbers = #tpu.dot_dimension_numbers<[1], [0], [0], [1], [0, 0, 1, 1], [], []>} : vector<2x4xbf16>, vector<4x512xbf16>, vector<2x512xf32> -> vector<2x512xf32>
    %21 = arith.addf %18, %20 : vector<2x512xf32>
    %22 = vector.broadcast %2 : vector<1x512xf32> to vector<2x512xf32>
    %23 = arith.addf %21, %22 : vector<2x512xf32>
    %24 = vector.extract_strided_slice %23 {offsets = [0, 0], sizes = [2, 384], strides = [1, 1]} : vector<2x512xf32> to vector<2x384xf32>
    %25 = arith.negf %24 : vector<2x384xf32>
    %26 = math.exp %25 : vector<2x384xf32>
    %cst_28 = arith.constant 1.000000e+00 : f32
    %27 = vector.broadcast %cst_28 : f32 to vector<2x384xf32>
    %28 = arith.addf %27, %26 : vector<2x384xf32>
    %29 = arith.divf %27, %28 : vector<2x384xf32>
    %30 = vector.extract_strided_slice %23 {offsets = [0, 384], sizes = [2, 128], strides = [1, 1]} : vector<2x512xf32> to vector<2x128xf32>
    %31 = math.tanh %30 : vector<2x128xf32>
    %32 = vector.extract_strided_slice %29 {offsets = [0, 0], sizes = [2, 128], strides = [1, 1]} : vector<2x384xf32> to vector<2x128xf32>
    %33 = vector.extract_strided_slice %29 {offsets = [0, 128], sizes = [2, 128], strides = [1, 1]} : vector<2x384xf32> to vector<2x128xf32>
    %34 = vector.extract_strided_slice %29 {offsets = [0, 256], sizes = [2, 128], strides = [1, 1]} : vector<2x384xf32> to vector<2x128xf32>
    %35 = arith.mulf %33, %16 : vector<2x128xf32>
    %36 = arith.mulf %32, %31 : vector<2x128xf32>
    %37 = arith.addf %35, %36 : vector<2x128xf32>
    %38 = math.tanh %37 : vector<2x128xf32>
    %39 = arith.mulf %34, %38 : vector<2x128xf32>
    %40 = arith.truncf %39 : vector<2x128xf32> to vector<2x128xbf16>
    %cst_29 = arith.constant dense<0.000000e+00> : vector<2x128xf32>
    %41 = tpu.matmul %40, %3, %cst_29 {dimension_numbers = #tpu.dot_dimension_numbers<[1], [0], [0], [1], [0, 0, 1, 1], [], []>} : vector<2x128xbf16>, vector<128x128xbf16>, vector<2x128xf32> -> vector<2x128xf32>
    %42 = vector.broadcast %4 : vector<1x128xf32> to vector<2x128xf32>
    %43 = arith.addf %41, %42 : vector<2x128xf32>
    %cst_30 = arith.constant 0.000000e+00 : f32
    %44 = vector.broadcast %cst_30 : f32 to vector<2x128xf32>
    %45 = arith.cmpf oge, %43, %44 : vector<2x128xf32>
    %cst_31 = arith.constant 0.00999999977 : f32
    %46 = vector.broadcast %cst_31 : f32 to vector<2x128xf32>
    %47 = arith.mulf %46, %43 : vector<2x128xf32>
    %48 = arith.select %45, %43, %47 : vector<2x128xi1>, vector<2x128xf32>
    %49 = arith.truncf %48 : vector<2x128xf32> to vector<2x128xbf16>
    %cst_32 = arith.constant dense<0.000000e+00> : vector<2x384xf32>
    %50 = tpu.matmul %49, %5, %cst_32 {dimension_numbers = #tpu.dot_dimension_numbers<[1], [0], [0], [1], [0, 0, 1, 1], [], []>} : vector<2x128xbf16>, vector<128x384xbf16>, vector<2x384xf32> -> vector<2x384xf32>
    %51 = vector.broadcast %6 : vector<1x384xf32> to vector<2x384xf32>
    %52 = arith.addf %50, %51 : vector<2x384xf32>
    %53 = vector.extract_strided_slice %52 {offsets = [0, 0], sizes = [2, 128], strides = [1, 1]} : vector<2x384xf32> to vector<2x128xf32>
    %54 = vector.extract_strided_slice %52 {offsets = [0, 128], sizes = [2, 128], strides = [1, 1]} : vector<2x384xf32> to vector<2x128xf32>
    %55 = vector.extract_strided_slice %52 {offsets = [0, 256], sizes = [2, 128], strides = [1, 1]} : vector<2x384xf32> to vector<2x128xf32>
    %56 = vector.extract_strided_slice %53 {offsets = [0, 0], sizes = [2, 32], strides = [1, 1]} : vector<2x128xf32> to vector<2x32xf32>
    %57 = vector.extract_strided_slice %54 {offsets = [0, 0], sizes = [2, 32], strides = [1, 1]} : vector<2x128xf32> to vector<2x32xf32>
    %58 = vector.extract_strided_slice %55 {offsets = [0, 0], sizes = [2, 32], strides = [1, 1]} : vector<2x128xf32> to vector<2x32xf32>
    %59 = vector.extract_strided_slice %57 {offsets = [0, 0], sizes = [1, 32], strides = [1, 1]} : vector<2x32xf32> to vector<1x32xf32>
    %60 = vector.broadcast %59 : vector<1x32xf32> to vector<2x32xf32>
    %61 = arith.mulf %56, %60 : vector<2x32xf32>
    %cst_33 = arith.constant dense<0.000000e+00> : vector<2xf32>
    %62 = vector.multi_reduction <add>, %61, %cst_33 [1] : vector<2x32xf32> to vector<2xf32>
    %63 = vector.shape_cast %62 : vector<2xf32> to vector<2x1xf32>
    %64 = vector.extract_strided_slice %57 {offsets = [1, 0], sizes = [1, 32], strides = [1, 1]} : vector<2x32xf32> to vector<1x32xf32>
    %65 = vector.broadcast %64 : vector<1x32xf32> to vector<2x32xf32>
    %66 = arith.mulf %56, %65 : vector<2x32xf32>
    %cst_34 = arith.constant dense<0.000000e+00> : vector<2xf32>
    %67 = vector.multi_reduction <add>, %66, %cst_34 [1] : vector<2x32xf32> to vector<2xf32>
    %68 = vector.shape_cast %67 : vector<2xf32> to vector<2x1xf32>
    %69 = tpu.concatenate %63, %68 in 1 : vector<2x1xf32>, vector<2x1xf32> -> vector<2x2xf32>
    %cst_35 = arith.constant 0.176776692 : f32
    %70 = vector.broadcast %cst_35 : f32 to vector<2x2xf32>
    %71 = arith.mulf %69, %70 : vector<2x2xf32>
    %cst_36 = arith.constant dense<0xFF800000> : vector<2xf32>
    %72 = vector.multi_reduction <maximumf>, %71, %cst_36 [1] : vector<2x2xf32> to vector<2xf32>
    %73 = vector.shape_cast %72 : vector<2xf32> to vector<2x1xf32>
    %74 = vector.broadcast %73 : vector<2x1xf32> to vector<2x2xf32>
    %75 = arith.subf %71, %74 : vector<2x2xf32>
    %76 = math.exp %75 : vector<2x2xf32>
    %cst_37 = arith.constant dense<0.000000e+00> : vector<2xf32>
    %77 = vector.multi_reduction <add>, %76, %cst_37 [1] : vector<2x2xf32> to vector<2xf32>
    %78 = vector.shape_cast %77 : vector<2xf32> to vector<2x1xf32>
    %79 = tpu.reciprocal %78 {approx = true} : vector<2x1xf32> -> vector<2x1xf32>
    %80 = vector.broadcast %79 : vector<2x1xf32> to vector<2x2xf32>
    %81 = arith.mulf %76, %80 : vector<2x2xf32>
    %82 = vector.extract_strided_slice %81 {offsets = [0, 0], sizes = [2, 1], strides = [1, 1]} : vector<2x2xf32> to vector<2x1xf32>
    %83 = vector.extract_strided_slice %58 {offsets = [0, 0], sizes = [1, 32], strides = [1, 1]} : vector<2x32xf32> to vector<1x32xf32>
    %84 = vector.broadcast %82 : vector<2x1xf32> to vector<2x32xf32>
    %85 = vector.broadcast %83 : vector<1x32xf32> to vector<2x32xf32>
    %86 = arith.mulf %84, %85 : vector<2x32xf32>
    %87 = vector.extract_strided_slice %81 {offsets = [0, 1], sizes = [2, 1], strides = [1, 1]} : vector<2x2xf32> to vector<2x1xf32>
    %88 = vector.extract_strided_slice %58 {offsets = [1, 0], sizes = [1, 32], strides = [1, 1]} : vector<2x32xf32> to vector<1x32xf32>
    %89 = vector.broadcast %87 : vector<2x1xf32> to vector<2x32xf32>
    %90 = vector.broadcast %88 : vector<1x32xf32> to vector<2x32xf32>
    %91 = arith.mulf %89, %90 : vector<2x32xf32>
    %92 = arith.addf %86, %91 : vector<2x32xf32>
    %93 = vector.extract_strided_slice %53 {offsets = [0, 32], sizes = [2, 32], strides = [1, 1]} : vector<2x128xf32> to vector<2x32xf32>
    %94 = vector.extract_strided_slice %54 {offsets = [0, 32], sizes = [2, 32], strides = [1, 1]} : vector<2x128xf32> to vector<2x32xf32>
    %95 = vector.extract_strided_slice %55 {offsets = [0, 32], sizes = [2, 32], strides = [1, 1]} : vector<2x128xf32> to vector<2x32xf32>
    %96 = vector.extract_strided_slice %94 {offsets = [0, 0], sizes = [1, 32], strides = [1, 1]} : vector<2x32xf32> to vector<1x32xf32>
    %97 = vector.broadcast %96 : vector<1x32xf32> to vector<2x32xf32>
    %98 = arith.mulf %93, %97 : vector<2x32xf32>
    %cst_38 = arith.constant dense<0.000000e+00> : vector<2xf32>
    %99 = vector.multi_reduction <add>, %98, %cst_38 [1] : vector<2x32xf32> to vector<2xf32>
    %100 = vector.shape_cast %99 : vector<2xf32> to vector<2x1xf32>
    %101 = vector.extract_strided_slice %94 {offsets = [1, 0], sizes = [1, 32], strides = [1, 1]} : vector<2x32xf32> to vector<1x32xf32>
    %102 = vector.broadcast %101 : vector<1x32xf32> to vector<2x32xf32>
    %103 = arith.mulf %93, %102 : vector<2x32xf32>
    %cst_39 = arith.constant dense<0.000000e+00> : vector<2xf32>
    %104 = vector.multi_reduction <add>, %103, %cst_39 [1] : vector<2x32xf32> to vector<2xf32>
    %105 = vector.shape_cast %104 : vector<2xf32> to vector<2x1xf32>
    %106 = tpu.concatenate %100, %105 in 1 : vector<2x1xf32>, vector<2x1xf32> -> vector<2x2xf32>
    %cst_40 = arith.constant 0.176776692 : f32
    %107 = vector.broadcast %cst_40 : f32 to vector<2x2xf32>
    %108 = arith.mulf %106, %107 : vector<2x2xf32>
    %cst_41 = arith.constant dense<0xFF800000> : vector<2xf32>
    %109 = vector.multi_reduction <maximumf>, %108, %cst_41 [1] : vector<2x2xf32> to vector<2xf32>
    %110 = vector.shape_cast %109 : vector<2xf32> to vector<2x1xf32>
    %111 = vector.broadcast %110 : vector<2x1xf32> to vector<2x2xf32>
    %112 = arith.subf %108, %111 : vector<2x2xf32>
    %113 = math.exp %112 : vector<2x2xf32>
    %cst_42 = arith.constant dense<0.000000e+00> : vector<2xf32>
    %114 = vector.multi_reduction <add>, %113, %cst_42 [1] : vector<2x2xf32> to vector<2xf32>
    %115 = vector.shape_cast %114 : vector<2xf32> to vector<2x1xf32>
    %116 = tpu.reciprocal %115 {approx = true} : vector<2x1xf32> -> vector<2x1xf32>
    %117 = vector.broadcast %116 : vector<2x1xf32> to vector<2x2xf32>
    %118 = arith.mulf %113, %117 : vector<2x2xf32>
    %119 = vector.extract_strided_slice %118 {offsets = [0, 0], sizes = [2, 1], strides = [1, 1]} : vector<2x2xf32> to vector<2x1xf32>
    %120 = vector.extract_strided_slice %95 {offsets = [0, 0], sizes = [1, 32], strides = [1, 1]} : vector<2x32xf32> to vector<1x32xf32>
    %121 = vector.broadcast %119 : vector<2x1xf32> to vector<2x32xf32>
    %122 = vector.broadcast %120 : vector<1x32xf32> to vector<2x32xf32>
    %123 = arith.mulf %121, %122 : vector<2x32xf32>
    %124 = vector.extract_strided_slice %118 {offsets = [0, 1], sizes = [2, 1], strides = [1, 1]} : vector<2x2xf32> to vector<2x1xf32>
    %125 = vector.extract_strided_slice %95 {offsets = [1, 0], sizes = [1, 32], strides = [1, 1]} : vector<2x32xf32> to vector<1x32xf32>
    %126 = vector.broadcast %124 : vector<2x1xf32> to vector<2x32xf32>
    %127 = vector.broadcast %125 : vector<1x32xf32> to vector<2x32xf32>
    %128 = arith.mulf %126, %127 : vector<2x32xf32>
    %129 = arith.addf %123, %128 : vector<2x32xf32>
    %130 = vector.extract_strided_slice %53 {offsets = [0, 64], sizes = [2, 32], strides = [1, 1]} : vector<2x128xf32> to vector<2x32xf32>
    %131 = vector.extract_strided_slice %54 {offsets = [0, 64], sizes = [2, 32], strides = [1, 1]} : vector<2x128xf32> to vector<2x32xf32>
    %132 = vector.extract_strided_slice %55 {offsets = [0, 64], sizes = [2, 32], strides = [1, 1]} : vector<2x128xf32> to vector<2x32xf32>
    %133 = vector.extract_strided_slice %131 {offsets = [0, 0], sizes = [1, 32], strides = [1, 1]} : vector<2x32xf32> to vector<1x32xf32>
    %134 = vector.broadcast %133 : vector<1x32xf32> to vector<2x32xf32>
    %135 = arith.mulf %130, %134 : vector<2x32xf32>
    %cst_43 = arith.constant dense<0.000000e+00> : vector<2xf32>
    %136 = vector.multi_reduction <add>, %135, %cst_43 [1] : vector<2x32xf32> to vector<2xf32>
    %137 = vector.shape_cast %136 : vector<2xf32> to vector<2x1xf32>
    %138 = vector.extract_strided_slice %131 {offsets = [1, 0], sizes = [1, 32], strides = [1, 1]} : vector<2x32xf32> to vector<1x32xf32>
    %139 = vector.broadcast %138 : vector<1x32xf32> to vector<2x32xf32>
    %140 = arith.mulf %130, %139 : vector<2x32xf32>
    %cst_44 = arith.constant dense<0.000000e+00> : vector<2xf32>
    %141 = vector.multi_reduction <add>, %140, %cst_44 [1] : vector<2x32xf32> to vector<2xf32>
    %142 = vector.shape_cast %141 : vector<2xf32> to vector<2x1xf32>
    %143 = tpu.concatenate %137, %142 in 1 : vector<2x1xf32>, vector<2x1xf32> -> vector<2x2xf32>
    %cst_45 = arith.constant 0.176776692 : f32
    %144 = vector.broadcast %cst_45 : f32 to vector<2x2xf32>
    %145 = arith.mulf %143, %144 : vector<2x2xf32>
    %cst_46 = arith.constant dense<0xFF800000> : vector<2xf32>
    %146 = vector.multi_reduction <maximumf>, %145, %cst_46 [1] : vector<2x2xf32> to vector<2xf32>
    %147 = vector.shape_cast %146 : vector<2xf32> to vector<2x1xf32>
    %148 = vector.broadcast %147 : vector<2x1xf32> to vector<2x2xf32>
    %149 = arith.subf %145, %148 : vector<2x2xf32>
    %150 = math.exp %149 : vector<2x2xf32>
    %cst_47 = arith.constant dense<0.000000e+00> : vector<2xf32>
    %151 = vector.multi_reduction <add>, %150, %cst_47 [1] : vector<2x2xf32> to vector<2xf32>
    %152 = vector.shape_cast %151 : vector<2xf32> to vector<2x1xf32>
    %153 = tpu.reciprocal %152 {approx = true} : vector<2x1xf32> -> vector<2x1xf32>
    %154 = vector.broadcast %153 : vector<2x1xf32> to vector<2x2xf32>
    %155 = arith.mulf %150, %154 : vector<2x2xf32>
    %156 = vector.extract_strided_slice %155 {offsets = [0, 0], sizes = [2, 1], strides = [1, 1]} : vector<2x2xf32> to vector<2x1xf32>
    %157 = vector.extract_strided_slice %132 {offsets = [0, 0], sizes = [1, 32], strides = [1, 1]} : vector<2x32xf32> to vector<1x32xf32>
    %158 = vector.broadcast %156 : vector<2x1xf32> to vector<2x32xf32>
    %159 = vector.broadcast %157 : vector<1x32xf32> to vector<2x32xf32>
    %160 = arith.mulf %158, %159 : vector<2x32xf32>
    %161 = vector.extract_strided_slice %155 {offsets = [0, 1], sizes = [2, 1], strides = [1, 1]} : vector<2x2xf32> to vector<2x1xf32>
    %162 = vector.extract_strided_slice %132 {offsets = [1, 0], sizes = [1, 32], strides = [1, 1]} : vector<2x32xf32> to vector<1x32xf32>
    %163 = vector.broadcast %161 : vector<2x1xf32> to vector<2x32xf32>
    %164 = vector.broadcast %162 : vector<1x32xf32> to vector<2x32xf32>
    %165 = arith.mulf %163, %164 : vector<2x32xf32>
    %166 = arith.addf %160, %165 : vector<2x32xf32>
    %167 = vector.extract_strided_slice %53 {offsets = [0, 96], sizes = [2, 32], strides = [1, 1]} : vector<2x128xf32> to vector<2x32xf32>
    %168 = vector.extract_strided_slice %54 {offsets = [0, 96], sizes = [2, 32], strides = [1, 1]} : vector<2x128xf32> to vector<2x32xf32>
    %169 = vector.extract_strided_slice %55 {offsets = [0, 96], sizes = [2, 32], strides = [1, 1]} : vector<2x128xf32> to vector<2x32xf32>
    %170 = vector.extract_strided_slice %168 {offsets = [0, 0], sizes = [1, 32], strides = [1, 1]} : vector<2x32xf32> to vector<1x32xf32>
    %171 = vector.broadcast %170 : vector<1x32xf32> to vector<2x32xf32>
    %172 = arith.mulf %167, %171 : vector<2x32xf32>
    %cst_48 = arith.constant dense<0.000000e+00> : vector<2xf32>
    %173 = vector.multi_reduction <add>, %172, %cst_48 [1] : vector<2x32xf32> to vector<2xf32>
    %174 = vector.shape_cast %173 : vector<2xf32> to vector<2x1xf32>
    %175 = vector.extract_strided_slice %168 {offsets = [1, 0], sizes = [1, 32], strides = [1, 1]} : vector<2x32xf32> to vector<1x32xf32>
    %176 = vector.broadcast %175 : vector<1x32xf32> to vector<2x32xf32>
    %177 = arith.mulf %167, %176 : vector<2x32xf32>
    %cst_49 = arith.constant dense<0.000000e+00> : vector<2xf32>
    %178 = vector.multi_reduction <add>, %177, %cst_49 [1] : vector<2x32xf32> to vector<2xf32>
    %179 = vector.shape_cast %178 : vector<2xf32> to vector<2x1xf32>
    %180 = tpu.concatenate %174, %179 in 1 : vector<2x1xf32>, vector<2x1xf32> -> vector<2x2xf32>
    %cst_50 = arith.constant 0.176776692 : f32
    %181 = vector.broadcast %cst_50 : f32 to vector<2x2xf32>
    %182 = arith.mulf %180, %181 : vector<2x2xf32>
    %cst_51 = arith.constant dense<0xFF800000> : vector<2xf32>
    %183 = vector.multi_reduction <maximumf>, %182, %cst_51 [1] : vector<2x2xf32> to vector<2xf32>
    %184 = vector.shape_cast %183 : vector<2xf32> to vector<2x1xf32>
    %185 = vector.broadcast %184 : vector<2x1xf32> to vector<2x2xf32>
    %186 = arith.subf %182, %185 : vector<2x2xf32>
    %187 = math.exp %186 : vector<2x2xf32>
    %cst_52 = arith.constant dense<0.000000e+00> : vector<2xf32>
    %188 = vector.multi_reduction <add>, %187, %cst_52 [1] : vector<2x2xf32> to vector<2xf32>
    %189 = vector.shape_cast %188 : vector<2xf32> to vector<2x1xf32>
    %190 = tpu.reciprocal %189 {approx = true} : vector<2x1xf32> -> vector<2x1xf32>
    %191 = vector.broadcast %190 : vector<2x1xf32> to vector<2x2xf32>
    %192 = arith.mulf %187, %191 : vector<2x2xf32>
    %193 = vector.extract_strided_slice %192 {offsets = [0, 0], sizes = [2, 1], strides = [1, 1]} : vector<2x2xf32> to vector<2x1xf32>
    %194 = vector.extract_strided_slice %169 {offsets = [0, 0], sizes = [1, 32], strides = [1, 1]} : vector<2x32xf32> to vector<1x32xf32>
    %195 = vector.broadcast %193 : vector<2x1xf32> to vector<2x32xf32>
    %196 = vector.broadcast %194 : vector<1x32xf32> to vector<2x32xf32>
    %197 = arith.mulf %195, %196 : vector<2x32xf32>
    %198 = vector.extract_strided_slice %192 {offsets = [0, 1], sizes = [2, 1], strides = [1, 1]} : vector<2x2xf32> to vector<2x1xf32>
    %199 = vector.extract_strided_slice %169 {offsets = [1, 0], sizes = [1, 32], strides = [1, 1]} : vector<2x32xf32> to vector<1x32xf32>
    %200 = vector.broadcast %198 : vector<2x1xf32> to vector<2x32xf32>
    %201 = vector.broadcast %199 : vector<1x32xf32> to vector<2x32xf32>
    %202 = arith.mulf %200, %201 : vector<2x32xf32>
    %203 = arith.addf %197, %202 : vector<2x32xf32>
    %204 = tpu.concatenate %92, %129, %166, %203 in 1 : vector<2x32xf32>, vector<2x32xf32>, vector<2x32xf32>, vector<2x32xf32> -> vector<2x128xf32>
    %205 = arith.truncf %204 : vector<2x128xf32> to vector<2x128xbf16>
    %cst_53 = arith.constant dense<0.000000e+00> : vector<2x128xf32>
    %206 = tpu.matmul %205, %7, %cst_53 {dimension_numbers = #tpu.dot_dimension_numbers<[1], [0], [0], [1], [0, 0, 1, 1], [], []>} : vector<2x128xbf16>, vector<128x128xbf16>, vector<2x128xf32> -> vector<2x128xf32>
    %207 = vector.broadcast %8 : vector<1x128xf32> to vector<2x128xf32>
    %208 = arith.addf %206, %207 : vector<2x128xf32>
    %209 = vector.extract_strided_slice %208 {offsets = [0, 0], sizes = [2, 32], strides = [1, 1]} : vector<2x128xf32> to vector<2x32xf32>
    %210 = vector.extract_strided_slice %9 {offsets = [0, 0], sizes = [1, 32], strides = [1, 1]} : vector<4x32xf32> to vector<1x32xf32>
    %211 = vector.broadcast %210 : vector<1x32xf32> to vector<2x32xf32>
    %212 = arith.mulf %209, %211 : vector<2x32xf32>
    %cst_54 = arith.constant dense<0.000000e+00> : vector<2xf32>
    %213 = vector.multi_reduction <add>, %212, %cst_54 [1] : vector<2x32xf32> to vector<2xf32>
    %214 = vector.shape_cast %213 : vector<2xf32> to vector<2x1xf32>
    %215 = vector.extract_strided_slice %208 {offsets = [0, 32], sizes = [2, 32], strides = [1, 1]} : vector<2x128xf32> to vector<2x32xf32>
    %216 = vector.extract_strided_slice %9 {offsets = [1, 0], sizes = [1, 32], strides = [1, 1]} : vector<4x32xf32> to vector<1x32xf32>
    %217 = vector.broadcast %216 : vector<1x32xf32> to vector<2x32xf32>
    %218 = arith.mulf %215, %217 : vector<2x32xf32>
    %cst_55 = arith.constant dense<0.000000e+00> : vector<2xf32>
    %219 = vector.multi_reduction <add>, %218, %cst_55 [1] : vector<2x32xf32> to vector<2xf32>
    %220 = vector.shape_cast %219 : vector<2xf32> to vector<2x1xf32>
    %221 = vector.extract_strided_slice %208 {offsets = [0, 64], sizes = [2, 32], strides = [1, 1]} : vector<2x128xf32> to vector<2x32xf32>
    %222 = vector.extract_strided_slice %9 {offsets = [2, 0], sizes = [1, 32], strides = [1, 1]} : vector<4x32xf32> to vector<1x32xf32>
    %223 = vector.broadcast %222 : vector<1x32xf32> to vector<2x32xf32>
    %224 = arith.mulf %221, %223 : vector<2x32xf32>
    %cst_56 = arith.constant dense<0.000000e+00> : vector<2xf32>
    %225 = vector.multi_reduction <add>, %224, %cst_56 [1] : vector<2x32xf32> to vector<2xf32>
    %226 = vector.shape_cast %225 : vector<2xf32> to vector<2x1xf32>
    %227 = vector.extract_strided_slice %208 {offsets = [0, 96], sizes = [2, 32], strides = [1, 1]} : vector<2x128xf32> to vector<2x32xf32>
    %228 = vector.extract_strided_slice %9 {offsets = [3, 0], sizes = [1, 32], strides = [1, 1]} : vector<4x32xf32> to vector<1x32xf32>
    %229 = vector.broadcast %228 : vector<1x32xf32> to vector<2x32xf32>
    %230 = arith.mulf %227, %229 : vector<2x32xf32>
    %cst_57 = arith.constant dense<0.000000e+00> : vector<2xf32>
    %231 = vector.multi_reduction <add>, %230, %cst_57 [1] : vector<2x32xf32> to vector<2xf32>
    %232 = vector.shape_cast %231 : vector<2xf32> to vector<2x1xf32>
    %233 = tpu.concatenate %214, %220, %226, %232 in 1 : vector<2x1xf32>, vector<2x1xf32>, vector<2x1xf32>, vector<2x1xf32> -> vector<2x4xf32>
    %234 = vector.broadcast %10 : vector<1x4xf32> to vector<2x4xf32>
    %235 = arith.addf %233, %234 : vector<2x4xf32>
    %cst_58 = arith.constant 0.000000e+00 : f32
    %236 = vector.broadcast %cst_58 : f32 to vector<2x4xf32>
    %237 = arith.cmpf oge, %235, %236 : vector<2x4xf32>
    %cst_59 = arith.constant 0.00999999977 : f32
    %238 = vector.broadcast %cst_59 : f32 to vector<2x4xf32>
    %239 = arith.mulf %238, %235 : vector<2x4xf32>
    %240 = arith.select %237, %235, %239 : vector<2x4xi1>, vector<2x4xf32>
    %241 = arith.truncf %39 : vector<2x128xf32> to vector<2x128xbf16>
    %cst_60 = arith.constant dense<0.000000e+00> : vector<2x512xf32>
    %242 = tpu.matmul %241, %0, %cst_60 {dimension_numbers = #tpu.dot_dimension_numbers<[1], [0], [0], [1], [0, 0, 1, 1], [], []>} : vector<2x128xbf16>, vector<128x512xbf16>, vector<2x512xf32> -> vector<2x512xf32>
    %243 = arith.truncf %240 : vector<2x4xf32> to vector<2x4xbf16>
    %cst_61 = arith.constant dense<0.000000e+00> : vector<2x512xf32>
    %244 = tpu.matmul %243, %1, %cst_61 {dimension_numbers = #tpu.dot_dimension_numbers<[1], [0], [0], [1], [0, 0, 1, 1], [], []>} : vector<2x4xbf16>, vector<4x512xbf16>, vector<2x512xf32> -> vector<2x512xf32>
    %245 = arith.addf %242, %244 : vector<2x512xf32>
    %246 = vector.broadcast %2 : vector<1x512xf32> to vector<2x512xf32>
    %247 = arith.addf %245, %246 : vector<2x512xf32>
    %248 = vector.extract_strided_slice %247 {offsets = [0, 0], sizes = [2, 384], strides = [1, 1]} : vector<2x512xf32> to vector<2x384xf32>
    %249 = arith.negf %248 : vector<2x384xf32>
    %250 = math.exp %249 : vector<2x384xf32>
    %cst_62 = arith.constant 1.000000e+00 : f32
    %251 = vector.broadcast %cst_62 : f32 to vector<2x384xf32>
    %252 = arith.addf %251, %250 : vector<2x384xf32>
    %253 = arith.divf %251, %252 : vector<2x384xf32>
    %254 = vector.extract_strided_slice %247 {offsets = [0, 384], sizes = [2, 128], strides = [1, 1]} : vector<2x512xf32> to vector<2x128xf32>
    %255 = math.tanh %254 : vector<2x128xf32>
    %256 = vector.extract_strided_slice %253 {offsets = [0, 0], sizes = [2, 128], strides = [1, 1]} : vector<2x384xf32> to vector<2x128xf32>
    %257 = vector.extract_strided_slice %253 {offsets = [0, 128], sizes = [2, 128], strides = [1, 1]} : vector<2x384xf32> to vector<2x128xf32>
    %258 = vector.extract_strided_slice %253 {offsets = [0, 256], sizes = [2, 128], strides = [1, 1]} : vector<2x384xf32> to vector<2x128xf32>
    %259 = arith.mulf %257, %37 : vector<2x128xf32>
    %260 = arith.mulf %256, %255 : vector<2x128xf32>
    %261 = arith.addf %259, %260 : vector<2x128xf32>
    %262 = math.tanh %261 : vector<2x128xf32>
    %263 = arith.mulf %258, %262 : vector<2x128xf32>
    %264 = arith.truncf %263 : vector<2x128xf32> to vector<2x128xbf16>
    %cst_63 = arith.constant dense<0.000000e+00> : vector<2x128xf32>
    %265 = tpu.matmul %264, %3, %cst_63 {dimension_numbers = #tpu.dot_dimension_numbers<[1], [0], [0], [1], [0, 0, 1, 1], [], []>} : vector<2x128xbf16>, vector<128x128xbf16>, vector<2x128xf32> -> vector<2x128xf32>
    %266 = vector.broadcast %4 : vector<1x128xf32> to vector<2x128xf32>
    %267 = arith.addf %265, %266 : vector<2x128xf32>
    %cst_64 = arith.constant 0.000000e+00 : f32
    %268 = vector.broadcast %cst_64 : f32 to vector<2x128xf32>
    %269 = arith.cmpf oge, %267, %268 : vector<2x128xf32>
    %cst_65 = arith.constant 0.00999999977 : f32
    %270 = vector.broadcast %cst_65 : f32 to vector<2x128xf32>
    %271 = arith.mulf %270, %267 : vector<2x128xf32>
    %272 = arith.select %269, %267, %271 : vector<2x128xi1>, vector<2x128xf32>
    %273 = arith.truncf %272 : vector<2x128xf32> to vector<2x128xbf16>
    %cst_66 = arith.constant dense<0.000000e+00> : vector<2x384xf32>
    %274 = tpu.matmul %273, %5, %cst_66 {dimension_numbers = #tpu.dot_dimension_numbers<[1], [0], [0], [1], [0, 0, 1, 1], [], []>} : vector<2x128xbf16>, vector<128x384xbf16>, vector<2x384xf32> -> vector<2x384xf32>
    %275 = vector.broadcast %6 : vector<1x384xf32> to vector<2x384xf32>
    %276 = arith.addf %274, %275 : vector<2x384xf32>
    %277 = vector.extract_strided_slice %276 {offsets = [0, 0], sizes = [2, 128], strides = [1, 1]} : vector<2x384xf32> to vector<2x128xf32>
    %278 = vector.extract_strided_slice %276 {offsets = [0, 128], sizes = [2, 128], strides = [1, 1]} : vector<2x384xf32> to vector<2x128xf32>
    %279 = vector.extract_strided_slice %276 {offsets = [0, 256], sizes = [2, 128], strides = [1, 1]} : vector<2x384xf32> to vector<2x128xf32>
    %280 = vector.extract_strided_slice %277 {offsets = [0, 0], sizes = [2, 32], strides = [1, 1]} : vector<2x128xf32> to vector<2x32xf32>
    %281 = vector.extract_strided_slice %278 {offsets = [0, 0], sizes = [2, 32], strides = [1, 1]} : vector<2x128xf32> to vector<2x32xf32>
    %282 = vector.extract_strided_slice %279 {offsets = [0, 0], sizes = [2, 32], strides = [1, 1]} : vector<2x128xf32> to vector<2x32xf32>
    %283 = vector.extract_strided_slice %281 {offsets = [0, 0], sizes = [1, 32], strides = [1, 1]} : vector<2x32xf32> to vector<1x32xf32>
    %284 = vector.broadcast %283 : vector<1x32xf32> to vector<2x32xf32>
    %285 = arith.mulf %280, %284 : vector<2x32xf32>
    %cst_67 = arith.constant dense<0.000000e+00> : vector<2xf32>
    %286 = vector.multi_reduction <add>, %285, %cst_67 [1] : vector<2x32xf32> to vector<2xf32>
    %287 = vector.shape_cast %286 : vector<2xf32> to vector<2x1xf32>
    %288 = vector.extract_strided_slice %281 {offsets = [1, 0], sizes = [1, 32], strides = [1, 1]} : vector<2x32xf32> to vector<1x32xf32>
    %289 = vector.broadcast %288 : vector<1x32xf32> to vector<2x32xf32>
    %290 = arith.mulf %280, %289 : vector<2x32xf32>
    %cst_68 = arith.constant dense<0.000000e+00> : vector<2xf32>
    %291 = vector.multi_reduction <add>, %290, %cst_68 [1] : vector<2x32xf32> to vector<2xf32>
    %292 = vector.shape_cast %291 : vector<2xf32> to vector<2x1xf32>
    %293 = tpu.concatenate %287, %292 in 1 : vector<2x1xf32>, vector<2x1xf32> -> vector<2x2xf32>
    %cst_69 = arith.constant 0.176776692 : f32
    %294 = vector.broadcast %cst_69 : f32 to vector<2x2xf32>
    %295 = arith.mulf %293, %294 : vector<2x2xf32>
    %cst_70 = arith.constant dense<0xFF800000> : vector<2xf32>
    %296 = vector.multi_reduction <maximumf>, %295, %cst_70 [1] : vector<2x2xf32> to vector<2xf32>
    %297 = vector.shape_cast %296 : vector<2xf32> to vector<2x1xf32>
    %298 = vector.broadcast %297 : vector<2x1xf32> to vector<2x2xf32>
    %299 = arith.subf %295, %298 : vector<2x2xf32>
    %300 = math.exp %299 : vector<2x2xf32>
    %cst_71 = arith.constant dense<0.000000e+00> : vector<2xf32>
    %301 = vector.multi_reduction <add>, %300, %cst_71 [1] : vector<2x2xf32> to vector<2xf32>
    %302 = vector.shape_cast %301 : vector<2xf32> to vector<2x1xf32>
    %303 = tpu.reciprocal %302 {approx = true} : vector<2x1xf32> -> vector<2x1xf32>
    %304 = vector.broadcast %303 : vector<2x1xf32> to vector<2x2xf32>
    %305 = arith.mulf %300, %304 : vector<2x2xf32>
    %306 = vector.extract_strided_slice %305 {offsets = [0, 0], sizes = [2, 1], strides = [1, 1]} : vector<2x2xf32> to vector<2x1xf32>
    %307 = vector.extract_strided_slice %282 {offsets = [0, 0], sizes = [1, 32], strides = [1, 1]} : vector<2x32xf32> to vector<1x32xf32>
    %308 = vector.broadcast %306 : vector<2x1xf32> to vector<2x32xf32>
    %309 = vector.broadcast %307 : vector<1x32xf32> to vector<2x32xf32>
    %310 = arith.mulf %308, %309 : vector<2x32xf32>
    %311 = vector.extract_strided_slice %305 {offsets = [0, 1], sizes = [2, 1], strides = [1, 1]} : vector<2x2xf32> to vector<2x1xf32>
    %312 = vector.extract_strided_slice %282 {offsets = [1, 0], sizes = [1, 32], strides = [1, 1]} : vector<2x32xf32> to vector<1x32xf32>
    %313 = vector.broadcast %311 : vector<2x1xf32> to vector<2x32xf32>
    %314 = vector.broadcast %312 : vector<1x32xf32> to vector<2x32xf32>
    %315 = arith.mulf %313, %314 : vector<2x32xf32>
    %316 = arith.addf %310, %315 : vector<2x32xf32>
    %317 = vector.extract_strided_slice %277 {offsets = [0, 32], sizes = [2, 32], strides = [1, 1]} : vector<2x128xf32> to vector<2x32xf32>
    %318 = vector.extract_strided_slice %278 {offsets = [0, 32], sizes = [2, 32], strides = [1, 1]} : vector<2x128xf32> to vector<2x32xf32>
    %319 = vector.extract_strided_slice %279 {offsets = [0, 32], sizes = [2, 32], strides = [1, 1]} : vector<2x128xf32> to vector<2x32xf32>
    %320 = vector.extract_strided_slice %318 {offsets = [0, 0], sizes = [1, 32], strides = [1, 1]} : vector<2x32xf32> to vector<1x32xf32>
    %321 = vector.broadcast %320 : vector<1x32xf32> to vector<2x32xf32>
    %322 = arith.mulf %317, %321 : vector<2x32xf32>
    %cst_72 = arith.constant dense<0.000000e+00> : vector<2xf32>
    %323 = vector.multi_reduction <add>, %322, %cst_72 [1] : vector<2x32xf32> to vector<2xf32>
    %324 = vector.shape_cast %323 : vector<2xf32> to vector<2x1xf32>
    %325 = vector.extract_strided_slice %318 {offsets = [1, 0], sizes = [1, 32], strides = [1, 1]} : vector<2x32xf32> to vector<1x32xf32>
    %326 = vector.broadcast %325 : vector<1x32xf32> to vector<2x32xf32>
    %327 = arith.mulf %317, %326 : vector<2x32xf32>
    %cst_73 = arith.constant dense<0.000000e+00> : vector<2xf32>
    %328 = vector.multi_reduction <add>, %327, %cst_73 [1] : vector<2x32xf32> to vector<2xf32>
    %329 = vector.shape_cast %328 : vector<2xf32> to vector<2x1xf32>
    %330 = tpu.concatenate %324, %329 in 1 : vector<2x1xf32>, vector<2x1xf32> -> vector<2x2xf32>
    %cst_74 = arith.constant 0.176776692 : f32
    %331 = vector.broadcast %cst_74 : f32 to vector<2x2xf32>
    %332 = arith.mulf %330, %331 : vector<2x2xf32>
    %cst_75 = arith.constant dense<0xFF800000> : vector<2xf32>
    %333 = vector.multi_reduction <maximumf>, %332, %cst_75 [1] : vector<2x2xf32> to vector<2xf32>
    %334 = vector.shape_cast %333 : vector<2xf32> to vector<2x1xf32>
    %335 = vector.broadcast %334 : vector<2x1xf32> to vector<2x2xf32>
    %336 = arith.subf %332, %335 : vector<2x2xf32>
    %337 = math.exp %336 : vector<2x2xf32>
    %cst_76 = arith.constant dense<0.000000e+00> : vector<2xf32>
    %338 = vector.multi_reduction <add>, %337, %cst_76 [1] : vector<2x2xf32> to vector<2xf32>
    %339 = vector.shape_cast %338 : vector<2xf32> to vector<2x1xf32>
    %340 = tpu.reciprocal %339 {approx = true} : vector<2x1xf32> -> vector<2x1xf32>
    %341 = vector.broadcast %340 : vector<2x1xf32> to vector<2x2xf32>
    %342 = arith.mulf %337, %341 : vector<2x2xf32>
    %343 = vector.extract_strided_slice %342 {offsets = [0, 0], sizes = [2, 1], strides = [1, 1]} : vector<2x2xf32> to vector<2x1xf32>
    %344 = vector.extract_strided_slice %319 {offsets = [0, 0], sizes = [1, 32], strides = [1, 1]} : vector<2x32xf32> to vector<1x32xf32>
    %345 = vector.broadcast %343 : vector<2x1xf32> to vector<2x32xf32>
    %346 = vector.broadcast %344 : vector<1x32xf32> to vector<2x32xf32>
    %347 = arith.mulf %345, %346 : vector<2x32xf32>
    %348 = vector.extract_strided_slice %342 {offsets = [0, 1], sizes = [2, 1], strides = [1, 1]} : vector<2x2xf32> to vector<2x1xf32>
    %349 = vector.extract_strided_slice %319 {offsets = [1, 0], sizes = [1, 32], strides = [1, 1]} : vector<2x32xf32> to vector<1x32xf32>
    %350 = vector.broadcast %348 : vector<2x1xf32> to vector<2x32xf32>
    %351 = vector.broadcast %349 : vector<1x32xf32> to vector<2x32xf32>
    %352 = arith.mulf %350, %351 : vector<2x32xf32>
    %353 = arith.addf %347, %352 : vector<2x32xf32>
    %354 = vector.extract_strided_slice %277 {offsets = [0, 64], sizes = [2, 32], strides = [1, 1]} : vector<2x128xf32> to vector<2x32xf32>
    %355 = vector.extract_strided_slice %278 {offsets = [0, 64], sizes = [2, 32], strides = [1, 1]} : vector<2x128xf32> to vector<2x32xf32>
    %356 = vector.extract_strided_slice %279 {offsets = [0, 64], sizes = [2, 32], strides = [1, 1]} : vector<2x128xf32> to vector<2x32xf32>
    %357 = vector.extract_strided_slice %355 {offsets = [0, 0], sizes = [1, 32], strides = [1, 1]} : vector<2x32xf32> to vector<1x32xf32>
    %358 = vector.broadcast %357 : vector<1x32xf32> to vector<2x32xf32>
    %359 = arith.mulf %354, %358 : vector<2x32xf32>
    %cst_77 = arith.constant dense<0.000000e+00> : vector<2xf32>
    %360 = vector.multi_reduction <add>, %359, %cst_77 [1] : vector<2x32xf32> to vector<2xf32>
    %361 = vector.shape_cast %360 : vector<2xf32> to vector<2x1xf32>
    %362 = vector.extract_strided_slice %355 {offsets = [1, 0], sizes = [1, 32], strides = [1, 1]} : vector<2x32xf32> to vector<1x32xf32>
    %363 = vector.broadcast %362 : vector<1x32xf32> to vector<2x32xf32>
    %364 = arith.mulf %354, %363 : vector<2x32xf32>
    %cst_78 = arith.constant dense<0.000000e+00> : vector<2xf32>
    %365 = vector.multi_reduction <add>, %364, %cst_78 [1] : vector<2x32xf32> to vector<2xf32>
    %366 = vector.shape_cast %365 : vector<2xf32> to vector<2x1xf32>
    %367 = tpu.concatenate %361, %366 in 1 : vector<2x1xf32>, vector<2x1xf32> -> vector<2x2xf32>
    %cst_79 = arith.constant 0.176776692 : f32
    %368 = vector.broadcast %cst_79 : f32 to vector<2x2xf32>
    %369 = arith.mulf %367, %368 : vector<2x2xf32>
    %cst_80 = arith.constant dense<0xFF800000> : vector<2xf32>
    %370 = vector.multi_reduction <maximumf>, %369, %cst_80 [1] : vector<2x2xf32> to vector<2xf32>
    %371 = vector.shape_cast %370 : vector<2xf32> to vector<2x1xf32>
    %372 = vector.broadcast %371 : vector<2x1xf32> to vector<2x2xf32>
    %373 = arith.subf %369, %372 : vector<2x2xf32>
    %374 = math.exp %373 : vector<2x2xf32>
    %cst_81 = arith.constant dense<0.000000e+00> : vector<2xf32>
    %375 = vector.multi_reduction <add>, %374, %cst_81 [1] : vector<2x2xf32> to vector<2xf32>
    %376 = vector.shape_cast %375 : vector<2xf32> to vector<2x1xf32>
    %377 = tpu.reciprocal %376 {approx = true} : vector<2x1xf32> -> vector<2x1xf32>
    %378 = vector.broadcast %377 : vector<2x1xf32> to vector<2x2xf32>
    %379 = arith.mulf %374, %378 : vector<2x2xf32>
    %380 = vector.extract_strided_slice %379 {offsets = [0, 0], sizes = [2, 1], strides = [1, 1]} : vector<2x2xf32> to vector<2x1xf32>
    %381 = vector.extract_strided_slice %356 {offsets = [0, 0], sizes = [1, 32], strides = [1, 1]} : vector<2x32xf32> to vector<1x32xf32>
    %382 = vector.broadcast %380 : vector<2x1xf32> to vector<2x32xf32>
    %383 = vector.broadcast %381 : vector<1x32xf32> to vector<2x32xf32>
    %384 = arith.mulf %382, %383 : vector<2x32xf32>
    %385 = vector.extract_strided_slice %379 {offsets = [0, 1], sizes = [2, 1], strides = [1, 1]} : vector<2x2xf32> to vector<2x1xf32>
    %386 = vector.extract_strided_slice %356 {offsets = [1, 0], sizes = [1, 32], strides = [1, 1]} : vector<2x32xf32> to vector<1x32xf32>
    %387 = vector.broadcast %385 : vector<2x1xf32> to vector<2x32xf32>
    %388 = vector.broadcast %386 : vector<1x32xf32> to vector<2x32xf32>
    %389 = arith.mulf %387, %388 : vector<2x32xf32>
    %390 = arith.addf %384, %389 : vector<2x32xf32>
    %391 = vector.extract_strided_slice %277 {offsets = [0, 96], sizes = [2, 32], strides = [1, 1]} : vector<2x128xf32> to vector<2x32xf32>
    %392 = vector.extract_strided_slice %278 {offsets = [0, 96], sizes = [2, 32], strides = [1, 1]} : vector<2x128xf32> to vector<2x32xf32>
    %393 = vector.extract_strided_slice %279 {offsets = [0, 96], sizes = [2, 32], strides = [1, 1]} : vector<2x128xf32> to vector<2x32xf32>
    %394 = vector.extract_strided_slice %392 {offsets = [0, 0], sizes = [1, 32], strides = [1, 1]} : vector<2x32xf32> to vector<1x32xf32>
    %395 = vector.broadcast %394 : vector<1x32xf32> to vector<2x32xf32>
    %396 = arith.mulf %391, %395 : vector<2x32xf32>
    %cst_82 = arith.constant dense<0.000000e+00> : vector<2xf32>
    %397 = vector.multi_reduction <add>, %396, %cst_82 [1] : vector<2x32xf32> to vector<2xf32>
    %398 = vector.shape_cast %397 : vector<2xf32> to vector<2x1xf32>
    %399 = vector.extract_strided_slice %392 {offsets = [1, 0], sizes = [1, 32], strides = [1, 1]} : vector<2x32xf32> to vector<1x32xf32>
    %400 = vector.broadcast %399 : vector<1x32xf32> to vector<2x32xf32>
    %401 = arith.mulf %391, %400 : vector<2x32xf32>
    %cst_83 = arith.constant dense<0.000000e+00> : vector<2xf32>
    %402 = vector.multi_reduction <add>, %401, %cst_83 [1] : vector<2x32xf32> to vector<2xf32>
    %403 = vector.shape_cast %402 : vector<2xf32> to vector<2x1xf32>
    %404 = tpu.concatenate %398, %403 in 1 : vector<2x1xf32>, vector<2x1xf32> -> vector<2x2xf32>
    %cst_84 = arith.constant 0.176776692 : f32
    %405 = vector.broadcast %cst_84 : f32 to vector<2x2xf32>
    %406 = arith.mulf %404, %405 : vector<2x2xf32>
    %cst_85 = arith.constant dense<0xFF800000> : vector<2xf32>
    %407 = vector.multi_reduction <maximumf>, %406, %cst_85 [1] : vector<2x2xf32> to vector<2xf32>
    %408 = vector.shape_cast %407 : vector<2xf32> to vector<2x1xf32>
    %409 = vector.broadcast %408 : vector<2x1xf32> to vector<2x2xf32>
    %410 = arith.subf %406, %409 : vector<2x2xf32>
    %411 = math.exp %410 : vector<2x2xf32>
    %cst_86 = arith.constant dense<0.000000e+00> : vector<2xf32>
    %412 = vector.multi_reduction <add>, %411, %cst_86 [1] : vector<2x2xf32> to vector<2xf32>
    %413 = vector.shape_cast %412 : vector<2xf32> to vector<2x1xf32>
    %414 = tpu.reciprocal %413 {approx = true} : vector<2x1xf32> -> vector<2x1xf32>
    %415 = vector.broadcast %414 : vector<2x1xf32> to vector<2x2xf32>
    %416 = arith.mulf %411, %415 : vector<2x2xf32>
    %417 = vector.extract_strided_slice %416 {offsets = [0, 0], sizes = [2, 1], strides = [1, 1]} : vector<2x2xf32> to vector<2x1xf32>
    %418 = vector.extract_strided_slice %393 {offsets = [0, 0], sizes = [1, 32], strides = [1, 1]} : vector<2x32xf32> to vector<1x32xf32>
    %419 = vector.broadcast %417 : vector<2x1xf32> to vector<2x32xf32>
    %420 = vector.broadcast %418 : vector<1x32xf32> to vector<2x32xf32>
    %421 = arith.mulf %419, %420 : vector<2x32xf32>
    %422 = vector.extract_strided_slice %416 {offsets = [0, 1], sizes = [2, 1], strides = [1, 1]} : vector<2x2xf32> to vector<2x1xf32>
    %423 = vector.extract_strided_slice %393 {offsets = [1, 0], sizes = [1, 32], strides = [1, 1]} : vector<2x32xf32> to vector<1x32xf32>
    %424 = vector.broadcast %422 : vector<2x1xf32> to vector<2x32xf32>
    %425 = vector.broadcast %423 : vector<1x32xf32> to vector<2x32xf32>
    %426 = arith.mulf %424, %425 : vector<2x32xf32>
    %427 = arith.addf %421, %426 : vector<2x32xf32>
    %428 = tpu.concatenate %316, %353, %390, %427 in 1 : vector<2x32xf32>, vector<2x32xf32>, vector<2x32xf32>, vector<2x32xf32> -> vector<2x128xf32>
    %429 = arith.truncf %428 : vector<2x128xf32> to vector<2x128xbf16>
    %cst_87 = arith.constant dense<0.000000e+00> : vector<2x128xf32>
    %430 = tpu.matmul %429, %7, %cst_87 {dimension_numbers = #tpu.dot_dimension_numbers<[1], [0], [0], [1], [0, 0, 1, 1], [], []>} : vector<2x128xbf16>, vector<128x128xbf16>, vector<2x128xf32> -> vector<2x128xf32>
    %431 = vector.broadcast %8 : vector<1x128xf32> to vector<2x128xf32>
    %432 = arith.addf %430, %431 : vector<2x128xf32>
    %433 = vector.extract_strided_slice %432 {offsets = [0, 0], sizes = [2, 32], strides = [1, 1]} : vector<2x128xf32> to vector<2x32xf32>
    %434 = vector.extract_strided_slice %9 {offsets = [0, 0], sizes = [1, 32], strides = [1, 1]} : vector<4x32xf32> to vector<1x32xf32>
    %435 = vector.broadcast %434 : vector<1x32xf32> to vector<2x32xf32>
    %436 = arith.mulf %433, %435 : vector<2x32xf32>
    %cst_88 = arith.constant dense<0.000000e+00> : vector<2xf32>
    %437 = vector.multi_reduction <add>, %436, %cst_88 [1] : vector<2x32xf32> to vector<2xf32>
    %438 = vector.shape_cast %437 : vector<2xf32> to vector<2x1xf32>
    %439 = vector.extract_strided_slice %432 {offsets = [0, 32], sizes = [2, 32], strides = [1, 1]} : vector<2x128xf32> to vector<2x32xf32>
    %440 = vector.extract_strided_slice %9 {offsets = [1, 0], sizes = [1, 32], strides = [1, 1]} : vector<4x32xf32> to vector<1x32xf32>
    %441 = vector.broadcast %440 : vector<1x32xf32> to vector<2x32xf32>
    %442 = arith.mulf %439, %441 : vector<2x32xf32>
    %cst_89 = arith.constant dense<0.000000e+00> : vector<2xf32>
    %443 = vector.multi_reduction <add>, %442, %cst_89 [1] : vector<2x32xf32> to vector<2xf32>
    %444 = vector.shape_cast %443 : vector<2xf32> to vector<2x1xf32>
    %445 = vector.extract_strided_slice %432 {offsets = [0, 64], sizes = [2, 32], strides = [1, 1]} : vector<2x128xf32> to vector<2x32xf32>
    %446 = vector.extract_strided_slice %9 {offsets = [2, 0], sizes = [1, 32], strides = [1, 1]} : vector<4x32xf32> to vector<1x32xf32>
    %447 = vector.broadcast %446 : vector<1x32xf32> to vector<2x32xf32>
    %448 = arith.mulf %445, %447 : vector<2x32xf32>
    %cst_90 = arith.constant dense<0.000000e+00> : vector<2xf32>
    %449 = vector.multi_reduction <add>, %448, %cst_90 [1] : vector<2x32xf32> to vector<2xf32>
    %450 = vector.shape_cast %449 : vector<2xf32> to vector<2x1xf32>
    %451 = vector.extract_strided_slice %432 {offsets = [0, 96], sizes = [2, 32], strides = [1, 1]} : vector<2x128xf32> to vector<2x32xf32>
    %452 = vector.extract_strided_slice %9 {offsets = [3, 0], sizes = [1, 32], strides = [1, 1]} : vector<4x32xf32> to vector<1x32xf32>
    %453 = vector.broadcast %452 : vector<1x32xf32> to vector<2x32xf32>
    %454 = arith.mulf %451, %453 : vector<2x32xf32>
    %cst_91 = arith.constant dense<0.000000e+00> : vector<2xf32>
    %455 = vector.multi_reduction <add>, %454, %cst_91 [1] : vector<2x32xf32> to vector<2xf32>
    %456 = vector.shape_cast %455 : vector<2xf32> to vector<2x1xf32>
    %457 = tpu.concatenate %438, %444, %450, %456 in 1 : vector<2x1xf32>, vector<2x1xf32>, vector<2x1xf32>, vector<2x1xf32> -> vector<2x4xf32>
    %458 = vector.broadcast %10 : vector<1x4xf32> to vector<2x4xf32>
    %459 = arith.addf %457, %458 : vector<2x4xf32>
    %cst_92 = arith.constant 0.000000e+00 : f32
    %460 = vector.broadcast %cst_92 : f32 to vector<2x4xf32>
    %461 = arith.cmpf oge, %459, %460 : vector<2x4xf32>
    %cst_93 = arith.constant 0.00999999977 : f32
    %462 = vector.broadcast %cst_93 : f32 to vector<2x4xf32>
    %463 = arith.mulf %462, %459 : vector<2x4xf32>
    %464 = arith.select %461, %459, %463 : vector<2x4xi1>, vector<2x4xf32>
    %465 = arith.truncf %263 : vector<2x128xf32> to vector<2x128xbf16>
    %cst_94 = arith.constant dense<0.000000e+00> : vector<2x512xf32>
    %466 = tpu.matmul %465, %0, %cst_94 {dimension_numbers = #tpu.dot_dimension_numbers<[1], [0], [0], [1], [0, 0, 1, 1], [], []>} : vector<2x128xbf16>, vector<128x512xbf16>, vector<2x512xf32> -> vector<2x512xf32>
    %467 = arith.truncf %464 : vector<2x4xf32> to vector<2x4xbf16>
    %cst_95 = arith.constant dense<0.000000e+00> : vector<2x512xf32>
    %468 = tpu.matmul %467, %1, %cst_95 {dimension_numbers = #tpu.dot_dimension_numbers<[1], [0], [0], [1], [0, 0, 1, 1], [], []>} : vector<2x4xbf16>, vector<4x512xbf16>, vector<2x512xf32> -> vector<2x512xf32>
    %469 = arith.addf %466, %468 : vector<2x512xf32>
    %470 = vector.broadcast %2 : vector<1x512xf32> to vector<2x512xf32>
    %471 = arith.addf %469, %470 : vector<2x512xf32>
    %472 = vector.extract_strided_slice %471 {offsets = [0, 0], sizes = [2, 384], strides = [1, 1]} : vector<2x512xf32> to vector<2x384xf32>
    %473 = arith.negf %472 : vector<2x384xf32>
    %474 = math.exp %473 : vector<2x384xf32>
    %cst_96 = arith.constant 1.000000e+00 : f32
    %475 = vector.broadcast %cst_96 : f32 to vector<2x384xf32>
    %476 = arith.addf %475, %474 : vector<2x384xf32>
    %477 = arith.divf %475, %476 : vector<2x384xf32>
    %478 = vector.extract_strided_slice %471 {offsets = [0, 384], sizes = [2, 128], strides = [1, 1]} : vector<2x512xf32> to vector<2x128xf32>
    %479 = math.tanh %478 : vector<2x128xf32>
    %480 = vector.extract_strided_slice %477 {offsets = [0, 0], sizes = [2, 128], strides = [1, 1]} : vector<2x384xf32> to vector<2x128xf32>
    %481 = vector.extract_strided_slice %477 {offsets = [0, 128], sizes = [2, 128], strides = [1, 1]} : vector<2x384xf32> to vector<2x128xf32>
    %482 = vector.extract_strided_slice %477 {offsets = [0, 256], sizes = [2, 128], strides = [1, 1]} : vector<2x384xf32> to vector<2x128xf32>
    %483 = arith.mulf %481, %261 : vector<2x128xf32>
    %484 = arith.mulf %480, %479 : vector<2x128xf32>
    %485 = arith.addf %483, %484 : vector<2x128xf32>
    %486 = math.tanh %485 : vector<2x128xf32>
    %487 = arith.mulf %482, %486 : vector<2x128xf32>
    %488 = arith.truncf %487 : vector<2x128xf32> to vector<2x128xbf16>
    %cst_97 = arith.constant dense<0.000000e+00> : vector<2x128xf32>
    %489 = tpu.matmul %488, %3, %cst_97 {dimension_numbers = #tpu.dot_dimension_numbers<[1], [0], [0], [1], [0, 0, 1, 1], [], []>} : vector<2x128xbf16>, vector<128x128xbf16>, vector<2x128xf32> -> vector<2x128xf32>
    %490 = vector.broadcast %4 : vector<1x128xf32> to vector<2x128xf32>
    %491 = arith.addf %489, %490 : vector<2x128xf32>
    %cst_98 = arith.constant 0.000000e+00 : f32
    %492 = vector.broadcast %cst_98 : f32 to vector<2x128xf32>
    %493 = arith.cmpf oge, %491, %492 : vector<2x128xf32>
    %cst_99 = arith.constant 0.00999999977 : f32
    %494 = vector.broadcast %cst_99 : f32 to vector<2x128xf32>
    %495 = arith.mulf %494, %491 : vector<2x128xf32>
    %496 = arith.select %493, %491, %495 : vector<2x128xi1>, vector<2x128xf32>
    %497 = arith.truncf %496 : vector<2x128xf32> to vector<2x128xbf16>
    %cst_100 = arith.constant dense<0.000000e+00> : vector<2x384xf32>
    %498 = tpu.matmul %497, %5, %cst_100 {dimension_numbers = #tpu.dot_dimension_numbers<[1], [0], [0], [1], [0, 0, 1, 1], [], []>} : vector<2x128xbf16>, vector<128x384xbf16>, vector<2x384xf32> -> vector<2x384xf32>
    %499 = vector.broadcast %6 : vector<1x384xf32> to vector<2x384xf32>
    %500 = arith.addf %498, %499 : vector<2x384xf32>
    %501 = vector.extract_strided_slice %500 {offsets = [0, 0], sizes = [2, 128], strides = [1, 1]} : vector<2x384xf32> to vector<2x128xf32>
    %502 = vector.extract_strided_slice %500 {offsets = [0, 128], sizes = [2, 128], strides = [1, 1]} : vector<2x384xf32> to vector<2x128xf32>
    %503 = vector.extract_strided_slice %500 {offsets = [0, 256], sizes = [2, 128], strides = [1, 1]} : vector<2x384xf32> to vector<2x128xf32>
    %504 = vector.extract_strided_slice %501 {offsets = [0, 0], sizes = [2, 32], strides = [1, 1]} : vector<2x128xf32> to vector<2x32xf32>
    %505 = vector.extract_strided_slice %502 {offsets = [0, 0], sizes = [2, 32], strides = [1, 1]} : vector<2x128xf32> to vector<2x32xf32>
    %506 = vector.extract_strided_slice %503 {offsets = [0, 0], sizes = [2, 32], strides = [1, 1]} : vector<2x128xf32> to vector<2x32xf32>
    %507 = vector.extract_strided_slice %505 {offsets = [0, 0], sizes = [1, 32], strides = [1, 1]} : vector<2x32xf32> to vector<1x32xf32>
    %508 = vector.broadcast %507 : vector<1x32xf32> to vector<2x32xf32>
    %509 = arith.mulf %504, %508 : vector<2x32xf32>
    %cst_101 = arith.constant dense<0.000000e+00> : vector<2xf32>
    %510 = vector.multi_reduction <add>, %509, %cst_101 [1] : vector<2x32xf32> to vector<2xf32>
    %511 = vector.shape_cast %510 : vector<2xf32> to vector<2x1xf32>
    %512 = vector.extract_strided_slice %505 {offsets = [1, 0], sizes = [1, 32], strides = [1, 1]} : vector<2x32xf32> to vector<1x32xf32>
    %513 = vector.broadcast %512 : vector<1x32xf32> to vector<2x32xf32>
    %514 = arith.mulf %504, %513 : vector<2x32xf32>
    %cst_102 = arith.constant dense<0.000000e+00> : vector<2xf32>
    %515 = vector.multi_reduction <add>, %514, %cst_102 [1] : vector<2x32xf32> to vector<2xf32>
    %516 = vector.shape_cast %515 : vector<2xf32> to vector<2x1xf32>
    %517 = tpu.concatenate %511, %516 in 1 : vector<2x1xf32>, vector<2x1xf32> -> vector<2x2xf32>
    %cst_103 = arith.constant 0.176776692 : f32
    %518 = vector.broadcast %cst_103 : f32 to vector<2x2xf32>
    %519 = arith.mulf %517, %518 : vector<2x2xf32>
    %cst_104 = arith.constant dense<0xFF800000> : vector<2xf32>
    %520 = vector.multi_reduction <maximumf>, %519, %cst_104 [1] : vector<2x2xf32> to vector<2xf32>
    %521 = vector.shape_cast %520 : vector<2xf32> to vector<2x1xf32>
    %522 = vector.broadcast %521 : vector<2x1xf32> to vector<2x2xf32>
    %523 = arith.subf %519, %522 : vector<2x2xf32>
    %524 = math.exp %523 : vector<2x2xf32>
    %cst_105 = arith.constant dense<0.000000e+00> : vector<2xf32>
    %525 = vector.multi_reduction <add>, %524, %cst_105 [1] : vector<2x2xf32> to vector<2xf32>
    %526 = vector.shape_cast %525 : vector<2xf32> to vector<2x1xf32>
    %527 = tpu.reciprocal %526 {approx = true} : vector<2x1xf32> -> vector<2x1xf32>
    %528 = vector.broadcast %527 : vector<2x1xf32> to vector<2x2xf32>
    %529 = arith.mulf %524, %528 : vector<2x2xf32>
    %530 = vector.extract_strided_slice %529 {offsets = [0, 0], sizes = [2, 1], strides = [1, 1]} : vector<2x2xf32> to vector<2x1xf32>
    %531 = vector.extract_strided_slice %506 {offsets = [0, 0], sizes = [1, 32], strides = [1, 1]} : vector<2x32xf32> to vector<1x32xf32>
    %532 = vector.broadcast %530 : vector<2x1xf32> to vector<2x32xf32>
    %533 = vector.broadcast %531 : vector<1x32xf32> to vector<2x32xf32>
    %534 = arith.mulf %532, %533 : vector<2x32xf32>
    %535 = vector.extract_strided_slice %529 {offsets = [0, 1], sizes = [2, 1], strides = [1, 1]} : vector<2x2xf32> to vector<2x1xf32>
    %536 = vector.extract_strided_slice %506 {offsets = [1, 0], sizes = [1, 32], strides = [1, 1]} : vector<2x32xf32> to vector<1x32xf32>
    %537 = vector.broadcast %535 : vector<2x1xf32> to vector<2x32xf32>
    %538 = vector.broadcast %536 : vector<1x32xf32> to vector<2x32xf32>
    %539 = arith.mulf %537, %538 : vector<2x32xf32>
    %540 = arith.addf %534, %539 : vector<2x32xf32>
    %541 = vector.extract_strided_slice %501 {offsets = [0, 32], sizes = [2, 32], strides = [1, 1]} : vector<2x128xf32> to vector<2x32xf32>
    %542 = vector.extract_strided_slice %502 {offsets = [0, 32], sizes = [2, 32], strides = [1, 1]} : vector<2x128xf32> to vector<2x32xf32>
    %543 = vector.extract_strided_slice %503 {offsets = [0, 32], sizes = [2, 32], strides = [1, 1]} : vector<2x128xf32> to vector<2x32xf32>
    %544 = vector.extract_strided_slice %542 {offsets = [0, 0], sizes = [1, 32], strides = [1, 1]} : vector<2x32xf32> to vector<1x32xf32>
    %545 = vector.broadcast %544 : vector<1x32xf32> to vector<2x32xf32>
    %546 = arith.mulf %541, %545 : vector<2x32xf32>
    %cst_106 = arith.constant dense<0.000000e+00> : vector<2xf32>
    %547 = vector.multi_reduction <add>, %546, %cst_106 [1] : vector<2x32xf32> to vector<2xf32>
    %548 = vector.shape_cast %547 : vector<2xf32> to vector<2x1xf32>
    %549 = vector.extract_strided_slice %542 {offsets = [1, 0], sizes = [1, 32], strides = [1, 1]} : vector<2x32xf32> to vector<1x32xf32>
    %550 = vector.broadcast %549 : vector<1x32xf32> to vector<2x32xf32>
    %551 = arith.mulf %541, %550 : vector<2x32xf32>
    %cst_107 = arith.constant dense<0.000000e+00> : vector<2xf32>
    %552 = vector.multi_reduction <add>, %551, %cst_107 [1] : vector<2x32xf32> to vector<2xf32>
    %553 = vector.shape_cast %552 : vector<2xf32> to vector<2x1xf32>
    %554 = tpu.concatenate %548, %553 in 1 : vector<2x1xf32>, vector<2x1xf32> -> vector<2x2xf32>
    %cst_108 = arith.constant 0.176776692 : f32
    %555 = vector.broadcast %cst_108 : f32 to vector<2x2xf32>
    %556 = arith.mulf %554, %555 : vector<2x2xf32>
    %cst_109 = arith.constant dense<0xFF800000> : vector<2xf32>
    %557 = vector.multi_reduction <maximumf>, %556, %cst_109 [1] : vector<2x2xf32> to vector<2xf32>
    %558 = vector.shape_cast %557 : vector<2xf32> to vector<2x1xf32>
    %559 = vector.broadcast %558 : vector<2x1xf32> to vector<2x2xf32>
    %560 = arith.subf %556, %559 : vector<2x2xf32>
    %561 = math.exp %560 : vector<2x2xf32>
    %cst_110 = arith.constant dense<0.000000e+00> : vector<2xf32>
    %562 = vector.multi_reduction <add>, %561, %cst_110 [1] : vector<2x2xf32> to vector<2xf32>
    %563 = vector.shape_cast %562 : vector<2xf32> to vector<2x1xf32>
    %564 = tpu.reciprocal %563 {approx = true} : vector<2x1xf32> -> vector<2x1xf32>
    %565 = vector.broadcast %564 : vector<2x1xf32> to vector<2x2xf32>
    %566 = arith.mulf %561, %565 : vector<2x2xf32>
    %567 = vector.extract_strided_slice %566 {offsets = [0, 0], sizes = [2, 1], strides = [1, 1]} : vector<2x2xf32> to vector<2x1xf32>
    %568 = vector.extract_strided_slice %543 {offsets = [0, 0], sizes = [1, 32], strides = [1, 1]} : vector<2x32xf32> to vector<1x32xf32>
    %569 = vector.broadcast %567 : vector<2x1xf32> to vector<2x32xf32>
    %570 = vector.broadcast %568 : vector<1x32xf32> to vector<2x32xf32>
    %571 = arith.mulf %569, %570 : vector<2x32xf32>
    %572 = vector.extract_strided_slice %566 {offsets = [0, 1], sizes = [2, 1], strides = [1, 1]} : vector<2x2xf32> to vector<2x1xf32>
    %573 = vector.extract_strided_slice %543 {offsets = [1, 0], sizes = [1, 32], strides = [1, 1]} : vector<2x32xf32> to vector<1x32xf32>
    %574 = vector.broadcast %572 : vector<2x1xf32> to vector<2x32xf32>
    %575 = vector.broadcast %573 : vector<1x32xf32> to vector<2x32xf32>
    %576 = arith.mulf %574, %575 : vector<2x32xf32>
    %577 = arith.addf %571, %576 : vector<2x32xf32>
    %578 = vector.extract_strided_slice %501 {offsets = [0, 64], sizes = [2, 32], strides = [1, 1]} : vector<2x128xf32> to vector<2x32xf32>
    %579 = vector.extract_strided_slice %502 {offsets = [0, 64], sizes = [2, 32], strides = [1, 1]} : vector<2x128xf32> to vector<2x32xf32>
    %580 = vector.extract_strided_slice %503 {offsets = [0, 64], sizes = [2, 32], strides = [1, 1]} : vector<2x128xf32> to vector<2x32xf32>
    %581 = vector.extract_strided_slice %579 {offsets = [0, 0], sizes = [1, 32], strides = [1, 1]} : vector<2x32xf32> to vector<1x32xf32>
    %582 = vector.broadcast %581 : vector<1x32xf32> to vector<2x32xf32>
    %583 = arith.mulf %578, %582 : vector<2x32xf32>
    %cst_111 = arith.constant dense<0.000000e+00> : vector<2xf32>
    %584 = vector.multi_reduction <add>, %583, %cst_111 [1] : vector<2x32xf32> to vector<2xf32>
    %585 = vector.shape_cast %584 : vector<2xf32> to vector<2x1xf32>
    %586 = vector.extract_strided_slice %579 {offsets = [1, 0], sizes = [1, 32], strides = [1, 1]} : vector<2x32xf32> to vector<1x32xf32>
    %587 = vector.broadcast %586 : vector<1x32xf32> to vector<2x32xf32>
    %588 = arith.mulf %578, %587 : vector<2x32xf32>
    %cst_112 = arith.constant dense<0.000000e+00> : vector<2xf32>
    %589 = vector.multi_reduction <add>, %588, %cst_112 [1] : vector<2x32xf32> to vector<2xf32>
    %590 = vector.shape_cast %589 : vector<2xf32> to vector<2x1xf32>
    %591 = tpu.concatenate %585, %590 in 1 : vector<2x1xf32>, vector<2x1xf32> -> vector<2x2xf32>
    %cst_113 = arith.constant 0.176776692 : f32
    %592 = vector.broadcast %cst_113 : f32 to vector<2x2xf32>
    %593 = arith.mulf %591, %592 : vector<2x2xf32>
    %cst_114 = arith.constant dense<0xFF800000> : vector<2xf32>
    %594 = vector.multi_reduction <maximumf>, %593, %cst_114 [1] : vector<2x2xf32> to vector<2xf32>
    %595 = vector.shape_cast %594 : vector<2xf32> to vector<2x1xf32>
    %596 = vector.broadcast %595 : vector<2x1xf32> to vector<2x2xf32>
    %597 = arith.subf %593, %596 : vector<2x2xf32>
    %598 = math.exp %597 : vector<2x2xf32>
    %cst_115 = arith.constant dense<0.000000e+00> : vector<2xf32>
    %599 = vector.multi_reduction <add>, %598, %cst_115 [1] : vector<2x2xf32> to vector<2xf32>
    %600 = vector.shape_cast %599 : vector<2xf32> to vector<2x1xf32>
    %601 = tpu.reciprocal %600 {approx = true} : vector<2x1xf32> -> vector<2x1xf32>
    %602 = vector.broadcast %601 : vector<2x1xf32> to vector<2x2xf32>
    %603 = arith.mulf %598, %602 : vector<2x2xf32>
    %604 = vector.extract_strided_slice %603 {offsets = [0, 0], sizes = [2, 1], strides = [1, 1]} : vector<2x2xf32> to vector<2x1xf32>
    %605 = vector.extract_strided_slice %580 {offsets = [0, 0], sizes = [1, 32], strides = [1, 1]} : vector<2x32xf32> to vector<1x32xf32>
    %606 = vector.broadcast %604 : vector<2x1xf32> to vector<2x32xf32>
    %607 = vector.broadcast %605 : vector<1x32xf32> to vector<2x32xf32>
    %608 = arith.mulf %606, %607 : vector<2x32xf32>
    %609 = vector.extract_strided_slice %603 {offsets = [0, 1], sizes = [2, 1], strides = [1, 1]} : vector<2x2xf32> to vector<2x1xf32>
    %610 = vector.extract_strided_slice %580 {offsets = [1, 0], sizes = [1, 32], strides = [1, 1]} : vector<2x32xf32> to vector<1x32xf32>
    %611 = vector.broadcast %609 : vector<2x1xf32> to vector<2x32xf32>
    %612 = vector.broadcast %610 : vector<1x32xf32> to vector<2x32xf32>
    %613 = arith.mulf %611, %612 : vector<2x32xf32>
    %614 = arith.addf %608, %613 : vector<2x32xf32>
    %615 = vector.extract_strided_slice %501 {offsets = [0, 96], sizes = [2, 32], strides = [1, 1]} : vector<2x128xf32> to vector<2x32xf32>
    %616 = vector.extract_strided_slice %502 {offsets = [0, 96], sizes = [2, 32], strides = [1, 1]} : vector<2x128xf32> to vector<2x32xf32>
    %617 = vector.extract_strided_slice %503 {offsets = [0, 96], sizes = [2, 32], strides = [1, 1]} : vector<2x128xf32> to vector<2x32xf32>
    %618 = vector.extract_strided_slice %616 {offsets = [0, 0], sizes = [1, 32], strides = [1, 1]} : vector<2x32xf32> to vector<1x32xf32>
    %619 = vector.broadcast %618 : vector<1x32xf32> to vector<2x32xf32>
    %620 = arith.mulf %615, %619 : vector<2x32xf32>
    %cst_116 = arith.constant dense<0.000000e+00> : vector<2xf32>
    %621 = vector.multi_reduction <add>, %620, %cst_116 [1] : vector<2x32xf32> to vector<2xf32>
    %622 = vector.shape_cast %621 : vector<2xf32> to vector<2x1xf32>
    %623 = vector.extract_strided_slice %616 {offsets = [1, 0], sizes = [1, 32], strides = [1, 1]} : vector<2x32xf32> to vector<1x32xf32>
    %624 = vector.broadcast %623 : vector<1x32xf32> to vector<2x32xf32>
    %625 = arith.mulf %615, %624 : vector<2x32xf32>
    %cst_117 = arith.constant dense<0.000000e+00> : vector<2xf32>
    %626 = vector.multi_reduction <add>, %625, %cst_117 [1] : vector<2x32xf32> to vector<2xf32>
    %627 = vector.shape_cast %626 : vector<2xf32> to vector<2x1xf32>
    %628 = tpu.concatenate %622, %627 in 1 : vector<2x1xf32>, vector<2x1xf32> -> vector<2x2xf32>
    %cst_118 = arith.constant 0.176776692 : f32
    %629 = vector.broadcast %cst_118 : f32 to vector<2x2xf32>
    %630 = arith.mulf %628, %629 : vector<2x2xf32>
    %cst_119 = arith.constant dense<0xFF800000> : vector<2xf32>
    %631 = vector.multi_reduction <maximumf>, %630, %cst_119 [1] : vector<2x2xf32> to vector<2xf32>
    %632 = vector.shape_cast %631 : vector<2xf32> to vector<2x1xf32>
    %633 = vector.broadcast %632 : vector<2x1xf32> to vector<2x2xf32>
    %634 = arith.subf %630, %633 : vector<2x2xf32>
    %635 = math.exp %634 : vector<2x2xf32>
    %cst_120 = arith.constant dense<0.000000e+00> : vector<2xf32>
    %636 = vector.multi_reduction <add>, %635, %cst_120 [1] : vector<2x2xf32> to vector<2xf32>
    %637 = vector.shape_cast %636 : vector<2xf32> to vector<2x1xf32>
    %638 = tpu.reciprocal %637 {approx = true} : vector<2x1xf32> -> vector<2x1xf32>
    %639 = vector.broadcast %638 : vector<2x1xf32> to vector<2x2xf32>
    %640 = arith.mulf %635, %639 : vector<2x2xf32>
    %641 = vector.extract_strided_slice %640 {offsets = [0, 0], sizes = [2, 1], strides = [1, 1]} : vector<2x2xf32> to vector<2x1xf32>
    %642 = vector.extract_strided_slice %617 {offsets = [0, 0], sizes = [1, 32], strides = [1, 1]} : vector<2x32xf32> to vector<1x32xf32>
    %643 = vector.broadcast %641 : vector<2x1xf32> to vector<2x32xf32>
    %644 = vector.broadcast %642 : vector<1x32xf32> to vector<2x32xf32>
    %645 = arith.mulf %643, %644 : vector<2x32xf32>
    %646 = vector.extract_strided_slice %640 {offsets = [0, 1], sizes = [2, 1], strides = [1, 1]} : vector<2x2xf32> to vector<2x1xf32>
    %647 = vector.extract_strided_slice %617 {offsets = [1, 0], sizes = [1, 32], strides = [1, 1]} : vector<2x32xf32> to vector<1x32xf32>
    %648 = vector.broadcast %646 : vector<2x1xf32> to vector<2x32xf32>
    %649 = vector.broadcast %647 : vector<1x32xf32> to vector<2x32xf32>
    %650 = arith.mulf %648, %649 : vector<2x32xf32>
    %651 = arith.addf %645, %650 : vector<2x32xf32>
    %652 = tpu.concatenate %540, %577, %614, %651 in 1 : vector<2x32xf32>, vector<2x32xf32>, vector<2x32xf32>, vector<2x32xf32> -> vector<2x128xf32>
    %653 = arith.truncf %652 : vector<2x128xf32> to vector<2x128xbf16>
    %cst_121 = arith.constant dense<0.000000e+00> : vector<2x128xf32>
    %654 = tpu.matmul %653, %7, %cst_121 {dimension_numbers = #tpu.dot_dimension_numbers<[1], [0], [0], [1], [0, 0, 1, 1], [], []>} : vector<2x128xbf16>, vector<128x128xbf16>, vector<2x128xf32> -> vector<2x128xf32>
    %655 = vector.broadcast %8 : vector<1x128xf32> to vector<2x128xf32>
    %656 = arith.addf %654, %655 : vector<2x128xf32>
    %657 = vector.extract_strided_slice %656 {offsets = [0, 0], sizes = [2, 32], strides = [1, 1]} : vector<2x128xf32> to vector<2x32xf32>
    %658 = vector.extract_strided_slice %9 {offsets = [0, 0], sizes = [1, 32], strides = [1, 1]} : vector<4x32xf32> to vector<1x32xf32>
    %659 = vector.broadcast %658 : vector<1x32xf32> to vector<2x32xf32>
    %660 = arith.mulf %657, %659 : vector<2x32xf32>
    %cst_122 = arith.constant dense<0.000000e+00> : vector<2xf32>
    %661 = vector.multi_reduction <add>, %660, %cst_122 [1] : vector<2x32xf32> to vector<2xf32>
    %662 = vector.shape_cast %661 : vector<2xf32> to vector<2x1xf32>
    %663 = vector.extract_strided_slice %656 {offsets = [0, 32], sizes = [2, 32], strides = [1, 1]} : vector<2x128xf32> to vector<2x32xf32>
    %664 = vector.extract_strided_slice %9 {offsets = [1, 0], sizes = [1, 32], strides = [1, 1]} : vector<4x32xf32> to vector<1x32xf32>
    %665 = vector.broadcast %664 : vector<1x32xf32> to vector<2x32xf32>
    %666 = arith.mulf %663, %665 : vector<2x32xf32>
    %cst_123 = arith.constant dense<0.000000e+00> : vector<2xf32>
    %667 = vector.multi_reduction <add>, %666, %cst_123 [1] : vector<2x32xf32> to vector<2xf32>
    %668 = vector.shape_cast %667 : vector<2xf32> to vector<2x1xf32>
    %669 = vector.extract_strided_slice %656 {offsets = [0, 64], sizes = [2, 32], strides = [1, 1]} : vector<2x128xf32> to vector<2x32xf32>
    %670 = vector.extract_strided_slice %9 {offsets = [2, 0], sizes = [1, 32], strides = [1, 1]} : vector<4x32xf32> to vector<1x32xf32>
    %671 = vector.broadcast %670 : vector<1x32xf32> to vector<2x32xf32>
    %672 = arith.mulf %669, %671 : vector<2x32xf32>
    %cst_124 = arith.constant dense<0.000000e+00> : vector<2xf32>
    %673 = vector.multi_reduction <add>, %672, %cst_124 [1] : vector<2x32xf32> to vector<2xf32>
    %674 = vector.shape_cast %673 : vector<2xf32> to vector<2x1xf32>
    %675 = vector.extract_strided_slice %656 {offsets = [0, 96], sizes = [2, 32], strides = [1, 1]} : vector<2x128xf32> to vector<2x32xf32>
    %676 = vector.extract_strided_slice %9 {offsets = [3, 0], sizes = [1, 32], strides = [1, 1]} : vector<4x32xf32> to vector<1x32xf32>
    %677 = vector.broadcast %676 : vector<1x32xf32> to vector<2x32xf32>
    %678 = arith.mulf %675, %677 : vector<2x32xf32>
    %cst_125 = arith.constant dense<0.000000e+00> : vector<2xf32>
    %679 = vector.multi_reduction <add>, %678, %cst_125 [1] : vector<2x32xf32> to vector<2xf32>
    %680 = vector.shape_cast %679 : vector<2xf32> to vector<2x1xf32>
    %681 = tpu.concatenate %662, %668, %674, %680 in 1 : vector<2x1xf32>, vector<2x1xf32>, vector<2x1xf32>, vector<2x1xf32> -> vector<2x4xf32>
    %682 = vector.broadcast %10 : vector<1x4xf32> to vector<2x4xf32>
    %683 = arith.addf %681, %682 : vector<2x4xf32>
    %cst_126 = arith.constant 0.000000e+00 : f32
    %684 = vector.broadcast %cst_126 : f32 to vector<2x4xf32>
    %685 = arith.cmpf oge, %683, %684 : vector<2x4xf32>
    %cst_127 = arith.constant 0.00999999977 : f32
    %686 = vector.broadcast %cst_127 : f32 to vector<2x4xf32>
    %687 = arith.mulf %686, %683 : vector<2x4xf32>
    %688 = arith.select %685, %683, %687 : vector<2x4xi1>, vector<2x4xf32>
    %689 = arith.truncf %487 : vector<2x128xf32> to vector<2x128xbf16>
    %cst_128 = arith.constant dense<0.000000e+00> : vector<2x512xf32>
    %690 = tpu.matmul %689, %0, %cst_128 {dimension_numbers = #tpu.dot_dimension_numbers<[1], [0], [0], [1], [0, 0, 1, 1], [], []>} : vector<2x128xbf16>, vector<128x512xbf16>, vector<2x512xf32> -> vector<2x512xf32>
    %691 = arith.truncf %688 : vector<2x4xf32> to vector<2x4xbf16>
    %cst_129 = arith.constant dense<0.000000e+00> : vector<2x512xf32>
    %692 = tpu.matmul %691, %1, %cst_129 {dimension_numbers = #tpu.dot_dimension_numbers<[1], [0], [0], [1], [0, 0, 1, 1], [], []>} : vector<2x4xbf16>, vector<4x512xbf16>, vector<2x512xf32> -> vector<2x512xf32>
    %693 = arith.addf %690, %692 : vector<2x512xf32>
    %694 = vector.broadcast %2 : vector<1x512xf32> to vector<2x512xf32>
    %695 = arith.addf %693, %694 : vector<2x512xf32>
    %696 = vector.extract_strided_slice %695 {offsets = [0, 0], sizes = [2, 384], strides = [1, 1]} : vector<2x512xf32> to vector<2x384xf32>
    %697 = arith.negf %696 : vector<2x384xf32>
    %698 = math.exp %697 : vector<2x384xf32>
    %cst_130 = arith.constant 1.000000e+00 : f32
    %699 = vector.broadcast %cst_130 : f32 to vector<2x384xf32>
    %700 = arith.addf %699, %698 : vector<2x384xf32>
    %701 = arith.divf %699, %700 : vector<2x384xf32>
    %702 = vector.extract_strided_slice %695 {offsets = [0, 384], sizes = [2, 128], strides = [1, 1]} : vector<2x512xf32> to vector<2x128xf32>
    %703 = math.tanh %702 : vector<2x128xf32>
    %704 = vector.extract_strided_slice %701 {offsets = [0, 0], sizes = [2, 128], strides = [1, 1]} : vector<2x384xf32> to vector<2x128xf32>
    %705 = vector.extract_strided_slice %701 {offsets = [0, 128], sizes = [2, 128], strides = [1, 1]} : vector<2x384xf32> to vector<2x128xf32>
    %706 = vector.extract_strided_slice %701 {offsets = [0, 256], sizes = [2, 128], strides = [1, 1]} : vector<2x384xf32> to vector<2x128xf32>
    %707 = arith.mulf %705, %485 : vector<2x128xf32>
    %708 = arith.mulf %704, %703 : vector<2x128xf32>
    %709 = arith.addf %707, %708 : vector<2x128xf32>
    %710 = math.tanh %709 : vector<2x128xf32>
    %711 = arith.mulf %706, %710 : vector<2x128xf32>
    %712 = arith.truncf %711 : vector<2x128xf32> to vector<2x128xbf16>
    %cst_131 = arith.constant dense<0.000000e+00> : vector<2x128xf32>
    %713 = tpu.matmul %712, %3, %cst_131 {dimension_numbers = #tpu.dot_dimension_numbers<[1], [0], [0], [1], [0, 0, 1, 1], [], []>} : vector<2x128xbf16>, vector<128x128xbf16>, vector<2x128xf32> -> vector<2x128xf32>
    %714 = vector.broadcast %4 : vector<1x128xf32> to vector<2x128xf32>
    %715 = arith.addf %713, %714 : vector<2x128xf32>
    %cst_132 = arith.constant 0.000000e+00 : f32
    %716 = vector.broadcast %cst_132 : f32 to vector<2x128xf32>
    %717 = arith.cmpf oge, %715, %716 : vector<2x128xf32>
    %cst_133 = arith.constant 0.00999999977 : f32
    %718 = vector.broadcast %cst_133 : f32 to vector<2x128xf32>
    %719 = arith.mulf %718, %715 : vector<2x128xf32>
    %720 = arith.select %717, %715, %719 : vector<2x128xi1>, vector<2x128xf32>
    %721 = arith.truncf %720 : vector<2x128xf32> to vector<2x128xbf16>
    %cst_134 = arith.constant dense<0.000000e+00> : vector<2x384xf32>
    %722 = tpu.matmul %721, %5, %cst_134 {dimension_numbers = #tpu.dot_dimension_numbers<[1], [0], [0], [1], [0, 0, 1, 1], [], []>} : vector<2x128xbf16>, vector<128x384xbf16>, vector<2x384xf32> -> vector<2x384xf32>
    %723 = vector.broadcast %6 : vector<1x384xf32> to vector<2x384xf32>
    %724 = arith.addf %722, %723 : vector<2x384xf32>
    %725 = vector.extract_strided_slice %724 {offsets = [0, 0], sizes = [2, 128], strides = [1, 1]} : vector<2x384xf32> to vector<2x128xf32>
    %726 = vector.extract_strided_slice %724 {offsets = [0, 128], sizes = [2, 128], strides = [1, 1]} : vector<2x384xf32> to vector<2x128xf32>
    %727 = vector.extract_strided_slice %724 {offsets = [0, 256], sizes = [2, 128], strides = [1, 1]} : vector<2x384xf32> to vector<2x128xf32>
    %728 = vector.extract_strided_slice %725 {offsets = [0, 0], sizes = [2, 32], strides = [1, 1]} : vector<2x128xf32> to vector<2x32xf32>
    %729 = vector.extract_strided_slice %726 {offsets = [0, 0], sizes = [2, 32], strides = [1, 1]} : vector<2x128xf32> to vector<2x32xf32>
    %730 = vector.extract_strided_slice %727 {offsets = [0, 0], sizes = [2, 32], strides = [1, 1]} : vector<2x128xf32> to vector<2x32xf32>
    %731 = vector.extract_strided_slice %729 {offsets = [0, 0], sizes = [1, 32], strides = [1, 1]} : vector<2x32xf32> to vector<1x32xf32>
    %732 = vector.broadcast %731 : vector<1x32xf32> to vector<2x32xf32>
    %733 = arith.mulf %728, %732 : vector<2x32xf32>
    %cst_135 = arith.constant dense<0.000000e+00> : vector<2xf32>
    %734 = vector.multi_reduction <add>, %733, %cst_135 [1] : vector<2x32xf32> to vector<2xf32>
    %735 = vector.shape_cast %734 : vector<2xf32> to vector<2x1xf32>
    %736 = vector.extract_strided_slice %729 {offsets = [1, 0], sizes = [1, 32], strides = [1, 1]} : vector<2x32xf32> to vector<1x32xf32>
    %737 = vector.broadcast %736 : vector<1x32xf32> to vector<2x32xf32>
    %738 = arith.mulf %728, %737 : vector<2x32xf32>
    %cst_136 = arith.constant dense<0.000000e+00> : vector<2xf32>
    %739 = vector.multi_reduction <add>, %738, %cst_136 [1] : vector<2x32xf32> to vector<2xf32>
    %740 = vector.shape_cast %739 : vector<2xf32> to vector<2x1xf32>
    %741 = tpu.concatenate %735, %740 in 1 : vector<2x1xf32>, vector<2x1xf32> -> vector<2x2xf32>
    %cst_137 = arith.constant 0.176776692 : f32
    %742 = vector.broadcast %cst_137 : f32 to vector<2x2xf32>
    %743 = arith.mulf %741, %742 : vector<2x2xf32>
    %cst_138 = arith.constant dense<0xFF800000> : vector<2xf32>
    %744 = vector.multi_reduction <maximumf>, %743, %cst_138 [1] : vector<2x2xf32> to vector<2xf32>
    %745 = vector.shape_cast %744 : vector<2xf32> to vector<2x1xf32>
    %746 = vector.broadcast %745 : vector<2x1xf32> to vector<2x2xf32>
    %747 = arith.subf %743, %746 : vector<2x2xf32>
    %748 = math.exp %747 : vector<2x2xf32>
    %cst_139 = arith.constant dense<0.000000e+00> : vector<2xf32>
    %749 = vector.multi_reduction <add>, %748, %cst_139 [1] : vector<2x2xf32> to vector<2xf32>
    %750 = vector.shape_cast %749 : vector<2xf32> to vector<2x1xf32>
    %751 = tpu.reciprocal %750 {approx = true} : vector<2x1xf32> -> vector<2x1xf32>
    %752 = vector.broadcast %751 : vector<2x1xf32> to vector<2x2xf32>
    %753 = arith.mulf %748, %752 : vector<2x2xf32>
    %754 = vector.extract_strided_slice %753 {offsets = [0, 0], sizes = [2, 1], strides = [1, 1]} : vector<2x2xf32> to vector<2x1xf32>
    %755 = vector.extract_strided_slice %730 {offsets = [0, 0], sizes = [1, 32], strides = [1, 1]} : vector<2x32xf32> to vector<1x32xf32>
    %756 = vector.broadcast %754 : vector<2x1xf32> to vector<2x32xf32>
    %757 = vector.broadcast %755 : vector<1x32xf32> to vector<2x32xf32>
    %758 = arith.mulf %756, %757 : vector<2x32xf32>
    %759 = vector.extract_strided_slice %753 {offsets = [0, 1], sizes = [2, 1], strides = [1, 1]} : vector<2x2xf32> to vector<2x1xf32>
    %760 = vector.extract_strided_slice %730 {offsets = [1, 0], sizes = [1, 32], strides = [1, 1]} : vector<2x32xf32> to vector<1x32xf32>
    %761 = vector.broadcast %759 : vector<2x1xf32> to vector<2x32xf32>
    %762 = vector.broadcast %760 : vector<1x32xf32> to vector<2x32xf32>
    %763 = arith.mulf %761, %762 : vector<2x32xf32>
    %764 = arith.addf %758, %763 : vector<2x32xf32>
    %765 = vector.extract_strided_slice %725 {offsets = [0, 32], sizes = [2, 32], strides = [1, 1]} : vector<2x128xf32> to vector<2x32xf32>
    %766 = vector.extract_strided_slice %726 {offsets = [0, 32], sizes = [2, 32], strides = [1, 1]} : vector<2x128xf32> to vector<2x32xf32>
    %767 = vector.extract_strided_slice %727 {offsets = [0, 32], sizes = [2, 32], strides = [1, 1]} : vector<2x128xf32> to vector<2x32xf32>
    %768 = vector.extract_strided_slice %766 {offsets = [0, 0], sizes = [1, 32], strides = [1, 1]} : vector<2x32xf32> to vector<1x32xf32>
    %769 = vector.broadcast %768 : vector<1x32xf32> to vector<2x32xf32>
    %770 = arith.mulf %765, %769 : vector<2x32xf32>
    %cst_140 = arith.constant dense<0.000000e+00> : vector<2xf32>
    %771 = vector.multi_reduction <add>, %770, %cst_140 [1] : vector<2x32xf32> to vector<2xf32>
    %772 = vector.shape_cast %771 : vector<2xf32> to vector<2x1xf32>
    %773 = vector.extract_strided_slice %766 {offsets = [1, 0], sizes = [1, 32], strides = [1, 1]} : vector<2x32xf32> to vector<1x32xf32>
    %774 = vector.broadcast %773 : vector<1x32xf32> to vector<2x32xf32>
    %775 = arith.mulf %765, %774 : vector<2x32xf32>
    %cst_141 = arith.constant dense<0.000000e+00> : vector<2xf32>
    %776 = vector.multi_reduction <add>, %775, %cst_141 [1] : vector<2x32xf32> to vector<2xf32>
    %777 = vector.shape_cast %776 : vector<2xf32> to vector<2x1xf32>
    %778 = tpu.concatenate %772, %777 in 1 : vector<2x1xf32>, vector<2x1xf32> -> vector<2x2xf32>
    %cst_142 = arith.constant 0.176776692 : f32
    %779 = vector.broadcast %cst_142 : f32 to vector<2x2xf32>
    %780 = arith.mulf %778, %779 : vector<2x2xf32>
    %cst_143 = arith.constant dense<0xFF800000> : vector<2xf32>
    %781 = vector.multi_reduction <maximumf>, %780, %cst_143 [1] : vector<2x2xf32> to vector<2xf32>
    %782 = vector.shape_cast %781 : vector<2xf32> to vector<2x1xf32>
    %783 = vector.broadcast %782 : vector<2x1xf32> to vector<2x2xf32>
    %784 = arith.subf %780, %783 : vector<2x2xf32>
    %785 = math.exp %784 : vector<2x2xf32>
    %cst_144 = arith.constant dense<0.000000e+00> : vector<2xf32>
    %786 = vector.multi_reduction <add>, %785, %cst_144 [1] : vector<2x2xf32> to vector<2xf32>
    %787 = vector.shape_cast %786 : vector<2xf32> to vector<2x1xf32>
    %788 = tpu.reciprocal %787 {approx = true} : vector<2x1xf32> -> vector<2x1xf32>
    %789 = vector.broadcast %788 : vector<2x1xf32> to vector<2x2xf32>
    %790 = arith.mulf %785, %789 : vector<2x2xf32>
    %791 = vector.extract_strided_slice %790 {offsets = [0, 0], sizes = [2, 1], strides = [1, 1]} : vector<2x2xf32> to vector<2x1xf32>
    %792 = vector.extract_strided_slice %767 {offsets = [0, 0], sizes = [1, 32], strides = [1, 1]} : vector<2x32xf32> to vector<1x32xf32>
    %793 = vector.broadcast %791 : vector<2x1xf32> to vector<2x32xf32>
    %794 = vector.broadcast %792 : vector<1x32xf32> to vector<2x32xf32>
    %795 = arith.mulf %793, %794 : vector<2x32xf32>
    %796 = vector.extract_strided_slice %790 {offsets = [0, 1], sizes = [2, 1], strides = [1, 1]} : vector<2x2xf32> to vector<2x1xf32>
    %797 = vector.extract_strided_slice %767 {offsets = [1, 0], sizes = [1, 32], strides = [1, 1]} : vector<2x32xf32> to vector<1x32xf32>
    %798 = vector.broadcast %796 : vector<2x1xf32> to vector<2x32xf32>
    %799 = vector.broadcast %797 : vector<1x32xf32> to vector<2x32xf32>
    %800 = arith.mulf %798, %799 : vector<2x32xf32>
    %801 = arith.addf %795, %800 : vector<2x32xf32>
    %802 = vector.extract_strided_slice %725 {offsets = [0, 64], sizes = [2, 32], strides = [1, 1]} : vector<2x128xf32> to vector<2x32xf32>
    %803 = vector.extract_strided_slice %726 {offsets = [0, 64], sizes = [2, 32], strides = [1, 1]} : vector<2x128xf32> to vector<2x32xf32>
    %804 = vector.extract_strided_slice %727 {offsets = [0, 64], sizes = [2, 32], strides = [1, 1]} : vector<2x128xf32> to vector<2x32xf32>
    %805 = vector.extract_strided_slice %803 {offsets = [0, 0], sizes = [1, 32], strides = [1, 1]} : vector<2x32xf32> to vector<1x32xf32>
    %806 = vector.broadcast %805 : vector<1x32xf32> to vector<2x32xf32>
    %807 = arith.mulf %802, %806 : vector<2x32xf32>
    %cst_145 = arith.constant dense<0.000000e+00> : vector<2xf32>
    %808 = vector.multi_reduction <add>, %807, %cst_145 [1] : vector<2x32xf32> to vector<2xf32>
    %809 = vector.shape_cast %808 : vector<2xf32> to vector<2x1xf32>
    %810 = vector.extract_strided_slice %803 {offsets = [1, 0], sizes = [1, 32], strides = [1, 1]} : vector<2x32xf32> to vector<1x32xf32>
    %811 = vector.broadcast %810 : vector<1x32xf32> to vector<2x32xf32>
    %812 = arith.mulf %802, %811 : vector<2x32xf32>
    %cst_146 = arith.constant dense<0.000000e+00> : vector<2xf32>
    %813 = vector.multi_reduction <add>, %812, %cst_146 [1] : vector<2x32xf32> to vector<2xf32>
    %814 = vector.shape_cast %813 : vector<2xf32> to vector<2x1xf32>
    %815 = tpu.concatenate %809, %814 in 1 : vector<2x1xf32>, vector<2x1xf32> -> vector<2x2xf32>
    %cst_147 = arith.constant 0.176776692 : f32
    %816 = vector.broadcast %cst_147 : f32 to vector<2x2xf32>
    %817 = arith.mulf %815, %816 : vector<2x2xf32>
    %cst_148 = arith.constant dense<0xFF800000> : vector<2xf32>
    %818 = vector.multi_reduction <maximumf>, %817, %cst_148 [1] : vector<2x2xf32> to vector<2xf32>
    %819 = vector.shape_cast %818 : vector<2xf32> to vector<2x1xf32>
    %820 = vector.broadcast %819 : vector<2x1xf32> to vector<2x2xf32>
    %821 = arith.subf %817, %820 : vector<2x2xf32>
    %822 = math.exp %821 : vector<2x2xf32>
    %cst_149 = arith.constant dense<0.000000e+00> : vector<2xf32>
    %823 = vector.multi_reduction <add>, %822, %cst_149 [1] : vector<2x2xf32> to vector<2xf32>
    %824 = vector.shape_cast %823 : vector<2xf32> to vector<2x1xf32>
    %825 = tpu.reciprocal %824 {approx = true} : vector<2x1xf32> -> vector<2x1xf32>
    %826 = vector.broadcast %825 : vector<2x1xf32> to vector<2x2xf32>
    %827 = arith.mulf %822, %826 : vector<2x2xf32>
    %828 = vector.extract_strided_slice %827 {offsets = [0, 0], sizes = [2, 1], strides = [1, 1]} : vector<2x2xf32> to vector<2x1xf32>
    %829 = vector.extract_strided_slice %804 {offsets = [0, 0], sizes = [1, 32], strides = [1, 1]} : vector<2x32xf32> to vector<1x32xf32>
    %830 = vector.broadcast %828 : vector<2x1xf32> to vector<2x32xf32>
    %831 = vector.broadcast %829 : vector<1x32xf32> to vector<2x32xf32>
    %832 = arith.mulf %830, %831 : vector<2x32xf32>
    %833 = vector.extract_strided_slice %827 {offsets = [0, 1], sizes = [2, 1], strides = [1, 1]} : vector<2x2xf32> to vector<2x1xf32>
    %834 = vector.extract_strided_slice %804 {offsets = [1, 0], sizes = [1, 32], strides = [1, 1]} : vector<2x32xf32> to vector<1x32xf32>
    %835 = vector.broadcast %833 : vector<2x1xf32> to vector<2x32xf32>
    %836 = vector.broadcast %834 : vector<1x32xf32> to vector<2x32xf32>
    %837 = arith.mulf %835, %836 : vector<2x32xf32>
    %838 = arith.addf %832, %837 : vector<2x32xf32>
    %839 = vector.extract_strided_slice %725 {offsets = [0, 96], sizes = [2, 32], strides = [1, 1]} : vector<2x128xf32> to vector<2x32xf32>
    %840 = vector.extract_strided_slice %726 {offsets = [0, 96], sizes = [2, 32], strides = [1, 1]} : vector<2x128xf32> to vector<2x32xf32>
    %841 = vector.extract_strided_slice %727 {offsets = [0, 96], sizes = [2, 32], strides = [1, 1]} : vector<2x128xf32> to vector<2x32xf32>
    %842 = vector.extract_strided_slice %840 {offsets = [0, 0], sizes = [1, 32], strides = [1, 1]} : vector<2x32xf32> to vector<1x32xf32>
    %843 = vector.broadcast %842 : vector<1x32xf32> to vector<2x32xf32>
    %844 = arith.mulf %839, %843 : vector<2x32xf32>
    %cst_150 = arith.constant dense<0.000000e+00> : vector<2xf32>
    %845 = vector.multi_reduction <add>, %844, %cst_150 [1] : vector<2x32xf32> to vector<2xf32>
    %846 = vector.shape_cast %845 : vector<2xf32> to vector<2x1xf32>
    %847 = vector.extract_strided_slice %840 {offsets = [1, 0], sizes = [1, 32], strides = [1, 1]} : vector<2x32xf32> to vector<1x32xf32>
    %848 = vector.broadcast %847 : vector<1x32xf32> to vector<2x32xf32>
    %849 = arith.mulf %839, %848 : vector<2x32xf32>
    %cst_151 = arith.constant dense<0.000000e+00> : vector<2xf32>
    %850 = vector.multi_reduction <add>, %849, %cst_151 [1] : vector<2x32xf32> to vector<2xf32>
    %851 = vector.shape_cast %850 : vector<2xf32> to vector<2x1xf32>
    %852 = tpu.concatenate %846, %851 in 1 : vector<2x1xf32>, vector<2x1xf32> -> vector<2x2xf32>
    %cst_152 = arith.constant 0.176776692 : f32
    %853 = vector.broadcast %cst_152 : f32 to vector<2x2xf32>
    %854 = arith.mulf %852, %853 : vector<2x2xf32>
    %cst_153 = arith.constant dense<0xFF800000> : vector<2xf32>
    %855 = vector.multi_reduction <maximumf>, %854, %cst_153 [1] : vector<2x2xf32> to vector<2xf32>
    %856 = vector.shape_cast %855 : vector<2xf32> to vector<2x1xf32>
    %857 = vector.broadcast %856 : vector<2x1xf32> to vector<2x2xf32>
    %858 = arith.subf %854, %857 : vector<2x2xf32>
    %859 = math.exp %858 : vector<2x2xf32>
    %cst_154 = arith.constant dense<0.000000e+00> : vector<2xf32>
    %860 = vector.multi_reduction <add>, %859, %cst_154 [1] : vector<2x2xf32> to vector<2xf32>
    %861 = vector.shape_cast %860 : vector<2xf32> to vector<2x1xf32>
    %862 = tpu.reciprocal %861 {approx = true} : vector<2x1xf32> -> vector<2x1xf32>
    %863 = vector.broadcast %862 : vector<2x1xf32> to vector<2x2xf32>
    %864 = arith.mulf %859, %863 : vector<2x2xf32>
    %865 = vector.extract_strided_slice %864 {offsets = [0, 0], sizes = [2, 1], strides = [1, 1]} : vector<2x2xf32> to vector<2x1xf32>
    %866 = vector.extract_strided_slice %841 {offsets = [0, 0], sizes = [1, 32], strides = [1, 1]} : vector<2x32xf32> to vector<1x32xf32>
    %867 = vector.broadcast %865 : vector<2x1xf32> to vector<2x32xf32>
    %868 = vector.broadcast %866 : vector<1x32xf32> to vector<2x32xf32>
    %869 = arith.mulf %867, %868 : vector<2x32xf32>
    %870 = vector.extract_strided_slice %864 {offsets = [0, 1], sizes = [2, 1], strides = [1, 1]} : vector<2x2xf32> to vector<2x1xf32>
    %871 = vector.extract_strided_slice %841 {offsets = [1, 0], sizes = [1, 32], strides = [1, 1]} : vector<2x32xf32> to vector<1x32xf32>
    %872 = vector.broadcast %870 : vector<2x1xf32> to vector<2x32xf32>
    %873 = vector.broadcast %871 : vector<1x32xf32> to vector<2x32xf32>
    %874 = arith.mulf %872, %873 : vector<2x32xf32>
    %875 = arith.addf %869, %874 : vector<2x32xf32>
    %876 = tpu.concatenate %764, %801, %838, %875 in 1 : vector<2x32xf32>, vector<2x32xf32>, vector<2x32xf32>, vector<2x32xf32> -> vector<2x128xf32>
    %877 = arith.truncf %876 : vector<2x128xf32> to vector<2x128xbf16>
    %cst_155 = arith.constant dense<0.000000e+00> : vector<2x128xf32>
    %878 = tpu.matmul %877, %7, %cst_155 {dimension_numbers = #tpu.dot_dimension_numbers<[1], [0], [0], [1], [0, 0, 1, 1], [], []>} : vector<2x128xbf16>, vector<128x128xbf16>, vector<2x128xf32> -> vector<2x128xf32>
    %879 = vector.broadcast %8 : vector<1x128xf32> to vector<2x128xf32>
    %880 = arith.addf %878, %879 : vector<2x128xf32>
    %881 = vector.extract_strided_slice %880 {offsets = [0, 0], sizes = [2, 32], strides = [1, 1]} : vector<2x128xf32> to vector<2x32xf32>
    %882 = vector.extract_strided_slice %9 {offsets = [0, 0], sizes = [1, 32], strides = [1, 1]} : vector<4x32xf32> to vector<1x32xf32>
    %883 = vector.broadcast %882 : vector<1x32xf32> to vector<2x32xf32>
    %884 = arith.mulf %881, %883 : vector<2x32xf32>
    %cst_156 = arith.constant dense<0.000000e+00> : vector<2xf32>
    %885 = vector.multi_reduction <add>, %884, %cst_156 [1] : vector<2x32xf32> to vector<2xf32>
    %886 = vector.shape_cast %885 : vector<2xf32> to vector<2x1xf32>
    %887 = vector.extract_strided_slice %880 {offsets = [0, 32], sizes = [2, 32], strides = [1, 1]} : vector<2x128xf32> to vector<2x32xf32>
    %888 = vector.extract_strided_slice %9 {offsets = [1, 0], sizes = [1, 32], strides = [1, 1]} : vector<4x32xf32> to vector<1x32xf32>
    %889 = vector.broadcast %888 : vector<1x32xf32> to vector<2x32xf32>
    %890 = arith.mulf %887, %889 : vector<2x32xf32>
    %cst_157 = arith.constant dense<0.000000e+00> : vector<2xf32>
    %891 = vector.multi_reduction <add>, %890, %cst_157 [1] : vector<2x32xf32> to vector<2xf32>
    %892 = vector.shape_cast %891 : vector<2xf32> to vector<2x1xf32>
    %893 = vector.extract_strided_slice %880 {offsets = [0, 64], sizes = [2, 32], strides = [1, 1]} : vector<2x128xf32> to vector<2x32xf32>
    %894 = vector.extract_strided_slice %9 {offsets = [2, 0], sizes = [1, 32], strides = [1, 1]} : vector<4x32xf32> to vector<1x32xf32>
    %895 = vector.broadcast %894 : vector<1x32xf32> to vector<2x32xf32>
    %896 = arith.mulf %893, %895 : vector<2x32xf32>
    %cst_158 = arith.constant dense<0.000000e+00> : vector<2xf32>
    %897 = vector.multi_reduction <add>, %896, %cst_158 [1] : vector<2x32xf32> to vector<2xf32>
    %898 = vector.shape_cast %897 : vector<2xf32> to vector<2x1xf32>
    %899 = vector.extract_strided_slice %880 {offsets = [0, 96], sizes = [2, 32], strides = [1, 1]} : vector<2x128xf32> to vector<2x32xf32>
    %900 = vector.extract_strided_slice %9 {offsets = [3, 0], sizes = [1, 32], strides = [1, 1]} : vector<4x32xf32> to vector<1x32xf32>
    %901 = vector.broadcast %900 : vector<1x32xf32> to vector<2x32xf32>
    %902 = arith.mulf %899, %901 : vector<2x32xf32>
    %cst_159 = arith.constant dense<0.000000e+00> : vector<2xf32>
    %903 = vector.multi_reduction <add>, %902, %cst_159 [1] : vector<2x32xf32> to vector<2xf32>
    %904 = vector.shape_cast %903 : vector<2xf32> to vector<2x1xf32>
    %905 = tpu.concatenate %886, %892, %898, %904 in 1 : vector<2x1xf32>, vector<2x1xf32>, vector<2x1xf32>, vector<2x1xf32> -> vector<2x4xf32>
    %906 = vector.broadcast %10 : vector<1x4xf32> to vector<2x4xf32>
    %907 = arith.addf %905, %906 : vector<2x4xf32>
    %cst_160 = arith.constant 0.000000e+00 : f32
    %908 = vector.broadcast %cst_160 : f32 to vector<2x4xf32>
    %909 = arith.cmpf oge, %907, %908 : vector<2x4xf32>
    %cst_161 = arith.constant 0.00999999977 : f32
    %910 = vector.broadcast %cst_161 : f32 to vector<2x4xf32>
    %911 = arith.mulf %910, %907 : vector<2x4xf32>
    %912 = arith.select %909, %907, %911 : vector<2x4xi1>, vector<2x4xf32>
    %913 = tpu.concatenate %240, %464, %688, %912 in 1 : vector<2x4xf32>, vector<2x4xf32>, vector<2x4xf32>, vector<2x4xf32> -> vector<2x16xf32>
    %c0_162 = arith.constant 0 : index
    %c0_163 = arith.constant 0 : index
    %914 = vector.load %arg14[%c0_162, %c0_163] : memref<2x16xf32, #tpu.memory_space<vmem>>, vector<2x16xf32>
    tpu.vector_store %arg14[%c0_162, %c0_163], %913 {strides = array<i32>} : memref<2x16xf32, #tpu.memory_space<vmem>>, vector<2x16xf32>,
    return
  }
}

</mosaic_0001>

<bundles_post_ra>
// kernel: _lambda_.2
= control target key start
LH: loop header
LB: loop body
LE: loop exit
PB: predicated region body
PF: predicated region fallthrough
CT: control target
= control target key end

     0   :  { %14 = vsyncpa [#allocation3], 0  ;;  %s1939_s27 = smov [#allocation2]   ;;  %s2330_s0 = inlined_call_operand.vmem [shape: f32[2,8,4], index: 0, kind: input, shape index: {}]   ;;  %s2331_s1 = inlined_call_operand.vmem [shape: bf16[4,128], index: 1, kind: input, shape index: {}]   ;;  %s2332_s2 = inlined_call_operand.hbm [shape: bf16[32,128], index: 2, kind: input, shape index: {}]   ;;  %s2333_s3 = inlined_call_operand.vmem [shape: f32[1,128], index: 3, kind: input, shape index: {}]   ;;  %s2334_s4 = inlined_call_operand.vmem [shape: bf16[32,128], index: 4, kind: input, shape index: {}]   ;;  %s2335_s5 = inlined_call_operand.vmem [shape: bf16[32,128], index: 5, kind: input, shape index: {}]   ;;  %s2336_s6 = inlined_call_operand.vmem [shape: f32[1,128], index: 6, kind: input, shape index: {}]   ;;  %s2337_s7 = inlined_call_operand.vmem [shape: f32[2,32], index: 7, kind: output, shape index: {0}]   ;;  %s2338_s8 = inlined_call_operand.vmem [shape: f32[2,32], index: 8, kind: output, shape index: {1}]  }
   0x1   :  { %s24_s28 = sshll.u32 %s1939_s27, 4  ;;  %s25_s28 = int_to_ptr.vmem [resolvable:$true] %s24_s28 }
   0x2   :  { %s1925_s29 = scalar_lea.vmem %s25_s28, 256  ;;  %p1930_p1 = scmp.lt.s32.totalorder %s25_s28, %s25_s28 }
   0x3   :  { %p1926_p0 = scmp.ne.s32.totalorder %s25_s28, %s1925_s29  ;;  %p1931_p2 = scmp.lt.s32.totalorder %s1925_s29, %s1925_s29 }
   0x5   :  { %p1932_p3 = por %p1931_p2, %p1930_p1 }
   0x7   :  { %p1933_p4 = pnand %p1932_p3, %p1926_p0 }
   0x9   :  { %1936 = shalt.err (!%p1933_p4)
}
   0xa   :  { %s1940_s30 = smov 64   ;;  %s1941_s9 = smov 4  }
   0xb   :  { %30 = dma.hbm_to_vmem [thread:$0]  %s2332_s2, 256, %s25_s28, [#allocation3], %s1940_s30, %s1940_s30, %s1941_s9  }
   0xc   :  { %1937 = dma.done.wait [#allocation3], 256  }
   0xd   :  { %1938 = vsyncadd [#allocation3], 4294967040  ;;  %v1942_v0 = vmov 0.0   ;;  %vm1943_vm0 = vmmov 0   ;;  %vm115_vm1 = vcmask 1041408   ;;  %vm68_vm2 = vcmask 1041409  }
   0xe   :  { %1639 = vmatprep.subr.bf16.mxu1 %v1942_v0  ;;  %1633 = vmatprep.subr.bf16.mxu0 %v1942_v0  ;;  %v2003_v1 = vld [vmem:[#allocation2 + $0x8] sm:$0xff]   ;;  %vm75_vm3 = vcmask 1043459   ;;  %v59_v2 = vld [vmem:[%s2331_s1] sm:$0x3]  ;;  %vm82_vm4 = vcmask 1045509   ;;  %vm89_vm5 = vcmask 1047559  }
   0xf   :  { %1635 = vmatprep.mubr.msk.bf16.mxu0 %vm1943_vm0, %v1942_v0  ;;  %1643 = vmatprep.mubr.msk.bf16.mxu1 %vm1943_vm0, %v1942_v0  ;;  %v136_v3 = vsel %vm115_vm1, %v59_v2, 0  ;;  %v2010_v4 = vld [vmem:[#allocation2] sm:$0xff]   ;;  %vm117_vm6 = vcmask 1043456   ;;  %v44_v5 = vld [vmem:[%s2330_s0 + $0x8] sm:$0x1]  ;;  %vm119_vm7 = vcmask 1045504  }
  0x10   :  { %1640 = vmatpush3.bf16.msra.mxu1 %v2003_v1  ;;  %1634 = vmatpush3.bf16.msra.mxu0 %v136_v3  ;;  %v45_v6 = vld [vmem:[%s2330_s0 + $0x1] sm:$0x1]  ;;  %v43_v7 = vld [vmem:[%s2330_s0] sm:$0x1]  ;;  %v46_v8 = vld [vmem:[%s2330_s0 + $0x9] sm:$0x1] }
  0x11   :  { %1641 = vmatprep.subr.bf16.mxu1 %v1942_v0  ;;  %v47_v9 = vld [vmem:[%s2330_s0 + $0x2] sm:$0x1]  ;;  %v48_v10 = vld [vmem:[%s2330_s0 + $0xa] sm:$0x1]  ;;  %1647 = vmatprep.subr.bf16.mxu0 %v1942_v0  ;;  %v49_v11 = vld [vmem:[%s2330_s0 + $0x3] sm:$0x1] }
  0x12   :  { %v50_v12 = vld [vmem:[%s2330_s0 + $0xb] sm:$0x1]  ;;  %v52_v13 = vld [vmem:[%s2330_s0 + $0xc] sm:$0x1]  ;;  %v51_v14 = vld [vmem:[%s2330_s0 + $0x4] sm:$0x1] }
  0x13   :  { %v53_v15 = vld [vmem:[%s2330_s0 + $0x5] sm:$0x1]  ;;  %v54_v16 = vld [vmem:[%s2330_s0 + $0xd] sm:$0x1]  ;;  %v55_v17 = vld [vmem:[%s2330_s0 + $0x6] sm:$0x1] }
  0x14   :  { %1642 = vmatpush3.bf16.msra.mxu1 %v2010_v4  ;;  %v56_v18 = vld [vmem:[%s2330_s0 + $0xe] sm:$0x1]  ;;  %v57_v19 = vld [vmem:[%s2330_s0 + $0x7] sm:$0x1]  ;;  %v67_v20 = vrot.slane %v44_v5, 7  ;;  %v73_v21 = vrot.slane %v45_v6, 6 }
  0x15   :  { %1655 = vmatprep.subr.bf16.mxu1 %v1942_v0  ;;  %v58_v22 = vld [vmem:[%s2330_s0 + $0xf] sm:$0x1]  ;;  %v74_v23 = vrot.slane %v46_v8, 5  ;;  %v80_v24 = vrot.slane %v47_v9, 4  ;;  %v81_v25 = vrot.slane %v48_v10, 3  ;;  %v87_v26 = vrot.slane %v49_v11, 2 }
  0x16   :  { %v69_v27 = vsel %vm68_vm2, %v67_v20, %v43_v7  ;;  %v88_v28 = vrot.slane %v50_v12, 1  ;;  %v94_v29 = vrot.slane %v52_v13, 7  ;;  %v99_v30 = vrot.slane %v53_v15, 6  ;;  %v1540_v55 = vld [vmem:[%s2333_s3] ss:$0 sm:$0xff]  ;;  %s1945_s22 = smov 32  }
  0x17   :  { %v1944_v31 = vmov 0   ;;  %v76_v32 = vsel %vm75_vm3, %v74_v23, %v73_v21  ;;  %v83_v33 = vsel %vm82_vm4, %v81_v25, %v80_v24  ;;  %v100_v34 = vrot.slane %v54_v16, 5 }
  0x18   :  { %1644 = vmatmul.mubr.bf16.vlgmr.msra.gmra.mxu1 %v1944_v31  ;;  %v105_v35 = vrot.slane %v55_v17, 4  ;;  %v90_v36 = vsel %vm89_vm5, %v88_v28, %v87_v26  ;;  %v95_v37 = vsel %vm68_vm2, %v94_v29, %v51_v14  ;;  %v106_v38 = vrot.slane %v56_v18, 3 }
  0x19   :  { %1656 = vmatpush3.bf16.msra.mxu1 %v2003_v1  ;;  %1659 = vmatprep.mubr.msk.bf16.mxu1 %vm1943_vm0, %v1942_v0  ;;  %v111_v39 = vrot.slane %v57_v19, 2  ;;  %v101_v40 = vsel %vm75_vm3, %v100_v34, %v99_v30  ;;  %v112_v41 = vrot.slane %v58_v22, 1  ;;  %v116_v42 = vsel %vm115_vm1, %v69_v27, %v76_v32 }
  0x1a   :  { %1657 = vmatprep.subr.bf16.mxu1 %v1942_v0  ;;  %v107_v43 = vsel %vm82_vm4, %v106_v38, %v105_v35  ;;  %v118_v44 = vsel %vm117_vm6, %v116_v42, %v83_v33  ;;  %v121_v45 = vsel %vm115_vm1, %v95_v37, %v101_v40  ;;  %vm131_vm8 = vcmask 31744  }
  0x1b   :  { %v113_v46 = vsel %vm89_vm5, %v112_v41, %v111_v39  ;;  %v120_v47 = vsel %vm119_vm7, %v118_v44, %v90_v36  ;;  %v122_v48 = vsel %vm117_vm6, %v121_v45, %v107_v43  ;;  %vm191_vm9 = vcmask 261120  }
  0x1c   :  { %v123_v49 = vsel %vm119_vm7, %v122_v48, %v113_v46  ;;  %vm1523_vm10 = vcmask 261126  }
  0x1d   :  { %1658 = vmatpush3.bf16.msra.mxu1 %v2010_v4  ;;  %v124_v50 = vpack.c.bf16 %v123_v49, %v120_v47 }
  0x1e   :  { %1671 = vmatprep.subr.bf16.mxu1 %v1942_v0 }
  0x1f   :  { %1636 = vmatmul.mubr.msk.bf16.vlgmr.msra.gmra.mxu0 %vm131_vm8, %v124_v50 }
  0x20   :  { %1648 = vmatpush3.bf16.msra.mxu0 %v2003_v1  ;;  %1651 = vmatprep.mubr.msk.bf16.mxu0 %vm1943_vm0, %v1942_v0 }
  0x21   :  { %1649 = vmatprep.subr.bf16.mxu0 %v1942_v0 }
  0x24   :  { %1650 = vmatpush3.bf16.msra.mxu0 %v2010_v4 }
  0x25   :  { %1663 = vmatprep.subr.bf16.mxu0 %v1942_v0 }
  0xd8   :  { %v229_v51 = vpop.f32.mrf.mxu1 }
  0xda   :  { %v1645_v52 = vpop.f32.mrf.mxu1 }
  0xdc   :  { %v232_v53 = vpop.f32.mrf.mxu1 }
  0xde   :  { %v1646_v54 = vpop.f32.mrf.mxu1 }
  0xdf   :  { %v172_v56 = vpop.f32.mrf.mxu0 }
  0xe0   :  { %v2094_v57 = vadd.f32 %v1540_v55, %v172_v56 }
  0xe1   :  { %v1637_v58 = vpop.f32.mrf.mxu0 }
  0xe2   :  { %v235_v59 = vadd.f32 %v229_v51, %v2094_v57 }
  0xe3   :  { %v175_v60 = vpop.f32.mrf.mxu0 }
  0xe4   :  { %1789 = vtanh.f32 %v235_v59  ;;  %v2097_v61 = vadd.f32 %v1540_v55, %v175_v60  ;;  %v1544_v2 = vmul.f32 -1.442695, %v235_v59 }
  0xe5   :  { %v1638_v62 = vpop.f32.mrf.mxu0 }
  0xe6   :  { %1791 = vpow2.f32 %v1544_v2 }
  0xf1   :  { %v1790_v63 = vpop.eup %1789 }
  0xf2   :  { %245 = vrot.lane.b32.xlu0 %v1790_v63, %s1945_s22 }
  0xf3   :  { %v1792_v3 = vpop.eup %1791 }
  0xf4   :  { %v239_v5 = vadd.f32 1.0, %v1792_v3 }
  0xf6   :  { %1793 = vrcp.f32 %v239_v5 }
 0x103   :  { %v1794_v6 = vpop.eup %1793 }
 0x104   :  { %v243_v9 = vmul.f32 0.0, %v1794_v6 }
 0x164   :  { %v246_v7 = vpop.permute.xlu0 %245 }
 0x165   :  { %v248_v8 = vmul.f32 %v1794_v6, %v246_v7 }
 0x167   :  { %250 = vrot.lane.b32.xlu0 %v248_v8, %s1945_s22 }
 0x1d9   :  { %v251_v10 = vpop.permute.xlu0 %250 }
 0x1da   :  { %v253_v11 = vadd.f32 %v251_v10, %v243_v9 }
 0x1dc   :  { %1795 = vtanh.f32 %v253_v11  ;;  %v319_v30 = vrot.slane %v253_v11, 6 }
 0x1e9   :  { %v1796_v12 = vpop.eup %1795 }
 0x1ea   :  { %256 = vrot.lane.b32.xlu1 %v1796_v12, %s1945_s22 }
 0x25c   :  { %v257_v13 = vpop.permute.xlu1 %256 }
 0x25d   :  { %v2102_v14 = vmul.f32 %v1794_v6, %v257_v13 }
 0x25f   :  { %v260_v15 = vpack.c.bf16 %v2102_v14, %v2102_v14 }
 0x261   :  { %262 = vrot.lane.b32.xlu1 %v260_v15, %s1940_s30 }
 0x2d3   :  { %v263_v16 = vpop.permute.xlu1 %262 }
 0x2d4   :  { %1652 = vmatmul.mubr.msk.bf16.vlgmr.msra.gmra.mxu0 %vm191_vm9, %v263_v16 }
 0x2d5   :  { %1664 = vmatpush3.bf16.msra.mxu0 %v2003_v1  ;;  %1667 = vmatprep.mubr.msk.bf16.mxu0 %vm1943_vm0, %v1942_v0 }
 0x2d6   :  { %1665 = vmatprep.subr.bf16.mxu0 %v1942_v0 }
 0x2d9   :  { %1666 = vmatpush3.bf16.msra.mxu0 %v2010_v4 }
 0x2da   :  { %1679 = vmatprep.subr.bf16.mxu0 %v1942_v0 }
 0x394   :  { %v301_v17 = vpop.f32.mrf.mxu0 }
 0x395   :  { %v308_v18 = vrot.slane %v301_v17, 6 }
 0x396   :  { %v1653_v19 = vpop.f32.mrf.mxu0 }
 0x397   :  { %v310_v20 = vadd.f32 %v308_v18, %v2094_v57 }
 0x398   :  { %v304_v21 = vpop.f32.mrf.mxu0 }
 0x399   :  { %1797 = vtanh.f32 %v310_v20  ;;  %v1546_v24 = vmul.f32 -1.442695, %v310_v20 }
 0x39a   :  { %v1654_v22 = vpop.f32.mrf.mxu0 }
 0x39b   :  { %1799 = vpow2.f32 %v1546_v24 }
 0x3a6   :  { %v1798_v23 = vpop.eup %1797 }
 0x3a7   :  { %323 = vrot.lane.b32.xlu0 %v1798_v23, %s1945_s22 }
 0x3a8   :  { %v1800_v25 = vpop.eup %1799 }
 0x3a9   :  { %v314_v26 = vadd.f32 1.0, %v1800_v25 }
 0x3ab   :  { %1801 = vrcp.f32 %v314_v26 }
 0x3b8   :  { %v1802_v27 = vpop.eup %1801 }
 0x3b9   :  { %v321_v32 = vmul.f32 %v1802_v27, %v319_v30 }
 0x419   :  { %v324_v28 = vpop.permute.xlu0 %323 }
 0x41a   :  { %v326_v29 = vmul.f32 %v1802_v27, %v324_v28 }
 0x41c   :  { %328 = vrot.lane.b32.xlu1 %v326_v29, %s1945_s22 }
 0x48e   :  { %v329_v33 = vpop.permute.xlu1 %328 }
 0x48f   :  { %v331_v34 = vadd.f32 %v329_v33, %v321_v32 }
 0x491   :  { %1803 = vtanh.f32 %v331_v34  ;;  %v398_v54 = vrot.slane %v331_v34, 6 }
 0x49e   :  { %v1804_v35 = vpop.eup %1803 }
 0x49f   :  { %334 = vrot.lane.b32.xlu0 %v1804_v35, %s1945_s22 }
 0x511   :  { %v335_v36 = vpop.permute.xlu0 %334 }
 0x512   :  { %v337_v37 = vmul.f32 %v1802_v27, %v335_v36 }
 0x514   :  { %v338_v38 = vpack.c.bf16 %v337_v37, %v337_v37  ;;  %v819_v63 = vsel %vm115_vm1, %v2102_v14, %v337_v37 }
 0x516   :  { %v340_v39 = vrot.slane %v338_v38, 1 }
 0x518   :  { %341 = vrot.lane.b32.xlu1 %v340_v39, %s1940_s30 }
 0x58a   :  { %v342_v40 = vpop.permute.xlu1 %341 }
 0x58b   :  { %1660 = vmatmul.mubr.msk.bf16.vlgmr.msra.gmra.mxu1 %vm191_vm9, %v342_v40 }
 0x58c   :  { %1672 = vmatpush3.bf16.msra.mxu1 %v2003_v1  ;;  %1675 = vmatprep.mubr.msk.bf16.mxu1 %vm1943_vm0, %v1942_v0 }
 0x58d   :  { %1673 = vmatprep.subr.bf16.mxu1 %v1942_v0 }
 0x590   :  { %1674 = vmatpush3.bf16.msra.mxu1 %v2010_v4 }
 0x591   :  { %1687 = vmatprep.subr.bf16.mxu1 %v1942_v0 }
 0x64b   :  { %v380_v41 = vpop.f32.mrf.mxu1 }
 0x64c   :  { %v387_v42 = vrot.slane %v380_v41, 4 }
 0x64d   :  { %v1661_v43 = vpop.f32.mrf.mxu1 }
 0x64e   :  { %v389_v44 = vadd.f32 %v387_v42, %v2094_v57 }
 0x64f   :  { %v383_v45 = vpop.f32.mrf.mxu1 }
 0x650   :  { %1805 = vtanh.f32 %v389_v44  ;;  %v1548_v48 = vmul.f32 -1.442695, %v389_v44 }
 0x651   :  { %v1662_v46 = vpop.f32.mrf.mxu1 }
 0x652   :  { %1807 = vpow2.f32 %v1548_v48 }
 0x65d   :  { %v1806_v47 = vpop.eup %1805 }
 0x65e   :  { %402 = vrot.lane.b32.xlu0 %v1806_v47, %s1945_s22 }
 0x65f   :  { %v1808_v49 = vpop.eup %1807 }
 0x660   :  { %v393_v50 = vadd.f32 1.0, %v1808_v49 }
 0x662   :  { %1809 = vrcp.f32 %v393_v50 }
 0x66f   :  { %v1810_v51 = vpop.eup %1809 }
 0x670   :  { %v400_v55 = vmul.f32 %v1810_v51, %v398_v54 }
 0x6d0   :  { %v403_v52 = vpop.permute.xlu0 %402 }
 0x6d1   :  { %v405_v53 = vmul.f32 %v1810_v51, %v403_v52 }
 0x6d3   :  { %407 = vrot.lane.b32.xlu1 %v405_v53, %s1945_s22 }
 0x745   :  { %v408_v56 = vpop.permute.xlu1 %407 }
 0x746   :  { %v410_v58 = vadd.f32 %v408_v56, %v400_v55 }
 0x748   :  { %1811 = vtanh.f32 %v410_v58  ;;  %v477_v20 = vrot.slane %v410_v58, 6 }
 0x755   :  { %v1812_v59 = vpop.eup %1811 }
 0x756   :  { %413 = vrot.lane.b32.xlu0 %v1812_v59, %s1945_s22 }
 0x7c8   :  { %v414_v60 = vpop.permute.xlu0 %413 }
 0x7c9   :  { %v416_v62 = vmul.f32 %v1810_v51, %v414_v60 }
 0x7cb   :  { %v417_v2 = vpack.c.bf16 %v416_v62, %v416_v62  ;;  %v820_v3 = vsel %vm117_vm6, %v819_v63, %v416_v62 }
 0x7cd   :  { %v419_v5 = vrot.slane %v417_v2, 2 }
 0x7cf   :  { %420 = vrot.lane.b32.xlu1 %v419_v5, %s1940_s30 }
 0x841   :  { %v421_v6 = vpop.permute.xlu1 %420 }
 0x842   :  { %1668 = vmatmul.mubr.msk.bf16.vlgmr.msra.gmra.mxu0 %vm191_vm9, %v421_v6 }
 0x843   :  { %1680 = vmatpush3.bf16.msra.mxu0 %v2003_v1  ;;  %1683 = vmatprep.mubr.msk.bf16.mxu0 %vm1943_vm0, %v1942_v0 }
 0x844   :  { %1681 = vmatprep.subr.bf16.mxu0 %v1942_v0 }
 0x847   :  { %1682 = vmatpush3.bf16.msra.mxu0 %v2010_v4 }
 0x848   :  { %1695 = vmatprep.subr.bf16.mxu0 %v1942_v0 }
 0x902   :  { %v459_v7 = vpop.f32.mrf.mxu0 }
 0x903   :  { %v466_v8 = vrot.slane %v459_v7, 2 }
 0x904   :  { %v1669_v9 = vpop.f32.mrf.mxu0 }
 0x905   :  { %v468_v10 = vadd.f32 %v466_v8, %v2094_v57 }
 0x906   :  { %v462_v11 = vpop.f32.mrf.mxu0 }
 0x907   :  { %1813 = vtanh.f32 %v468_v10  ;;  %v1550_v14 = vmul.f32 -1.442695, %v468_v10 }
 0x908   :  { %v1670_v12 = vpop.f32.mrf.mxu0 }
 0x909   :  { %1815 = vpow2.f32 %v1550_v14 }
 0x914   :  { %v1814_v13 = vpop.eup %1813 }
 0x915   :  { %481 = vrot.lane.b32.xlu0 %v1814_v13, %s1945_s22 }
 0x916   :  { %v1816_v15 = vpop.eup %1815 }
 0x917   :  { %v472_v16 = vadd.f32 1.0, %v1816_v15 }
 0x919   :  { %1817 = vrcp.f32 %v472_v16 }
 0x926   :  { %v1818_v17 = vpop.eup %1817 }
 0x927   :  { %v479_v21 = vmul.f32 %v1818_v17, %v477_v20 }
 0x987   :  { %v482_v18 = vpop.permute.xlu0 %481 }
 0x988   :  { %v484_v19 = vmul.f32 %v1818_v17, %v482_v18 }
 0x98a   :  { %486 = vrot.lane.b32.xlu1 %v484_v19, %s1945_s22 }
 0x9fc   :  { %v487_v22 = vpop.permute.xlu1 %486 }
 0x9fd   :  { %v489_v57 = vadd.f32 %v487_v22, %v479_v21 }
 0x9ff   :  { %1819 = vtanh.f32 %v489_v57  ;;  %v553_v43 = vrot.slane %v489_v57, 6 }
 0xa0c   :  { %v1820_v23 = vpop.eup %1819 }
 0xa0d   :  { %492 = vrot.lane.b32.xlu0 %v1820_v23, %s1945_s22 }
 0xa7f   :  { %v493_v24 = vpop.permute.xlu0 %492 }
 0xa80   :  { %v495_v25 = vmul.f32 %v1818_v17, %v493_v24 }
 0xa82   :  { %v496_v26 = vpack.c.bf16 %v495_v25, %v495_v25  ;;  %v2146_v27 = vsel %vm119_vm7, %v820_v3, %v495_v25 }
 0xa84   :  { %v498_v28 = vrot.slane %v496_v26, 3 }
 0xa86   :  { %499 = vrot.lane.b32.xlu1 %v498_v28, %s1940_s30 }
 0xaf8   :  { %v500_v29 = vpop.permute.xlu1 %499 }
 0xaf9   :  { %1676 = vmatmul.mubr.msk.bf16.vlgmr.msra.gmra.mxu1 %vm191_vm9, %v500_v29 }
 0xafa   :  { %1688 = vmatpush3.bf16.msra.mxu1 %v2003_v1  ;;  %1691 = vmatprep.mubr.msk.bf16.mxu1 %vm1943_vm0, %v1942_v0 }
 0xafb   :  { %1689 = vmatprep.subr.bf16.mxu1 %v1942_v0 }
 0xafe   :  { %1690 = vmatpush3.bf16.msra.mxu1 %v2010_v4 }
 0xaff   :  { %1703 = vmatprep.subr.bf16.mxu1 %v1942_v0 }
 0xbb9   :  { %v538_v30 = vpop.f32.mrf.mxu1 }
 0xbba   :  { %v544_v32 = vadd.f32 %v538_v30, %v2097_v61 }
 0xbbb   :  { %v1677_v33 = vpop.f32.mrf.mxu1 }
 0xbbc   :  { %1821 = vtanh.f32 %v544_v32  ;;  %v1552_v37 = vmul.f32 -1.442695, %v544_v32 }
 0xbbd   :  { %v541_v34 = vpop.f32.mrf.mxu1 }
 0xbbe   :  { %1823 = vpow2.f32 %v1552_v37 }
 0xbbf   :  { %v1678_v35 = vpop.f32.mrf.mxu1 }
 0xbc9   :  { %v1822_v36 = vpop.eup %1821 }
 0xbca   :  { %557 = vrot.lane.b32.xlu0 %v1822_v36, %s1945_s22 }
 0xbcb   :  { %v1824_v38 = vpop.eup %1823 }
 0xbcc   :  { %v548_v39 = vadd.f32 1.0, %v1824_v38 }
 0xbce   :  { %1825 = vrcp.f32 %v548_v39 }
 0xbdb   :  { %v1826_v40 = vpop.eup %1825 }
 0xbdc   :  { %v555_v44 = vmul.f32 %v1826_v40, %v553_v43 }
 0xc3c   :  { %v558_v41 = vpop.permute.xlu0 %557 }
 0xc3d   :  { %v560_v42 = vmul.f32 %v1826_v40, %v558_v41 }
 0xc3f   :  { %562 = vrot.lane.b32.xlu1 %v560_v42, %s1945_s22 }
 0xcb1   :  { %v563_v45 = vpop.permute.xlu1 %562 }
 0xcb2   :  { %v565_v46 = vadd.f32 %v563_v45, %v555_v44 }
 0xcb4   :  { %1827 = vtanh.f32 %v565_v46  ;;  %v631_v3 = vrot.slane %v565_v46, 6 }
 0xcc1   :  { %v1828_v47 = vpop.eup %1827 }
 0xcc2   :  { %568 = vrot.lane.b32.xlu0 %v1828_v47, %s1945_s22 }
 0xd34   :  { %v569_v48 = vpop.permute.xlu0 %568 }
 0xd35   :  { %v2160_v49 = vmul.f32 %v1826_v40, %v569_v48 }
 0xd37   :  { %v572_v50 = vpack.c.bf16 %v2160_v49, %v2160_v49 }
 0xd39   :  { %574 = vrot.lane.b32.xlu1 %v572_v50, %s1940_s30 }
 0xdab   :  { %v575_v51 = vpop.permute.xlu1 %574 }
 0xdac   :  { %1684 = vmatmul.mubr.msk.bf16.vlgmr.msra.gmra.mxu0 %vm191_vm9, %v575_v51 }
 0xdad   :  { %1696 = vmatpush3.bf16.msra.mxu0 %v2003_v1  ;;  %1699 = vmatprep.mubr.msk.bf16.mxu0 %vm1943_vm0, %v1942_v0 }
 0xdae   :  { %1697 = vmatprep.subr.bf16.mxu0 %v1942_v0 }
 0xdb1   :  { %1698 = vmatpush3.bf16.msra.mxu0 %v2010_v4 }
 0xdb2   :  { %1711 = vmatprep.subr.bf16.mxu0 %v1942_v0 }
 0xe6c   :  { %v613_v52 = vpop.f32.mrf.mxu0 }
 0xe6d   :  { %v620_v53 = vrot.slane %v613_v52, 6 }
 0xe6e   :  { %v1685_v54 = vpop.f32.mrf.mxu0 }
 0xe6f   :  { %v622_v55 = vadd.f32 %v620_v53, %v2097_v61 }
 0xe70   :  { %v616_v56 = vpop.f32.mrf.mxu0 }
 0xe71   :  { %1829 = vtanh.f32 %v622_v55  ;;  %v1554_v1 = vmul.f32 -1.442695, %v622_v55  ;;  %v2200_v56 = vld [vmem:[%s2335_s5 + $0x8] sm:$0xff]  }
 0xe72   :  { %v1686_v58 = vpop.f32.mrf.mxu0 }
 0xe73   :  { %1831 = vpow2.f32 %v1554_v1  ;;  %v1786_v58 = vld [vmem:[%s2334_s4 + $0x8] sm:$0xff]   ;;  %v1788_v1 = vld [vmem:[%s2334_s4] sm:$0xff]  }
 0xe7e   :  { %v1830_v59 = vpop.eup %1829 }
 0xe7f   :  { %635 = vrot.lane.b32.xlu0 %v1830_v59, %s1945_s22  ;;  %v2209_v59 = vld [vmem:[%s2335_s5] sm:$0xff]  }
 0xe80   :  { %v1832_v60 = vpop.eup %1831 }
 0xe81   :  { %v626_v62 = vadd.f32 1.0, %v1832_v60 }
 0xe83   :  { %1833 = vrcp.f32 %v626_v62 }
 0xe90   :  { %v1834_v63 = vpop.eup %1833 }
 0xe91   :  { %v633_v5 = vmul.f32 %v1834_v63, %v631_v3 }
 0xef1   :  { %v636_v4 = vpop.permute.xlu0 %635 }
 0xef2   :  { %v638_v2 = vmul.f32 %v1834_v63, %v636_v4 }
 0xef4   :  { %640 = vrot.lane.b32.xlu1 %v638_v2, %s1945_s22 }
 0xf66   :  { %v641_v6 = vpop.permute.xlu1 %640 }
 0xf67   :  { %v643_v7 = vadd.f32 %v641_v6, %v633_v5 }
 0xf69   :  { %1835 = vtanh.f32 %v643_v7  ;;  %v710_v26 = vrot.slane %v643_v7, 6 }
 0xf76   :  { %v1836_v8 = vpop.eup %1835 }
 0xf77   :  { %646 = vrot.lane.b32.xlu0 %v1836_v8, %s1945_s22 }
 0xfe9   :  { %v647_v9 = vpop.permute.xlu0 %646 }
 0xfea   :  { %v649_v10 = vmul.f32 %v1834_v63, %v647_v9 }
 0xfec   :  { %v650_v11 = vpack.c.bf16 %v649_v10, %v649_v10  ;;  %v822_v35 = vsel %vm115_vm1, %v2160_v49, %v649_v10 }
 0xfee   :  { %v652_v12 = vrot.slane %v650_v11, 1 }
 0xff0   :  { %653 = vrot.lane.b32.xlu1 %v652_v12, %s1940_s30 }
0x1062   :  { %v654_v13 = vpop.permute.xlu1 %653 }
0x1063   :  { %1692 = vmatmul.mubr.msk.bf16.vlgmr.msra.gmra.mxu1 %vm191_vm9, %v654_v13 }
0x1064   :  { %1707 = vmatprep.mubr.msk.bf16.mxu1 %vm1943_vm0, %v1942_v0  ;;  %1704 = vmatpush3.bf16.msra.mxu1 %v1786_v58 }
0x1065   :  { %1705 = vmatprep.subr.bf16.mxu1 %v1942_v0 }
0x1068   :  { %1706 = vmatpush3.bf16.msra.mxu1 %v1788_v1 }
0x1069   :  { %1719 = vmatprep.subr.bf16.mxu1 %v1942_v0 }
0x1123   :  { %v692_v14 = vpop.f32.mrf.mxu1 }
0x1124   :  { %v699_v15 = vrot.slane %v692_v14, 4 }
0x1125   :  { %v1693_v16 = vpop.f32.mrf.mxu1 }
0x1126   :  { %v701_v17 = vadd.f32 %v699_v15, %v2097_v61 }
0x1127   :  { %v695_v18 = vpop.f32.mrf.mxu1 }
0x1128   :  { %1837 = vtanh.f32 %v701_v17  ;;  %v1556_v21 = vmul.f32 -1.442695, %v701_v17 }
0x1129   :  { %v1694_v19 = vpop.f32.mrf.mxu1 }
0x112a   :  { %1839 = vpow2.f32 %v1556_v21 }
0x1135   :  { %v1838_v20 = vpop.eup %1837 }
0x1136   :  { %714 = vrot.lane.b32.xlu0 %v1838_v20, %s1945_s22 }
0x1137   :  { %v1840_v22 = vpop.eup %1839 }
0x1138   :  { %v705_v57 = vadd.f32 1.0, %v1840_v22 }
0x113a   :  { %1841 = vrcp.f32 %v705_v57 }
0x1147   :  { %v1842_v23 = vpop.eup %1841 }
0x1148   :  { %v712_v28 = vmul.f32 %v1842_v23, %v710_v26 }
0x11a8   :  { %v715_v24 = vpop.permute.xlu0 %714 }
0x11a9   :  { %v717_v25 = vmul.f32 %v1842_v23, %v715_v24 }
0x11ab   :  { %719 = vrot.lane.b32.xlu1 %v717_v25, %s1945_s22 }
0x121d   :  { %v720_v29 = vpop.permute.xlu1 %719 }
0x121e   :  { %v722_v30 = vadd.f32 %v720_v29, %v712_v28 }
0x1220   :  { %1843 = vtanh.f32 %v722_v30  ;;  %v789_v53 = vrot.slane %v722_v30, 6 }
0x122d   :  { %v1844_v32 = vpop.eup %1843 }
0x122e   :  { %725 = vrot.lane.b32.xlu0 %v1844_v32, %s1945_s22 }
0x12a0   :  { %v726_v33 = vpop.permute.xlu0 %725 }
0x12a1   :  { %v728_v34 = vmul.f32 %v1842_v23, %v726_v33 }
0x12a3   :  { %v729_v36 = vpack.c.bf16 %v728_v34, %v728_v34  ;;  %v823_v37 = vsel %vm117_vm6, %v822_v35, %v728_v34 }
0x12a5   :  { %v731_v38 = vrot.slane %v729_v36, 2 }
0x12a7   :  { %732 = vrot.lane.b32.xlu1 %v731_v38, %s1940_s30 }
0x1319   :  { %v733_v39 = vpop.permute.xlu1 %732 }
0x131a   :  { %1700 = vmatmul.mubr.msk.bf16.vlgmr.msra.gmra.mxu0 %vm191_vm9, %v733_v39 }
0x131b   :  { %1715 = vmatprep.mubr.msk.bf16.mxu0 %vm1943_vm0, %v1942_v0  ;;  %1712 = vmatpush3.bf16.msra.mxu0 %v2200_v56 }
0x131c   :  { %1713 = vmatprep.subr.bf16.mxu0 %v1942_v0 }
0x131f   :  { %1714 = vmatpush3.bf16.msra.mxu0 %v2209_v59 }
0x1320   :  { %1727 = vmatprep.subr.bf16.mxu0 %v1942_v0 }
0x1322   :  { %1716 = vmatmul.mubr.bf16.vlgmr.msra.gmra.mxu0 %v1944_v31 }
0x1323   :  { %1728 = vmatpush3.bf16.msra.mxu0 %v2200_v56  ;;  %1731 = vmatprep.mubr.msk.bf16.mxu0 %vm1943_vm0, %v1942_v0 }
0x1324   :  { %1729 = vmatprep.subr.bf16.mxu0 %v1942_v0 }
0x1327   :  { %1730 = vmatpush3.bf16.msra.mxu0 %v2209_v59 }
0x1328   :  { %1743 = vmatprep.subr.bf16.mxu0 %v1942_v0 }
0x13da   :  { %v771_v40 = vpop.f32.mrf.mxu0 }
0x13db   :  { %v778_v41 = vrot.slane %v771_v40, 2 }
0x13dc   :  { %v1701_v42 = vpop.f32.mrf.mxu0 }
0x13dd   :  { %v780_v43 = vadd.f32 %v778_v41, %v2097_v61 }
0x13de   :  { %v774_v44 = vpop.f32.mrf.mxu0 }
0x13df   :  { %1845 = vtanh.f32 %v780_v43  ;;  %v1558_v47 = vmul.f32 -1.442695, %v780_v43 }
0x13e0   :  { %v1702_v45 = vpop.f32.mrf.mxu0 }
0x13e1   :  { %1847 = vpow2.f32 %v1558_v47 }
0x13e2   :  { %v937_v31 = vpop.f32.mrf.mxu0 }
0x13e4   :  { %v1717_v3 = vpop.f32.mrf.mxu0 }
0x13e6   :  { %v940_v5 = vpop.f32.mrf.mxu0 }
0x13e8   :  { %v1718_v6 = vpop.f32.mrf.mxu0 }
0x13ec   :  { %v1846_v46 = vpop.eup %1845 }
0x13ed   :  { %793 = vrot.lane.b32.xlu0 %v1846_v46, %s1945_s22 }
0x13ee   :  { %v1848_v48 = vpop.eup %1847 }
0x13ef   :  { %v784_v49 = vadd.f32 1.0, %v1848_v48 }
0x13f1   :  { %1849 = vrcp.f32 %v784_v49 }
0x13fe   :  { %v1850_v50 = vpop.eup %1849 }
0x13ff   :  { %v791_v54 = vmul.f32 %v1850_v50, %v789_v53 }
0x145f   :  { %v794_v51 = vpop.permute.xlu0 %793 }
0x1460   :  { %v796_v52 = vmul.f32 %v1850_v50, %v794_v51 }
0x1462   :  { %798 = vrot.lane.b32.xlu1 %v796_v52, %s1945_s22 }
0x14d4   :  { %v799_v55 = vpop.permute.xlu1 %798 }
0x14d5   :  { %v2194_v61 = vadd.f32 %v799_v55, %v791_v54 }
0x14d7   :  { %1851 = vtanh.f32 %v2194_v61 }
0x14e4   :  { %v1852_v60 = vpop.eup %1851 }
0x14e5   :  { %804 = vrot.lane.b32.xlu0 %v1852_v60, %s1945_s22 }
0x1557   :  { %v805_v62 = vpop.permute.xlu0 %804 }
0x1558   :  { %v2227_v63 = vmul.f32 %v1850_v50, %v805_v62 }
0x155a   :  { %v824_v4 = vsel %vm119_vm7, %v823_v37, %v2227_v63 }
0x155b   :  { %v825_v2 = vpack.c.bf16 %v824_v4, %v2146_v27  ;;  %v1559_v27 = vld [vmem:[%s2336_s6] ss:$0 sm:$0xff]  ;;  %s1946_s6 = smov 96  }
0x155d   :  { %833 = vrot.lane.b32.xlu1 %v825_v2, %s1940_s30 }
0x15cf   :  { %v834_v7 = vpop.permute.xlu1 %833 }
0x15d0   :  { %1708 = vmatmul.mubr.msk.bf16.vlgmr.msra.gmra.mxu1 %vm191_vm9, %v834_v7 }
0x15d1   :  { %1720 = vmatpush3.bf16.msra.mxu1 %v2200_v56  ;;  %1723 = vmatprep.mubr.msk.bf16.mxu1 %vm1943_vm0, %v1942_v0 }
0x15d2   :  { %1721 = vmatprep.subr.bf16.mxu1 %v1942_v0 }
0x15d5   :  { %1722 = vmatpush3.bf16.msra.mxu1 %v2209_v59 }
0x15d6   :  { %1735 = vmatprep.subr.bf16.mxu1 %v1942_v0 }
0x1690   :  { %v884_v8 = vpop.f32.mrf.mxu1 }
0x1691   :  { %v2243_v9 = vadd.f32 %v1559_v27, %v884_v8 }
0x1692   :  { %v1709_v10 = vpop.f32.mrf.mxu1 }
0x1693   :  { %v943_v11 = vadd.f32 %v937_v31, %v2243_v9 }
0x1694   :  { %v887_v12 = vpop.f32.mrf.mxu1 }
0x1695   :  { %1853 = vtanh.f32 %v943_v11  ;;  %v2246_v13 = vadd.f32 %v1559_v27, %v887_v12  ;;  %v1565_v16 = vmul.f32 -1.442695, %v943_v11 }
0x1696   :  { %v1710_v14 = vpop.f32.mrf.mxu1 }
0x1697   :  { %1855 = vpow2.f32 %v1565_v16 }
0x16a2   :  { %v1854_v15 = vpop.eup %1853 }
0x16a3   :  { %953 = vrot.lane.b32.xlu0 %v1854_v15, %s1945_s22 }
0x16a4   :  { %v1856_v17 = vpop.eup %1855 }
0x16a5   :  { %v947_v18 = vadd.f32 1.0, %v1856_v17 }
0x16a7   :  { %1857 = vrcp.f32 %v947_v18 }
0x16b4   :  { %v1858_v19 = vpop.eup %1857 }
0x16b5   :  { %v951_v22 = vmul.f32 0.0, %v1858_v19 }
0x1715   :  { %v954_v20 = vpop.permute.xlu0 %953 }
0x1716   :  { %v956_v21 = vmul.f32 %v1858_v19, %v954_v20 }
0x1718   :  { %958 = vrot.lane.b32.xlu1 %v956_v21, %s1945_s22 }
0x178a   :  { %v959_v57 = vpop.permute.xlu1 %958 }
0x178b   :  { %v961_v23 = vadd.f32 %v959_v57, %v951_v22 }
0x178d   :  { %1859 = vtanh.f32 %v961_v23  ;;  %v1027_v44 = vrot.slane %v961_v23, 6 }
0x179a   :  { %v1860_v24 = vpop.eup %1859 }
0x179b   :  { %964 = vrot.lane.b32.xlu0 %v1860_v24, %s1945_s22 }
0x180d   :  { %v965_v25 = vpop.permute.xlu0 %964 }
0x180e   :  { %v967_v26 = vmul.f32 %v1858_v19, %v965_v25 }
0x1810   :  { %v968_v28 = vpack.c.bf16 %v967_v26, %v967_v26 }
0x1812   :  { %970 = vrot.lane.b32.xlu1 %v968_v28, %s1940_s30 }
0x1884   :  { %v971_v29 = vpop.permute.xlu1 %970 }
0x1885   :  { %1724 = vmatmul.mubr.msk.bf16.vlgmr.msra.gmra.mxu1 %vm191_vm9, %v971_v29 }
0x1886   :  { %1736 = vmatpush3.bf16.msra.mxu1 %v2200_v56  ;;  %1739 = vmatprep.mubr.msk.bf16.mxu1 %vm1943_vm0, %v1942_v0 }
0x1887   :  { %1737 = vmatprep.subr.bf16.mxu1 %v1942_v0 }
0x188a   :  { %1738 = vmatpush3.bf16.msra.mxu1 %v2209_v59 }
0x188b   :  { %1751 = vmatprep.subr.bf16.mxu1 %v1942_v0 }
0x1945   :  { %v1009_v30 = vpop.f32.mrf.mxu1 }
0x1946   :  { %v1016_v32 = vrot.slane %v1009_v30, 6 }
0x1947   :  { %v1725_v33 = vpop.f32.mrf.mxu1 }
0x1948   :  { %v1018_v34 = vadd.f32 %v1016_v32, %v2243_v9 }
0x1949   :  { %v1012_v35 = vpop.f32.mrf.mxu1 }
0x194a   :  { %1861 = vtanh.f32 %v1018_v34  ;;  %v1567_v38 = vmul.f32 -1.442695, %v1018_v34 }
0x194b   :  { %v1726_v36 = vpop.f32.mrf.mxu1 }
0x194c   :  { %1863 = vpow2.f32 %v1567_v38 }
0x1957   :  { %v1862_v37 = vpop.eup %1861 }
0x1958   :  { %1031 = vrot.lane.b32.xlu0 %v1862_v37, %s1945_s22 }
0x1959   :  { %v1864_v39 = vpop.eup %1863 }
0x195a   :  { %v1022_v40 = vadd.f32 1.0, %v1864_v39 }
0x195c   :  { %1865 = vrcp.f32 %v1022_v40 }
0x1969   :  { %v1866_v41 = vpop.eup %1865 }
0x196a   :  { %v1029_v45 = vmul.f32 %v1866_v41, %v1027_v44 }
0x19ca   :  { %v1032_v42 = vpop.permute.xlu0 %1031 }
0x19cb   :  { %v1034_v43 = vmul.f32 %v1866_v41, %v1032_v42 }
0x19cd   :  { %1036 = vrot.lane.b32.xlu1 %v1034_v43, %s1945_s22 }
0x1a3f   :  { %v1037_v46 = vpop.permute.xlu1 %1036 }
0x1a40   :  { %v1039_v47 = vadd.f32 %v1037_v46, %v1029_v45 }
0x1a42   :  { %1867 = vtanh.f32 %v1039_v47  ;;  %v1106_v27 = vrot.slane %v1039_v47, 6 }
0x1a4f   :  { %v1868_v48 = vpop.eup %1867 }
0x1a50   :  { %1042 = vrot.lane.b32.xlu0 %v1868_v48, %s1945_s22 }
0x1ac2   :  { %v1043_v49 = vpop.permute.xlu0 %1042 }
0x1ac3   :  { %v1045_v50 = vmul.f32 %v1866_v41, %v1043_v49 }
0x1ac5   :  { %v1046_v51 = vpack.c.bf16 %v1045_v50, %v1045_v50 }
0x1ac7   :  { %v1048_v52 = vrot.slane %v1046_v51, 1 }
0x1ac9   :  { %1049 = vrot.lane.b32.xlu1 %v1048_v52, %s1940_s30 }
0x1b3b   :  { %v1050_v53 = vpop.permute.xlu1 %1049 }
0x1b3c   :  { %1732 = vmatmul.mubr.msk.bf16.vlgmr.msra.gmra.mxu0 %vm191_vm9, %v1050_v53 }
0x1b3d   :  { %1744 = vmatpush3.bf16.msra.mxu0 %v2200_v56  ;;  %1747 = vmatprep.mubr.msk.bf16.mxu0 %vm1943_vm0, %v1942_v0 }
0x1b3e   :  { %1745 = vmatprep.subr.bf16.mxu0 %v1942_v0 }
0x1b41   :  { %1746 = vmatpush3.bf16.msra.mxu0 %v2209_v59 }
0x1b42   :  { %1759 = vmatprep.subr.bf16.mxu0 %v1942_v0 }
0x1bfc   :  { %v1088_v54 = vpop.f32.mrf.mxu0 }
0x1bfd   :  { %v1095_v55 = vrot.slane %v1088_v54, 4 }
0x1bfe   :  { %v1733_v58 = vpop.f32.mrf.mxu0 }
0x1bff   :  { %v1097_v1 = vadd.f32 %v1095_v55, %v2243_v9 }
0x1c00   :  { %v1091_v60 = vpop.f32.mrf.mxu0 }
0x1c01   :  { %1869 = vtanh.f32 %v1097_v1  ;;  %v1569_v2 = vmul.f32 -1.442695, %v1097_v1 }
0x1c02   :  { %v1734_v62 = vpop.f32.mrf.mxu0 }
0x1c03   :  { %1871 = vpow2.f32 %v1569_v2 }
0x1c0e   :  { %v1870_v4 = vpop.eup %1869 }
0x1c0f   :  { %1110 = vrot.lane.b32.xlu0 %v1870_v4, %s1945_s22 }
0x1c10   :  { %v1872_v31 = vpop.eup %1871 }
0x1c11   :  { %v1101_v3 = vadd.f32 1.0, %v1872_v31 }
0x1c13   :  { %1873 = vrcp.f32 %v1101_v3 }
0x1c20   :  { %v1874_v5 = vpop.eup %1873 }
0x1c21   :  { %v1108_v8 = vmul.f32 %v1874_v5, %v1106_v27 }
0x1c81   :  { %v1111_v6 = vpop.permute.xlu0 %1110 }
0x1c82   :  { %v1113_v7 = vmul.f32 %v1874_v5, %v1111_v6 }
0x1c84   :  { %1115 = vrot.lane.b32.xlu1 %v1113_v7, %s1945_s22 }
0x1cf6   :  { %v1116_v10 = vpop.permute.xlu1 %1115 }
0x1cf7   :  { %v1118_v11 = vadd.f32 %v1116_v10, %v1108_v8 }
0x1cf9   :  { %1875 = vtanh.f32 %v1118_v11  ;;  %v1185_v33 = vrot.slane %v1118_v11, 6 }
0x1d06   :  { %v1876_v12 = vpop.eup %1875 }
0x1d07   :  { %1121 = vrot.lane.b32.xlu0 %v1876_v12, %s1945_s22 }
0x1d79   :  { %v1122_v14 = vpop.permute.xlu0 %1121 }
0x1d7a   :  { %v1124_v15 = vmul.f32 %v1874_v5, %v1122_v14 }
0x1d7c   :  { %v1125_v16 = vpack.c.bf16 %v1124_v15, %v1124_v15 }
0x1d7e   :  { %v1127_v17 = vrot.slane %v1125_v16, 2 }
0x1d80   :  { %1128 = vrot.lane.b32.xlu1 %v1127_v17, %s1940_s30 }
0x1df2   :  { %v1129_v18 = vpop.permute.xlu1 %1128 }
0x1df3   :  { %1740 = vmatmul.mubr.msk.bf16.vlgmr.msra.gmra.mxu1 %vm191_vm9, %v1129_v18 }
0x1df4   :  { %1752 = vmatpush3.bf16.msra.mxu1 %v2200_v56  ;;  %1755 = vmatprep.mubr.msk.bf16.mxu1 %vm1943_vm0, %v1942_v0 }
0x1df5   :  { %1753 = vmatprep.subr.bf16.mxu1 %v1942_v0 }
0x1df8   :  { %1754 = vmatpush3.bf16.msra.mxu1 %v2209_v59 }
0x1df9   :  { %1767 = vmatprep.subr.bf16.mxu1 %v1942_v0 }
0x1eb3   :  { %v1167_v19 = vpop.f32.mrf.mxu1 }
0x1eb4   :  { %v1174_v20 = vrot.slane %v1167_v19, 2 }
0x1eb5   :  { %v1741_v21 = vpop.f32.mrf.mxu1 }
0x1eb6   :  { %v1176_v22 = vadd.f32 %v1174_v20, %v2243_v9 }
0x1eb7   :  { %v1170_v57 = vpop.f32.mrf.mxu1 }
0x1eb8   :  { %1877 = vtanh.f32 %v1176_v22  ;;  %v1571_v25 = vmul.f32 -1.442695, %v1176_v22 }
0x1eb9   :  { %v1742_v23 = vpop.f32.mrf.mxu1 }
0x1eba   :  { %1879 = vpow2.f32 %v1571_v25 }
0x1ec5   :  { %v1878_v24 = vpop.eup %1877 }
0x1ec6   :  { %1189 = vrot.lane.b32.xlu0 %v1878_v24, %s1945_s22 }
0x1ec7   :  { %v1880_v26 = vpop.eup %1879 }
0x1ec8   :  { %v1180_v28 = vadd.f32 1.0, %v1880_v26 }
0x1eca   :  { %1881 = vrcp.f32 %v1180_v28 }
0x1ed7   :  { %v1882_v29 = vpop.eup %1881 }
0x1ed8   :  { %v1187_v34 = vmul.f32 %v1882_v29, %v1185_v33 }
0x1f38   :  { %v1190_v30 = vpop.permute.xlu0 %1189 }
0x1f39   :  { %v1192_v32 = vmul.f32 %v1882_v29, %v1190_v30 }
0x1f3b   :  { %1194 = vrot.lane.b32.xlu1 %v1192_v32, %s1945_s22 }
0x1fad   :  { %v1195_v35 = vpop.permute.xlu1 %1194 }
0x1fae   :  { %v1197_v9 = vadd.f32 %v1195_v35, %v1187_v34 }
0x1fb0   :  { %1883 = vtanh.f32 %v1197_v9  ;;  %v1261_v54 = vrot.slane %v1197_v9, 6 }
0x1fbd   :  { %v1884_v36 = vpop.eup %1883 }
0x1fbe   :  { %1200 = vrot.lane.b32.xlu0 %v1884_v36, %s1945_s22 }
0x2030   :  { %v1201_v37 = vpop.permute.xlu0 %1200 }
0x2031   :  { %v1203_v38 = vmul.f32 %v1882_v29, %v1201_v37 }
0x2033   :  { %v1204_v39 = vpack.c.bf16 %v1203_v38, %v1203_v38 }
0x2035   :  { %v1206_v40 = vrot.slane %v1204_v39, 3 }
0x2037   :  { %1207 = vrot.lane.b32.xlu1 %v1206_v40, %s1940_s30 }
0x20a9   :  { %v1208_v41 = vpop.permute.xlu1 %1207 }
0x20aa   :  { %1748 = vmatmul.mubr.msk.bf16.vlgmr.msra.gmra.mxu0 %vm191_vm9, %v1208_v41 }
0x20ab   :  { %1760 = vmatpush3.bf16.msra.mxu0 %v2200_v56  ;;  %1763 = vmatprep.mubr.msk.bf16.mxu0 %vm1943_vm0, %v1942_v0 }
0x20ac   :  { %1761 = vmatprep.subr.bf16.mxu0 %v1942_v0 }
0x20af   :  { %1762 = vmatpush3.bf16.msra.mxu0 %v2209_v59 }
0x216a   :  { %v1246_v42 = vpop.f32.mrf.mxu0 }
0x216b   :  { %v1252_v43 = vadd.f32 %v1246_v42, %v2246_v13 }
0x216c   :  { %v1749_v44 = vpop.f32.mrf.mxu0 }
0x216d   :  { %1885 = vtanh.f32 %v1252_v43  ;;  %v1573_v48 = vmul.f32 -1.442695, %v1252_v43 }
0x216e   :  { %v1249_v45 = vpop.f32.mrf.mxu0 }
0x216f   :  { %1887 = vpow2.f32 %v1573_v48 }
0x2170   :  { %v1750_v46 = vpop.f32.mrf.mxu0 }
0x217a   :  { %v1886_v47 = vpop.eup %1885 }
0x217b   :  { %1265 = vrot.lane.b32.xlu0 %v1886_v47, %s1945_s22 }
0x217c   :  { %v1888_v49 = vpop.eup %1887 }
0x217d   :  { %v1256_v50 = vadd.f32 1.0, %v1888_v49 }
0x217f   :  { %1889 = vrcp.f32 %v1256_v50 }
0x218c   :  { %v1890_v51 = vpop.eup %1889 }
0x218d   :  { %v1263_v55 = vmul.f32 %v1890_v51, %v1261_v54 }
0x21ed   :  { %v1266_v52 = vpop.permute.xlu0 %1265 }
0x21ee   :  { %v1268_v53 = vmul.f32 %v1890_v51, %v1266_v52 }
0x21f0   :  { %1270 = vrot.lane.b32.xlu1 %v1268_v53, %s1945_s22 }
0x2262   :  { %v1271_v58 = vpop.permute.xlu1 %1270 }
0x2263   :  { %v1273_v1 = vadd.f32 %v1271_v58, %v1263_v55 }
0x2265   :  { %1891 = vtanh.f32 %v1273_v1 }
0x2272   :  { %v1892_v60 = vpop.eup %1891 }
0x2273   :  { %1276 = vrot.lane.b32.xlu0 %v1892_v60, %s1945_s22 }
0x22e5   :  { %v1277_v62 = vpop.permute.xlu0 %1276 }
0x22e6   :  { %v1279_v4 = vmul.f32 %v1890_v51, %v1277_v62 }
0x22e8   :  { %v1280_v2 = vpack.c.bf16 %v1279_v4, %v1279_v4 }
0x22ea   :  { %1282 = vrot.lane.b32.xlu1 %v1280_v2, %s1940_s30 }
0x235c   :  { %v1283_v31 = vpop.permute.xlu1 %1282 }
0x235d   :  { %1756 = vmatmul.mubr.msk.bf16.vlgmr.msra.gmra.mxu1 %vm191_vm9, %v1283_v31 }
0x235e   :  { %1768 = vmatpush3.bf16.msra.mxu1 %v2200_v56  ;;  %1771 = vmatprep.mubr.msk.bf16.mxu1 %vm1943_vm0, %v1942_v0 }
0x235f   :  { %1769 = vmatprep.subr.bf16.mxu1 %v1942_v0 }
0x2362   :  { %1770 = vmatpush3.bf16.msra.mxu1 %v2209_v59  ;;  %v1339_v59 = vrot.slane %v1273_v1, 6 }
0x241d   :  { %v1321_v3 = vpop.f32.mrf.mxu1 }
0x241e   :  { %v1328_v5 = vrot.slane %v1321_v3, 6 }
0x241f   :  { %v1757_v6 = vpop.f32.mrf.mxu1 }
0x2420   :  { %v1330_v7 = vadd.f32 %v1328_v5, %v2246_v13 }
0x2421   :  { %v1324_v27 = vpop.f32.mrf.mxu1 }
0x2422   :  { %1893 = vtanh.f32 %v1330_v7  ;;  %v1575_v11 = vmul.f32 -1.442695, %v1330_v7 }
0x2423   :  { %v1758_v8 = vpop.f32.mrf.mxu1 }
0x2424   :  { %1895 = vpow2.f32 %v1575_v11 }
0x242f   :  { %v1894_v10 = vpop.eup %1893 }
0x2430   :  { %1343 = vrot.lane.b32.xlu0 %v1894_v10, %s1945_s22 }
0x2431   :  { %v1896_v56 = vpop.eup %1895 }
0x2432   :  { %v1334_v12 = vadd.f32 1.0, %v1896_v56 }
0x2434   :  { %1897 = vrcp.f32 %v1334_v12 }
0x2441   :  { %v1898_v14 = vpop.eup %1897 }
0x2442   :  { %v1341_v16 = vmul.f32 %v1898_v14, %v1339_v59 }
0x24a2   :  { %v1344_v0 = vpop.permute.xlu0 %1343 }
0x24a3   :  { %v1346_v15 = vmul.f32 %v1898_v14, %v1344_v0 }
0x24a5   :  { %1348 = vrot.lane.b32.xlu1 %v1346_v15, %s1945_s22 }
0x2517   :  { %v1349_v17 = vpop.permute.xlu1 %1348 }
0x2518   :  { %v1351_v18 = vadd.f32 %v1349_v17, %v1341_v16 }
0x251a   :  { %1899 = vtanh.f32 %v1351_v18  ;;  %v1418_v38 = vrot.slane %v1351_v18, 6 }
0x2527   :  { %v1900_v19 = vpop.eup %1899 }
0x2528   :  { %1354 = vrot.lane.b32.xlu0 %v1900_v19, %s1945_s22 }
0x259a   :  { %v1355_v20 = vpop.permute.xlu0 %1354 }
0x259b   :  { %v1357_v21 = vmul.f32 %v1898_v14, %v1355_v20 }
0x259d   :  { %v1358_v22 = vpack.c.bf16 %v1357_v21, %v1357_v21 }
0x259f   :  { %v1360_v57 = vrot.slane %v1358_v22, 1 }
0x25a1   :  { %1361 = vrot.lane.b32.xlu1 %v1360_v57, %s1940_s30 }
0x2613   :  { %v1362_v23 = vpop.permute.xlu1 %1361 }
0x2614   :  { %1764 = vmatmul.mubr.msk.bf16.vlgmr.msra.gmra.mxu0 %vm191_vm9, %v1362_v23 }
0x26d4   :  { %v1400_v24 = vpop.f32.mrf.mxu0 }
0x26d5   :  { %v1407_v25 = vrot.slane %v1400_v24, 4 }
0x26d6   :  { %v1765_v26 = vpop.f32.mrf.mxu0 }
0x26d7   :  { %v1409_v28 = vadd.f32 %v1407_v25, %v2246_v13 }
0x26d8   :  { %v1403_v29 = vpop.f32.mrf.mxu0 }
0x26d9   :  { %1901 = vtanh.f32 %v1409_v28  ;;  %v1577_v33 = vmul.f32 -1.442695, %v1409_v28 }
0x26da   :  { %v1766_v30 = vpop.f32.mrf.mxu0 }
0x26db   :  { %1903 = vpow2.f32 %v1577_v33 }
0x26e6   :  { %v1902_v32 = vpop.eup %1901 }
0x26e7   :  { %1422 = vrot.lane.b32.xlu0 %v1902_v32, %s1945_s22 }
0x26e8   :  { %v1904_v34 = vpop.eup %1903 }
0x26e9   :  { %v1413_v35 = vadd.f32 1.0, %v1904_v34 }
0x26eb   :  { %1905 = vrcp.f32 %v1413_v35 }
0x26f8   :  { %v1906_v9 = vpop.eup %1905 }
0x26f9   :  { %v1420_v39 = vmul.f32 %v1906_v9, %v1418_v38 }
0x2759   :  { %v1423_v36 = vpop.permute.xlu0 %1422 }
0x275a   :  { %v1425_v37 = vmul.f32 %v1906_v9, %v1423_v36 }
0x275c   :  { %1427 = vrot.lane.b32.xlu1 %v1425_v37, %s1945_s22 }
0x27ce   :  { %v1428_v40 = vpop.permute.xlu1 %1427 }
0x27cf   :  { %v1430_v41 = vadd.f32 %v1428_v40, %v1420_v39 }
0x27d1   :  { %1907 = vtanh.f32 %v1430_v41  ;;  %v1497_v2 = vrot.slane %v1430_v41, 6 }
0x27de   :  { %v1908_v42 = vpop.eup %1907 }
0x27df   :  { %1433 = vrot.lane.b32.xlu0 %v1908_v42, %s1945_s22 }
0x2851   :  { %v1434_v43 = vpop.permute.xlu0 %1433 }
0x2852   :  { %v1436_v44 = vmul.f32 %v1906_v9, %v1434_v43 }
0x2854   :  { %v1437_v45 = vpack.c.bf16 %v1436_v44, %v1436_v44 }
0x2856   :  { %v1439_v46 = vrot.slane %v1437_v45, 2 }
0x2858   :  { %1440 = vrot.lane.b32.xlu1 %v1439_v46, %s1940_s30 }
0x28ca   :  { %v1441_v47 = vpop.permute.xlu1 %1440 }
0x28cb   :  { %1772 = vmatmul.mubr.msk.bf16.vlgmr.msra.gmra.mxu1 %vm191_vm9, %v1441_v47 }
0x298b   :  { %v1479_v48 = vpop.f32.mrf.mxu1 }
0x298c   :  { %v1486_v49 = vrot.slane %v1479_v48, 2 }
0x298d   :  { %v1773_v50 = vpop.f32.mrf.mxu1 }
0x298e   :  { %v1488_v51 = vadd.f32 %v1486_v49, %v2246_v13 }
0x298f   :  { %v1482_v52 = vpop.f32.mrf.mxu1 }
0x2990   :  { %1909 = vtanh.f32 %v1488_v51  ;;  %v1579_v55 = vmul.f32 -1.442695, %v1488_v51 }
0x2991   :  { %v1774_v53 = vpop.f32.mrf.mxu1 }
0x2992   :  { %1911 = vpow2.f32 %v1579_v55 }
0x299d   :  { %v1910_v54 = vpop.eup %1909 }
0x299e   :  { %1501 = vrot.lane.b32.xlu0 %v1910_v54, %s1945_s22 }
0x299f   :  { %v1912_v58 = vpop.eup %1911 }
0x29a0   :  { %v1492_v1 = vadd.f32 1.0, %v1912_v58 }
0x29a2   :  { %1913 = vrcp.f32 %v1492_v1 }
0x29af   :  { %v1914_v60 = vpop.eup %1913 }
0x29b0   :  { %v1499_v31 = vmul.f32 %v1914_v60, %v1497_v2 }
0x2a10   :  { %v1502_v62 = vpop.permute.xlu0 %1501 }
0x2a11   :  { %v1504_v4 = vmul.f32 %v1914_v60, %v1502_v62 }
0x2a13   :  { %1506 = vrot.lane.b32.xlu1 %v1504_v4, %s1945_s22 }
0x2a85   :  { %v1507_v3 = vpop.permute.xlu1 %1506 }
0x2a86   :  { %v1509_v13 = vadd.f32 %v1507_v3, %v1499_v31 }
0x2a88   :  { %1915 = vtanh.f32 %v1509_v13  ;;  %v1517_v5 = vadd.f32 %v1509_v13, %v2194_v61 }
0x2a8a   :  { %v1525_v7 = vmul.f32 0.5, %v1517_v5 }
0x2a95   :  { %v1916_v6 = vpop.eup %1915 }
0x2a96   :  { %1512 = vrot.lane.b32.xlu0 %v1916_v6, %s1945_s22 }
0x2a9a   :  { %1527 = vrot.lane.b32.xlu0 %v1525_v7, %s1946_s6 }
0x2b08   :  { %v1513_v27 = vpop.permute.xlu0 %1512 }
0x2b09   :  { %v1515_v8 = vmul.f32 %v1914_v60, %v1513_v27 }
0x2b0b   :  { %v1516_v10 = vadd.f32 %v1515_v8, %v2227_v63 }
0x2b0c   :  { %v1528_v11 = vpop.permute.xlu0 %1527 }
0x2b0d   :  { %1530 = vst.msk [vmem:[%s2338_s8 - $0x6] sm:$0xc0] %vm1523_vm10, %v1528_v11  ;;  %v1518_v56 = vmul.f32 0.5, %v1516_v10 }
0x2b0f   :  { %1520 = vrot.lane.b32.xlu1 %v1518_v56, %s1940_s30 }
0x2b81   :  { %v1521_v61 = vpop.permute.xlu1 %1520 }
0x2b82   :  { %1524 = vst.msk [vmem:[%s2337_s7 - $0x6] sm:$0xc0] %vm1523_vm10, %v1521_v61 }
0x2b83   :  { %1539 = vsyncpa [#allocation3], 1 }

// kernel: _lambda_.3
= control target key start
LH: loop header
LB: loop body
LE: loop exit
PB: predicated region body
PF: predicated region fallthrough
CT: control target
= control target key end

     0   :  { %19 = vsyncpa [#allocation3], 0  ;;  %s5160_s0 = inlined_call_operand.vmem [shape: f32[2,8,4], index: 0, kind: input, shape index: {}]   ;;  %s5161_s1 = inlined_call_operand.vmem [shape: f32[2,32], index: 1, kind: input, shape index: {}]   ;;  %s5162_s2 = inlined_call_operand.vmem [shape: f32[2,32], index: 2, kind: input, shape index: {}]   ;;  %s5163_s3 = inlined_call_operand.hbm [shape: bf16[128,512], index: 3, kind: input, shape index: {}]   ;;  %s5164_s4 = inlined_call_operand.vmem [shape: bf16[4,512], index: 4, kind: input, shape index: {}]   ;;  %s5165_s5 = inlined_call_operand.vmem [shape: f32[1,512], index: 5, kind: input, shape index: {}]   ;;  %s5166_s6 = inlined_call_operand.hbm [shape: bf16[128,128], index: 6, kind: input, shape index: {}]   ;;  %s5167_s7 = inlined_call_operand.vmem [shape: f32[1,128], index: 7, kind: input, shape index: {}]   ;;  %s5168_s8 = inlined_call_operand.hbm [shape: bf16[128,384], index: 8, kind: input, shape index: {}]   ;;  %s5169_s9 = inlined_call_operand.vmem [shape: f32[1,384], index: 9, kind: input, shape index: {}]   ;;  %s5170_s10 = inlined_call_operand.vmem [shape: bf16[128,128], index: 10, kind: input, shape index: {}]   ;;  %s5171_s11 = inlined_call_operand.vmem [shape: f32[1,128], index: 11, kind: input, shape index: {}]   ;;  %s5172_s12 = inlined_call_operand.vmem [shape: f32[4,32], index: 12, kind: input, shape index: {}]   ;;  %s5173_s13 = inlined_call_operand.vmem [shape: f32[1,4], index: 13, kind: input, shape index: {}]   ;;  %s5174_s14 = inlined_call_operand.vmem [shape: f32[2,16], index: 14, kind: output, shape index: {}]  }
   0x1   :  { %20 = vsyncpa [#allocation5], 0  ;;  %s3894_s29 = smov [#allocation4]  }
   0x2   :  { %s48_s30 = sshll.u32 %s3894_s29, 4  ;;  %s49_s30 = int_to_ptr.vmem [resolvable:$true] %s48_s30 }
   0x3   :  { %s3838_s15 = scalar_lea.vmem %s49_s30, 1024  ;;  %p3843_p1 = scmp.lt.s32.totalorder %s49_s30, %s49_s30 }
   0x4   :  { %p3839_p0 = scmp.ne.s32.totalorder %s49_s30, %s3838_s15  ;;  %p3844_p2 = scmp.lt.s32.totalorder %s3838_s15, %s3838_s15 }
   0x6   :  { %p3845_p3 = por %p3844_p2, %p3843_p1 }
   0x8   :  { %p3846_p4 = pnand %p3845_p3, %p3839_p0 }
   0xa   :  { %3849 = shalt.err (!%p3846_p4)
}
   0xb   :  { %s3895_s16 = smov 64   ;;  %s3896_s17 = smov 4  }
   0xc   :  { %54 = dma.hbm_to_vmem [thread:$0]  %s5166_s6, 1024, %s49_s30, [#allocation5], %s3895_s16, %s3895_s16, %s3896_s17  }
   0xd   :  { %s3897_s20 = smov [#allocation2]  }
   0xe   :  { %s32_s21 = sshll.u32 %s3897_s20, 4  ;;  %s33_s21 = int_to_ptr.vmem [resolvable:$true] %s32_s21 }
   0xf   :  { %s3858_s22 = scalar_lea.vmem %s33_s21, 4096  ;;  %p3863_p6 = scmp.lt.s32.totalorder %s33_s21, %s33_s21 }
  0x10   :  { %p3859_p5 = scmp.ne.s32.totalorder %s33_s21, %s3858_s22  ;;  %p3864_p7 = scmp.lt.s32.totalorder %s3858_s22, %s3858_s22 }
  0x12   :  { %p3865_p8 = por %p3864_p7, %p3863_p6 }
  0x14   :  { %p3866_p9 = pnand %p3865_p8, %p3859_p5 }
  0x16   :  { %3869 = shalt.err (!%p3866_p9)
}
  0x17   :  { %s3898_s23 = smov 256   ;;  %s3899_s24 = smov 16  }
  0x18   :  { %38 = dma.hbm_to_vmem [thread:$0]  %s5163_s3, 4096, %s33_s21, [#allocation3], %s3898_s23, %s3898_s23, %s3899_s24  }
  0x19   :  { %s3900_s27 = smov [#allocation6]  }
  0x1a   :  { %s62_s28 = sshll.u32 %s3900_s27, 4  ;;  %s63_s28 = int_to_ptr.vmem [resolvable:$true] %s62_s28 }
  0x1b   :  { %s3878_s6 = scalar_lea.vmem %s63_s28, 3072  ;;  %p3883_p11 = scmp.lt.s32.totalorder %s63_s28, %s63_s28 }
  0x1c   :  { %p3879_p10 = scmp.ne.s32.totalorder %s63_s28, %s3878_s6  ;;  %p3884_p12 = scmp.lt.s32.totalorder %s3878_s6, %s3878_s6 }
  0x1e   :  { %p3885_p13 = por %p3884_p12, %p3883_p11 }
  0x20   :  { %p3886_p0 = pnand %p3885_p13, %p3879_p10 }
  0x22   :  { %3889 = shalt.err (!%p3886_p0)
}
  0x23   :  { %s3901_s29 = smov 192   ;;  %s3902_s30 = smov 12  }
  0x24   :  { %68 = dma.hbm_to_vmem [thread:$0]  %s5168_s8, 3072, %s63_s28, [#allocation5], %s3901_s29, %s3901_s29, %s3902_s30  }
  0x25   :  { %3890 = dma.done.wait [#allocation3], 4096  }
  0x26   :  { %3891 = vsyncadd [#allocation3], 4294963200 }
  0x27   :  { %3892 = dma.done.wait [#allocation5], 4096  }
  0x28   :  { %3893 = vsyncadd [#allocation5], 4294963200  ;;  %v241_v0 = vlaneseq  ;;  %v3903_v1 = vmov 1983009808   ;;  %v5176_v4 = vmov 0   ;;  %v121_v8 = vld [vmem:[%s5164_s4] sm:$0xff] }
  0x29   :  { %v239_v2 = vunpack.c.l.s4 %v3903_v1  ;;  %303 = vmatprep.mubr.bf16.mxu0 %v5176_v4  ;;  %344 = vmatprep.mubr.bf16.mxu1 %v5176_v4  ;;  %v4008_v7 = vld [vmem:[%s5161_s1] sm:$0x3]  ;;  %vm258_vm0 = vcmask 1041408   ;;  %v192_v9 = vld [vmem:[%s5160_s0 + $0x7] sm:$0x1]  ;;  %s3905_s23 = smov 32   ;;  %v237_v13 = vcombine.high %v121_v8, %v121_v8 }
  0x2a   :  { %v3999_v3 = vshrl.u32 %v241_v0, 7  ;;  %3484 = vset.pattern.permute.xlu1 %v5176_v4  ;;  %197 = vrot.lane.b32.xlu0 %v4008_v7, %s3905_s23  ;;  %s3906_s24 = smov 96   ;;  %v193_v11 = vld [vmem:[%s5160_s0 + $0xf] sm:$0x1]  ;;  %v226_v12 = vpack.c.bf16 %v192_v9, %v192_v9  ;;  %v4028_v18 = vld [vmem:[#allocation2 + $0xe4] ss:$16 sps:$4 sm:$0xff]  }
  0x2b   :  { %v240_v5 = vunpack.c.0.s8 %v239_v2  ;;  %203 = vrot.lane.b32.xlu1 %v4008_v7, %s3906_s24  ;;  %v227_v14 = vpack.c.bf16 %v193_v11, %v193_v11  ;;  %vm233_vm1 = vcmask 1041409   ;;  %v3508_v23 = vld [vmem:[#allocation2 + $0xec] ss:$16 sps:$4 sm:$0xff]   ;;  %v3510_v25 = vld [vmem:[#allocation2 + $0xe0] ss:$16 sps:$4 sm:$0xff]   ;;  %vm254_vm2 = vcmask 31744  }
  0x2c   :  { %v230_v19 = vunpack.c.l.b16 %v226_v12  ;;  %v3511_v27 = vld [vmem:[#allocation2 + $0xe8] ss:$16 sps:$4 sm:$0xff]   ;;  %v3512_v28 = vld [vmem:[#allocation2 + $0xc4] ss:$16 sps:$4 sm:$0xff]   ;;  %v3514_v30 = vld [vmem:[#allocation2 + $0xcc] ss:$16 sps:$4 sm:$0xff]  }
  0x2d   :  { %v243_v6 = vsub.s32 %v240_v5, %v3999_v3  ;;  %v231_v20 = vunpack.c.l.b16 %v227_v14  ;;  %v3516_v31 = vld [vmem:[#allocation2 + $0xc0] ss:$16 sps:$4 sm:$0xff]   ;;  %v3517_v32 = vld [vmem:[#allocation2 + $0xc8] ss:$16 sps:$4 sm:$0xff]   ;;  %v3518_v33 = vld [vmem:[#allocation2 + $0xa4] ss:$16 sps:$4 sm:$0xff]  }
  0x2e   :  { %200 = vrot.lane.b32.xlu0 %v4008_v7, %s3895_s16  ;;  %v3520_v34 = vld [vmem:[#allocation2 + $0xac] ss:$16 sps:$4 sm:$0xff]   ;;  %v3522_v35 = vld [vmem:[#allocation2 + $0xa0] ss:$16 sps:$4 sm:$0xff]   ;;  %v3523_v36 = vld [vmem:[#allocation2 + $0xa8] ss:$16 sps:$4 sm:$0xff]  }
  0x2f   :  { %v244_v10 = vrot.slane %v121_v8, %v243_v6  ;;  %v251_v17 = vrot.slane %v237_v13, %v243_v6  ;;  %v232_v24 = vrot.slane %v231_v20, 7  ;;  %v3524_v37 = vld [vmem:[#allocation2 + $0x84] ss:$16 sps:$4 sm:$0xff]   ;;  %v3526_v38 = vld [vmem:[#allocation2 + $0x8c] ss:$16 sps:$4 sm:$0xff]   ;;  %vm206_vm3 = vcmask 261120  }
  0x30   :  { %v3528_v39 = vld [vmem:[#allocation2 + $0x80] ss:$16 sps:$4 sm:$0xff]   ;;  %v3529_v40 = vld [vmem:[#allocation2 + $0x88] ss:$16 sps:$4 sm:$0xff]   ;;  %v3530_v41 = vld [vmem:[#allocation2 + $0x64] ss:$16 sps:$4 sm:$0xff]  }
  0x31   :  { %v4023_v15 = vcombine.high %v244_v10, %v244_v10  ;;  %v4026_v16 = vsel %vm258_vm0, %v244_v10, 0  ;;  %v4034_v21 = vcombine.high %v251_v17, %v251_v17  ;;  %v4037_v22 = vsel %vm258_vm0, %v251_v17, 0  ;;  %v3532_v42 = vld [vmem:[#allocation2 + $0x6c] ss:$16 sps:$4 sm:$0xff]   ;;  %v3534_v43 = vld [vmem:[#allocation2 + $0x60] ss:$16 sps:$4 sm:$0xff]  }
  0x32   :  { %5251 = vst [vmem:[#allocation10_spill] sm:$0xff] %v4026_v16  ;;  %v234_v26 = vsel %vm233_vm1, %v232_v24, %v230_v19  ;;  %v3535_v44 = vld [vmem:[#allocation2 + $0x68] ss:$16 sps:$4 sm:$0xff]   ;;  %v4051_v45 = vld [vmem:[%s5162_s2] sm:$0x3]  ;;  %vm208_vm4 = vcmask 523264  }
  0x33   :  { %5250 = vst [vmem:[#allocation9_spill] sm:$0xff] %v4023_v15  ;;  %3016 = vmatprep.subr.msk.bf16.mxu0 %vm258_vm0, %v4023_v15  ;;  %5252 = vst [vmem:[#allocation11_spill] sm:$0xff] %v4034_v21  ;;  %3018 = vmatprep.subr.msk.bf16.mxu1 %vm258_vm0, %v4034_v21  ;;  %v235_v29 = vpack.c.b16 %v234_v26, %v234_v26  ;;  %v3536_v46 = vld [vmem:[#allocation2 + $0x44] ss:$16 sps:$4 sm:$0xff]   ;;  %v3538_v47 = vld [vmem:[#allocation2 + $0x4c] ss:$16 sps:$4 sm:$0xff]  }
  0x34   :  { %286 = vmatpush1.bf16.msra.mxu0 %v4026_v16  ;;  %327 = vmatpush1.bf16.msra.mxu1 %v4037_v22  ;;  %v3540_v48 = vld [vmem:[#allocation2 + $0x40] ss:$16 sps:$4 sm:$0xff]   ;;  %v3541_v49 = vld [vmem:[#allocation2 + $0x48] ss:$16 sps:$4 sm:$0xff]   ;;  %v3542_v50 = vld [vmem:[#allocation2 + $0x24] ss:$16 sps:$4 sm:$0xff]  }
  0x35   :  { %513 = vmatprep.subr.bf16.mxu0 %v4028_v18  ;;  %554 = vmatprep.subr.bf16.mxu1 %v3508_v23  ;;  %v3544_v51 = vld [vmem:[#allocation2 + $0x2c] ss:$16 sps:$4 sm:$0xff]   ;;  %v4059_v52 = vld [vmem:[#allocation2 + $0x20] ss:$16 sps:$4 sm:$0xff]   ;;  %v4061_v53 = vld [vmem:[#allocation2 + $0x28] ss:$16 sps:$4 sm:$0xff]  }
  0x36   :  { %213 = vrot.lane.b32.xlu1 %v4051_v45, %s3905_s23  ;;  %216 = vrot.lane.b32.xlu0 %v4051_v45, %s3895_s16  ;;  %v4063_v54 = vld [vmem:[#allocation2 + $0x4] ss:$16 sps:$4 sm:$0xff]   ;;  %v4065_v55 = vld [vmem:[#allocation2 + $0xc] ss:$16 sps:$4 sm:$0xff]   ;;  %v4067_v56 = vld [vmem:[#allocation2] ss:$16 sps:$4 sm:$0xff]  }
  0x37   :  { %3017 = vmatmul.mubr.msk.bf16.vlgmr.msra.gmra.mxu0 %vm254_vm2, %v235_v29  ;;  %3019 = vmatmul.mubr.msk.bf16.vlgmr.msra.gmra.mxu1 %vm254_vm2, %v235_v29  ;;  %v4069_v57 = vld [vmem:[#allocation2 + $0x8] ss:$16 sps:$4 sm:$0xff]   ;;  %vm210_vm5 = vcmask 785408   ;;  %v5178_v12 = vmov 0.0   ;;  %v4094_v13 = vld [vmem:[#allocation4 + $0x30] sm:$0xff]   ;;  %v4103_v17 = vld [vmem:[#allocation4 + $0x20] sm:$0xff]  }
  0x38   :  { %514 = vmatpush1.bf16.msra.mxu0 %v3510_v25  ;;  %555 = vmatpush1.bf16.msra.mxu1 %v3511_v27  ;;  %v4090_v11 = vld [vmem:[#allocation4 + $0x38] sm:$0xff]   ;;  %v4099_v14 = vld [vmem:[#allocation4 + $0x28] sm:$0xff]   ;;  %vm3908_vm6 = vmmov 0   ;;  %v4112_v20 = vld [vmem:[#allocation4 + $0x10] sm:$0xff]   ;;  %vm973_vm8 = vcmask 254976   ;;  %vm985_vm9 = vcmask 7168  }
  0x39   :  { %515 = vmatprep.subr.bf16.mxu0 %v3512_v28  ;;  %556 = vmatprep.subr.bf16.mxu1 %v3514_v30  ;;  %v4108_v19 = vld [vmem:[#allocation4 + $0x18] sm:$0xff]   ;;  %v4116_v23 = vld [vmem:[#allocation4 + $0x8] sm:$0xff]   ;;  %v4120_v24 = vld [vmem:[#allocation4] sm:$0xff]   ;;  %vm988_vm10 = vcmask 9216   ;;  %vm1288_vm11 = vcmask 15360   ;;  %vm1290_vm12 = vcmask 23552  }
  0x3a   :  { %545 = vmatprep.mubr.bf16.mxu0 %v5176_v4  ;;  %586 = vmatprep.mubr.bf16.mxu1 %v5176_v4  ;;  %v4124_v25 = vld [vmem:[#allocation6 + $0xac] ss:$12 sps:$4 sm:$0xff]   ;;  %v4126_v26 = vld [vmem:[#allocation6 + $0xa8] ss:$12 sps:$4 sm:$0xff]   ;;  %v4133_v28 = vld [vmem:[#allocation6 + $0x90] ss:$12 sps:$4 sm:$0xff]  }
  0x3b   :  { %219 = vrot.lane.b32.xlu1 %v4051_v45, %s3906_s24  ;;  %v4129_v27 = vld [vmem:[#allocation6 + $0x94] ss:$12 sps:$4 sm:$0xff]   ;;  %v4136_v29 = vld [vmem:[#allocation6 + $0x7c] ss:$12 sps:$4 sm:$0xff]   ;;  %v4139_v30 = vld [vmem:[#allocation6 + $0x78] ss:$12 sps:$4 sm:$0xff]  }
  0x3c   :  { %516 = vmatpush1.bf16.msra.mxu0 %v3516_v31  ;;  %557 = vmatpush1.bf16.msra.mxu1 %v3517_v32  ;;  %v4142_v31 = vld [vmem:[#allocation6 + $0x64] ss:$12 sps:$4 sm:$0xff]   ;;  %v4145_v32 = vld [vmem:[#allocation6 + $0x60] ss:$12 sps:$4 sm:$0xff]  }
  0x3d   :  { %517 = vmatprep.subr.bf16.mxu0 %v3518_v33  ;;  %558 = vmatprep.subr.bf16.mxu1 %v3520_v34  ;;  %v4148_v33 = vld [vmem:[#allocation6 + $0x4c] ss:$12 sps:$4 sm:$0xff]   ;;  %v4151_v34 = vld [vmem:[#allocation6 + $0x48] ss:$12 sps:$4 sm:$0xff]  }
  0x40   :  { %518 = vmatpush1.bf16.msra.mxu0 %v3522_v35  ;;  %559 = vmatpush1.bf16.msra.mxu1 %v3523_v36  ;;  %v4154_v35 = vld [vmem:[#allocation6 + $0x34] ss:$12 sps:$4 sm:$0xff]   ;;  %v4157_v36 = vld [vmem:[#allocation6 + $0x30] ss:$12 sps:$4 sm:$0xff]  }
  0x41   :  { %519 = vmatprep.subr.bf16.mxu0 %v3524_v37  ;;  %560 = vmatprep.subr.bf16.mxu1 %v3526_v38  ;;  %v4162_v37 = vsub.s32 0, %v3999_v3  ;;  %v122_v38 = vld [vmem:[%s5165_s5] sm:$0xf] }
  0x44   :  { %520 = vmatpush1.bf16.msra.mxu0 %v3528_v39  ;;  %561 = vmatpush1.bf16.msra.mxu1 %v3529_v40  ;;  %v4168_v39 = vsub.s32 1, %v3999_v3  ;;  %v4171_v40 = vrot.slane %v122_v38, %v4162_v37 }
  0x45   :  { %521 = vmatprep.subr.bf16.mxu0 %v3530_v41  ;;  %562 = vmatprep.subr.bf16.mxu1 %v3532_v42 }
  0x46   :  { %5253 = vst [vmem:[#allocation12_spill] sm:$0xff] %v4168_v39 }
  0x48   :  { %522 = vmatpush1.bf16.msra.mxu0 %v3534_v43  ;;  %563 = vmatpush1.bf16.msra.mxu1 %v3535_v44  ;;  %v4175_v44 = vrot.slane %v122_v38, %v4168_v39 }
  0x49   :  { %523 = vmatprep.subr.bf16.mxu0 %v3536_v46  ;;  %564 = vmatprep.subr.bf16.mxu1 %v3538_v47 }
  0x4c   :  { %524 = vmatpush1.bf16.msra.mxu0 %v3540_v48  ;;  %565 = vmatpush1.bf16.msra.mxu1 %v3541_v49 }
  0x4d   :  { %525 = vmatprep.subr.bf16.mxu0 %v3542_v50  ;;  %566 = vmatprep.subr.bf16.mxu1 %v3544_v51 }
  0x50   :  { %526 = vmatpush1.bf16.msra.mxu0 %v4059_v52  ;;  %567 = vmatpush1.bf16.msra.mxu1 %v4061_v53 }
  0x51   :  { %527 = vmatprep.subr.bf16.mxu0 %v4063_v54  ;;  %568 = vmatprep.subr.bf16.mxu1 %v4065_v55 }
  0x54   :  { %528 = vmatpush1.bf16.msra.mxu0 %v4067_v56  ;;  %569 = vmatpush1.bf16.msra.mxu1 %v4069_v57 }
  0x55   :  { %3227 = vmatprep.subr.bf16.mxu0 %v5178_v12  ;;  %887 = vmatprep.subr.bf16.mxu1 %v4124_v25 }
  0x9c   :  { %v198_v58 = vpop.permute.xlu0 %197 }
  0x9d   :  { %v204_v59 = vpop.permute.xlu1 %203  ;;  %v207_v60 = vsel %vm206_vm3, %v4008_v7, %v198_v58 }
  0xa0   :  { %v201_v61 = vpop.permute.xlu0 %200 }
  0xa1   :  { %v209_v62 = vsel %vm208_vm4, %v207_v60, %v201_v61  ;;  %v4181_v60 = vsub.s32 2, %v3999_v3 }
  0xa2   :  { %v211_v63 = vsel %vm210_vm5, %v209_v62, %v204_v59 }
  0xa3   :  { %v225_v0 = vpack.c.bf16 %v211_v63, %v211_v63 }
  0xa5   :  { %546 = vmatmul.mubr.bf16.vlgmr.msra.gmra.mxu0 %v225_v0  ;;  %587 = vmatmul.mubr.bf16.vlgmr.msra.gmra.mxu1 %v225_v0 }
  0xa6   :  { %919 = vmatprep.mubr.bf16.mxu1 %v5176_v4  ;;  %3228 = vmatpush3.bf16.msra.mxu0 %v4090_v11 }
  0xa7   :  { %3229 = vmatprep.subr.bf16.mxu0 %v5178_v12  ;;  %3243 = vmatprep.mubr.msk.bf16.mxu0 %vm3908_vm6, %v5178_v12 }
  0xa8   :  { %888 = vmatpush1.bf16.msra.mxu1 %v4126_v26 }
  0xa9   :  { %889 = vmatprep.subr.bf16.mxu1 %v4129_v27 }
  0xaa   :  { %3230 = vmatpush3.bf16.msra.mxu0 %v4094_v13 }
  0xab   :  { %3231 = vmatprep.subr.bf16.mxu0 %v5178_v12 }
  0xac   :  { %890 = vmatpush1.bf16.msra.mxu1 %v4133_v28 }
  0xad   :  { %891 = vmatprep.subr.bf16.mxu1 %v4136_v29 }
  0xae   :  { %3232 = vmatpush3.bf16.msra.mxu0 %v4099_v14 }
  0xaf   :  { %3233 = vmatprep.subr.bf16.mxu0 %v5178_v12 }
  0xb0   :  { %892 = vmatpush1.bf16.msra.mxu1 %v4139_v30 }
  0xb1   :  { %893 = vmatprep.subr.bf16.mxu1 %v4142_v31 }
  0xb2   :  { %3234 = vmatpush3.bf16.msra.mxu0 %v4103_v17 }
  0xb3   :  { %3235 = vmatprep.subr.bf16.mxu0 %v5178_v12 }
  0xb4   :  { %894 = vmatpush1.bf16.msra.mxu1 %v4145_v32 }
  0xb5   :  { %895 = vmatprep.subr.bf16.mxu1 %v4148_v33 }
  0xb6   :  { %3236 = vmatpush3.bf16.msra.mxu0 %v4108_v19 }
  0xb7   :  { %3237 = vmatprep.subr.bf16.mxu0 %v5178_v12 }
  0xb8   :  { %896 = vmatpush1.bf16.msra.mxu1 %v4151_v34 }
  0xb9   :  { %897 = vmatprep.subr.bf16.mxu1 %v4154_v35 }
  0xba   :  { %3238 = vmatpush3.bf16.msra.mxu0 %v4112_v20 }
  0xbb   :  { %3239 = vmatprep.subr.bf16.mxu0 %v5178_v12 }
  0xbc   :  { %898 = vmatpush1.bf16.msra.mxu1 %v4157_v36 }
  0xbe   :  { %3240 = vmatpush3.bf16.msra.mxu0 %v4116_v23 }
  0xbf   :  { %3241 = vmatprep.subr.bf16.mxu0 %v5178_v12 }
  0xc2   :  { %3242 = vmatpush3.bf16.msra.mxu0 %v4120_v24 }
  0xc3   :  { %3247 = vmatprep.subr.bf16.mxu0 %v5178_v12 }
  0xf7   :  { %v4082_v1 = vpop.f32.mrf.mxu0  ;;  %v4084_v2 = vpop.f32.mrf.mxu1 }
  0xf9   :  { %v4086_v5 = vpop.f32.mrf.mxu0  ;;  %v4088_v6 = vpop.f32.mrf.mxu1 }
  0xfb   :  { %v309_v8 = vpop.f32.mrf.mxu0  ;;  %v350_v7 = vpop.f32.mrf.mxu1 }
  0xfd   :  { %v310_v9 = vpop.f32.mrf.mxu0  ;;  %v351_v10 = vpop.f32.mrf.mxu1 }
 0x165   :  { %v547_v41 = vpop.f32.mrf.mxu0  ;;  %v588_v42 = vpop.f32.mrf.mxu1 }
 0x166   :  { %v548_v43 = vadd.f32 %v547_v41, %v4082_v1  ;;  %v589_v0 = vadd.f32 %v588_v42, %v4084_v2  ;;  %v4185_v1 = vrot.slane %v122_v38, %v4181_v60  ;;  %v214_v42 = vpop.permute.xlu1 %213 }
 0x167   :  { %v549_v46 = vpop.f32.mrf.mxu0  ;;  %v590_v47 = vpop.f32.mrf.mxu1 }
 0x168   :  { %v616_v48 = vadd.f32 %v4171_v40, %v548_v43  ;;  %v550_v49 = vadd.f32 %v549_v46, %v4086_v5  ;;  %v5175_v5 = vsub.s32 3, %v3999_v3  ;;  %v618_v8 = vadd.f32 %v4185_v1, %v589_v0 }
 0x169   :  { %v551_v50 = vpop.f32.mrf.mxu0  ;;  %v592_v51 = vpop.f32.mrf.mxu1  ;;  %v591_v7 = vadd.f32 %v590_v47, %v4088_v6 }
 0x16a   :  { %v3052_v58 = vmul.f32 -1.442695, %v616_v48  ;;  %v617_v59 = vadd.f32 %v4175_v44, %v550_v49  ;;  %v4192_v9 = vrot.slane %v122_v38, %v5175_v5  ;;  %v3054_v10 = vmul.f32 -1.442695, %v618_v8  ;;  %v217_v6 = vpop.permute.xlu0 %216  ;;  %v220_v50 = vpop.permute.xlu1 %219 }
 0x16b   :  { %v552_v61 = vpop.f32.mrf.mxu0  ;;  %v593_v62 = vpop.f32.mrf.mxu1  ;;  %v222_v49 = vsel %vm206_vm3, %v4051_v45, %v214_v42  ;;  %v4222_v42 = vld [vmem:[#allocation6 + $0x50] ss:$12 sps:$4 sm:$0xff]  }
 0x16c   :  { %3602 = vpow2.f32 %v3052_v58  ;;  %v3053_v63 = vmul.f32 -1.442695, %v617_v59  ;;  %5254 = vst [vmem:[#allocation13_spill] sm:$0xff] %v4192_v9  ;;  %v619_v43 = vadd.f32 %v4192_v9, %v591_v7  ;;  %v223_v38 = vsel %vm208_vm4, %v222_v49, %v217_v6  ;;  %5260 = vst [vmem:[#allocation19_spill] sm:$0xff] %v4222_v42  ;;  %v4226_v49 = vld [vmem:[#allocation6 + $0x38] ss:$12 sps:$4 sm:$0xff]  }
 0x16d   :  { %v224_v62 = vsel %vm210_vm5, %v223_v38, %v220_v50  ;;  %5261 = vst [vmem:[#allocation20_spill] sm:$0xff] %v4226_v49  ;;  %v4231_v6 = vld [vmem:[#allocation6 + $0x1c] ss:$12 sps:$4 sm:$0xff]   ;;  %v4235_v38 = vld [vmem:[#allocation6 + $0x20] ss:$12 sps:$4 sm:$0xff]  }
 0x16e   :  { %3604 = vpow2.f32 %v3053_v63  ;;  %5262 = vst [vmem:[#allocation21_spill] sm:$0xff] %v4235_v38  ;;  %899 = vmatprep.subr.bf16.mxu1 %v4231_v6  ;;  %v4240_v50 = vld [vmem:[#allocation6 + $0x4] ss:$12 sps:$4 sm:$0xff]  }
 0x16f   :  { %3606 = vpow2.f32 %v3054_v10 }
 0x179   :  { %v3603_v41 = vpop.eup %3602 }
 0x17a   :  { %v629_v46 = vadd.f32 1.0, %v3603_v41  ;;  %v4202_v41 = vld [vmem:[#allocation6 + $0xb0] ss:$12 sps:$4 sm:$0xff]  }
 0x17b   :  { %v3605_v48 = vpop.eup %3604  ;;  %5256 = vst [vmem:[#allocation15_spill] sm:$0xff] %v4202_v41 }
 0x17c   :  { %3608 = vrcp.f32 %v629_v46  ;;  %v630_v2 = vadd.f32 1.0, %v3605_v48  ;;  %v3607_v47 = vpop.eup %3606  ;;  %v4208_v46 = vld [vmem:[#allocation6 + $0x98] ss:$12 sps:$4 sm:$0xff]   ;;  %v4214_v48 = vld [vmem:[#allocation6 + $0x80] ss:$12 sps:$4 sm:$0xff]  }
 0x17d   :  { %3610 = vtanh.f32 %v619_v43  ;;  %v631_v61 = vadd.f32 1.0, %v3607_v47  ;;  %5257 = vst [vmem:[#allocation16_spill] sm:$0xff] %v4208_v46  ;;  %5258 = vst [vmem:[#allocation17_spill] sm:$0xff] %v4214_v48  ;;  %v4233_v47 = vld [vmem:[#allocation6 + $0x18] ss:$12 sps:$4 sm:$0xff]  }
 0x17e   :  { %3612 = vrcp.f32 %v630_v2  ;;  %v4218_v2 = vld [vmem:[#allocation6 + $0x68] ss:$12 sps:$4 sm:$0xff]   ;;  %900 = vmatpush1.bf16.msra.mxu1 %v4233_v47 }
 0x17f   :  { %3614 = vrcp.f32 %v631_v61  ;;  %5259 = vst [vmem:[#allocation18_spill] sm:$0xff] %v4218_v2  ;;  %901 = vmatprep.subr.bf16.mxu1 %v4240_v50 }
 0x189   :  { %v3609_v51 = vpop.eup %3608 }
 0x18a   :  { %v3611_v58 = vpop.eup %3610 }
 0x18b   :  { %v3613_v59 = vpop.eup %3612  ;;  %v640_v0 = vmul.f32 %v3611_v58, %v3609_v51  ;;  %v4243_v51 = vld [vmem:[#allocation6] ss:$12 sps:$4 sm:$0xff]   ;;  %v4245_v58 = vld [vmem:[#allocation6 + $0x8] ss:$12 sps:$4 sm:$0xff]  }
 0x18c   :  { %v639_v63 = vmul.f32 %v3613_v59, %v224_v62  ;;  %v3615_v7 = vpop.eup %3614  ;;  %5263 = vst [vmem:[#allocation22_spill] sm:$0xff] %v4245_v58  ;;  %902 = vmatpush1.bf16.msra.mxu1 %v4243_v51  ;;  %v4256_v59 = vld [vmem:[%s5167_s7] ss:$0 sm:$0xff] }
 0x18d   :  { %3267 = vmatprep.subr.bf16.mxu1 %v5178_v12  ;;  %5264 = vst [vmem:[#allocation23_spill] sm:$0xff] %v4256_v59 }
 0x18e   :  { %v4199_v8 = vadd.f32 %v640_v0, %v639_v63 }
 0x190   :  { %5255 = vst [vmem:[#allocation14_spill] sm:$0xff] %v4199_v8  ;;  %3616 = vtanh.f32 %v4199_v8 }
 0x19d   :  { %v3617_v45 = vpop.eup %3616 }
 0x19e   :  { %v643_v10 = vmul.f32 %v3617_v45, %v3615_v7 }
 0x1a0   :  { %v4204_v43 = vpack.c.bf16 %v643_v10, %v643_v10 }
 0x1a2   :  { %3244 = vmatmul.mubr.bf16.vlgmr.msra.gmra.mxu0 %v4204_v43 }
 0x1a3   :  { %3248 = vmatpush3.bf16.msra.mxu0 %v4202_v41  ;;  %3263 = vmatprep.mubr.msk.bf16.mxu0 %vm3908_vm6, %v5178_v12 }
 0x1a4   :  { %3249 = vmatprep.subr.bf16.mxu0 %v5178_v12 }
 0x1a7   :  { %3250 = vmatpush3.bf16.msra.mxu0 %v4208_v46 }
 0x1a8   :  { %3251 = vmatprep.subr.bf16.mxu0 %v5178_v12 }
 0x1ab   :  { %3252 = vmatpush3.bf16.msra.mxu0 %v4214_v48 }
 0x1ac   :  { %3253 = vmatprep.subr.bf16.mxu0 %v5178_v12 }
 0x1af   :  { %3254 = vmatpush3.bf16.msra.mxu0 %v4218_v2 }
 0x1b0   :  { %3255 = vmatprep.subr.bf16.mxu0 %v5178_v12 }
 0x1b3   :  { %3256 = vmatpush3.bf16.msra.mxu0 %v4222_v42 }
 0x1b4   :  { %3257 = vmatprep.subr.bf16.mxu0 %v5178_v12 }
 0x1b7   :  { %3258 = vmatpush3.bf16.msra.mxu0 %v4226_v49 }
 0x1b8   :  { %3259 = vmatprep.subr.bf16.mxu0 %v5178_v12 }
 0x1bb   :  { %3260 = vmatpush3.bf16.msra.mxu0 %v4235_v38 }
 0x1bc   :  { %3261 = vmatprep.subr.bf16.mxu0 %v5178_v12 }
 0x1bf   :  { %3262 = vmatpush3.bf16.msra.mxu0 %v4245_v58 }
 0x1c0   :  { %3098 = vmatprep.subr.msk.bf16.mxu0 %vm258_vm0, %v4023_v15 }
 0x262   :  { %v733_v61 = vpop.f32.mrf.mxu0 }
 0x263   :  { %v734_v62 = vadd.f32 %v4256_v59, %v733_v61  ;;  %v4267_v61 = vld [vmem:[%s5169_s9] sm:$0x7] }
 0x264   :  { %v3245_v63 = vpop.f32.mrf.mxu0 }
 0x265   :  { %vm739_vm7 = vcmp.ge.f32.partialorder %v734_v62, 0.0  ;;  %v740_v0 = vmul.f32 0.01, %v734_v62 }
 0x266   :  { %v736_v7 = vpop.f32.mrf.mxu0 }
 0x267   :  { %v741_v45 = vsel %vm739_vm7, %v734_v62, %v740_v0  ;;  %v4271_v62 = vrot.slane %v4267_v61, %v4168_v39  ;;  %v4277_v0 = vrot.slane %v4267_v61, %v4162_v37 }
 0x268   :  { %v742_v10 = vpack.c.bf16 %v741_v45, %v741_v45  ;;  %v3246_v5 = vpop.f32.mrf.mxu0 }
 0x269   :  { %5265 = vst [vmem:[#allocation24_spill] sm:$0xff] %v4271_v62  ;;  %5266 = vst [vmem:[#allocation25_spill] sm:$0xff] %v4277_v0 }
 0x26a   :  { %920 = vmatmul.mubr.bf16.vlgmr.msra.gmra.mxu1 %v742_v10  ;;  %3264 = vmatmul.mubr.bf16.vlgmr.msra.gmra.mxu0 %v742_v10 }
 0x26b   :  { %3283 = vmatprep.mubr.msk.bf16.mxu1 %vm3908_vm6, %v5178_v12  ;;  %1321 = vmatpush1.bf16.msra.mxu0 %v4026_v16 }
 0x26c   :  { %1338 = vmatprep.mubr.bf16.mxu0 %v5176_v4  ;;  %1388 = vmatprep.subr.bf16.mxu0 %v4028_v18 }
 0x32a   :  { %v921_v5 = vpop.f32.mrf.mxu1  ;;  %v4273_v63 = vpop.f32.mrf.mxu0 }
 0x32b   :  { %v922_v12 = vadd.f32 %v921_v5, %v4277_v0 }
 0x32c   :  { %v923_v7 = vpop.f32.mrf.mxu1  ;;  %v3265_v45 = vpop.f32.mrf.mxu0 }
 0x32d   :  { %v924_v18 = vadd.f32 %v923_v7, %v4271_v62 }
 0x32e   :  { %v925_v10 = vpop.f32.mrf.mxu1  ;;  %v965_v4 = vpop.f32.mrf.mxu0 }
 0x32f   :  { %v971_v16 = vrot.slane %v924_v18, %v4162_v37  ;;  %v980_v59 = vrot.slane %v924_v18, %v4168_v39 }
 0x330   :  { %v926_v15 = vpop.f32.mrf.mxu1  ;;  %v3266_v58 = vpop.f32.mrf.mxu0 }
 0x331   :  { %v972_v38 = vmul.f32 %v971_v16, %v922_v12  ;;  %v981_v49 = vmul.f32 %v980_v59, %v922_v12 }
 0x333   :  { %1028 = vrot.lane.b32.xlu1 %v981_v49, %s3906_s24  ;;  %1021 = vrot.lane.b32.xlu0 %v972_v38, %s3906_s24  ;;  %v974_v4 = vsel %vm973_vm8, %v972_v38, 0.0  ;;  %v982_v15 = vsel %vm973_vm8, %v981_v49, 0.0 }
 0x337   :  { %1065 = vrot.lane.b32.xlu1 %v981_v49, %s3895_s16  ;;  %1059 = vrot.lane.b32.xlu0 %v972_v38, %s3895_s16 }
 0x33b   :  { %1102 = vrot.lane.b32.xlu1 %v981_v49, %s3905_s23  ;;  %1096 = vrot.lane.b32.xlu0 %v972_v38, %s3905_s23 }
 0x35a   :  { %975 = vadd.xlane.f32.xlu0 %v974_v4 }
 0x35f   :  { %983 = vadd.xlane.f32.xlu1 %v982_v15 }
 0x3a5   :  { %v1029_v16 = vpop.permute.xlu1 %1028  ;;  %v1022_v12 = vpop.permute.xlu0 %1021 }
 0x3a6   :  { %v1024_v58 = vsel %vm973_vm8, %v1022_v12, 0.0  ;;  %v1031_v45 = vsel %vm973_vm8, %v1029_v16, 0.0 }
 0x3a7   :  { %1025 = vadd.xlane.f32.xlu0 %v1024_v58 }
 0x3a9   :  { %v1066_v59 = vpop.permute.xlu1 %1065  ;;  %v1060_v5 = vpop.permute.xlu0 %1059 }
 0x3aa   :  { %v1062_v7 = vsel %vm973_vm8, %v1060_v5, 0.0  ;;  %v1068_v10 = vsel %vm973_vm8, %v1066_v59, 0.0 }
 0x3ab   :  { %1063 = vadd.xlane.f32.xlu1 %v1062_v7  ;;  %1032 = vadd.xlane.f32.xlu0 %v1031_v45 }
 0x3ad   :  { %v1097_v18 = vpop.permute.xlu0 %1096  ;;  %v1103_v49 = vpop.permute.xlu1 %1102 }
 0x3ae   :  { %v1099_v38 = vsel %vm973_vm8, %v1097_v18, 0.0  ;;  %v1105_v4 = vsel %vm973_vm8, %v1103_v49, 0.0 }
 0x3af   :  { %1100 = vadd.xlane.f32.xlu1 %v1099_v38  ;;  %1069 = vadd.xlane.f32.xlu0 %v1068_v10 }
 0x3b3   :  { %1106 = vadd.xlane.f32.xlu0 %v1105_v4 }
 0x3e3   :  { %v976_v15 = vpop.xlane.xlu0 %975 }
 0x3e8   :  { %v984_v12 = vpop.xlane.xlu1 %983 }
 0x3e9   :  { %v986_v58 = vsel %vm985_vm9, %v976_v15, %v984_v12 }
 0x3ea   :  { %v987_v16 = vmul.f32 0.17677669, %v986_v58 }
 0x3ec   :  { %v989_v5 = vsel %vm988_vm10, %v987_v16, -inf }
 0x3ed   :  { %990 = vmax.xlane.f32.xlu1 %v989_v5 }
 0x430   :  { %v1026_v7 = vpop.xlane.xlu0 %1025 }
 0x434   :  { %v1033_v45 = vpop.xlane.xlu0 %1032  ;;  %v1064_v18 = vpop.xlane.xlu1 %1063 }
 0x435   :  { %v1034_v59 = vsel %vm985_vm9, %v1026_v7, %v1033_v45 }
 0x436   :  { %v1035_v38 = vmul.f32 0.17677669, %v1034_v59 }
 0x438   :  { %v1070_v10 = vpop.xlane.xlu0 %1069  ;;  %v1036_v49 = vsel %vm988_vm10, %v1035_v38, -inf  ;;  %v1101_v62 = vpop.xlane.xlu1 %1100 }
 0x439   :  { %v1071_v4 = vsel %vm985_vm9, %v1064_v18, %v1070_v10  ;;  %1037 = vmax.xlane.f32.xlu0 %v1036_v49  ;;  %v5195_v10 = vmov 1  }
 0x43a   :  { %v1072_v0 = vmul.f32 0.17677669, %v1071_v4  ;;  %3485 = vset.pattern.permute.xlu0 %v5195_v10 }
 0x43c   :  { %v1107_v15 = vpop.xlane.xlu0 %1106  ;;  %v1073_v12 = vsel %vm988_vm10, %v1072_v0, -inf }
 0x43d   :  { %v1108_v58 = vsel %vm985_vm9, %v1101_v62, %v1107_v15  ;;  %1074 = vmax.xlane.f32.xlu1 %v1073_v12 }
 0x43e   :  { %v1109_v5 = vmul.f32 0.17677669, %v1108_v58 }
 0x440   :  { %v1110_v42 = vsel %vm988_vm10, %v1109_v5, -inf }
 0x441   :  { %1111 = vmax.xlane.f32.xlu0 %v1110_v42 }
 0x476   :  { %v991_v7 = vpop.xlane.xlu1 %990 }
 0x477   :  { %v992_v45 = vsub.f32 %v987_v16, %v991_v7 }
 0x479   :  { %v993_v59 = vmul.f32 1.442695, %v992_v45 }
 0x47b   :  { %3618 = vpow2.f32 %v993_v59 }
 0x488   :  { %v3619_v2 = vpop.eup %3618 }
 0x489   :  { %v995_v18 = vsel %vm988_vm10, %v3619_v2, 0.0 }
 0x48a   :  { %996 = vadd.xlane.f32.xlu1 %v995_v18 }
 0x4c2   :  { %v1038_v49 = vpop.xlane.xlu0 %1037 }
 0x4c3   :  { %v1039_v4 = vsub.f32 %v1035_v38, %v1038_v49 }
 0x4c5   :  { %v1040_v48 = vmul.f32 1.442695, %v1039_v4 }
 0x4c6   :  { %v1075_v62 = vpop.xlane.xlu1 %1074 }
 0x4c7   :  { %3620 = vpow2.f32 %v1040_v48  ;;  %v1076_v15 = vsub.f32 %v1072_v0, %v1075_v62  ;;  %v4313_v62 = vld [vmem:[%s5170_s10 + $0x38] sm:$0xff]  }
 0x4c8   :  { %5267 = vst [vmem:[#allocation26_spill] sm:$0xff] %v4313_v62  ;;  %3268 = vmatpush3.bf16.msra.mxu1 %v4313_v62 }
 0x4c9   :  { %v1077_v12 = vmul.f32 1.442695, %v1076_v15 }
 0x4ca   :  { %v1112_v58 = vpop.xlane.xlu0 %1111 }
 0x4cb   :  { %3622 = vpow2.f32 %v1077_v12  ;;  %v1113_v42 = vsub.f32 %v1109_v5, %v1112_v58 }
 0x4cd   :  { %v1114_v16 = vmul.f32 1.442695, %v1113_v42  ;;  %v5268_v42 = vmov 0.0  }
 0x4ce   :  { %3269 = vmatprep.subr.bf16.mxu1 %v5268_v42 }
 0x4cf   :  { %3624 = vpow2.f32 %v1114_v16  ;;  %v5270_v16 = vmov 1  }
 0x4d4   :  { %v3621_v7 = vpop.eup %3620 }
 0x4d5   :  { %v1042_v45 = vsel %vm988_vm10, %v3621_v7, 0.0 }
 0x4d6   :  { %1043 = vadd.xlane.f32.xlu0 %v1042_v45 }
 0x4d8   :  { %v3623_v59 = vpop.eup %3622 }
 0x4d9   :  { %v1079_v18 = vsel %vm988_vm10, %v3623_v59, 0.0 }
 0x4da   :  { %1080 = vadd.xlane.f32.xlu1 %v1079_v18 }
 0x4dc   :  { %v3625_v10 = vpop.eup %3624 }
 0x4dd   :  { %v1116_v38 = vsel %vm988_vm10, %v3625_v10, 0.0 }
 0x4de   :  { %1117 = vadd.xlane.f32.xlu0 %v1116_v38  ;;  %v4334_v38 = vld [vmem:[%s5170_s10 + $0x20] sm:$0xff]  }
 0x4df   :  { %5272 = vst [vmem:[#allocation29_spill] sm:$0xff] %v4334_v38 }
 0x513   :  { %v997_v48 = vpop.xlane.xlu1 %996 }
 0x514   :  { %3626 = vrcp.f32 %v997_v48  ;;  %v5273_v48 = vmov 0  }
 0x521   :  { %v3627_v0 = vpop.eup %3626 }
 0x522   :  { %v999_v49 = vmul.f32 %v3627_v0, %v3619_v2  ;;  %v4320_v2 = vld [vmem:[%s5170_s10 + $0x30] sm:$0xff]  }
 0x523   :  { %5269 = vst [vmem:[#allocation27_spill] sm:$0xff] %v4320_v2  ;;  %3270 = vmatpush3.bf16.msra.mxu1 %v4320_v2 }
 0x524   :  { %1002 = vperm.xlu1 %3484, %v999_v49   ;;  %1011 = vperm.xlu0 %3485, %v999_v49   ;;  %v4350_v49 = vld [vmem:[%s5170_s10 + $0x10] sm:$0xff]  }
 0x525   :  { %3271 = vmatprep.subr.bf16.mxu1 %v5268_v42  ;;  %5275 = vst [vmem:[#allocation31_spill] sm:$0xff] %v4350_v49 }
 0x55f   :  { %v1044_v5 = vpop.xlane.xlu0 %1043 }
 0x560   :  { %3628 = vrcp.f32 %v1044_v5 }
 0x563   :  { %v1081_v4 = vpop.xlane.xlu1 %1080 }
 0x564   :  { %3630 = vrcp.f32 %v1081_v4  ;;  %v4359_v4 = vld [vmem:[%s5170_s10 + $0x8] sm:$0xff]  }
 0x565   :  { %5276 = vst [vmem:[#allocation32_spill] sm:$0xff] %v4359_v4 }
 0x567   :  { %v1118_v58 = vpop.xlane.xlu0 %1117 }
 0x568   :  { %3632 = vrcp.f32 %v1118_v58  ;;  %v5278_v58 = vsub.s32 3, %v3999_v3  ;;  %v4385_v3 = vrot.slane %v4267_v61, %v4181_v60 }
 0x56a   :  { %5279 = vst [vmem:[#allocation34_spill] sm:$0xff] %v4385_v3 }
 0x56d   :  { %v3629_v15 = vpop.eup %3628 }
 0x56e   :  { %v1046_v12 = vmul.f32 %v3629_v15, %v3621_v7  ;;  %v4328_v7 = vld [vmem:[%s5170_s10 + $0x28] sm:$0xff]   ;;  %v190_v15 = vld [vmem:[%s5172_s12] sm:$0xf] }
 0x56f   :  { %5271 = vst [vmem:[#allocation28_spill] sm:$0xff] %v4328_v7  ;;  %3272 = vmatpush3.bf16.msra.mxu1 %v4328_v7 }
 0x570   :  { %1049 = vperm.xlu1 %3484, %v1046_v12   ;;  %3273 = vmatprep.subr.bf16.mxu1 %v5268_v42 }
 0x571   :  { %v3631_v45 = vpop.eup %3630 }
 0x572   :  { %v1083_v18 = vmul.f32 %v3631_v45, %v3623_v59  ;;  %v4344_v59 = vld [vmem:[%s5170_s10 + $0x18] sm:$0xff]   ;;  %v1274_v45 = vrot.slane %v190_v15, %v5278_v58 }
 0x573   :  { %3274 = vmatpush3.bf16.msra.mxu1 %v4334_v38  ;;  %5274 = vst [vmem:[#allocation30_spill] sm:$0xff] %v4344_v59 }
 0x574   :  { %3486 = vset.pattern.permute.xlu1 %v5270_v16  ;;  %3275 = vmatprep.subr.bf16.mxu1 %v5268_v42 }
 0x575   :  { %1054 = vperm.xlu1 %3486, %v1046_v12   ;;  %v3633_v0 = vpop.eup %3632  ;;  %v1242_v12 = vrot.slane %v190_v15, %v4168_v39  ;;  %1276 = vrot.lane.b32.xlu0 %v1274_v45, %s3906_s24 }
 0x576   :  { %v1120_v5 = vmul.f32 %v3633_v0, %v3625_v10  ;;  %v4366_v10 = vld [vmem:[%s5170_s10] sm:$0xff]  }
 0x577   :  { %3276 = vmatpush3.bf16.msra.mxu1 %v4344_v59  ;;  %5277 = vst [vmem:[#allocation33_spill] sm:$0xff] %v4366_v10 }
 0x578   :  { %3277 = vmatprep.subr.bf16.mxu1 %v5268_v42 }
 0x579   :  { %3487 = vset.pattern.permute.xlu1 %v5273_v48 }
 0x57a   :  { %1086 = vperm.xlu1 %3487, %v1083_v18  }
 0x57b   :  { %3278 = vmatpush3.bf16.msra.mxu1 %v4350_v49 }
 0x57c   :  { %3279 = vmatprep.subr.bf16.mxu1 %v5268_v42 }
 0x57e   :  { %3488 = vset.pattern.permute.xlu1 %v5270_v16 }
 0x57f   :  { %1091 = vperm.xlu1 %3488, %v1083_v18   ;;  %3280 = vmatpush3.bf16.msra.mxu1 %v4359_v4  ;;  %v1258_v18 = vrot.slane %v190_v15, %v4181_v60 }
 0x580   :  { %3281 = vmatprep.subr.bf16.mxu1 %v5268_v42 }
 0x583   :  { %3489 = vset.pattern.permute.xlu1 %v5273_v48  ;;  %3282 = vmatpush3.bf16.msra.mxu1 %v4366_v10 }
 0x584   :  { %1123 = vperm.xlu1 %3489, %v1120_v5   ;;  %3100 = vmatprep.subr.msk.bf16.mxu1 %vm258_vm0, %v4034_v21  ;;  %v963_v21 = vadd.f32 %v4273_v63, %v4385_v3 }
 0x586   :  { %v1008_v45 = vrot.slane %v963_v21, %v4162_v37 }
 0x588   :  { %3490 = vset.pattern.permute.xlu1 %v5270_v16 }
 0x589   :  { %1128 = vperm.xlu1 %3490, %v1120_v5  }
 0x58d   :  { %3491 = vset.pattern.permute.xlu1 %v5273_v48 }
 0x58e   :  { %1244 = vrot.lane.b32.xlu1 %v1242_v12, %s3905_s23  ;;  %v1017_v12 = vrot.slane %v963_v21, %v4168_v39 }
 0x592   :  { %1260 = vrot.lane.b32.xlu1 %v1258_v18, %s3895_s16 }
 0x59f   :  { %v1003_v0 = vpop.permute.xlu1 %1002  ;;  %v1012_v4 = vpop.permute.xlu0 %1011 }
 0x5a0   :  { %v1009_v38 = vmul.f32 %v1008_v45, %v1003_v0  ;;  %v1018_v7 = vmul.f32 %v1017_v12, %v1012_v4  ;;  %v4396_v4 = vld [vmem:[#allocation2 + $0xec] ss:$16 sps:$4 sm:$0xff]   ;;  %v4418_v0 = vrot.slane %v190_v15, %v4162_v37 }
 0x5a2   :  { %v1019_v41 = vadd.f32 %v1018_v7, %v1009_v38 }
 0x5e7   :  { %v4411_v38 = vpop.permute.xlu0 %1276 }
 0x5eb   :  { %v1050_v5 = vpop.permute.xlu1 %1049 }
 0x5ec   :  { %v1052_v2 = vmul.f32 %v1050_v5, %v1008_v45 }
 0x5f0   :  { %v1055_v16 = vpop.permute.xlu1 %1054 }
 0x5f1   :  { %v1057_v49 = vmul.f32 %v1055_v16, %v1017_v12 }
 0x5f3   :  { %v1058_v46 = vadd.f32 %v1057_v49, %v1052_v2 }
 0x5f5   :  { %v1087_v58 = vpop.permute.xlu1 %1086  ;;  %v1133_v63 = vsel %vm206_vm3, %v1019_v41, %v1058_v46 }
 0x5f6   :  { %v1089_v62 = vmul.f32 %v1087_v58, %v1008_v45 }
 0x5fa   :  { %v1092_v10 = vpop.permute.xlu1 %1091 }
 0x5fb   :  { %v1094_v18 = vmul.f32 %v1092_v10, %v1017_v12 }
 0x5fd   :  { %v1095_v60 = vadd.f32 %v1094_v18, %v1089_v62 }
 0x5ff   :  { %v1124_v59 = vpop.permute.xlu1 %1123  ;;  %v1134_v39 = vsel %vm208_vm4, %v1133_v63, %v1095_v60 }
 0x600   :  { %v1126_v8 = vmul.f32 %v1124_v59, %v1008_v45 }
 0x604   :  { %v1129_v61 = vpop.permute.xlu1 %1128 }
 0x605   :  { %v1131_v9 = vmul.f32 %v1129_v61, %v1017_v12 }
 0x607   :  { %v1132_v3 = vadd.f32 %v1131_v9, %v1126_v8  ;;  %v4404_v9 = vld [vmem:[%s5171_s11] ss:$0 sm:$0xff] }
 0x608   :  { %v4399_v62 = vpop.permute.xlu1 %1244 }
 0x609   :  { %v1135_v21 = vsel %vm210_vm5, %v1134_v39, %v1132_v3 }
 0x60a   :  { %v1136_v16 = vpack.c.bf16 %v1135_v21, %v1135_v21 }
 0x60c   :  { %3284 = vmatmul.mubr.bf16.vlgmr.msra.gmra.mxu1 %v1136_v16  ;;  %v4406_v41 = vpop.permute.xlu1 %1260 }
 0x60d   :  { %1362 = vmatpush1.bf16.msra.mxu1 %v4037_v22  ;;  %1379 = vmatprep.mubr.bf16.mxu1 %v5273_v48 }
 0x60e   :  { %1429 = vmatprep.subr.bf16.mxu1 %v4396_v4 }
 0x6cc   :  { %v1225_v8 = vpop.f32.mrf.mxu1 }
 0x6cd   :  { %v1226_v39 = vadd.f32 %v4404_v9, %v1225_v8  ;;  %v4429_v8 = vld [vmem:[%s5173_s13] ss:$0 sm:$0xff] }
 0x6ce   :  { %v3285_v46 = vpop.f32.mrf.mxu1 }
 0x6cf   :  { %v1263_v2 = vmul.f32 %v4406_v41, %v1226_v39  ;;  %v1247_v7 = vmul.f32 %v4399_v62, %v1226_v39  ;;  %v1279_v10 = vmul.f32 %v4411_v38, %v1226_v39  ;;  %v1235_v5 = vmul.f32 %v4418_v0, %v1226_v39 }
 0x6d0   :  { %v1228_v59 = vpop.f32.mrf.mxu1 }
 0x6d1   :  { %1265 = vrot.lane.b32.xlu0 %v1263_v2, %s3895_s16  ;;  %1249 = vrot.lane.b32.xlu1 %v1247_v7, %s3906_s24  ;;  %v1236_v3 = vsel %vm973_vm8, %v1235_v5, 0.0  ;;  %v4440_v5 = vld [vmem:[#allocation2 + $0xe0] ss:$16 sps:$4 sm:$0xff]  }
 0x6d2   :  { %v3286_v49 = vpop.f32.mrf.mxu1 }
 0x6d5   :  { %1281 = vrot.lane.b32.xlu1 %v1279_v10, %s3905_s23 }
 0x6f0   :  { %1237 = vadd.xlane.f32.xlu0 %v1236_v3  ;;  %v4443_v3 = vld [vmem:[#allocation2 + $0xe8] ss:$16 sps:$4 sm:$0xff]  }
 0x743   :  { %v1266_v58 = vpop.permute.xlu0 %1265  ;;  %v1250_v12 = vpop.permute.xlu1 %1249 }
 0x744   :  { %v1252_v45 = vsel %vm973_vm8, %v1250_v12, 0.0  ;;  %v1268_v18 = vsel %vm973_vm8, %v1266_v58, 0.0  ;;  %v4446_v58 = vld [vmem:[#allocation2 + $0xc4] ss:$16 sps:$4 sm:$0xff]   ;;  %v4449_v12 = vld [vmem:[#allocation2 + $0xcc] ss:$16 sps:$4 sm:$0xff]  }
 0x745   :  { %1253 = vadd.xlane.f32.xlu1 %v1252_v45  ;;  %1269 = vadd.xlane.f32.xlu0 %v1268_v18  ;;  %v4454_v45 = vld [vmem:[#allocation2 + $0xc0] ss:$16 sps:$4 sm:$0xff]   ;;  %v4457_v18 = vld [vmem:[#allocation2 + $0xc8] ss:$16 sps:$4 sm:$0xff]  }
 0x747   :  { %v1282_v60 = vpop.permute.xlu1 %1281 }
 0x748   :  { %v1284_v61 = vsel %vm973_vm8, %v1282_v60, 0.0  ;;  %v4460_v60 = vld [vmem:[#allocation2 + $0xa4] ss:$16 sps:$4 sm:$0xff]  }
 0x749   :  { %1285 = vadd.xlane.f32.xlu0 %v1284_v61  ;;  %v4463_v61 = vld [vmem:[#allocation2 + $0xac] ss:$16 sps:$4 sm:$0xff]  }
 0x779   :  { %v1238_v63 = vpop.xlane.xlu0 %1237 }
 0x7ce   :  { %v1254_v15 = vpop.xlane.xlu1 %1253  ;;  %v1270_v21 = vpop.xlane.xlu0 %1269 }
 0x7cf   :  { %v1287_v16 = vsel %vm985_vm9, %v1238_v63, %v1254_v15  ;;  %v4466_v63 = vld [vmem:[#allocation2 + $0xa0] ss:$16 sps:$4 sm:$0xff]   ;;  %v4469_v15 = vld [vmem:[#allocation2 + $0xa8] ss:$16 sps:$4 sm:$0xff]  }
 0x7d0   :  { %v1289_v39 = vsel %vm1288_vm11, %v1287_v16, %v1270_v21  ;;  %v4472_v21 = vld [vmem:[#allocation2 + $0x84] ss:$16 sps:$4 sm:$0xff]   ;;  %v4475_v16 = vld [vmem:[#allocation2 + $0x8c] ss:$16 sps:$4 sm:$0xff]  }
 0x7d2   :  { %v1286_v46 = vpop.xlane.xlu0 %1285 }
 0x7d3   :  { %v1291_v2 = vsel %vm1290_vm12, %v1289_v39, %v1286_v46  ;;  %v4478_v39 = vld [vmem:[#allocation2 + $0x80] ss:$16 sps:$4 sm:$0xff]   ;;  %v4481_v46 = vld [vmem:[#allocation2 + $0x88] ss:$16 sps:$4 sm:$0xff]  }
 0x7d4   :  { %v1298_v7 = vadd.f32 %v4429_v8, %v1291_v2  ;;  %5281 = vst [vmem:[#allocation36_spill] sm:$0xff] %v4481_v46  ;;  %v4484_v2 = vld [vmem:[#allocation2 + $0x64] ss:$16 sps:$4 sm:$0xff]  }
 0x7d5   :  { %5282 = vst [vmem:[#allocation37_spill] sm:$0xff] %v4484_v2 }
 0x7d6   :  { %vm1299_vm13 = vcmp.ge.f32.partialorder %v1298_v7, 0.0  ;;  %v1300_v59 = vmul.f32 0.01, %v1298_v7 }
 0x7d8   :  { %v4434_v49 = vsel %vm1299_vm13, %v1298_v7, %v1300_v59  ;;  %v4487_v7 = vld [vmem:[#allocation2 + $0x6c] ss:$16 sps:$4 sm:$0xff]   ;;  %v4490_v59 = vld [vmem:[#allocation2 + $0x60] ss:$16 sps:$4 sm:$0xff]  }
 0x7d9   :  { %5280 = vst [vmem:[#allocation35_spill] sm:$0xff] %v4434_v49  ;;  %v1302_v10 = vpack.c.bf16 %v4434_v49, %v4434_v49  ;;  %5283 = vst [vmem:[#allocation38_spill] sm:$0xff] %v4487_v7  ;;  %v4496_v49 = vld [vmem:[#allocation2 + $0x44] ss:$16 sps:$4 sm:$0xff]  }
 0x7da   :  { %5284 = vst [vmem:[#allocation39_spill] sm:$0xff] %v4490_v59 }
 0x7db   :  { %3099 = vmatmul.mubr.msk.bf16.vlgmr.msra.gmra.mxu0 %vm254_vm2, %v1302_v10  ;;  %3101 = vmatmul.mubr.msk.bf16.vlgmr.msra.gmra.mxu1 %vm254_vm2, %v1302_v10  ;;  %v4493_v10 = vld [vmem:[#allocation2 + $0x68] ss:$16 sps:$4 sm:$0xff]  }
 0x7dc   :  { %1389 = vmatpush1.bf16.msra.mxu0 %v4440_v5  ;;  %1430 = vmatpush1.bf16.msra.mxu1 %v4443_v3  ;;  %5285 = vst [vmem:[#allocation40_spill] sm:$0xff] %v4493_v10 }
 0x7dd   :  { %1390 = vmatprep.subr.bf16.mxu0 %v4446_v58  ;;  %1431 = vmatprep.subr.bf16.mxu1 %v4449_v12 }
 0x7de   :  { %1420 = vmatprep.mubr.bf16.mxu0 %v5273_v48  ;;  %1461 = vmatprep.mubr.bf16.mxu1 %v5273_v48 }
 0x7e0   :  { %1391 = vmatpush1.bf16.msra.mxu0 %v4454_v45  ;;  %1432 = vmatpush1.bf16.msra.mxu1 %v4457_v18 }
 0x7e1   :  { %1392 = vmatprep.subr.bf16.mxu0 %v4460_v60  ;;  %1433 = vmatprep.subr.bf16.mxu1 %v4463_v61 }
 0x7e4   :  { %1393 = vmatpush1.bf16.msra.mxu0 %v4466_v63  ;;  %1434 = vmatpush1.bf16.msra.mxu1 %v4469_v15 }
 0x7e5   :  { %1394 = vmatprep.subr.bf16.mxu0 %v4472_v21  ;;  %1435 = vmatprep.subr.bf16.mxu1 %v4475_v16 }
 0x7e8   :  { %1395 = vmatpush1.bf16.msra.mxu0 %v4478_v39  ;;  %1436 = vmatpush1.bf16.msra.mxu1 %v4481_v46  ;;  %v4499_v46 = vld [vmem:[#allocation2 + $0x4c] ss:$16 sps:$4 sm:$0xff]  }
 0x7e9   :  { %1396 = vmatprep.subr.bf16.mxu0 %v4484_v2  ;;  %1437 = vmatprep.subr.bf16.mxu1 %v4487_v7  ;;  %v4502_v2 = vld [vmem:[#allocation2 + $0x40] ss:$16 sps:$4 sm:$0xff]   ;;  %v4505_v7 = vld [vmem:[#allocation2 + $0x48] ss:$16 sps:$4 sm:$0xff]  }
 0x7ec   :  { %1397 = vmatpush1.bf16.msra.mxu0 %v4490_v59  ;;  %1438 = vmatpush1.bf16.msra.mxu1 %v4493_v10  ;;  %v4508_v59 = vld [vmem:[#allocation2 + $0x24] ss:$16 sps:$4 sm:$0xff]   ;;  %v4511_v10 = vld [vmem:[#allocation2 + $0x2c] ss:$16 sps:$4 sm:$0xff]  }
 0x7ed   :  { %1398 = vmatprep.subr.bf16.mxu0 %v4496_v49  ;;  %1439 = vmatprep.subr.bf16.mxu1 %v4499_v46 }
 0x7f0   :  { %1399 = vmatpush1.bf16.msra.mxu0 %v4502_v2  ;;  %1440 = vmatpush1.bf16.msra.mxu1 %v4505_v7 }
 0x7f1   :  { %1400 = vmatprep.subr.bf16.mxu0 %v4508_v59  ;;  %1441 = vmatprep.subr.bf16.mxu1 %v4511_v10 }
 0x7f4   :  { %1401 = vmatpush1.bf16.msra.mxu0 %v4059_v52  ;;  %1442 = vmatpush1.bf16.msra.mxu1 %v4061_v53 }
 0x7f5   :  { %1402 = vmatprep.subr.bf16.mxu0 %v4063_v54  ;;  %1443 = vmatprep.subr.bf16.mxu1 %v4065_v55 }
 0x7f8   :  { %1403 = vmatpush1.bf16.msra.mxu0 %v4067_v56  ;;  %1444 = vmatpush1.bf16.msra.mxu1 %v4069_v57 }
 0x7f9   :  { %3287 = vmatprep.subr.bf16.mxu0 %v5268_v42  ;;  %1543 = vmatprep.subr.bf16.mxu1 %v4124_v25 }
 0x7fb   :  { %1421 = vmatmul.mubr.bf16.vlgmr.msra.gmra.mxu0 %v4204_v43  ;;  %1462 = vmatmul.mubr.bf16.vlgmr.msra.gmra.mxu1 %v4204_v43 }
 0x7fc   :  { %3288 = vmatpush3.bf16.msra.mxu0 %v4090_v11  ;;  %3303 = vmatprep.mubr.msk.bf16.mxu0 %vm3908_vm6, %v5268_v42 }
 0x7fd   :  { %3289 = vmatprep.subr.bf16.mxu0 %v5268_v42  ;;  %1544 = vmatpush1.bf16.msra.mxu1 %v4126_v26 }
 0x7fe   :  { %1545 = vmatprep.subr.bf16.mxu1 %v4129_v27  ;;  %1575 = vmatprep.mubr.bf16.mxu1 %v5273_v48 }
 0x800   :  { %3290 = vmatpush3.bf16.msra.mxu0 %v4094_v13 }
 0x801   :  { %3291 = vmatprep.subr.bf16.mxu0 %v5268_v42  ;;  %1546 = vmatpush1.bf16.msra.mxu1 %v4133_v28 }
 0x802   :  { %1547 = vmatprep.subr.bf16.mxu1 %v4136_v29 }
 0x804   :  { %3292 = vmatpush3.bf16.msra.mxu0 %v4099_v14 }
 0x805   :  { %3293 = vmatprep.subr.bf16.mxu0 %v5268_v42  ;;  %1548 = vmatpush1.bf16.msra.mxu1 %v4139_v30 }
 0x806   :  { %1549 = vmatprep.subr.bf16.mxu1 %v4142_v31 }
 0x808   :  { %3294 = vmatpush3.bf16.msra.mxu0 %v4103_v17 }
 0x809   :  { %3295 = vmatprep.subr.bf16.mxu0 %v5268_v42  ;;  %1550 = vmatpush1.bf16.msra.mxu1 %v4145_v32 }
 0x80a   :  { %1551 = vmatprep.subr.bf16.mxu1 %v4148_v33 }
 0x80c   :  { %3296 = vmatpush3.bf16.msra.mxu0 %v4108_v19 }
 0x80d   :  { %3297 = vmatprep.subr.bf16.mxu0 %v5268_v42  ;;  %1552 = vmatpush1.bf16.msra.mxu1 %v4151_v34 }
 0x80e   :  { %1553 = vmatprep.subr.bf16.mxu1 %v4154_v35 }
 0x810   :  { %3298 = vmatpush3.bf16.msra.mxu0 %v4112_v20 }
 0x811   :  { %3299 = vmatprep.subr.bf16.mxu0 %v5268_v42  ;;  %1554 = vmatpush1.bf16.msra.mxu1 %v4157_v36 }
 0x812   :  { %1555 = vmatprep.subr.bf16.mxu1 %v4231_v6  ;;  %v5286_v6 = vld [vmem:[#allocation13_spill] sm:$0xff] }
 0x814   :  { %3300 = vmatpush3.bf16.msra.mxu0 %v4116_v23 }
 0x815   :  { %3301 = vmatprep.subr.bf16.mxu0 %v5268_v42  ;;  %1556 = vmatpush1.bf16.msra.mxu1 %v4233_v47 }
 0x816   :  { %1557 = vmatprep.subr.bf16.mxu1 %v4240_v50 }
 0x818   :  { %3302 = vmatpush3.bf16.msra.mxu0 %v4120_v24 }
 0x819   :  { %3307 = vmatprep.subr.bf16.mxu0 %v5268_v42  ;;  %1558 = vmatpush1.bf16.msra.mxu1 %v4243_v51 }
 0x81a   :  { %3327 = vmatprep.subr.bf16.mxu1 %v5268_v42 }
 0x89b   :  { %v1340_v52 = vpop.f32.mrf.mxu0  ;;  %v1381_v53 = vpop.f32.mrf.mxu1 }
 0x89d   :  { %v1342_v54 = vpop.f32.mrf.mxu0  ;;  %v1383_v55 = vpop.f32.mrf.mxu1 }
 0x89f   :  { %v1344_v56 = vpop.f32.mrf.mxu0  ;;  %v1385_v57 = vpop.f32.mrf.mxu1 }
 0x8a1   :  { %v1345_v11 = vpop.f32.mrf.mxu0  ;;  %v1386_v13 = vpop.f32.mrf.mxu1 }
 0x8bb   :  { %v1422_v14 = vpop.f32.mrf.mxu0  ;;  %v1463_v17 = vpop.f32.mrf.mxu1 }
 0x8bc   :  { %v1423_v19 = vadd.f32 %v1422_v14, %v1340_v52  ;;  %v1464_v33 = vadd.f32 %v1463_v17, %v1381_v53  ;;  %v5287_v53 = vld [vmem:[#allocation14_spill] sm:$0xff] }
 0x8bd   :  { %v1424_v20 = vpop.f32.mrf.mxu0  ;;  %v1465_v23 = vpop.f32.mrf.mxu1 }
 0x8be   :  { %v1470_v24 = vadd.f32 %v1423_v19, %v4171_v40  ;;  %v1425_v25 = vadd.f32 %v1424_v20, %v1342_v54  ;;  %v1472_v34 = vadd.f32 %v1464_v33, %v4185_v1  ;;  %v1466_v35 = vadd.f32 %v1465_v23, %v1383_v55  ;;  %v5296_v33 = vld [vmem:[#allocation9_spill] sm:$0xff] }
 0x8bf   :  { %v1426_v26 = vpop.f32.mrf.mxu0  ;;  %v1467_v27 = vpop.f32.mrf.mxu1 }
 0x8c0   :  { %v3102_v28 = vmul.f32 -1.442695, %v1470_v24  ;;  %v1471_v29 = vadd.f32 %v1425_v25, %v4175_v44  ;;  %v3104_v36 = vmul.f32 -1.442695, %v1472_v34  ;;  %v1473_v47 = vadd.f32 %v1466_v35, %v5286_v6  ;;  %v5288_v25 = vld [vmem:[#allocation15_spill] sm:$0xff]  ;;  %v5289_v26 = vld [vmem:[#allocation16_spill] sm:$0xff] }
 0x8c1   :  { %v1427_v30 = vpop.f32.mrf.mxu0  ;;  %v1468_v31 = vpop.f32.mrf.mxu1  ;;  %v5290_v27 = vld [vmem:[#allocation17_spill] sm:$0xff]  ;;  %v5297_v35 = vld [vmem:[#allocation23_spill] sm:$0xff] }
 0x8c2   :  { %3634 = vpow2.f32 %v3102_v28  ;;  %v3103_v32 = vmul.f32 -1.442695, %v1471_v29  ;;  %v5291_v28 = vld [vmem:[#allocation18_spill] sm:$0xff]  ;;  %v5292_v29 = vld [vmem:[#allocation19_spill] sm:$0xff]  ;;  %v5293_v30 = vld [vmem:[#allocation20_spill] sm:$0xff] }
 0x8c3   :  { %v5294_v31 = vld [vmem:[#allocation21_spill] sm:$0xff] }
 0x8c4   :  { %3636 = vpow2.f32 %v3103_v32  ;;  %v5295_v32 = vld [vmem:[#allocation22_spill] sm:$0xff] }
 0x8c5   :  { %3638 = vpow2.f32 %v3104_v36 }
 0x8cf   :  { %v3635_v43 = vpop.eup %3634 }
 0x8d0   :  { %v1483_v50 = vadd.f32 1.0, %v3635_v43 }
 0x8d1   :  { %v3637_v51 = vpop.eup %3636 }
 0x8d2   :  { %3640 = vrcp.f32 %v1483_v50  ;;  %v1484_v52 = vadd.f32 1.0, %v3637_v51  ;;  %v3639_v54 = vpop.eup %3638 }
 0x8d3   :  { %3642 = vtanh.f32 %v1473_v47  ;;  %v1485_v13 = vadd.f32 1.0, %v3639_v54 }
 0x8d4   :  { %3644 = vrcp.f32 %v1484_v52 }
 0x8d5   :  { %3646 = vrcp.f32 %v1485_v13  ;;  %v5300_v13 = vld [vmem:[#allocation27_spill] sm:$0xff] }
 0x8df   :  { %v3641_v56 = vpop.eup %3640 }
 0x8e0   :  { %v3643_v57 = vpop.eup %3642 }
 0x8e1   :  { %v3645_v11 = vpop.eup %3644  ;;  %v1494_v17 = vmul.f32 %v3643_v57, %v3641_v56  ;;  %v5298_v56 = vld [vmem:[#allocation26_spill] sm:$0xff] }
 0x8e2   :  { %v1493_v14 = vmul.f32 %v3645_v11, %v5287_v53  ;;  %v3647_v19 = vpop.eup %3646  ;;  %v5299_v57 = vld [vmem:[#allocation10_spill] sm:$0xff]  ;;  %v4596_v11 = vld [vmem:[#allocation2 + $0xe4] ss:$16 sps:$4 sm:$0xff]   ;;  %v5301_v53 = vld [vmem:[#allocation28_spill] sm:$0xff] }
 0x8e4   :  { %v4564_v55 = vadd.f32 %v1494_v17, %v1493_v14  ;;  %v5302_v14 = vld [vmem:[#allocation29_spill] sm:$0xff]  ;;  %v5303_v17 = vld [vmem:[#allocation30_spill] sm:$0xff] }
 0x8e6   :  { %3648 = vtanh.f32 %v4564_v55 }
 0x8f3   :  { %v3649_v20 = vpop.eup %3648 }
 0x8f4   :  { %v1497_v23 = vmul.f32 %v3649_v20, %v3647_v19  ;;  %v5304_v19 = vld [vmem:[#allocation31_spill] sm:$0xff]  ;;  %v5305_v20 = vld [vmem:[#allocation32_spill] sm:$0xff] }
 0x8f6   :  { %v4567_v24 = vpack.c.bf16 %v1497_v23, %v1497_v23  ;;  %v5306_v23 = vld [vmem:[#allocation33_spill] sm:$0xff] }
 0x8f8   :  { %3304 = vmatmul.mubr.bf16.vlgmr.msra.gmra.mxu0 %v4567_v24 }
 0x8f9   :  { %3308 = vmatpush3.bf16.msra.mxu0 %v5288_v25  ;;  %3323 = vmatprep.mubr.msk.bf16.mxu0 %vm3908_vm6, %v5268_v42  ;;  %v5307_v25 = vld [vmem:[#allocation11_spill] sm:$0xff] }
 0x8fa   :  { %3309 = vmatprep.subr.bf16.mxu0 %v5268_v42 }
 0x8fd   :  { %3310 = vmatpush3.bf16.msra.mxu0 %v5289_v26 }
 0x8fe   :  { %3311 = vmatprep.subr.bf16.mxu0 %v5268_v42 }
 0x901   :  { %3312 = vmatpush3.bf16.msra.mxu0 %v5290_v27 }
 0x902   :  { %3313 = vmatprep.subr.bf16.mxu0 %v5268_v42 }
 0x905   :  { %3314 = vmatpush3.bf16.msra.mxu0 %v5291_v28 }
 0x906   :  { %3315 = vmatprep.subr.bf16.mxu0 %v5268_v42 }
 0x909   :  { %3316 = vmatpush3.bf16.msra.mxu0 %v5292_v29 }
 0x90a   :  { %3317 = vmatprep.subr.bf16.mxu0 %v5268_v42 }
 0x90d   :  { %3318 = vmatpush3.bf16.msra.mxu0 %v5293_v30  ;;  %v5308_v30 = vld [vmem:[#allocation24_spill] sm:$0xff] }
 0x90e   :  { %3319 = vmatprep.subr.bf16.mxu0 %v5268_v42 }
 0x911   :  { %3320 = vmatpush3.bf16.msra.mxu0 %v5294_v31 }
 0x912   :  { %3321 = vmatprep.subr.bf16.mxu0 %v5268_v42 }
 0x915   :  { %3322 = vmatpush3.bf16.msra.mxu0 %v5295_v32 }
 0x916   :  { %3105 = vmatprep.subr.msk.bf16.mxu0 %vm258_vm0, %v5296_v33 }
 0x9b8   :  { %v1533_v34 = vpop.f32.mrf.mxu0 }
 0x9b9   :  { %v1534_v36 = vadd.f32 %v5297_v35, %v1533_v34  ;;  %v5309_v35 = vld [vmem:[#allocation25_spill] sm:$0xff] }
 0x9ba   :  { %v3305_v43 = vpop.f32.mrf.mxu0 }
 0x9bb   :  { %vm1539_vm14 = vcmp.ge.f32.partialorder %v1534_v36, 0.0  ;;  %v1540_v47 = vmul.f32 0.01, %v1534_v36 }
 0x9bc   :  { %v1536_v50 = vpop.f32.mrf.mxu0 }
 0x9bd   :  { %v1541_v51 = vsel %vm1539_vm14, %v1534_v36, %v1540_v47  ;;  %v5310_v47 = vld [vmem:[#allocation12_spill] sm:$0xff] }
 0x9be   :  { %v1542_v52 = vpack.c.bf16 %v1541_v51, %v1541_v51  ;;  %v3306_v54 = vpop.f32.mrf.mxu0 }
 0x9c0   :  { %1576 = vmatmul.mubr.bf16.vlgmr.msra.gmra.mxu1 %v1542_v52  ;;  %3324 = vmatmul.mubr.bf16.vlgmr.msra.gmra.mxu0 %v1542_v52 }
 0x9c1   :  { %3328 = vmatpush3.bf16.msra.mxu1 %v5298_v56  ;;  %3343 = vmatprep.mubr.msk.bf16.mxu1 %vm3908_vm6, %v5268_v42 }
 0x9c2   :  { %3329 = vmatprep.subr.bf16.mxu1 %v5268_v42  ;;  %1884 = vmatpush1.bf16.msra.mxu0 %v5299_v57 }
 0x9c3   :  { %1901 = vmatprep.mubr.bf16.mxu0 %v5273_v48  ;;  %1951 = vmatprep.subr.bf16.mxu0 %v4596_v11 }
 0x9c5   :  { %3330 = vmatpush3.bf16.msra.mxu1 %v5300_v13 }
 0x9c6   :  { %3331 = vmatprep.subr.bf16.mxu1 %v5268_v42 }
 0x9c9   :  { %3332 = vmatpush3.bf16.msra.mxu1 %v5301_v53 }
 0x9ca   :  { %3333 = vmatprep.subr.bf16.mxu1 %v5268_v42 }
 0x9cd   :  { %3334 = vmatpush3.bf16.msra.mxu1 %v5302_v14 }
 0x9ce   :  { %3335 = vmatprep.subr.bf16.mxu1 %v5268_v42 }
 0x9d1   :  { %3336 = vmatpush3.bf16.msra.mxu1 %v5303_v17 }
 0x9d2   :  { %3337 = vmatprep.subr.bf16.mxu1 %v5268_v42 }
 0x9d5   :  { %3338 = vmatpush3.bf16.msra.mxu1 %v5304_v19 }
 0x9d6   :  { %3339 = vmatprep.subr.bf16.mxu1 %v5268_v42 }
 0x9d9   :  { %3340 = vmatpush3.bf16.msra.mxu1 %v5305_v20 }
 0x9da   :  { %3341 = vmatprep.subr.bf16.mxu1 %v5268_v42 }
 0x9dd   :  { %3342 = vmatpush3.bf16.msra.mxu1 %v5306_v23 }
 0x9de   :  { %3107 = vmatprep.subr.msk.bf16.mxu1 %vm258_vm0, %v5307_v25 }
 0xa80   :  { %v1577_v26 = vpop.f32.mrf.mxu1  ;;  %v4614_v27 = vpop.f32.mrf.mxu0 }
 0xa81   :  { %v1578_v36 = vadd.f32 %v1577_v26, %v5309_v35 }
 0xa82   :  { %v1579_v28 = vpop.f32.mrf.mxu1  ;;  %v3325_v29 = vpop.f32.mrf.mxu0 }
 0xa83   :  { %v1580_v31 = vadd.f32 %v1579_v28, %v5308_v30 }
 0xa84   :  { %v1581_v32 = vpop.f32.mrf.mxu1  ;;  %v1621_v34 = vpop.f32.mrf.mxu0 }
 0xa85   :  { %v1627_v43 = vrot.slane %v1580_v31, %v4162_v37  ;;  %v1635_v50 = vrot.slane %v1580_v31, %v5310_v47 }
 0xa86   :  { %v1582_v51 = vpop.f32.mrf.mxu1  ;;  %v3326_v52 = vpop.f32.mrf.mxu0 }
 0xa87   :  { %v1628_v54 = vmul.f32 %v1627_v43, %v1578_v36  ;;  %v1636_v56 = vmul.f32 %v1635_v50, %v1578_v36 }
 0xa89   :  { %1681 = vrot.lane.b32.xlu0 %v1636_v56, %s3906_s24  ;;  %1674 = vrot.lane.b32.xlu1 %v1628_v54, %s3906_s24  ;;  %v1629_v13 = vsel %vm973_vm8, %v1628_v54, 0.0  ;;  %v1637_v53 = vsel %vm973_vm8, %v1636_v56, 0.0 }
 0xa8d   :  { %1749 = vrot.lane.b32.xlu0 %v1628_v54, %s3905_s23  ;;  %1712 = vrot.lane.b32.xlu1 %v1628_v54, %s3895_s16 }
 0xa91   :  { %1718 = vrot.lane.b32.xlu1 %v1636_v56, %s3895_s16 }
 0xa95   :  { %1755 = vrot.lane.b32.xlu1 %v1636_v56, %s3905_s23 }
 0xaac   :  { %1630 = vadd.xlane.f32.xlu0 %v1629_v13 }
 0xab9   :  { %1638 = vadd.xlane.f32.xlu1 %v1637_v53 }
 0xafb   :  { %v1682_v14 = vpop.permute.xlu0 %1681  ;;  %v1675_v17 = vpop.permute.xlu1 %1674 }
 0xafc   :  { %v1677_v19 = vsel %vm973_vm8, %v1675_v17, 0.0  ;;  %v1684_v26 = vsel %vm973_vm8, %v1682_v14, 0.0 }
 0xafd   :  { %1678 = vadd.xlane.f32.xlu0 %v1677_v19 }
 0xaff   :  { %v1713_v20 = vpop.permute.xlu1 %1712  ;;  %v1750_v28 = vpop.permute.xlu0 %1749 }
 0xb00   :  { %v1715_v23 = vsel %vm973_vm8, %v1713_v20, 0.0  ;;  %v1752_v31 = vsel %vm973_vm8, %v1750_v28, 0.0 }
 0xb01   :  { %1716 = vadd.xlane.f32.xlu1 %v1715_v23  ;;  %1685 = vadd.xlane.f32.xlu0 %v1684_v26 }
 0xb03   :  { %v1719_v29 = vpop.permute.xlu1 %1718 }
 0xb04   :  { %v1721_v32 = vsel %vm973_vm8, %v1719_v29, 0.0 }
 0xb05   :  { %1753 = vadd.xlane.f32.xlu1 %v1752_v31  ;;  %1722 = vadd.xlane.f32.xlu0 %v1721_v32 }
 0xb07   :  { %v1756_v34 = vpop.permute.xlu1 %1755 }
 0xb08   :  { %v1758_v36 = vsel %vm973_vm8, %v1756_v34, 0.0 }
 0xb09   :  { %1759 = vadd.xlane.f32.xlu0 %v1758_v36 }
 0xb35   :  { %v1631_v43 = vpop.xlane.xlu0 %1630 }
 0xb42   :  { %v1639_v50 = vpop.xlane.xlu1 %1638 }
 0xb43   :  { %v1640_v51 = vsel %vm985_vm9, %v1631_v43, %v1639_v50 }
 0xb44   :  { %v1641_v52 = vmul.f32 0.17677669, %v1640_v51 }
 0xb46   :  { %v1642_v54 = vsel %vm988_vm10, %v1641_v52, -inf }
 0xb47   :  { %1643 = vmax.xlane.f32.xlu1 %v1642_v54 }
 0xb86   :  { %v1679_v56 = vpop.xlane.xlu0 %1678 }
 0xb8a   :  { %v1686_v13 = vpop.xlane.xlu0 %1685  ;;  %v1717_v14 = vpop.xlane.xlu1 %1716 }
 0xb8b   :  { %v1687_v53 = vsel %vm985_vm9, %v1679_v56, %v1686_v13 }
 0xb8c   :  { %v1688_v17 = vmul.f32 0.17677669, %v1687_v53 }
 0xb8e   :  { %v1723_v19 = vpop.xlane.xlu0 %1722  ;;  %v1689_v20 = vsel %vm988_vm10, %v1688_v17, -inf  ;;  %v1754_v28 = vpop.xlane.xlu1 %1753 }
 0xb8f   :  { %v1724_v23 = vsel %vm985_vm9, %v1717_v14, %v1723_v19  ;;  %1690 = vmax.xlane.f32.xlu0 %v1689_v20 }
 0xb90   :  { %v1725_v26 = vmul.f32 0.17677669, %v1724_v23 }
 0xb92   :  { %v1760_v29 = vpop.xlane.xlu0 %1759  ;;  %v1726_v31 = vsel %vm988_vm10, %v1725_v26, -inf }
 0xb93   :  { %v1761_v32 = vsel %vm985_vm9, %v1754_v28, %v1760_v29  ;;  %1727 = vmax.xlane.f32.xlu1 %v1726_v31 }
 0xb94   :  { %v1762_v34 = vmul.f32 0.17677669, %v1761_v32 }
 0xb96   :  { %v1763_v36 = vsel %vm988_vm10, %v1762_v34, -inf }
 0xb97   :  { %1764 = vmax.xlane.f32.xlu0 %v1763_v36 }
 0xbd0   :  { %v1644_v43 = vpop.xlane.xlu1 %1643 }
 0xbd1   :  { %v1645_v50 = vsub.f32 %v1641_v52, %v1644_v43 }
 0xbd3   :  { %v1646_v51 = vmul.f32 1.442695, %v1645_v50 }
 0xbd5   :  { %3650 = vpow2.f32 %v1646_v51 }
 0xbe2   :  { %v3651_v54 = vpop.eup %3650 }
 0xbe3   :  { %v1648_v56 = vsel %vm988_vm10, %v3651_v54, 0.0 }
 0xbe4   :  { %1649 = vadd.xlane.f32.xlu1 %v1648_v56 }
 0xc18   :  { %v1691_v13 = vpop.xlane.xlu0 %1690 }
 0xc19   :  { %v1692_v53 = vsub.f32 %v1688_v17, %v1691_v13 }
 0xc1b   :  { %v1693_v14 = vmul.f32 1.442695, %v1692_v53 }
 0xc1c   :  { %v1728_v19 = vpop.xlane.xlu1 %1727 }
 0xc1d   :  { %3652 = vpow2.f32 %v1693_v14  ;;  %v1729_v20 = vsub.f32 %v1725_v26, %v1728_v19 }
 0xc1f   :  { %v1730_v23 = vmul.f32 1.442695, %v1729_v20 }
 0xc20   :  { %v1765_v28 = vpop.xlane.xlu0 %1764 }
 0xc21   :  { %3654 = vpow2.f32 %v1730_v23  ;;  %v1766_v29 = vsub.f32 %v1762_v34, %v1765_v28  ;;  %v5311_v28 = vmov 1  }
 0xc23   :  { %v1767_v31 = vmul.f32 1.442695, %v1766_v29 }
 0xc25   :  { %3656 = vpow2.f32 %v1767_v31 }
 0xc2a   :  { %v3653_v32 = vpop.eup %3652 }
 0xc2b   :  { %v1695_v52 = vsel %vm988_vm10, %v3653_v32, 0.0 }
 0xc2c   :  { %1696 = vadd.xlane.f32.xlu0 %v1695_v52 }
 0xc2e   :  { %v3655_v36 = vpop.eup %3654 }
 0xc2f   :  { %v1732_v43 = vsel %vm988_vm10, %v3655_v36, 0.0 }
 0xc30   :  { %1733 = vadd.xlane.f32.xlu1 %v1732_v43 }
 0xc32   :  { %v3657_v50 = vpop.eup %3656 }
 0xc33   :  { %v1769_v17 = vsel %vm988_vm10, %v3657_v50, 0.0 }
 0xc34   :  { %1770 = vadd.xlane.f32.xlu0 %v1769_v17 }
 0xc6d   :  { %v1650_v51 = vpop.xlane.xlu1 %1649 }
 0xc6e   :  { %3658 = vrcp.f32 %v1650_v51 }
 0xc7b   :  { %v3659_v26 = vpop.eup %3658 }
 0xc7c   :  { %v1652_v56 = vmul.f32 %v3659_v26, %v3651_v54 }
 0xc7e   :  { %1655 = vperm.xlu1 %3491, %v1652_v56   ;;  %1664 = vperm.xlu0 %3485, %v1652_v56  }
 0xc82   :  { %3493 = vset.pattern.permute.xlu0 %v5273_v48 }
 0xcb5   :  { %v1697_v34 = vpop.xlane.xlu0 %1696 }
 0xcb6   :  { %3660 = vrcp.f32 %v1697_v34 }
 0xcb9   :  { %v1734_v13 = vpop.xlane.xlu1 %1733 }
 0xcba   :  { %3662 = vrcp.f32 %v1734_v13 }
 0xcbd   :  { %v1771_v53 = vpop.xlane.xlu0 %1770 }
 0xcbe   :  { %3664 = vrcp.f32 %v1771_v53 }
 0xcc3   :  { %v3661_v14 = vpop.eup %3660 }
 0xcc4   :  { %v1699_v19 = vmul.f32 %v3661_v14, %v3653_v32 }
 0xcc6   :  { %1702 = vperm.xlu1 %3491, %v1699_v19  }
 0xcc7   :  { %v3663_v20 = vpop.eup %3662 }
 0xcc8   :  { %v1736_v23 = vmul.f32 %v3663_v20, %v3655_v36  ;;  %v5312_v36 = vld [vmem:[#allocation34_spill] sm:$0xff] }
 0xcc9   :  { %v1619_v43 = vadd.f32 %v4614_v27, %v5312_v36 }
 0xcca   :  { %1739 = vperm.xlu0 %3493, %v1736_v23   ;;  %3492 = vset.pattern.permute.xlu1 %v5311_v28 }
 0xccb   :  { %v3665_v29 = vpop.eup %3664  ;;  %1707 = vperm.xlu1 %3492, %v1699_v19   ;;  %v1661_v26 = vrot.slane %v1619_v43, %v4162_v37 }
 0xccc   :  { %v1773_v54 = vmul.f32 %v3665_v29, %v3657_v50  ;;  %v1670_v50 = vrot.slane %v1619_v43, %v5310_v47 }
 0xcce   :  { %3495 = vset.pattern.permute.xlu0 %v5311_v28 }
 0xccf   :  { %1744 = vperm.xlu1 %3492, %v1736_v23   ;;  %1781 = vperm.xlu0 %3495, %v1773_v54  }
 0xcd3   :  { %3494 = vset.pattern.permute.xlu1 %v5273_v48  ;;  %3496 = vset.pattern.permute.xlu0 %v5273_v48 }
 0xcd4   :  { %1776 = vperm.xlu1 %3494, %v1773_v54  }
 0xcd8   :  { %3497 = vset.pattern.permute.xlu1 %v5311_v28 }
 0xcf9   :  { %v1656_v31 = vpop.permute.xlu1 %1655  ;;  %v1665_v52 = vpop.permute.xlu0 %1664 }
 0xcfa   :  { %v1662_v53 = vmul.f32 %v1661_v26, %v1656_v31  ;;  %v1671_v14 = vmul.f32 %v1670_v50, %v1665_v52 }
 0xcfc   :  { %v1672_v35 = vadd.f32 %v1671_v14, %v1662_v53 }
 0xd41   :  { %v1703_v32 = vpop.permute.xlu1 %1702 }
 0xd42   :  { %v1705_v19 = vmul.f32 %v1703_v32, %v1661_v26 }
 0xd45   :  { %v1740_v51 = vpop.permute.xlu0 %1739 }
 0xd46   :  { %v1708_v17 = vpop.permute.xlu1 %1707  ;;  %v1742_v20 = vmul.f32 %v1740_v51, %v1661_v26 }
 0xd47   :  { %v1710_v56 = vmul.f32 %v1708_v17, %v1670_v50 }
 0xd49   :  { %v1711_v29 = vadd.f32 %v1710_v56, %v1705_v19 }
 0xd4a   :  { %v1745_v34 = vpop.permute.xlu1 %1744  ;;  %v1782_v23 = vpop.permute.xlu0 %1781 }
 0xd4b   :  { %v1747_v13 = vmul.f32 %v1745_v34, %v1670_v50  ;;  %v1784_v30 = vmul.f32 %v1782_v23, %v1670_v50  ;;  %v1786_v36 = vsel %vm206_vm3, %v1672_v35, %v1711_v29 }
 0xd4d   :  { %v1748_v54 = vadd.f32 %v1747_v13, %v1742_v20 }
 0xd4f   :  { %v1777_v28 = vpop.permute.xlu1 %1776  ;;  %v1787_v47 = vsel %vm208_vm4, %v1786_v36, %v1748_v54 }
 0xd50   :  { %v1779_v27 = vmul.f32 %v1777_v28, %v1661_v26 }
 0xd52   :  { %v1785_v25 = vadd.f32 %v1784_v30, %v1779_v27 }
 0xd54   :  { %v1788_v43 = vsel %vm210_vm5, %v1787_v47, %v1785_v25 }
 0xd55   :  { %v1789_v17 = vpack.c.bf16 %v1788_v43, %v1788_v43 }
 0xd57   :  { %3344 = vmatmul.mubr.bf16.vlgmr.msra.gmra.mxu1 %v1789_v17 }
 0xd58   :  { %1925 = vmatpush1.bf16.msra.mxu1 %v4037_v22  ;;  %1942 = vmatprep.mubr.bf16.mxu1 %v5273_v48 }
 0xd59   :  { %1992 = vmatprep.subr.bf16.mxu1 %v4396_v4 }
 0xe17   :  { %v1824_v31 = vpop.f32.mrf.mxu1 }
 0xe18   :  { %v1825_v32 = vadd.f32 %v4404_v9, %v1824_v31  ;;  %v4767_v31 = vld [vmem:[#allocation4 + $0x20] sm:$0xff]  }
 0xe19   :  { %v3345_v52 = vpop.f32.mrf.mxu1 }
 0xe1a   :  { %v1850_v28 = vmul.f32 %v1825_v32, %v4411_v38  ;;  %v1834_v30 = vmul.f32 %v1825_v32, %v4399_v62  ;;  %v1842_v47 = vmul.f32 %v1825_v32, %v4406_v41  ;;  %v1830_v4 = vmul.f32 %v1825_v32, %v4418_v0  ;;  %v4771_v32 = vld [vmem:[#allocation6 + $0x60] ss:$12 sps:$4 sm:$0xff]  }
 0xe1b   :  { %v1827_v35 = vpop.f32.mrf.mxu1  ;;  %v4774_v52 = vld [vmem:[#allocation6 + $0x4c] ss:$12 sps:$4 sm:$0xff]  }
 0xe1c   :  { %1852 = vrot.lane.b32.xlu0 %v1850_v28, %s3905_s23  ;;  %1836 = vrot.lane.b32.xlu1 %v1834_v30, %s3906_s24  ;;  %v1831_v36 = vsel %vm973_vm8, %v1830_v4, 0.0  ;;  %v4777_v28 = vld [vmem:[#allocation4 + $0x18] sm:$0xff]   ;;  %v4781_v30 = vld [vmem:[#allocation6 + $0x48] ss:$12 sps:$4 sm:$0xff]  }
 0xe1d   :  { %v3346_v25 = vpop.f32.mrf.mxu1  ;;  %v4784_v35 = vld [vmem:[#allocation6 + $0x34] ss:$12 sps:$4 sm:$0xff]   ;;  %v4794_v4 = vld [vmem:[#allocation6 + $0x1c] ss:$12 sps:$4 sm:$0xff]  }
 0xe1e   :  { %v4787_v25 = vld [vmem:[#allocation4 + $0x10] sm:$0xff]  }
 0xe20   :  { %1844 = vrot.lane.b32.xlu1 %v1842_v47, %s3895_s16  ;;  %v4791_v47 = vld [vmem:[#allocation6 + $0x30] ss:$12 sps:$4 sm:$0xff]  }
 0xe44   :  { %1832 = vadd.xlane.f32.xlu1 %v1831_v36  ;;  %v4797_v36 = vld [vmem:[#allocation4 + $0x8] sm:$0xff]  }
 0xe8e   :  { %v1853_v9 = vpop.permute.xlu0 %1852  ;;  %v1837_v51 = vpop.permute.xlu1 %1836 }
 0xe8f   :  { %v1839_v50 = vsel %vm973_vm8, %v1837_v51, 0.0  ;;  %v1855_v26 = vsel %vm973_vm8, %v1853_v9, 0.0  ;;  %v4801_v9 = vld [vmem:[#allocation6 + $0x18] ss:$12 sps:$4 sm:$0xff]  }
 0xe90   :  { %1840 = vadd.xlane.f32.xlu0 %v1839_v50  ;;  %1856 = vadd.xlane.f32.xlu1 %v1855_v26  ;;  %5319 = vst [vmem:[#allocation14_spill] sm:$0xff] %v4801_v9  ;;  %v4804_v51 = vld [vmem:[#allocation6 + $0x4] ss:$12 sps:$4 sm:$0xff]   ;;  %v4811_v26 = vld [vmem:[#allocation6] ss:$12 sps:$4 sm:$0xff]  }
 0xe91   :  { %5320 = vst [vmem:[#allocation15_spill] sm:$0xff] %v4804_v51  ;;  %v4807_v50 = vld [vmem:[#allocation4] sm:$0xff]   ;;  %5322 = vst [vmem:[#allocation17_spill] sm:$0xff] %v4811_v26 }
 0xe92   :  { %v1845_v56 = vpop.permute.xlu1 %1844  ;;  %5321 = vst [vmem:[#allocation16_spill] sm:$0xff] %v4807_v50 }
 0xe93   :  { %v1847_v34 = vsel %vm973_vm8, %v1845_v56, 0.0 }
 0xe94   :  { %1848 = vadd.xlane.f32.xlu0 %v1847_v34 }
 0xecd   :  { %v1833_v53 = vpop.xlane.xlu1 %1832 }
 0xf19   :  { %v1841_v13 = vpop.xlane.xlu0 %1840  ;;  %v1857_v20 = vpop.xlane.xlu1 %1856 }
 0xf1a   :  { %v1858_v14 = vsel %vm985_vm9, %v1833_v53, %v1841_v13 }
 0xf1d   :  { %v1849_v19 = vpop.xlane.xlu0 %1848 }
 0xf1e   :  { %v1859_v23 = vsel %vm1288_vm11, %v1858_v14, %v1849_v19 }
 0xf1f   :  { %v1860_v29 = vsel %vm1290_vm12, %v1859_v23, %v1857_v20 }
 0xf20   :  { %v1861_v54 = vadd.f32 %v4429_v8, %v1860_v29  ;;  %v5314_v8 = vld [vmem:[#allocation36_spill] sm:$0xff] }
 0xf22   :  { %vm1862_vm15 = vcmp.ge.f32.partialorder %v1861_v54, 0.0  ;;  %v1863_v27 = vmul.f32 0.01, %v1861_v54 }
 0xf24   :  { %v4678_v43 = vsel %vm1862_vm15, %v1861_v54, %v1863_v27 }
 0xf25   :  { %5313 = vst [vmem:[#allocation13_spill] sm:$0xff] %v4678_v43  ;;  %v1865_v17 = vpack.c.bf16 %v4678_v43, %v4678_v43 }
 0xf27   :  { %3106 = vmatmul.mubr.msk.bf16.vlgmr.msra.gmra.mxu0 %vm254_vm2, %v1865_v17  ;;  %3108 = vmatmul.mubr.msk.bf16.vlgmr.msra.gmra.mxu1 %vm254_vm2, %v1865_v17 }
 0xf28   :  { %1952 = vmatpush1.bf16.msra.mxu0 %v4440_v5  ;;  %1993 = vmatpush1.bf16.msra.mxu1 %v4443_v3  ;;  %v5315_v5 = vld [vmem:[#allocation37_spill] sm:$0xff]  ;;  %v5316_v3 = vld [vmem:[#allocation38_spill] sm:$0xff] }
 0xf29   :  { %1953 = vmatprep.subr.bf16.mxu0 %v4446_v58  ;;  %1994 = vmatprep.subr.bf16.mxu1 %v4449_v12  ;;  %v5317_v58 = vld [vmem:[#allocation39_spill] sm:$0xff]  ;;  %v5318_v12 = vld [vmem:[#allocation40_spill] sm:$0xff] }
 0xf2a   :  { %1983 = vmatprep.mubr.bf16.mxu0 %v5273_v48  ;;  %2024 = vmatprep.mubr.bf16.mxu1 %v5273_v48 }
 0xf2c   :  { %1954 = vmatpush1.bf16.msra.mxu0 %v4454_v45  ;;  %1995 = vmatpush1.bf16.msra.mxu1 %v4457_v18  ;;  %v4710_v45 = vld [vmem:[#allocation2 + $0x20] ss:$16 sps:$4 sm:$0xff]   ;;  %v4713_v18 = vld [vmem:[#allocation2 + $0x28] ss:$16 sps:$4 sm:$0xff]  }
 0xf2d   :  { %1955 = vmatprep.subr.bf16.mxu0 %v4460_v60  ;;  %1996 = vmatprep.subr.bf16.mxu1 %v4463_v61  ;;  %v4716_v60 = vld [vmem:[#allocation2 + $0x4] ss:$16 sps:$4 sm:$0xff]   ;;  %v4722_v61 = vld [vmem:[#allocation2] ss:$16 sps:$4 sm:$0xff]  }
 0xf30   :  { %1956 = vmatpush1.bf16.msra.mxu0 %v4466_v63  ;;  %1997 = vmatpush1.bf16.msra.mxu1 %v4469_v15  ;;  %v4725_v63 = vld [vmem:[#allocation2 + $0x8] ss:$16 sps:$4 sm:$0xff]  }
 0xf31   :  { %1957 = vmatprep.subr.bf16.mxu0 %v4472_v21  ;;  %1998 = vmatprep.subr.bf16.mxu1 %v4475_v16  ;;  %v4729_v15 = vld [vmem:[#allocation6 + $0xac] ss:$12 sps:$4 sm:$0xff]   ;;  %v4740_v16 = vld [vmem:[#allocation6 + $0xa8] ss:$12 sps:$4 sm:$0xff]  }
 0xf32   :  { %v4734_v21 = vld [vmem:[#allocation4 + $0x38] sm:$0xff]  }
 0xf34   :  { %1958 = vmatpush1.bf16.msra.mxu0 %v4478_v39  ;;  %1999 = vmatpush1.bf16.msra.mxu1 %v5314_v8  ;;  %v4743_v39 = vld [vmem:[#allocation6 + $0x94] ss:$12 sps:$4 sm:$0xff]  }
 0xf35   :  { %1959 = vmatprep.subr.bf16.mxu0 %v5315_v5  ;;  %2000 = vmatprep.subr.bf16.mxu1 %v5316_v3 }
 0xf38   :  { %1960 = vmatpush1.bf16.msra.mxu0 %v5317_v58  ;;  %2001 = vmatpush1.bf16.msra.mxu1 %v5318_v12 }
 0xf39   :  { %1961 = vmatprep.subr.bf16.mxu0 %v4496_v49  ;;  %2002 = vmatprep.subr.bf16.mxu1 %v4499_v46  ;;  %v4719_v49 = vld [vmem:[#allocation2 + $0xc] ss:$16 sps:$4 sm:$0xff]   ;;  %v4747_v46 = vld [vmem:[#allocation4 + $0x30] sm:$0xff]  }
 0xf3c   :  { %1962 = vmatpush1.bf16.msra.mxu0 %v4502_v2  ;;  %2003 = vmatpush1.bf16.msra.mxu1 %v4505_v7  ;;  %v4751_v2 = vld [vmem:[#allocation6 + $0x90] ss:$12 sps:$4 sm:$0xff]  }
 0xf3d   :  { %1963 = vmatprep.subr.bf16.mxu0 %v4508_v59  ;;  %2004 = vmatprep.subr.bf16.mxu1 %v4511_v10  ;;  %v4754_v7 = vld [vmem:[#allocation6 + $0x7c] ss:$12 sps:$4 sm:$0xff]   ;;  %v4761_v10 = vld [vmem:[#allocation6 + $0x78] ss:$12 sps:$4 sm:$0xff]  }
 0xf3e   :  { %v4757_v59 = vld [vmem:[#allocation4 + $0x28] sm:$0xff]  }
 0xf40   :  { %1964 = vmatpush1.bf16.msra.mxu0 %v4710_v45  ;;  %2005 = vmatpush1.bf16.msra.mxu1 %v4713_v18 }
 0xf41   :  { %1965 = vmatprep.subr.bf16.mxu0 %v4716_v60  ;;  %2006 = vmatprep.subr.bf16.mxu1 %v4719_v49 }
 0xf44   :  { %1966 = vmatpush1.bf16.msra.mxu0 %v4722_v61  ;;  %2007 = vmatpush1.bf16.msra.mxu1 %v4725_v63 }
 0xf45   :  { %3347 = vmatprep.subr.bf16.mxu0 %v5268_v42  ;;  %2106 = vmatprep.subr.bf16.mxu1 %v4729_v15 }
 0xf47   :  { %1984 = vmatmul.mubr.bf16.vlgmr.msra.gmra.mxu0 %v4567_v24  ;;  %2025 = vmatmul.mubr.bf16.vlgmr.msra.gmra.mxu1 %v4567_v24  ;;  %v4764_v24 = vld [vmem:[#allocation6 + $0x64] ss:$12 sps:$4 sm:$0xff]  }
 0xf48   :  { %3348 = vmatpush3.bf16.msra.mxu0 %v4734_v21  ;;  %3363 = vmatprep.mubr.msk.bf16.mxu0 %vm3908_vm6, %v5268_v42 }
 0xf49   :  { %3349 = vmatprep.subr.bf16.mxu0 %v5268_v42  ;;  %2107 = vmatpush1.bf16.msra.mxu1 %v4740_v16 }
 0xf4a   :  { %2108 = vmatprep.subr.bf16.mxu1 %v4743_v39  ;;  %2138 = vmatprep.mubr.bf16.mxu1 %v5273_v48 }
 0xf4c   :  { %3350 = vmatpush3.bf16.msra.mxu0 %v4747_v46 }
 0xf4d   :  { %3351 = vmatprep.subr.bf16.mxu0 %v5268_v42  ;;  %2109 = vmatpush1.bf16.msra.mxu1 %v4751_v2 }
 0xf4e   :  { %2110 = vmatprep.subr.bf16.mxu1 %v4754_v7 }
 0xf50   :  { %3352 = vmatpush3.bf16.msra.mxu0 %v4757_v59 }
 0xf51   :  { %3353 = vmatprep.subr.bf16.mxu0 %v5268_v42  ;;  %2111 = vmatpush1.bf16.msra.mxu1 %v4761_v10 }
 0xf52   :  { %2112 = vmatprep.subr.bf16.mxu1 %v4764_v24 }
 0xf54   :  { %3354 = vmatpush3.bf16.msra.mxu0 %v4767_v31 }
 0xf55   :  { %3355 = vmatprep.subr.bf16.mxu0 %v5268_v42  ;;  %2113 = vmatpush1.bf16.msra.mxu1 %v4771_v32 }
 0xf56   :  { %2114 = vmatprep.subr.bf16.mxu1 %v4774_v52 }
 0xf58   :  { %3356 = vmatpush3.bf16.msra.mxu0 %v4777_v28 }
 0xf59   :  { %3357 = vmatprep.subr.bf16.mxu0 %v5268_v42  ;;  %2115 = vmatpush1.bf16.msra.mxu1 %v4781_v30 }
 0xf5a   :  { %2116 = vmatprep.subr.bf16.mxu1 %v4784_v35 }
 0xf5c   :  { %3358 = vmatpush3.bf16.msra.mxu0 %v4787_v25 }
 0xf5d   :  { %3359 = vmatprep.subr.bf16.mxu0 %v5268_v42  ;;  %2117 = vmatpush1.bf16.msra.mxu1 %v4791_v47 }
 0xf5e   :  { %2118 = vmatprep.subr.bf16.mxu1 %v4794_v4 }
 0xf60   :  { %3360 = vmatpush3.bf16.msra.mxu0 %v4797_v36 }
 0xf61   :  { %3361 = vmatprep.subr.bf16.mxu0 %v5268_v42  ;;  %2119 = vmatpush1.bf16.msra.mxu1 %v4801_v9 }
 0xf62   :  { %2120 = vmatprep.subr.bf16.mxu1 %v4804_v51 }
 0xf64   :  { %3362 = vmatpush3.bf16.msra.mxu0 %v4807_v50 }
 0xf65   :  { %3367 = vmatprep.subr.bf16.mxu0 %v5268_v42  ;;  %2121 = vmatpush1.bf16.msra.mxu1 %v4811_v26 }
 0xf66   :  { %3387 = vmatprep.subr.bf16.mxu1 %v5268_v42 }
 0xfe7   :  { %v1903_v56 = vpop.f32.mrf.mxu0  ;;  %v1944_v34 = vpop.f32.mrf.mxu1 }
 0xfe9   :  { %v1905_v13 = vpop.f32.mrf.mxu0  ;;  %v1946_v53 = vpop.f32.mrf.mxu1 }
 0xfeb   :  { %v1907_v14 = vpop.f32.mrf.mxu0  ;;  %v1948_v19 = vpop.f32.mrf.mxu1 }
 0xfed   :  { %v1908_v20 = vpop.f32.mrf.mxu0  ;;  %v1949_v23 = vpop.f32.mrf.mxu1 }
0x1007   :  { %v1985_v29 = vpop.f32.mrf.mxu0  ;;  %v2026_v54 = vpop.f32.mrf.mxu1 }
0x1008   :  { %v1986_v27 = vadd.f32 %v1985_v29, %v1903_v56  ;;  %v2027_v19 = vadd.f32 %v2026_v54, %v1944_v34 }
0x1009   :  { %v1987_v17 = vpop.f32.mrf.mxu0  ;;  %v2028_v8 = vpop.f32.mrf.mxu1 }
0x100a   :  { %v2033_v5 = vadd.f32 %v1986_v27, %v4171_v40  ;;  %v1988_v3 = vadd.f32 %v1987_v17, %v1905_v13  ;;  %v2035_v20 = vadd.f32 %v2027_v19, %v4185_v1  ;;  %v2029_v23 = vadd.f32 %v2028_v8, %v1946_v53  ;;  %v4840_v19 = vld [vmem:[#allocation6 + $0x68] ss:$12 sps:$4 sm:$0xff]  }
0x100b   :  { %v1989_v58 = vpop.f32.mrf.mxu0  ;;  %v2030_v12 = vpop.f32.mrf.mxu1  ;;  %5327 = vst [vmem:[#allocation22_spill] sm:$0xff] %v4840_v19 }
0x100c   :  { %v3109_v43 = vmul.f32 -1.442695, %v2033_v5  ;;  %v2034_v26 = vadd.f32 %v1988_v3, %v4175_v44  ;;  %v3111_v56 = vmul.f32 -1.442695, %v2035_v20  ;;  %v2036_v9 = vadd.f32 %v2029_v23, %v5286_v6  ;;  %v4844_v20 = vld [vmem:[#allocation6 + $0x50] ss:$12 sps:$4 sm:$0xff]  }
0x100d   :  { %v1990_v50 = vpop.f32.mrf.mxu0  ;;  %v2031_v51 = vpop.f32.mrf.mxu1  ;;  %5328 = vst [vmem:[#allocation9_spill] sm:$0xff] %v4844_v20  ;;  %v4848_v23 = vld [vmem:[#allocation6 + $0x38] ss:$12 sps:$4 sm:$0xff]  }
0x100e   :  { %3666 = vpow2.f32 %v3109_v43  ;;  %v3110_v14 = vmul.f32 -1.442695, %v2034_v26  ;;  %5329 = vst [vmem:[#allocation23_spill] sm:$0xff] %v4848_v23 }
0x1010   :  { %3668 = vpow2.f32 %v3110_v14  ;;  %v4836_v14 = vld [vmem:[#allocation6 + $0x80] ss:$12 sps:$4 sm:$0xff]  }
0x1011   :  { %3670 = vpow2.f32 %v3111_v56  ;;  %5326 = vst [vmem:[#allocation21_spill] sm:$0xff] %v4836_v14  ;;  %v4852_v56 = vld [vmem:[#allocation6 + $0x20] ss:$12 sps:$4 sm:$0xff]  }
0x1012   :  { %5330 = vst [vmem:[#allocation26_spill] sm:$0xff] %v4852_v56 }
0x101b   :  { %v3667_v29 = vpop.eup %3666 }
0x101c   :  { %v2046_v27 = vadd.f32 1.0, %v3667_v29  ;;  %v4856_v29 = vld [vmem:[#allocation6 + $0x8] ss:$12 sps:$4 sm:$0xff]  }
0x101d   :  { %v3669_v13 = vpop.eup %3668  ;;  %5331 = vst [vmem:[#allocation10_spill] sm:$0xff] %v4856_v29 }
0x101e   :  { %3672 = vrcp.f32 %v2046_v27  ;;  %v2047_v17 = vadd.f32 1.0, %v3669_v13  ;;  %v3671_v50 = vpop.eup %3670  ;;  %v4864_v13 = vld [vmem:[%s5167_s7] ss:$0 sm:$0xff] }
0x101f   :  { %3674 = vtanh.f32 %v2036_v9  ;;  %v2048_v5 = vadd.f32 1.0, %v3671_v50  ;;  %v4826_v9 = vld [vmem:[#allocation6 + $0xb0] ss:$12 sps:$4 sm:$0xff]   ;;  %5332 = vst [vmem:[#allocation27_spill] sm:$0xff] %v4864_v13 }
0x1020   :  { %3676 = vrcp.f32 %v2047_v17  ;;  %5324 = vst [vmem:[#allocation19_spill] sm:$0xff] %v4826_v9 }
0x1021   :  { %3678 = vrcp.f32 %v2048_v5 }
0x102b   :  { %v3673_v51 = vpop.eup %3672 }
0x102c   :  { %v3675_v43 = vpop.eup %3674 }
0x102d   :  { %v3677_v26 = vpop.eup %3676  ;;  %v2057_v54 = vmul.f32 %v3675_v43, %v3673_v51 }
0x102e   :  { %v2056_v34 = vmul.f32 %v3677_v26, %v4564_v55  ;;  %v3679_v8 = vpop.eup %3678  ;;  %v4832_v55 = vld [vmem:[#allocation6 + $0x98] ss:$12 sps:$4 sm:$0xff]  }
0x102f   :  { %5325 = vst [vmem:[#allocation20_spill] sm:$0xff] %v4832_v55 }
0x1030   :  { %v4820_v53 = vadd.f32 %v2057_v54, %v2056_v34  ;;  %v4882_v54 = vld [vmem:[%s5170_s10 + $0x30] sm:$0xff]  }
0x1031   :  { %5334 = vst [vmem:[#allocation29_spill] sm:$0xff] %v4882_v54 }
0x1032   :  { %5323 = vst [vmem:[#allocation18_spill] sm:$0xff] %v4820_v53  ;;  %3680 = vtanh.f32 %v4820_v53 }
0x103f   :  { %v3681_v3 = vpop.eup %3680 }
0x1040   :  { %v2060_v58 = vmul.f32 %v3681_v3, %v3679_v8  ;;  %v4889_v8 = vld [vmem:[%s5170_s10 + $0x28] sm:$0xff]   ;;  %v4910_v3 = vld [vmem:[%s5170_s10 + $0x10] sm:$0xff]  }
0x1041   :  { %5335 = vst [vmem:[#allocation30_spill] sm:$0xff] %v4889_v8  ;;  %5338 = vst [vmem:[#allocation33_spill] sm:$0xff] %v4910_v3 }
0x1042   :  { %v4823_v12 = vpack.c.bf16 %v2060_v58, %v2060_v58  ;;  %v4917_v58 = vld [vmem:[%s5170_s10 + $0x8] sm:$0xff]  }
0x1043   :  { %5339 = vst [vmem:[#allocation36_spill] sm:$0xff] %v4917_v58 }
0x1044   :  { %3364 = vmatmul.mubr.bf16.vlgmr.msra.gmra.mxu0 %v4823_v12 }
0x1045   :  { %3368 = vmatpush3.bf16.msra.mxu0 %v4826_v9  ;;  %3383 = vmatprep.mubr.msk.bf16.mxu0 %vm3908_vm6, %v5268_v42 }
0x1046   :  { %3369 = vmatprep.subr.bf16.mxu0 %v5268_v42 }
0x1049   :  { %3370 = vmatpush3.bf16.msra.mxu0 %v4832_v55 }
0x104a   :  { %3371 = vmatprep.subr.bf16.mxu0 %v5268_v42 }
0x104d   :  { %3372 = vmatpush3.bf16.msra.mxu0 %v4836_v14 }
0x104e   :  { %3373 = vmatprep.subr.bf16.mxu0 %v5268_v42 }
0x1051   :  { %3374 = vmatpush3.bf16.msra.mxu0 %v4840_v19 }
0x1052   :  { %3375 = vmatprep.subr.bf16.mxu0 %v5268_v42 }
0x1055   :  { %3376 = vmatpush3.bf16.msra.mxu0 %v4844_v20 }
0x1056   :  { %3377 = vmatprep.subr.bf16.mxu0 %v5268_v42 }
0x1059   :  { %3378 = vmatpush3.bf16.msra.mxu0 %v4848_v23 }
0x105a   :  { %3379 = vmatprep.subr.bf16.mxu0 %v5268_v42 }
0x105d   :  { %3380 = vmatpush3.bf16.msra.mxu0 %v4852_v56 }
0x105e   :  { %3381 = vmatprep.subr.bf16.mxu0 %v5268_v42 }
0x1061   :  { %3382 = vmatpush3.bf16.msra.mxu0 %v4856_v29 }
0x1062   :  { %3112 = vmatprep.subr.msk.bf16.mxu0 %vm258_vm0, %v5296_v33  ;;  %v4870_v33 = vld [vmem:[%s5170_s10 + $0x38] sm:$0xff]  }
0x1063   :  { %5333 = vst [vmem:[#allocation28_spill] sm:$0xff] %v4870_v33 }
0x1104   :  { %v2096_v27 = vpop.f32.mrf.mxu0 }
0x1105   :  { %v2097_v17 = vadd.f32 %v4864_v13, %v2096_v27  ;;  %v4924_v27 = vld [vmem:[%s5170_s10] sm:$0xff]  }
0x1106   :  { %v3365_v50 = vpop.f32.mrf.mxu0  ;;  %5340 = vst [vmem:[#allocation37_spill] sm:$0xff] %v4924_v27 }
0x1107   :  { %vm2102_vm1 = vcmp.ge.f32.partialorder %v2097_v17, 0.0  ;;  %v2103_v51 = vmul.f32 0.01, %v2097_v17 }
0x1108   :  { %v2099_v43 = vpop.f32.mrf.mxu0 }
0x1109   :  { %v2104_v26 = vsel %vm2102_vm1, %v2097_v17, %v2103_v51  ;;  %v5341_v17 = vld [vmem:[#allocation11_spill] sm:$0xff] }
0x110a   :  { %v2105_v5 = vpack.c.bf16 %v2104_v26, %v2104_v26  ;;  %v3366_v34 = vpop.f32.mrf.mxu0 }
0x110c   :  { %2139 = vmatmul.mubr.bf16.vlgmr.msra.gmra.mxu1 %v2105_v5  ;;  %3384 = vmatmul.mubr.bf16.vlgmr.msra.gmra.mxu0 %v2105_v5  ;;  %v5342_v5 = vld [vmem:[#allocation24_spill] sm:$0xff] }
0x110d   :  { %3388 = vmatpush3.bf16.msra.mxu1 %v4870_v33  ;;  %3403 = vmatprep.mubr.msk.bf16.mxu1 %vm3908_vm6, %v5268_v42 }
0x110e   :  { %3389 = vmatprep.subr.bf16.mxu1 %v5268_v42  ;;  %2447 = vmatpush1.bf16.msra.mxu0 %v5299_v57  ;;  %v4896_v57 = vld [vmem:[%s5170_s10 + $0x20] sm:$0xff]  }
0x110f   :  { %2464 = vmatprep.mubr.bf16.mxu0 %v5273_v48  ;;  %2514 = vmatprep.subr.bf16.mxu0 %v4596_v11  ;;  %5336 = vst [vmem:[#allocation31_spill] sm:$0xff] %v4896_v57  ;;  %v4903_v11 = vld [vmem:[%s5170_s10 + $0x18] sm:$0xff]  }
0x1110   :  { %5337 = vst [vmem:[#allocation32_spill] sm:$0xff] %v4903_v11 }
0x1111   :  { %3390 = vmatpush3.bf16.msra.mxu1 %v4882_v54  ;;  %v5344_v54 = vld [vmem:[#allocation12_spill] sm:$0xff] }
0x1112   :  { %3391 = vmatprep.subr.bf16.mxu1 %v5268_v42 }
0x1115   :  { %3392 = vmatpush3.bf16.msra.mxu1 %v4889_v8 }
0x1116   :  { %3393 = vmatprep.subr.bf16.mxu1 %v5268_v42 }
0x1119   :  { %3394 = vmatpush3.bf16.msra.mxu1 %v4896_v57 }
0x111a   :  { %3395 = vmatprep.subr.bf16.mxu1 %v5268_v42 }
0x111d   :  { %3396 = vmatpush3.bf16.msra.mxu1 %v4903_v11  ;;  %v5343_v11 = vld [vmem:[#allocation25_spill] sm:$0xff] }
0x111e   :  { %3397 = vmatprep.subr.bf16.mxu1 %v5268_v42 }
0x1121   :  { %3398 = vmatpush3.bf16.msra.mxu1 %v4910_v3 }
0x1122   :  { %3399 = vmatprep.subr.bf16.mxu1 %v5268_v42 }
0x1125   :  { %3400 = vmatpush3.bf16.msra.mxu1 %v4917_v58 }
0x1126   :  { %3401 = vmatprep.subr.bf16.mxu1 %v5268_v42 }
0x1129   :  { %3402 = vmatpush3.bf16.msra.mxu1 %v4924_v27 }
0x112a   :  { %3114 = vmatprep.subr.msk.bf16.mxu1 %vm258_vm0, %v5341_v17 }
0x11cc   :  { %v2140_v50 = vpop.f32.mrf.mxu1  ;;  %v4929_v51 = vpop.f32.mrf.mxu0 }
0x11cd   :  { %v2141_v57 = vadd.f32 %v2140_v50, %v5343_v11 }
0x11ce   :  { %v2142_v43 = vpop.f32.mrf.mxu1  ;;  %v3385_v26 = vpop.f32.mrf.mxu0 }
0x11cf   :  { %v2143_v34 = vadd.f32 %v2142_v43, %v5342_v5 }
0x11d0   :  { %v2144_v58 = vpop.f32.mrf.mxu1  ;;  %v2184_v3 = vpop.f32.mrf.mxu0 }
0x11d1   :  { %v2190_v8 = vrot.slane %v2143_v34, %v4162_v37  ;;  %v2198_v33 = vrot.slane %v2143_v34, %v5344_v54 }
0x11d2   :  { %v2145_v13 = vpop.f32.mrf.mxu1  ;;  %v3386_v27 = vpop.f32.mrf.mxu0 }
0x11d3   :  { %v2191_v29 = vmul.f32 %v2190_v8, %v2141_v57  ;;  %v2199_v56 = vmul.f32 %v2198_v33, %v2141_v57 }
0x11d5   :  { %2244 = vrot.lane.b32.xlu1 %v2199_v56, %s3906_s24  ;;  %2237 = vrot.lane.b32.xlu0 %v2191_v29, %s3906_s24  ;;  %v2200_v3 = vsel %vm973_vm8, %v2199_v56, 0.0  ;;  %v2192_v13 = vsel %vm973_vm8, %v2191_v29, 0.0 }
0x11d9   :  { %2275 = vrot.lane.b32.xlu1 %v2191_v29, %s3895_s16  ;;  %2281 = vrot.lane.b32.xlu0 %v2199_v56, %s3895_s16 }
0x11dd   :  { %2312 = vrot.lane.b32.xlu1 %v2191_v29, %s3905_s23  ;;  %2318 = vrot.lane.b32.xlu0 %v2199_v56, %s3905_s23 }
0x11fc   :  { %2201 = vadd.xlane.f32.xlu0 %v2200_v3 }
0x1201   :  { %2193 = vadd.xlane.f32.xlu1 %v2192_v13 }
0x1247   :  { %v2245_v8 = vpop.permute.xlu1 %2244  ;;  %v2238_v33 = vpop.permute.xlu0 %2237 }
0x1248   :  { %v2247_v57 = vsel %vm973_vm8, %v2245_v8, 0.0  ;;  %v2240_v58 = vsel %vm973_vm8, %v2238_v33, 0.0 }
0x1249   :  { %2241 = vadd.xlane.f32.xlu0 %v2240_v58  ;;  %2248 = vadd.xlane.f32.xlu1 %v2247_v57 }
0x124b   :  { %v2276_v27 = vpop.permute.xlu1 %2275  ;;  %v2282_v17 = vpop.permute.xlu0 %2281 }
0x124c   :  { %v2284_v50 = vsel %vm973_vm8, %v2282_v17, 0.0  ;;  %v2278_v43 = vsel %vm973_vm8, %v2276_v27, 0.0 }
0x124d   :  { %2279 = vadd.xlane.f32.xlu0 %v2278_v43  ;;  %2285 = vadd.xlane.f32.xlu1 %v2284_v50 }
0x124f   :  { %v2313_v56 = vpop.permute.xlu1 %2312  ;;  %v2319_v26 = vpop.permute.xlu0 %2318 }
0x1250   :  { %v2321_v29 = vsel %vm973_vm8, %v2319_v26, 0.0  ;;  %v2315_v34 = vsel %vm973_vm8, %v2313_v56, 0.0 }
0x1251   :  { %2316 = vadd.xlane.f32.xlu0 %v2315_v34  ;;  %2322 = vadd.xlane.f32.xlu1 %v2321_v29 }
0x1285   :  { %v2202_v3 = vpop.xlane.xlu0 %2201 }
0x128a   :  { %v2194_v13 = vpop.xlane.xlu1 %2193 }
0x128b   :  { %v2203_v8 = vsel %vm985_vm9, %v2194_v13, %v2202_v3 }
0x128c   :  { %v2204_v33 = vmul.f32 0.17677669, %v2203_v8 }
0x128e   :  { %v2205_v57 = vsel %vm988_vm10, %v2204_v33, -inf }
0x128f   :  { %2206 = vmax.xlane.f32.xlu0 %v2205_v57 }
0x12d2   :  { %v2242_v58 = vpop.xlane.xlu0 %2241  ;;  %v2249_v27 = vpop.xlane.xlu1 %2248 }
0x12d3   :  { %v2250_v17 = vsel %vm985_vm9, %v2242_v58, %v2249_v27 }
0x12d4   :  { %v2251_v50 = vmul.f32 0.17677669, %v2250_v17 }
0x12d6   :  { %v2280_v43 = vpop.xlane.xlu0 %2279  ;;  %v2286_v11 = vpop.xlane.xlu1 %2285  ;;  %v2252_v26 = vsel %vm988_vm10, %v2251_v50, -inf }
0x12d7   :  { %v2287_v56 = vsel %vm985_vm9, %v2280_v43, %v2286_v11  ;;  %2253 = vmax.xlane.f32.xlu1 %v2252_v26 }
0x12d8   :  { %v2288_v29 = vmul.f32 0.17677669, %v2287_v56 }
0x12da   :  { %v2317_v34 = vpop.xlane.xlu0 %2316  ;;  %v2323_v5 = vpop.xlane.xlu1 %2322  ;;  %v2289_v3 = vsel %vm988_vm10, %v2288_v29, -inf }
0x12db   :  { %v2324_v13 = vsel %vm985_vm9, %v2317_v34, %v2323_v5  ;;  %2290 = vmax.xlane.f32.xlu0 %v2289_v3 }
0x12dc   :  { %v2325_v8 = vmul.f32 0.17677669, %v2324_v13 }
0x12de   :  { %v2326_v57 = vsel %vm988_vm10, %v2325_v8, -inf }
0x12df   :  { %2327 = vmax.xlane.f32.xlu1 %v2326_v57 }
0x1318   :  { %v2207_v58 = vpop.xlane.xlu0 %2206 }
0x1319   :  { %v2208_v27 = vsub.f32 %v2204_v33, %v2207_v58 }
0x131b   :  { %v2209_v17 = vmul.f32 1.442695, %v2208_v27 }
0x131d   :  { %3682 = vpow2.f32 %v2209_v17 }
0x132a   :  { %v3683_v23 = vpop.eup %3682 }
0x132b   :  { %v2211_v11 = vsel %vm988_vm10, %v3683_v23, 0.0 }
0x132c   :  { %2212 = vadd.xlane.f32.xlu0 %v2211_v11 }
0x1360   :  { %v2254_v43 = vpop.xlane.xlu1 %2253 }
0x1361   :  { %v2255_v26 = vsub.f32 %v2251_v50, %v2254_v43 }
0x1363   :  { %v2256_v56 = vmul.f32 1.442695, %v2255_v26 }
0x1364   :  { %v2291_v20 = vpop.xlane.xlu0 %2290 }
0x1365   :  { %3684 = vpow2.f32 %v2256_v56  ;;  %v2292_v19 = vsub.f32 %v2288_v29, %v2291_v20 }
0x1367   :  { %v2293_v5 = vmul.f32 1.442695, %v2292_v19 }
0x1368   :  { %v2328_v34 = vpop.xlane.xlu1 %2327 }
0x1369   :  { %3686 = vpow2.f32 %v2293_v5  ;;  %v2329_v3 = vsub.f32 %v2325_v8, %v2328_v34  ;;  %v5345_v5 = vmov 1  }
0x136b   :  { %v2330_v13 = vmul.f32 1.442695, %v2329_v3 }
0x136d   :  { %3688 = vpow2.f32 %v2330_v13 }
0x1372   :  { %v3685_v57 = vpop.eup %3684 }
0x1373   :  { %v2258_v33 = vsel %vm988_vm10, %v3685_v57, 0.0 }
0x1374   :  { %2259 = vadd.xlane.f32.xlu1 %v2258_v33 }
0x1376   :  { %v3687_v58 = vpop.eup %3686 }
0x1377   :  { %v2295_v27 = vsel %vm988_vm10, %v3687_v58, 0.0 }
0x1378   :  { %2296 = vadd.xlane.f32.xlu0 %v2295_v27 }
0x137a   :  { %v3689_v17 = vpop.eup %3688 }
0x137b   :  { %v2332_v50 = vsel %vm988_vm10, %v3689_v17, 0.0 }
0x137c   :  { %2333 = vadd.xlane.f32.xlu1 %v2332_v50 }
0x13b5   :  { %v2213_v11 = vpop.xlane.xlu0 %2212 }
0x13b6   :  { %3690 = vrcp.f32 %v2213_v11  ;;  %v5346_v11 = vld [vmem:[#allocation34_spill] sm:$0xff] }
0x13c3   :  { %v3691_v19 = vpop.eup %3690 }
0x13c4   :  { %v2215_v20 = vmul.f32 %v3691_v19, %v3683_v23 }
0x13c6   :  { %2218 = vperm.xlu0 %3496, %v2215_v20   ;;  %2227 = vperm.xlu1 %3497, %v2215_v20  }
0x13ca   :  { %3498 = vset.pattern.permute.xlu1 %v5273_v48 }
0x13fd   :  { %v2260_v29 = vpop.xlane.xlu1 %2259 }
0x13fe   :  { %3692 = vrcp.f32 %v2260_v29 }
0x1401   :  { %v2297_v8 = vpop.xlane.xlu0 %2296 }
0x1402   :  { %3694 = vrcp.f32 %v2297_v8 }
0x1405   :  { %v2334_v56 = vpop.xlane.xlu1 %2333 }
0x1406   :  { %3696 = vrcp.f32 %v2334_v56 }
0x140b   :  { %v3693_v43 = vpop.eup %3692 }
0x140c   :  { %v2262_v26 = vmul.f32 %v3693_v43, %v3685_v57 }
0x140e   :  { %2265 = vperm.xlu1 %3498, %v2262_v26  }
0x140f   :  { %v3695_v34 = vpop.eup %3694 }
0x1410   :  { %v2299_v3 = vmul.f32 %v3695_v34, %v3687_v58  ;;  %v2182_v58 = vadd.f32 %v4929_v51, %v5346_v11 }
0x1412   :  { %3499 = vset.pattern.permute.xlu1 %v5345_v5  ;;  %v2233_v20 = vrot.slane %v2182_v58, %v5344_v54  ;;  %v2224_v8 = vrot.slane %v2182_v58, %v4162_v37 }
0x1413   :  { %2270 = vperm.xlu1 %3499, %v2262_v26   ;;  %v3697_v23 = vpop.eup %3696 }
0x1414   :  { %v2336_v13 = vmul.f32 %v3697_v23, %v3689_v17 }
0x1417   :  { %3500 = vset.pattern.permute.xlu1 %v5273_v48 }
0x1418   :  { %2302 = vperm.xlu1 %3500, %v2299_v3  }
0x141c   :  { %3501 = vset.pattern.permute.xlu1 %v5345_v5 }
0x141d   :  { %2307 = vperm.xlu1 %3501, %v2299_v3  }
0x1421   :  { %3502 = vset.pattern.permute.xlu1 %v5273_v48 }
0x1422   :  { %2339 = vperm.xlu1 %3502, %v2336_v13  }
0x1426   :  { %3503 = vset.pattern.permute.xlu1 %v5345_v5 }
0x1427   :  { %2344 = vperm.xlu1 %3503, %v2336_v13  }
0x1441   :  { %v2228_v57 = vpop.permute.xlu1 %2227  ;;  %v2219_v29 = vpop.permute.xlu0 %2218 }
0x1442   :  { %v2225_v56 = vmul.f32 %v2224_v8, %v2219_v29  ;;  %v2234_v34 = vmul.f32 %v2233_v20, %v2228_v57  ;;  %v3803_v57 = vld [vmem:[#allocation2 + $0xec] ss:$16 sps:$4 sm:$0xff]  }
0x1444   :  { %v2235_v55 = vadd.f32 %v2234_v34, %v2225_v56 }
0x1489   :  { %v2266_v33 = vpop.permute.xlu1 %2265 }
0x148a   :  { %v2268_v3 = vmul.f32 %v2266_v33, %v2224_v8 }
0x148e   :  { %v2271_v27 = vpop.permute.xlu1 %2270 }
0x148f   :  { %v2273_v17 = vmul.f32 %v2271_v27, %v2233_v20 }
0x1491   :  { %v2274_v13 = vadd.f32 %v2273_v17, %v2268_v3 }
0x1493   :  { %v2303_v50 = vpop.permute.xlu1 %2302  ;;  %v2349_v51 = vsel %vm206_vm3, %v2235_v55, %v2274_v13 }
0x1494   :  { %v2305_v23 = vmul.f32 %v2303_v50, %v2224_v8 }
0x1498   :  { %v2308_v19 = vpop.permute.xlu1 %2307 }
0x1499   :  { %v2310_v26 = vmul.f32 %v2308_v19, %v2233_v20 }
0x149b   :  { %v2311_v5 = vadd.f32 %v2310_v26, %v2305_v23 }
0x149d   :  { %v2340_v43 = vpop.permute.xlu1 %2339  ;;  %v2350_v54 = vsel %vm208_vm4, %v2349_v51, %v2311_v5 }
0x149e   :  { %v2342_v9 = vmul.f32 %v2340_v43, %v2224_v8 }
0x14a2   :  { %v2345_v14 = vpop.permute.xlu1 %2344 }
0x14a3   :  { %v2347_v53 = vmul.f32 %v2345_v14, %v2233_v20  ;;  %v4979_v14 = vld [vmem:[%s5171_s11] ss:$0 sm:$0xff] }
0x14a5   :  { %v2348_v11 = vadd.f32 %v2347_v53, %v2342_v9 }
0x14a7   :  { %v2351_v58 = vsel %vm210_vm5, %v2350_v54, %v2348_v11 }
0x14a8   :  { %v2352_v27 = vpack.c.bf16 %v2351_v58, %v2351_v58 }
0x14aa   :  { %3404 = vmatmul.mubr.bf16.vlgmr.msra.gmra.mxu1 %v2352_v27  ;;  %v4999_v27 = vld [vmem:[%s5173_s13] ss:$0 sm:$0xff]  ;;  %s3910_s13 = smov 8  }
0x14ab   :  { %2488 = vmatpush1.bf16.msra.mxu1 %v4037_v22  ;;  %2505 = vmatprep.mubr.bf16.mxu1 %v5273_v48 }
0x14ac   :  { %2555 = vmatprep.subr.bf16.mxu1 %v3803_v57 }
0x156a   :  { %v2387_v33 = vpop.f32.mrf.mxu1 }
0x156b   :  { %v2388_v53 = vadd.f32 %v4979_v14, %v2387_v33 }
0x156c   :  { %v3405_v9 = vpop.f32.mrf.mxu1 }
0x156d   :  { %v2405_v55 = vmul.f32 %v2388_v53, %v4406_v41  ;;  %v2397_v54 = vmul.f32 %v2388_v53, %v4399_v62  ;;  %v2413_v50 = vmul.f32 %v2388_v53, %v4411_v38  ;;  %v2393_v11 = vmul.f32 %v2388_v53, %v4418_v0 }
0x156e   :  { %v2390_v5 = vpop.f32.mrf.mxu1 }
0x156f   :  { %2407 = vrot.lane.b32.xlu1 %v2405_v55, %s3895_s16  ;;  %2399 = vrot.lane.b32.xlu0 %v2397_v54, %s3906_s24  ;;  %v2394_v19 = vsel %vm973_vm8, %v2393_v11, 0.0  ;;  %v3806_v55 = vld [vmem:[#allocation2 + $0xe0] ss:$16 sps:$4 sm:$0xff]   ;;  %v3807_v54 = vld [vmem:[#allocation2 + $0xe8] ss:$16 sps:$4 sm:$0xff]  }
0x1570   :  { %v3406_v22 = vpop.f32.mrf.mxu1  ;;  %v3808_v5 = vld [vmem:[#allocation2 + $0xc4] ss:$16 sps:$4 sm:$0xff]   ;;  %v3811_v11 = vld [vmem:[#allocation2 + $0xc8] ss:$16 sps:$4 sm:$0xff]  }
0x1571   :  { %v3809_v22 = vld [vmem:[#allocation2 + $0xcc] ss:$16 sps:$4 sm:$0xff]  }
0x1573   :  { %2415 = vrot.lane.b32.xlu0 %v2413_v50, %s3905_s23  ;;  %v3810_v50 = vld [vmem:[#allocation2 + $0xc0] ss:$16 sps:$4 sm:$0xff]  }
0x1593   :  { %2395 = vadd.xlane.f32.xlu1 %v2394_v19  ;;  %v3812_v19 = vld [vmem:[#allocation2 + $0xa4] ss:$16 sps:$4 sm:$0xff]  }
0x15e1   :  { %v2400_v20 = vpop.permute.xlu0 %2399  ;;  %v2408_v8 = vpop.permute.xlu1 %2407 }
0x15e2   :  { %v2402_v29 = vsel %vm973_vm8, %v2400_v20, 0.0  ;;  %v2410_v43 = vsel %vm973_vm8, %v2408_v8, 0.0  ;;  %v3813_v20 = vld [vmem:[#allocation2 + $0xac] ss:$16 sps:$4 sm:$0xff]   ;;  %v3815_v8 = vld [vmem:[#allocation2 + $0xa8] ss:$16 sps:$4 sm:$0xff]  }
0x15e3   :  { %2403 = vadd.xlane.f32.xlu0 %v2402_v29  ;;  %v3814_v29 = vld [vmem:[#allocation2 + $0xa0] ss:$16 sps:$4 sm:$0xff]  }
0x15e5   :  { %v2416_v17 = vpop.permute.xlu0 %2415 }
0x15e6   :  { %v2418_v26 = vsel %vm973_vm8, %v2416_v17, 0.0  ;;  %v3816_v17 = vld [vmem:[#allocation2 + $0x84] ss:$16 sps:$4 sm:$0xff]  }
0x15e7   :  { %2411 = vadd.xlane.f32.xlu0 %v2410_v43  ;;  %2419 = vadd.xlane.f32.xlu1 %v2418_v26  ;;  %v3817_v43 = vld [vmem:[#allocation2 + $0x8c] ss:$16 sps:$4 sm:$0xff]   ;;  %v3818_v26 = vld [vmem:[#allocation2 + $0x80] ss:$16 sps:$4 sm:$0xff]  }
0x161c   :  { %v2396_v56 = vpop.xlane.xlu1 %2395 }
0x166c   :  { %v2404_v34 = vpop.xlane.xlu0 %2403 }
0x166d   :  { %v2421_v3 = vsel %vm985_vm9, %v2396_v56, %v2404_v34  ;;  %v3819_v56 = vld [vmem:[#allocation2 + $0x88] ss:$16 sps:$4 sm:$0xff]   ;;  %v3820_v34 = vld [vmem:[#allocation2 + $0x64] ss:$16 sps:$4 sm:$0xff]  }
0x1670   :  { %v2412_v23 = vpop.xlane.xlu0 %2411  ;;  %v2420_v13 = vpop.xlane.xlu1 %2419 }
0x1671   :  { %v2422_v51 = vsel %vm1288_vm11, %v2421_v3, %v2412_v23  ;;  %v3821_v3 = vld [vmem:[#allocation2 + $0x6c] ss:$16 sps:$4 sm:$0xff]   ;;  %v3822_v23 = vld [vmem:[#allocation2 + $0x60] ss:$16 sps:$4 sm:$0xff]  }
0x1672   :  { %v2423_v58 = vsel %vm1290_vm12, %v2422_v51, %v2420_v13  ;;  %v3823_v13 = vld [vmem:[#allocation2 + $0x68] ss:$16 sps:$4 sm:$0xff]   ;;  %v3824_v51 = vld [vmem:[#allocation2 + $0x44] ss:$16 sps:$4 sm:$0xff]  }
0x1673   :  { %v2424_v57 = vadd.f32 %v4999_v27, %v2423_v58  ;;  %v3825_v58 = vld [vmem:[#allocation2 + $0x4c] ss:$16 sps:$4 sm:$0xff]  }
0x1675   :  { %vm2425_vm0 = vcmp.ge.f32.partialorder %v2424_v57, 0.0  ;;  %v2426_v33 = vmul.f32 0.01, %v2424_v57 }
0x1677   :  { %v5002_v53 = vsel %vm2425_vm0, %v2424_v57, %v2426_v33  ;;  %v3826_v57 = vld [vmem:[#allocation2 + $0x40] ss:$16 sps:$4 sm:$0xff]   ;;  %v3827_v33 = vld [vmem:[#allocation2 + $0x48] ss:$16 sps:$4 sm:$0xff]  }
0x1678   :  { %v2428_v9 = vpack.c.bf16 %v5002_v53, %v5002_v53 }
0x167a   :  { %3113 = vmatmul.mubr.msk.bf16.vlgmr.msra.gmra.mxu0 %vm254_vm2, %v2428_v9  ;;  %3115 = vmatmul.mubr.msk.bf16.vlgmr.msra.gmra.mxu1 %vm254_vm2, %v2428_v9  ;;  %v3828_v9 = vld [vmem:[#allocation2 + $0x24] ss:$16 sps:$4 sm:$0xff]  }
0x167b   :  { %2515 = vmatpush1.bf16.msra.mxu0 %v3806_v55  ;;  %2556 = vmatpush1.bf16.msra.mxu1 %v3807_v54  ;;  %v3829_v55 = vld [vmem:[#allocation2 + $0x2c] ss:$16 sps:$4 sm:$0xff]  }
0x167c   :  { %2516 = vmatprep.subr.bf16.mxu0 %v3808_v5  ;;  %2557 = vmatprep.subr.bf16.mxu1 %v3809_v22 }
0x167d   :  { %2546 = vmatprep.mubr.bf16.mxu0 %v5273_v48  ;;  %2587 = vmatprep.mubr.bf16.mxu1 %v5273_v48 }
0x167f   :  { %2517 = vmatpush1.bf16.msra.mxu0 %v3810_v50  ;;  %2558 = vmatpush1.bf16.msra.mxu1 %v3811_v11 }
0x1680   :  { %2518 = vmatprep.subr.bf16.mxu0 %v3812_v19  ;;  %2559 = vmatprep.subr.bf16.mxu1 %v3813_v20 }
0x1683   :  { %2519 = vmatpush1.bf16.msra.mxu0 %v3814_v29  ;;  %2560 = vmatpush1.bf16.msra.mxu1 %v3815_v8 }
0x1684   :  { %2520 = vmatprep.subr.bf16.mxu0 %v3816_v17  ;;  %2561 = vmatprep.subr.bf16.mxu1 %v3817_v43  ;;  %v5351_v43 = vld [vmem:[#allocation18_spill] sm:$0xff] }
0x1687   :  { %2521 = vmatpush1.bf16.msra.mxu0 %v3818_v26  ;;  %2562 = vmatpush1.bf16.msra.mxu1 %v3819_v56 }
0x1688   :  { %2522 = vmatprep.subr.bf16.mxu0 %v3820_v34  ;;  %2563 = vmatprep.subr.bf16.mxu1 %v3821_v3 }
0x168b   :  { %2523 = vmatpush1.bf16.msra.mxu0 %v3822_v23  ;;  %2564 = vmatpush1.bf16.msra.mxu1 %v3823_v13  ;;  %v5352_v13 = vld [vmem:[#allocation19_spill] sm:$0xff] }
0x168c   :  { %2524 = vmatprep.subr.bf16.mxu0 %v3824_v51  ;;  %2565 = vmatprep.subr.bf16.mxu1 %v3825_v58  ;;  %v5353_v51 = vld [vmem:[#allocation20_spill] sm:$0xff]  ;;  %v5354_v58 = vld [vmem:[#allocation21_spill] sm:$0xff] }
0x168f   :  { %2525 = vmatpush1.bf16.msra.mxu0 %v3826_v57  ;;  %2566 = vmatpush1.bf16.msra.mxu1 %v3827_v33  ;;  %v5355_v57 = vld [vmem:[#allocation22_spill] sm:$0xff]  ;;  %v5356_v33 = vld [vmem:[#allocation9_spill] sm:$0xff] }
0x1690   :  { %2526 = vmatprep.subr.bf16.mxu0 %v3828_v9  ;;  %2567 = vmatprep.subr.bf16.mxu1 %v3829_v55  ;;  %v5357_v9 = vld [vmem:[#allocation23_spill] sm:$0xff]  ;;  %v5358_v55 = vld [vmem:[#allocation26_spill] sm:$0xff] }
0x1693   :  { %2527 = vmatpush1.bf16.msra.mxu0 %v4710_v45  ;;  %2568 = vmatpush1.bf16.msra.mxu1 %v4713_v18  ;;  %v5348_v45 = vld [vmem:[#allocation15_spill] sm:$0xff]  ;;  %v5349_v18 = vld [vmem:[#allocation16_spill] sm:$0xff] }
0x1694   :  { %2528 = vmatprep.subr.bf16.mxu0 %v4716_v60  ;;  %2569 = vmatprep.subr.bf16.mxu1 %v4719_v49  ;;  %v5350_v60 = vld [vmem:[#allocation17_spill] sm:$0xff] }
0x1697   :  { %2529 = vmatpush1.bf16.msra.mxu0 %v4722_v61  ;;  %2570 = vmatpush1.bf16.msra.mxu1 %v4725_v63 }
0x1698   :  { %3407 = vmatprep.subr.bf16.mxu0 %v5268_v42  ;;  %2669 = vmatprep.subr.bf16.mxu1 %v4729_v15 }
0x169a   :  { %2547 = vmatmul.mubr.bf16.vlgmr.msra.gmra.mxu0 %v4823_v12  ;;  %2588 = vmatmul.mubr.bf16.vlgmr.msra.gmra.mxu1 %v4823_v12 }
0x169b   :  { %3408 = vmatpush3.bf16.msra.mxu0 %v4734_v21  ;;  %3423 = vmatprep.mubr.msk.bf16.mxu0 %vm3908_vm6, %v5268_v42 }
0x169c   :  { %3409 = vmatprep.subr.bf16.mxu0 %v5268_v42  ;;  %2670 = vmatpush1.bf16.msra.mxu1 %v4740_v16 }
0x169d   :  { %2671 = vmatprep.subr.bf16.mxu1 %v4743_v39  ;;  %2701 = vmatprep.mubr.bf16.mxu1 %v5273_v48  ;;  %v5347_v48 = vld [vmem:[#allocation14_spill] sm:$0xff] }
0x169f   :  { %3410 = vmatpush3.bf16.msra.mxu0 %v4747_v46 }
0x16a0   :  { %3411 = vmatprep.subr.bf16.mxu0 %v5268_v42  ;;  %2672 = vmatpush1.bf16.msra.mxu1 %v4751_v2 }
0x16a1   :  { %2673 = vmatprep.subr.bf16.mxu1 %v4754_v7 }
0x16a3   :  { %3412 = vmatpush3.bf16.msra.mxu0 %v4757_v59 }
0x16a4   :  { %3413 = vmatprep.subr.bf16.mxu0 %v5268_v42  ;;  %2674 = vmatpush1.bf16.msra.mxu1 %v4761_v10 }
0x16a5   :  { %2675 = vmatprep.subr.bf16.mxu1 %v4764_v24 }
0x16a7   :  { %3414 = vmatpush3.bf16.msra.mxu0 %v4767_v31 }
0x16a8   :  { %3415 = vmatprep.subr.bf16.mxu0 %v5268_v42  ;;  %2676 = vmatpush1.bf16.msra.mxu1 %v4771_v32 }
0x16a9   :  { %2677 = vmatprep.subr.bf16.mxu1 %v4774_v52 }
0x16ab   :  { %3416 = vmatpush3.bf16.msra.mxu0 %v4777_v28 }
0x16ac   :  { %3417 = vmatprep.subr.bf16.mxu0 %v5268_v42  ;;  %2678 = vmatpush1.bf16.msra.mxu1 %v4781_v30 }
0x16ad   :  { %2679 = vmatprep.subr.bf16.mxu1 %v4784_v35 }
0x16af   :  { %3418 = vmatpush3.bf16.msra.mxu0 %v4787_v25 }
0x16b0   :  { %3419 = vmatprep.subr.bf16.mxu0 %v5268_v42  ;;  %2680 = vmatpush1.bf16.msra.mxu1 %v4791_v47 }
0x16b1   :  { %2681 = vmatprep.subr.bf16.mxu1 %v4794_v4 }
0x16b3   :  { %3420 = vmatpush3.bf16.msra.mxu0 %v4797_v36 }
0x16b4   :  { %3421 = vmatprep.subr.bf16.mxu0 %v5268_v42  ;;  %2682 = vmatpush1.bf16.msra.mxu1 %v5347_v48  ;;  %v5359_v48 = vld [vmem:[#allocation10_spill] sm:$0xff] }
0x16b5   :  { %2683 = vmatprep.subr.bf16.mxu1 %v5348_v45 }
0x16b7   :  { %3422 = vmatpush3.bf16.msra.mxu0 %v5349_v18  ;;  %v5360_v18 = vld [vmem:[#allocation27_spill] sm:$0xff] }
0x16b8   :  { %3427 = vmatprep.subr.bf16.mxu0 %v5268_v42  ;;  %2684 = vmatpush1.bf16.msra.mxu1 %v5350_v60 }
0x16b9   :  { %3447 = vmatprep.subr.bf16.mxu1 %v5268_v42 }
0x173a   :  { %v2466_v49 = vpop.f32.mrf.mxu0  ;;  %v2507_v61 = vpop.f32.mrf.mxu1 }
0x173c   :  { %v2468_v63 = vpop.f32.mrf.mxu0  ;;  %v2509_v15 = vpop.f32.mrf.mxu1 }
0x173e   :  { %v2470_v21 = vpop.f32.mrf.mxu0  ;;  %v2511_v16 = vpop.f32.mrf.mxu1 }
0x1740   :  { %v2471_v39 = vpop.f32.mrf.mxu0  ;;  %v2512_v46 = vpop.f32.mrf.mxu1 }
0x1741   :  { %v5361_v39 = vld [vmem:[#allocation28_spill] sm:$0xff]  ;;  %v5362_v46 = vld [vmem:[#allocation29_spill] sm:$0xff] }
0x175a   :  { %v2548_v2 = vpop.f32.mrf.mxu0  ;;  %v2589_v7 = vpop.f32.mrf.mxu1 }
0x175b   :  { %v2549_v59 = vadd.f32 %v2548_v2, %v2466_v49  ;;  %v2590_v36 = vadd.f32 %v2589_v7, %v2507_v61  ;;  %v5363_v2 = vld [vmem:[#allocation30_spill] sm:$0xff]  ;;  %v5364_v7 = vld [vmem:[#allocation31_spill] sm:$0xff] }
0x175c   :  { %v2550_v10 = vpop.f32.mrf.mxu0  ;;  %v2591_v24 = vpop.f32.mrf.mxu1 }
0x175d   :  { %v2596_v31 = vadd.f32 %v2549_v59, %v4171_v40  ;;  %v2551_v32 = vadd.f32 %v2550_v10, %v2468_v63  ;;  %v2598_v12 = vadd.f32 %v2590_v36, %v4185_v1  ;;  %v2592_v54 = vadd.f32 %v2591_v24, %v2509_v15  ;;  %v5365_v59 = vld [vmem:[#allocation32_spill] sm:$0xff]  ;;  %v5366_v10 = vld [vmem:[#allocation33_spill] sm:$0xff] }
0x175e   :  { %v2552_v52 = vpop.f32.mrf.mxu0  ;;  %v2593_v28 = vpop.f32.mrf.mxu1  ;;  %v5367_v24 = vld [vmem:[#allocation36_spill] sm:$0xff]  ;;  %v5370_v36 = vld [vmem:[#allocation25_spill] sm:$0xff] }
0x175f   :  { %v3116_v30 = vmul.f32 -1.442695, %v2596_v31  ;;  %v2597_v35 = vadd.f32 %v2551_v32, %v4175_v44  ;;  %v3118_v5 = vmul.f32 -1.442695, %v2598_v12  ;;  %v2599_v50 = vadd.f32 %v2592_v54, %v5286_v6  ;;  %v5368_v31 = vld [vmem:[#allocation37_spill] sm:$0xff] }
0x1760   :  { %v2553_v25 = vpop.f32.mrf.mxu0  ;;  %v2594_v47 = vpop.f32.mrf.mxu1 }
0x1761   :  { %3698 = vpow2.f32 %v3116_v30  ;;  %v3117_v4 = vmul.f32 -1.442695, %v2597_v35  ;;  %v5369_v35 = vld [vmem:[#allocation24_spill] sm:$0xff] }
0x1763   :  { %3700 = vpow2.f32 %v3117_v4 }
0x1764   :  { %3702 = vpow2.f32 %v3118_v5 }
0x176e   :  { %v3699_v22 = vpop.eup %3698 }
0x176f   :  { %v2609_v40 = vadd.f32 1.0, %v3699_v22 }
0x1770   :  { %v3701_v11 = vpop.eup %3700 }
0x1771   :  { %3704 = vrcp.f32 %v2609_v40  ;;  %v2610_v19 = vadd.f32 1.0, %v3701_v11  ;;  %v3703_v44 = vpop.eup %3702  ;;  %v5371_v40 = vld [vmem:[#allocation12_spill] sm:$0xff] }
0x1772   :  { %3706 = vtanh.f32 %v2599_v50  ;;  %v2611_v17 = vadd.f32 1.0, %v3703_v44 }
0x1773   :  { %3708 = vrcp.f32 %v2610_v19 }
0x1774   :  { %3710 = vrcp.f32 %v2611_v17 }
0x177e   :  { %v3705_v20 = vpop.eup %3704 }
0x177f   :  { %v3707_v29 = vpop.eup %3706 }
0x1780   :  { %v3709_v8 = vpop.eup %3708  ;;  %v2620_v1 = vmul.f32 %v3707_v29, %v3705_v20 }
0x1781   :  { %v2619_v26 = vmul.f32 %v3709_v8, %v5351_v43  ;;  %v3711_v34 = vpop.eup %3710 }
0x1783   :  { %v2621_v56 = vadd.f32 %v2620_v1, %v2619_v26 }
0x1785   :  { %3712 = vtanh.f32 %v2621_v56 }
0x1792   :  { %v3713_v6 = vpop.eup %3712 }
0x1793   :  { %v2623_v3 = vmul.f32 %v3713_v6, %v3711_v34 }
0x1795   :  { %v2624_v23 = vpack.c.bf16 %v2623_v3, %v2623_v3 }
0x1797   :  { %3424 = vmatmul.mubr.bf16.vlgmr.msra.gmra.mxu0 %v2624_v23 }
0x1798   :  { %3428 = vmatpush3.bf16.msra.mxu0 %v5352_v13  ;;  %3443 = vmatprep.mubr.msk.bf16.mxu0 %vm3908_vm6, %v5268_v42 }
0x1799   :  { %3429 = vmatprep.subr.bf16.mxu0 %v5268_v42 }
0x179c   :  { %3430 = vmatpush3.bf16.msra.mxu0 %v5353_v51 }
0x179d   :  { %3431 = vmatprep.subr.bf16.mxu0 %v5268_v42 }
0x17a0   :  { %3432 = vmatpush3.bf16.msra.mxu0 %v5354_v58 }
0x17a1   :  { %3433 = vmatprep.subr.bf16.mxu0 %v5268_v42 }
0x17a4   :  { %3434 = vmatpush3.bf16.msra.mxu0 %v5355_v57 }
0x17a5   :  { %3435 = vmatprep.subr.bf16.mxu0 %v5268_v42 }
0x17a8   :  { %3436 = vmatpush3.bf16.msra.mxu0 %v5356_v33 }
0x17a9   :  { %3437 = vmatprep.subr.bf16.mxu0 %v5268_v42 }
0x17ac   :  { %3438 = vmatpush3.bf16.msra.mxu0 %v5357_v9 }
0x17ad   :  { %3439 = vmatprep.subr.bf16.mxu0 %v5268_v42 }
0x17b0   :  { %3440 = vmatpush3.bf16.msra.mxu0 %v5358_v55 }
0x17b1   :  { %3441 = vmatprep.subr.bf16.mxu0 %v5268_v42 }
0x17b4   :  { %3442 = vmatpush3.bf16.msra.mxu0 %v5359_v48 }
0x1857   :  { %v2659_v45 = vpop.f32.mrf.mxu0 }
0x1858   :  { %v2660_v60 = vadd.f32 %v5360_v18, %v2659_v45 }
0x1859   :  { %v3425_v49 = vpop.f32.mrf.mxu0 }
0x185a   :  { %vm2665_vm7 = vcmp.ge.f32.partialorder %v2660_v60, 0.0  ;;  %v2666_v61 = vmul.f32 0.01, %v2660_v60 }
0x185b   :  { %v2662_v63 = vpop.f32.mrf.mxu0 }
0x185c   :  { %v2667_v15 = vsel %vm2665_vm7, %v2660_v60, %v2666_v61 }
0x185d   :  { %v2668_v21 = vpack.c.bf16 %v2667_v15, %v2667_v15  ;;  %v3426_v16 = vpop.f32.mrf.mxu0 }
0x185f   :  { %2702 = vmatmul.mubr.bf16.vlgmr.msra.gmra.mxu1 %v2668_v21  ;;  %3444 = vmatmul.mubr.bf16.vlgmr.msra.gmra.mxu0 %v2668_v21 }
0x1860   :  { %3448 = vmatpush3.bf16.msra.mxu1 %v5361_v39  ;;  %3463 = vmatprep.mubr.msk.bf16.mxu1 %vm3908_vm6, %v5268_v42  ;;  %vm3008_vm6 = vcmask 123904  }
0x1861   :  { %3449 = vmatprep.subr.bf16.mxu1 %v5268_v42 }
0x1864   :  { %3450 = vmatpush3.bf16.msra.mxu1 %v5362_v46 }
0x1865   :  { %3451 = vmatprep.subr.bf16.mxu1 %v5268_v42 }
0x1868   :  { %3452 = vmatpush3.bf16.msra.mxu1 %v5363_v2 }
0x1869   :  { %3453 = vmatprep.subr.bf16.mxu1 %v5268_v42 }
0x186c   :  { %3454 = vmatpush3.bf16.msra.mxu1 %v5364_v7 }
0x186d   :  { %3455 = vmatprep.subr.bf16.mxu1 %v5268_v42 }
0x1870   :  { %3456 = vmatpush3.bf16.msra.mxu1 %v5365_v59 }
0x1871   :  { %3457 = vmatprep.subr.bf16.mxu1 %v5268_v42 }
0x1874   :  { %3458 = vmatpush3.bf16.msra.mxu1 %v5366_v10 }
0x1875   :  { %3459 = vmatprep.subr.bf16.mxu1 %v5268_v42 }
0x1878   :  { %3460 = vmatpush3.bf16.msra.mxu1 %v5367_v24 }
0x1879   :  { %3461 = vmatprep.subr.bf16.mxu1 %v5268_v42 }
0x187c   :  { %3462 = vmatpush3.bf16.msra.mxu1 %v5368_v31 }
0x191f   :  { %v2703_v32 = vpop.f32.mrf.mxu1  ;;  %v5095_v52 = vpop.f32.mrf.mxu0 }
0x1920   :  { %v2704_v12 = vadd.f32 %v2703_v32, %v5370_v36 }
0x1921   :  { %v2705_v28 = vpop.f32.mrf.mxu1  ;;  %v3445_v30 = vpop.f32.mrf.mxu0 }
0x1922   :  { %v2706_v25 = vadd.f32 %v2705_v28, %v5369_v35 }
0x1923   :  { %v2707_v47 = vpop.f32.mrf.mxu1  ;;  %v2747_v4 = vpop.f32.mrf.mxu0 }
0x1924   :  { %v2753_v54 = vrot.slane %v2706_v25, %v4162_v37  ;;  %v2761_v42 = vrot.slane %v2706_v25, %v5371_v40 }
0x1925   :  { %v2708_v5 = vpop.f32.mrf.mxu1  ;;  %v3446_v22 = vpop.f32.mrf.mxu0 }
0x1926   :  { %v2754_v50 = vmul.f32 %v2753_v54, %v2704_v12  ;;  %v2762_v19 = vmul.f32 %v2761_v42, %v2704_v12 }
0x1928   :  { %2800 = vrot.lane.b32.xlu1 %v2754_v50, %s3906_s24  ;;  %v2755_v11 = vsel %vm973_vm8, %v2754_v50, 0.0  ;;  %v2763_v44 = vsel %vm973_vm8, %v2762_v19, 0.0 }
0x1929   :  { %2756 = vadd.xlane.f32.xlu0 %v2755_v11 }
0x192c   :  { %2807 = vrot.lane.b32.xlu1 %v2762_v19, %s3906_s24 }
0x1930   :  { %2838 = vrot.lane.b32.xlu1 %v2754_v50, %s3895_s16 }
0x1934   :  { %2844 = vrot.lane.b32.xlu1 %v2762_v19, %s3895_s16 }
0x1938   :  { %2875 = vrot.lane.b32.xlu1 %v2754_v50, %s3905_s23 }
0x195c   :  { %2764 = vadd.xlane.f32.xlu1 %v2763_v44 }
0x199a   :  { %v2801_v20 = vpop.permute.xlu1 %2800 }
0x199b   :  { %v2803_v29 = vsel %vm973_vm8, %v2801_v20, 0.0 }
0x199c   :  { %2804 = vadd.xlane.f32.xlu0 %v2803_v29 }
0x199e   :  { %v2808_v8 = vpop.permute.xlu1 %2807 }
0x199f   :  { %v2810_v17 = vsel %vm973_vm8, %v2808_v8, 0.0 }
0x19a0   :  { %2811 = vadd.xlane.f32.xlu1 %v2810_v17 }
0x19a2   :  { %v2839_v43 = vpop.permute.xlu1 %2838 }
0x19a3   :  { %v2841_v26 = vsel %vm973_vm8, %v2839_v43, 0.0 }
0x19a4   :  { %2842 = vadd.xlane.f32.xlu0 %v2841_v26 }
0x19a6   :  { %v2845_v1 = vpop.permute.xlu1 %2844 }
0x19a7   :  { %v2847_v56 = vsel %vm973_vm8, %v2845_v1, 0.0 }
0x19a8   :  { %2848 = vadd.xlane.f32.xlu1 %v2847_v56 }
0x19aa   :  { %v2876_v34 = vpop.permute.xlu1 %2875 }
0x19ab   :  { %v2878_v6 = vsel %vm973_vm8, %v2876_v34, 0.0 }
0x19ac   :  { %2879 = vadd.xlane.f32.xlu0 %v2878_v6 }
0x19b2   :  { %v2757_v3 = vpop.xlane.xlu0 %2756 }
0x19b9   :  { %2881 = vrot.lane.b32.xlu1 %v2762_v19, %s3905_s23 }
0x19e5   :  { %v2765_v23 = vpop.xlane.xlu1 %2764 }
0x19e6   :  { %v2766_v13 = vsel %vm985_vm9, %v2757_v3, %v2765_v23  ;;  %v5372_v3 = vmov 1  }
0x19e7   :  { %v2767_v51 = vmul.f32 0.17677669, %v2766_v13 }
0x19e9   :  { %v2768_v58 = vsel %vm988_vm10, %v2767_v51, -inf }
0x19ea   :  { %2769 = vmax.xlane.f32.xlu0 %v2768_v58  ;;  %v5373_v58 = vld [vmem:[#allocation34_spill] sm:$0xff] }
0x1a25   :  { %v2805_v57 = vpop.xlane.xlu0 %2804 }
0x1a29   :  { %v2812_v33 = vpop.xlane.xlu1 %2811 }
0x1a2a   :  { %v2813_v9 = vsel %vm985_vm9, %v2805_v57, %v2812_v33  ;;  %v2745_v57 = vadd.f32 %v5095_v52, %v5373_v58 }
0x1a2b   :  { %v2814_v55 = vmul.f32 0.17677669, %v2813_v9 }
0x1a2c   :  { %v2787_v9 = vrot.slane %v2745_v57, %v4162_v37 }
0x1a2d   :  { %v2815_v48 = vsel %vm988_vm10, %v2814_v55, -inf  ;;  %v2843_v45 = vpop.xlane.xlu0 %2842 }
0x1a2e   :  { %2816 = vmax.xlane.f32.xlu0 %v2815_v48  ;;  %v2796_v48 = vrot.slane %v2745_v57, %v5371_v40 }
0x1a31   :  { %v2849_v18 = vpop.xlane.xlu1 %2848 }
0x1a32   :  { %v2850_v60 = vsel %vm985_vm9, %v2843_v45, %v2849_v18 }
0x1a33   :  { %v2851_v49 = vmul.f32 0.17677669, %v2850_v60 }
0x1a35   :  { %v2852_v61 = vsel %vm988_vm10, %v2851_v49, -inf  ;;  %v2880_v63 = vpop.xlane.xlu0 %2879  ;;  %v2882_v2 = vpop.permute.xlu1 %2881 }
0x1a36   :  { %2853 = vmax.xlane.f32.xlu0 %v2852_v61  ;;  %v2884_v7 = vsel %vm973_vm8, %v2882_v2, 0.0 }
0x1a73   :  { %v2770_v15 = vpop.xlane.xlu0 %2769 }
0x1a74   :  { %v2771_v21 = vsub.f32 %v2767_v51, %v2770_v15 }
0x1a76   :  { %v2772_v16 = vmul.f32 1.442695, %v2771_v21 }
0x1a78   :  { %3714 = vpow2.f32 %v2772_v16 }
0x1a85   :  { %v3715_v39 = vpop.eup %3714 }
0x1a86   :  { %v2774_v46 = vsel %vm988_vm10, %v3715_v39, 0.0 }
0x1a87   :  { %2775 = vadd.xlane.f32.xlu1 %v2774_v46 }
0x1a8b   :  { %2885 = vadd.xlane.f32.xlu1 %v2884_v7 }
0x1ab7   :  { %v2817_v59 = vpop.xlane.xlu0 %2816 }
0x1ab8   :  { %v2818_v10 = vsub.f32 %v2814_v55, %v2817_v59 }
0x1aba   :  { %v2819_v31 = vmul.f32 1.442695, %v2818_v10 }
0x1abc   :  { %3716 = vpow2.f32 %v2819_v31 }
0x1abf   :  { %v2854_v24 = vpop.xlane.xlu0 %2853 }
0x1ac0   :  { %v2855_v32 = vsub.f32 %v2851_v49, %v2854_v24 }
0x1ac2   :  { %v2856_v28 = vmul.f32 1.442695, %v2855_v32 }
0x1ac4   :  { %3718 = vpow2.f32 %v2856_v28 }
0x1ac9   :  { %v3717_v36 = vpop.eup %3716 }
0x1aca   :  { %v2821_v12 = vsel %vm988_vm10, %v3717_v36, 0.0 }
0x1ad1   :  { %v3719_v54 = vpop.eup %3718 }
0x1ad2   :  { %v2858_v50 = vsel %vm988_vm10, %v3719_v54, 0.0 }
0x1b10   :  { %v2776_v30 = vpop.xlane.xlu1 %2775 }
0x1b11   :  { %3720 = vrcp.f32 %v2776_v30 }
0x1b14   :  { %v2886_v35 = vpop.xlane.xlu1 %2885 }
0x1b15   :  { %v2887_v25 = vsel %vm985_vm9, %v2880_v63, %v2886_v35 }
0x1b16   :  { %v2888_v47 = vmul.f32 0.17677669, %v2887_v25 }
0x1b18   :  { %v2889_v4 = vsel %vm988_vm10, %v2888_v47, -inf }
0x1b19   :  { %2890 = vmax.xlane.f32.xlu0 %v2889_v4 }
0x1b1d   :  { %2822 = vadd.xlane.f32.xlu0 %v2821_v12 }
0x1b1e   :  { %v3721_v5 = vpop.eup %3720 }
0x1b1f   :  { %v2778_v22 = vmul.f32 %v3721_v5, %v3715_v39  ;;  %v5374_v5 = vld [vmem:[#allocation13_spill] sm:$0xff] }
0x1b21   :  { %2790 = vperm.xlu1 %3503, %v2778_v22   ;;  %2859 = vadd.xlane.f32.xlu0 %v2858_v50 }
0x1b9c   :  { %v2791_v13 = vpop.permute.xlu1 %2790 }
0x1b9d   :  { %v2797_v15 = vmul.f32 %v2796_v48, %v2791_v13 }
0x1ba2   :  { %v2891_v42 = vpop.xlane.xlu0 %2890 }
0x1ba3   :  { %v2892_v11 = vsub.f32 %v2888_v47, %v2891_v42 }
0x1ba5   :  { %v2893_v19 = vmul.f32 1.442695, %v2892_v11 }
0x1ba6   :  { %v2823_v44 = vpop.xlane.xlu0 %2822 }
0x1ba7   :  { %3722 = vpow2.f32 %v2893_v19 }
0x1ba8   :  { %3724 = vrcp.f32 %v2823_v44 }
0x1baa   :  { %v2860_v20 = vpop.xlane.xlu0 %2859 }
0x1bab   :  { %3726 = vrcp.f32 %v2860_v20 }
0x1bb4   :  { %v3723_v29 = vpop.eup %3722 }
0x1bb5   :  { %v3725_v8 = vpop.eup %3724  ;;  %v2895_v17 = vsel %vm988_vm10, %v3723_v29, 0.0 }
0x1bb6   :  { %2896 = vadd.xlane.f32.xlu0 %v2895_v17  ;;  %v2825_v43 = vmul.f32 %v3725_v8, %v3717_v36 }
0x1bb8   :  { %v3727_v26 = vpop.eup %3726  ;;  %2833 = vperm.xlu1 %3503, %v2825_v43  }
0x1bb9   :  { %v2862_v1 = vmul.f32 %v3727_v26, %v3719_v54  ;;  %v5375_v26 = vld [vmem:[#allocation35_spill] sm:$0xff] }
0x1bbc   :  { %2870 = vperm.xlu1 %3503, %v2862_v1  }
0x1bcc   :  { %2781 = vperm.xlu0 %3496, %v2778_v22  }
0x1bd0   :  { %2828 = vperm.xlu0 %3496, %v2825_v43  }
0x1bd4   :  { %2865 = vperm.xlu0 %3496, %v2862_v1  }
0x1c33   :  { %v2834_v33 = vpop.permute.xlu1 %2833 }
0x1c34   :  { %v2836_v49 = vmul.f32 %v2834_v33, %v2796_v48 }
0x1c37   :  { %v2871_v45 = vpop.permute.xlu1 %2870 }
0x1c38   :  { %v2873_v63 = vmul.f32 %v2871_v45, %v2796_v48 }
0x1c3f   :  { %v2897_v56 = vpop.xlane.xlu0 %2896 }
0x1c40   :  { %3728 = vrcp.f32 %v2897_v56 }
0x1c47   :  { %v2782_v23 = vpop.permute.xlu0 %2781 }
0x1c48   :  { %v2788_v61 = vmul.f32 %v2787_v9, %v2782_v23 }
0x1c4a   :  { %v2798_v2 = vadd.f32 %v2797_v15, %v2788_v61 }
0x1c4b   :  { %v2829_v51 = vpop.permute.xlu0 %2828 }
0x1c4c   :  { %v2831_v18 = vmul.f32 %v2829_v51, %v2787_v9 }
0x1c4d   :  { %v3729_v34 = vpop.eup %3728 }
0x1c4e   :  { %v2899_v6 = vmul.f32 %v3729_v34, %v3723_v29  ;;  %v2837_v21 = vadd.f32 %v2836_v49, %v2831_v18 }
0x1c4f   :  { %v2866_v55 = vpop.permute.xlu0 %2865 }
0x1c50   :  { %2907 = vperm.xlu1 %3503, %v2899_v6   ;;  %2902 = vperm.xlu0 %3496, %v2899_v6   ;;  %v2868_v60 = vmul.f32 %v2866_v55, %v2787_v9  ;;  %v2912_v59 = vsel %vm206_vm3, %v2798_v2, %v2837_v21 }
0x1c52   :  { %v2874_v16 = vadd.f32 %v2873_v63, %v2868_v60 }
0x1c54   :  { %3504 = vset.pattern.permute.xlu0 %v5372_v3  ;;  %v2913_v10 = vsel %vm208_vm4, %v2912_v59, %v2874_v16  ;;  %vm3004_vm4 = vcmask 64512  }
0x1ccb   :  { %v2908_v39 = vpop.permute.xlu1 %2907  ;;  %v2903_v46 = vpop.permute.xlu0 %2902 }
0x1ccc   :  { %v2910_v7 = vmul.f32 %v2908_v39, %v2796_v48  ;;  %v2905_v52 = vmul.f32 %v2903_v46, %v2787_v9 }
0x1cce   :  { %v2911_v37 = vadd.f32 %v2910_v7, %v2905_v52 }
0x1cd0   :  { %v2914_v40 = vsel %vm210_vm5, %v2913_v10, %v2911_v37  ;;  %vm3006_vm5 = vcmask 97280  }
0x1cd1   :  { %v2915_v24 = vpack.c.bf16 %v2914_v40, %v2914_v40 }
0x1cd3   :  { %3464 = vmatmul.mubr.bf16.vlgmr.msra.gmra.mxu1 %v2915_v24 }
0x1d93   :  { %v2950_v31 = vpop.f32.mrf.mxu1 }
0x1d94   :  { %v2951_v32 = vadd.f32 %v4979_v14, %v2950_v31 }
0x1d95   :  { %v3465_v28 = vpop.f32.mrf.mxu1 }
0x1d96   :  { %v2968_v30 = vmul.f32 %v2951_v32, %v4406_v41  ;;  %v2960_v35 = vmul.f32 %v2951_v32, %v4399_v62  ;;  %v2956_v4 = vmul.f32 %v2951_v32, %v4418_v0  ;;  %v2976_v62 = vmul.f32 %v2951_v32, %v4411_v38 }
0x1d97   :  { %v2953_v25 = vpop.f32.mrf.mxu1 }
0x1d98   :  { %2970 = vrot.lane.b32.xlu1 %v2968_v30, %s3895_s16  ;;  %2962 = vrot.lane.b32.xlu0 %v2960_v35, %s3906_s24  ;;  %v2957_v36 = vsel %vm973_vm8, %v2956_v4, 0.0 }
0x1d99   :  { %v3466_v47 = vpop.f32.mrf.mxu1 }
0x1dbc   :  { %2958 = vadd.xlane.f32.xlu1 %v2957_v36 }
0x1e0a   :  { %v2963_v12 = vpop.permute.xlu0 %2962  ;;  %v2971_v14 = vpop.permute.xlu1 %2970 }
0x1e0b   :  { %v2965_v54 = vsel %vm973_vm8, %v2963_v12, 0.0  ;;  %v2973_v41 = vsel %vm973_vm8, %v2971_v14, 0.0 }
0x1e0c   :  { %2966 = vadd.xlane.f32.xlu0 %v2965_v54 }
0x1e10   :  { %2974 = vadd.xlane.f32.xlu0 %v2973_v41 }
0x1e26   :  { %2978 = vrot.lane.b32.xlu0 %v2976_v62, %s3905_s23 }
0x1e2a   :  { %2992 = vrot.lane.b32.xlu0 %v5374_v5, %s3896_s17 }
0x1e2e   :  { %2996 = vrot.lane.b32.xlu0 %v5002_v53, %s3910_s13 }
0x1e45   :  { %v2959_v22 = vpop.xlane.xlu1 %2958 }
0x1e95   :  { %v2967_v0 = vpop.xlane.xlu0 %2966 }
0x1e96   :  { %v2984_v50 = vsel %vm985_vm9, %v2959_v22, %v2967_v0 }
0x1e99   :  { %v2975_v42 = vpop.xlane.xlu0 %2974 }
0x1e9a   :  { %v2985_v11 = vsel %vm1288_vm11, %v2984_v50, %v2975_v42 }
0x1e9d   :  { %v2979_v19 = vpop.permute.xlu0 %2978 }
0x1e9e   :  { %v2981_v44 = vsel %vm973_vm8, %v2979_v19, 0.0 }
0x1e9f   :  { %2982 = vadd.xlane.f32.xlu1 %v2981_v44 }
0x1ea1   :  { %v2993_v53 = vpop.permute.xlu0 %2992 }
0x1ea2   :  { %v3003_v1 = vsel %vm254_vm2, %v5375_v26, %v2993_v53 }
0x1ea5   :  { %v2997_v43 = vpop.permute.xlu0 %2996 }
0x1ea6   :  { %v3005_v56 = vsel %vm3004_vm4, %v3003_v1, %v2997_v43 }
0x1f28   :  { %v2983_v38 = vpop.xlane.xlu1 %2982 }
0x1f29   :  { %v2986_v20 = vsel %vm1290_vm12, %v2985_v11, %v2983_v38 }
0x1f2a   :  { %v2987_v29 = vadd.f32 %v4999_v27, %v2986_v20 }
0x1f2c   :  { %vm2988_vm3 = vcmp.ge.f32.partialorder %v2987_v29, 0.0  ;;  %v2989_v8 = vmul.f32 0.01, %v2987_v29 }
0x1f2e   :  { %v2990_v17 = vsel %vm2988_vm3, %v2987_v29, %v2989_v8 }
0x1f2f   :  { %3000 = vrot.lane.b32.xlu0 %v2990_v17, %s3902_s30 }
0x1fa1   :  { %v3001_v34 = vpop.permute.xlu0 %3000 }
0x1fa2   :  { %v3007_v6 = vsel %vm3006_vm5, %v3005_v56, %v3001_v34 }
0x1fa3   :  { %3009 = vst.msk [vmem:[%s5174_s14] sm:$0x3] %vm3008_vm6, %v3007_v6 }
0x1fa4   :  { %3014 = vsyncpa [#allocation3], 1 }
0x1fa5   :  { %3015 = vsyncpa [#allocation5], 1 }

</bundles_post_ra>
